<compile_context>
chip_gen: v7x
topology: tpu7x:2x2x1
jax: 0.10.0
libtpu: 0.0.40
codegen_flags: <defaults>
</compile_context>

<pallas_src>
import jax
import jax.numpy as jnp
from jax.experimental import pallas as pl
from jax.experimental.pallas import tpu as pltpu


def _round_up(x, m):
    return (x + m - 1) // m * m


# ----------------------------------------------------------------------------
# Pallas kernels
# ----------------------------------------------------------------------------
def _matmul_kernel(a_ref, b_ref, o_ref):
    # K-resident f32 output block: zero at k==0, accumulate directly in place.
    @pl.when(pl.program_id(2) == 0)
    def _():
        o_ref[...] = jnp.zeros_like(o_ref)

    o_ref[...] += jnp.dot(a_ref[...], b_ref[...],
                          preferred_element_type=jnp.float32)


def pallas_matmul(a, b, tm=256, tk=256, tn=256):
    """(M, K) @ (K, N) -> (M, N) f32.  Operands cast to bf16, f32 accumulation.
    All dims are zero-padded to tile multiples internally (exact result)."""
    M, K = a.shape
    K2, N = b.shape
    assert K == K2
    tm = min(tm, _round_up(M, 8))
    tk = min(tk, _round_up(K, 128))
    tn = min(tn, _round_up(N, 128))
    Mp, Kp, Np = _round_up(M, tm), _round_up(K, tk), _round_up(N, tn)
    a = a.astype(jnp.bfloat16)
    b = b.astype(jnp.bfloat16)
    if (Mp, Kp) != (M, K):
        a = jnp.pad(a, ((0, Mp - M), (0, Kp - K)))
    if (Kp, Np) != (K, N):
        b = jnp.pad(b, ((0, Kp - K), (0, Np - N)))
    out = pl.pallas_call(
        _matmul_kernel,
        out_shape=jax.ShapeDtypeStruct((Mp, Np), jnp.float32),
        grid_spec=pltpu.PrefetchScalarGridSpec(
            num_scalar_prefetch=0, grid=(Mp // tm, Np // tn, Kp // tk),
            in_specs=[pl.BlockSpec((tm, tk), lambda i, j, k: (i, k)),
                      pl.BlockSpec((tk, tn), lambda i, j, k: (k, j))],
            out_specs=pl.BlockSpec((tm, tn), lambda i, j, k: (i, j))),
        compiler_params=pltpu.CompilerParams(
            dimension_semantics=("parallel", "parallel", "arbitrary")),
    )(a, b)
    if (Mp, Np) != (M, N):
        out = out[:M, :N]
    return out


def _colstats_kernel(y_ref, o_ref):
    # Row 0: per-column sum; row 1: per-column sum of squares.
    @pl.when(pl.program_id(0) == 0)
    def _():
        o_ref[...] = jnp.zeros_like(o_ref)

    y = y_ref[...]
    s = jnp.sum(y, axis=0, keepdims=True)
    sq = jnp.sum(y * y, axis=0, keepdims=True)
    o_ref[...] += jnp.concatenate([s, sq], axis=0)


def pallas_colstats(y, tm=512):
    M, C = y.shape
    tm = min(tm, _round_up(M, 8))
    Mp = _round_up(M, tm)
    if Mp != M:
        y = jnp.pad(y, ((0, Mp - M), (0, 0)))  # zero rows contribute nothing
    return pl.pallas_call(
        _colstats_kernel,
        out_shape=jax.ShapeDtypeStruct((2, C), jnp.float32),
        grid_spec=pltpu.PrefetchScalarGridSpec(
            num_scalar_prefetch=0, grid=(Mp // tm,),
            in_specs=[pl.BlockSpec((tm, C), lambda i: (i, 0))],
            out_specs=pl.BlockSpec((2, C), lambda i: (0, 0))),
        compiler_params=pltpu.CompilerParams(
            dimension_semantics=("arbitrary",)),
    )(y)


def _bn_relu_kernel(y_ref, scale_ref, shift_ref, o_ref):
    o_ref[...] = jnp.maximum(
        y_ref[...] * scale_ref[...] + shift_ref[...], 0.0).astype(o_ref.dtype)


def pallas_bn_relu(y, scale, shift, tm=512, out_dtype=jnp.bfloat16):
    M, C = y.shape
    tm = min(tm, _round_up(M, 8))
    Mp = _round_up(M, tm)
    if Mp != M:
        y = jnp.pad(y, ((0, Mp - M), (0, 0)))
    out = pl.pallas_call(
        _bn_relu_kernel,
        out_shape=jax.ShapeDtypeStruct((Mp, C), out_dtype),
        grid_spec=pltpu.PrefetchScalarGridSpec(
            num_scalar_prefetch=0, grid=(Mp // tm,),
            in_specs=[pl.BlockSpec((tm, C), lambda i: (i, 0)),
                      pl.BlockSpec((1, C), lambda i: (0, 0)),
                      pl.BlockSpec((1, C), lambda i: (0, 0))],
            out_specs=pl.BlockSpec((tm, C), lambda i: (i, 0))),
        compiler_params=pltpu.CompilerParams(
            dimension_semantics=("parallel",)),
    )(y, scale, shift)
    return out[:M] if Mp != M else out


def _tanh_kernel(y_ref, o_ref):
    o_ref[...] = jnp.tanh(y_ref[...])


def pallas_tanh_flat(x, tm=256, tn=512):
    """Elementwise tanh on a fully lane-dense flattened (rows, 512) view."""
    shape = x.shape
    flat = x.reshape(-1)
    L = flat.shape[0]
    Lp = _round_up(L, tn)
    if Lp != L:
        flat = jnp.pad(flat, (0, Lp - L))
    y2 = flat.reshape(-1, tn)
    M = y2.shape[0]
    tm = min(tm, _round_up(M, 8))
    Mp = _round_up(M, tm)
    if Mp != M:
        y2 = jnp.pad(y2, ((0, Mp - M), (0, 0)))
    out = pl.pallas_call(
        _tanh_kernel,
        out_shape=jax.ShapeDtypeStruct((Mp, tn), jnp.float32),
        grid_spec=pltpu.PrefetchScalarGridSpec(
            num_scalar_prefetch=0, grid=(Mp // tm,),
            in_specs=[pl.BlockSpec((tm, tn), lambda i: (i, 0))],
            out_specs=pl.BlockSpec((tm, tn), lambda i: (i, 0))),
        compiler_params=pltpu.CompilerParams(
            dimension_semantics=("parallel",)),
    )(y2)
    return out.reshape(-1)[:L].reshape(shape)


# ----------------------------------------------------------------------------
# ConvTranspose2d = Pallas matmul (no im2col / no zero-dilation) + cheap col2im
# ----------------------------------------------------------------------------
def _shift1(a, d, axis):
    """result[..., m, ...] = a[..., m + d, ...]; zero where out of range."""
    if d == 0:
        return a
    n = a.shape[axis]
    zshape = list(a.shape)
    zshape[axis] = 1
    z = jnp.zeros(zshape, a.dtype)
    idx = [slice(None)] * a.ndim
    if d == 1:
        idx[axis] = slice(1, n)
        return jnp.concatenate([a[tuple(idx)], z], axis=axis)
    idx[axis] = slice(0, n - 1)
    return jnp.concatenate([z, a[tuple(idx)]], axis=axis)


def _col2im(y6, stride, padding):
    """Scatter Y[n,iy,ix,ky,kx,co] to out[n, iy*s+ky-p, ix*s+kx-p, co] (+)."""
    N, H, W, k, _, Co = y6.shape
    s, p = stride, padding
    if s == 1 and p == 0 and H == 1 and W == 1:
        return y6.reshape(N, k, k, Co)
    if p == 0 and s == k:
        # Non-overlapping sub-pixel shuffle.
        return jnp.transpose(y6, (0, 1, 3, 2, 4, 5)).reshape(N, H * k, W * k, Co)
    if s == 2 and k == 4 and p == 1:
        # Output phase r in {0,1}: contributing (kernel tap, input shift) pairs.
        taps = {0: ((1, 0), (3, -1)), 1: ((0, 1), (2, 0))}
        phases = []
        for r in (0, 1):
            for c in (0, 1):
                acc = None
                for ky, dy in taps[r]:
                    for kx, dx in taps[c]:
                        t = y6[:, :, :, ky, kx, :]
                        t = _shift1(t, dy, axis=1)
                        t = _shift1(t, dx, axis=2)
                        acc = t if acc is None else acc + t
                phases.append(acc)
        ph = jnp.stack(phases, axis=0).reshape(2, 2, N, H, W, Co)
        return jnp.transpose(ph, (2, 3, 0, 4, 1, 5)).reshape(N, 2 * H, 2 * W, Co)
    raise NotImplementedError(f"col2im for stride={s}, k={k}, pad={p}")


def conv_transpose_layer(x_nhwc, w_t, stride, padding):
    """ConvTranspose2d(bias=False).  x_nhwc: (N,H,W,Ci); w_t: (Ci,Co,k,k)."""
    N, H, W, Ci = x_nhwc.shape
    Ci2, Co, k, _ = w_t.shape
    assert Ci == Ci2
    OH = (H - 1) * stride - 2 * padding + k
    OW = (W - 1) * stride - 2 * padding + k

    a = x_nhwc.reshape(N * H * W, Ci)
    # W_mat[ci, (ky,kx,co)] = w[ci, co, ky, kx]
    b = jnp.transpose(w_t, (0, 2, 3, 1)).reshape(Ci, k * k * Co)
    y = pallas_matmul(a, b)                          # (N*H*W, k*k*Co) f32
    y6 = y.reshape(N, H, W, k, k, Co)
    out = _col2im(y6, stride, padding)
    assert out.shape == (N, OH, OW, Co), (out.shape, (N, OH, OW, Co))
    return out


def batchnorm_relu(x_nhwc, gamma, beta, eps=1e-5):
    """Training-mode BatchNorm2d (batch stats, biased variance) + ReLU."""
    N, H, W, C = x_nhwc.shape
    M = N * H * W
    y = x_nhwc.reshape(M, C)
    fold = 1
    if C < 128 and 128 % C == 0 and M % (128 // C) == 0:
        fold = 128 // C                   # lane-dense view for small channel counts
        y = y.reshape(M // fold, C * fold)
    Cr = y.shape[1]

    stats = pallas_colstats(y)                            # (2, Cr)
    stats = stats.reshape(2, fold, C).sum(axis=1)         # fold back -> (2, C)
    mean = stats[0] / M
    var = jnp.maximum(stats[1] / M - mean * mean, 0.0)    # clamp cancellation
    scale = gamma * jax.lax.rsqrt(var + eps)
    shift = beta - mean * scale
    if fold > 1:
        scale_r = jnp.tile(scale, fold).reshape(1, Cr)
        shift_r = jnp.tile(shift, fold).reshape(1, Cr)
    else:
        scale_r = scale.reshape(1, Cr)
        shift_r = shift.reshape(1, Cr)

    out = pallas_bn_relu(y, scale_r, shift_r)             # bf16
    return out.reshape(N, H, W, C)


# ----------------------------------------------------------------------------
# Generator: parameters + forward
# ----------------------------------------------------------------------------
NC, NZ, NGF = 3, 100, 64
# (stride, padding) for each ConvTranspose2d in self.main
LAYER_CFG = [(1, 0), (2, 1), (2, 1), (4, 0), (2, 1)]
WEIGHT_SHAPES = [
    (NZ, NGF * 8, 7, 7),
    (NGF * 8, NGF * 4, 4, 4),
    (NGF * 4, NGF * 2, 4, 4),
    (NGF * 2, NGF, 4, 4),
    (NGF, NC, 4, 4),
]


def init_params(key):
    params = {}
    keys = jax.random.split(key, len(WEIGHT_SHAPES))
    for i, shape in enumerate(WEIGHT_SHAPES):
        params[f"w{i}"] = 0.05 * jax.random.normal(keys[i], shape, jnp.float32)
        if i < 4:  # BatchNorm2d defaults: weight=1, bias=0
            co = shape[1]
            params[f"gamma{i}"] = jnp.ones((co,), jnp.float32)
            params[f"beta{i}"] = jnp.zeros((co,), jnp.float32)
    return params


@jax.jit
def generator_forward(params, z_nchw, labels):
    del labels  # unused, matches the PyTorch forward signature
    x = jnp.transpose(z_nchw, (0, 2, 3, 1)).astype(jnp.float32)  # NCHW -> NHWC
    for li, (s, p) in enumerate(LAYER_CFG):
        y = conv_transpose_layer(x, params[f"w{li}"], s, p)
        if li < 4:
            x = batchnorm_relu(y, params[f"gamma{li}"], params[f"beta{li}"])
        else:
            x = pallas_tanh_flat(y)
    return jnp.transpose(x, (0, 3, 1, 2))  # NHWC -> NCHW


if __name__ == "__main__":
    key = jax.random.PRNGKey(0)
    k_param, k_z = jax.random.split(key)
    params = init_params(k_param)

    batch = 2
    z = jax.random.normal(k_z, (batch, NZ, 1, 1), jnp.float32)
    labels = jnp.zeros((batch,), jnp.int32)  # ignored by the forward pass

    out = generator_forward(params, z, labels)
    out = jax.block_until_ready(out)

    assert out.shape == (batch, NC, 224, 224), out.shape
    assert out.dtype == jnp.float32
    assert bool(jnp.all(jnp.isfinite(out)))
    assert bool(jnp.all(jnp.abs(out) <= 1.0 + 1e-5))  # tanh range
    print("KERNEL_OK")
</pallas_src>

<mosaic_0001>
module attributes {stable_mosaic.version = 11 : i64} {
  func.func @_matmul_kernel(%arg0: i32, %arg1: i32, %arg2: i32, %arg3: memref<8x128xbf16, #tpu.memory_space<vmem>>, %arg4: memref<128x256xbf16, #tpu.memory_space<vmem>>, %arg5: memref<8x256xf32, #tpu.memory_space<vmem>>) attributes {dimension_semantics = [#tpu.dimension_semantics<parallel>, #tpu.dimension_semantics<parallel>, #tpu.dimension_semantics<arbitrary>], iteration_bounds = array<i64: 1, 98, 1>, scalar_prefetch = 0 : i64, scratch_operands = 0 : i64, tpu.core_type = #tpu.core_type<tc>, window_params = [{transform_indices = @transform_0, window_bounds = array<i64: 8, 128>}, {transform_indices = @transform_1, window_bounds = array<i64: 128, 256>}, {transform_indices = @transform_2, window_bounds = array<i64: 8, 256>}]} {
    %c0_i32 = arith.constant 0 : i32
    %0 = arith.cmpi eq, %arg2, %c0_i32 : i32
    %1 = arith.extui %0 : i1 to i32
    %c0_i32_0 = arith.constant 0 : i32
    %2 = arith.cmpi ne, %1, %c0_i32_0 : i32
    scf.if %2 {
      %cst_8 = arith.constant 0.000000e+00 : f32
      %9 = vector.broadcast %cst_8 : f32 to vector<8x256xf32>
      %c0_9 = arith.constant 0 : index
      %c0_10 = arith.constant 0 : index
      %10 = vector.load %arg5[%c0_9, %c0_10] : memref<8x256xf32, #tpu.memory_space<vmem>>, vector<8x256xf32>
      tpu.vector_store %arg5[%c0_9, %c0_10], %9 {strides = array<i32>} : memref<8x256xf32, #tpu.memory_space<vmem>>, vector<8x256xf32>,
    } else {
    }
    %c0 = arith.constant 0 : index
    %c0_1 = arith.constant 0 : index
    %3 = vector.load %arg5[%c0, %c0_1] : memref<8x256xf32, #tpu.memory_space<vmem>>, vector<8x256xf32>
    %c0_2 = arith.constant 0 : index
    %c0_3 = arith.constant 0 : index
    %4 = vector.load %arg3[%c0_2, %c0_3] : memref<8x128xbf16, #tpu.memory_space<vmem>>, vector<8x128xbf16>
    %c0_4 = arith.constant 0 : index
    %c0_5 = arith.constant 0 : index
    %5 = vector.load %arg4[%c0_4, %c0_5] : memref<128x256xbf16, #tpu.memory_space<vmem>>, vector<128x256xbf16>
    %cst = arith.constant dense<0.000000e+00> : vector<8x256xf32>
    %6 = tpu.matmul %4, %5, %cst {dimension_numbers = #tpu.dot_dimension_numbers<[1], [0], [0], [1], [0, 0, 1, 1], [], []>} : vector<8x128xbf16>, vector<128x256xbf16>, vector<8x256xf32> -> vector<8x256xf32>
    %7 = arith.addf %3, %6 : vector<8x256xf32>
    %c0_6 = arith.constant 0 : index
    %c0_7 = arith.constant 0 : index
    %8 = vector.load %arg5[%c0_6, %c0_7] : memref<8x256xf32, #tpu.memory_space<vmem>>, vector<8x256xf32>
    tpu.vector_store %arg5[%c0_6, %c0_7], %7 {strides = array<i32>} : memref<8x256xf32, #tpu.memory_space<vmem>>, vector<8x256xf32>,
    return
  }
  func.func @transform_0(%arg0: i32, %arg1: i32, %arg2: i32) -> (i32, i32) {
    %c0_i32 = arith.constant 0 : i32
    return %arg0, %arg2 : i32, i32
  }
  func.func @transform_1(%arg0: i32, %arg1: i32, %arg2: i32) -> (i32, i32) {
    %c0_i32 = arith.constant 0 : i32
    return %arg2, %arg1 : i32, i32
  }
  func.func @transform_2(%arg0: i32, %arg1: i32, %arg2: i32) -> (i32, i32) {
    %c0_i32 = arith.constant 0 : i32
    return %arg0, %arg1 : i32, i32
  }
}

module attributes {stable_mosaic.version = 11 : i64} {
  func.func @_colstats_kernel(%arg0: i32, %arg1: memref<104x512xf32, #tpu.memory_space<vmem>>, %arg2: memref<2x512xf32, #tpu.memory_space<vmem>>) attributes {dimension_semantics = [#tpu.dimension_semantics<arbitrary>], iteration_bounds = array<i64: 1>, scalar_prefetch = 0 : i64, scratch_operands = 0 : i64, tpu.core_type = #tpu.core_type<tc>, window_params = [{transform_indices = @transform_0, window_bounds = array<i64: 104, 512>}, {pipeline_mode = #tpu.pipeline_mode<synchronous>, transform_indices = @transform_1, window_bounds = array<i64: 2, 512>}]} {
    %c0_i32 = arith.constant 0 : i32
    %0 = arith.cmpi eq, %arg0, %c0_i32 : i32
    %1 = arith.extui %0 : i1 to i32
    %c0_i32_0 = arith.constant 0 : i32
    %2 = arith.cmpi ne, %1, %c0_i32_0 : i32
    scf.if %2 {
      %cst_7 = arith.constant 0.000000e+00 : f32
      %13 = vector.broadcast %cst_7 : f32 to vector<2x512xf32>
      %c0_8 = arith.constant 0 : index
      %c0_9 = arith.constant 0 : index
      %14 = vector.load %arg2[%c0_8, %c0_9] : memref<2x512xf32, #tpu.memory_space<vmem>>, vector<2x512xf32>
      tpu.vector_store %arg2[%c0_8, %c0_9], %13 {strides = array<i32>} : memref<2x512xf32, #tpu.memory_space<vmem>>, vector<2x512xf32>,
    } else {
    }
    %c0 = arith.constant 0 : index
    %c0_1 = arith.constant 0 : index
    %3 = vector.load %arg1[%c0, %c0_1] : memref<104x512xf32, #tpu.memory_space<vmem>>, vector<104x512xf32>
    %cst = arith.constant dense<0.000000e+00> : vector<512xf32>
    %4 = vector.multi_reduction <add>, %3, %cst [0] : vector<104x512xf32> to vector<512xf32>
    %5 = vector.shape_cast %4 : vector<512xf32> to vector<1x512xf32>
    %6 = arith.mulf %3, %3 : vector<104x512xf32>
    %cst_2 = arith.constant dense<0.000000e+00> : vector<512xf32>
    %7 = vector.multi_reduction <add>, %6, %cst_2 [0] : vector<104x512xf32> to vector<512xf32>
    %8 = vector.shape_cast %7 : vector<512xf32> to vector<1x512xf32>
    %c0_3 = arith.constant 0 : index
    %c0_4 = arith.constant 0 : index
    %9 = vector.load %arg2[%c0_3, %c0_4] : memref<2x512xf32, #tpu.memory_space<vmem>>, vector<2x512xf32>
    %10 = tpu.concatenate %5, %8 in 0 : vector<1x512xf32>, vector<1x512xf32> -> vector<2x512xf32>
    %11 = arith.addf %9, %10 : vector<2x512xf32>
    %c0_5 = arith.constant 0 : index
    %c0_6 = arith.constant 0 : index
    %12 = vector.load %arg2[%c0_5, %c0_6] : memref<2x512xf32, #tpu.memory_space<vmem>>, vector<2x512xf32>
    tpu.vector_store %arg2[%c0_5, %c0_6], %11 {strides = array<i32>} : memref<2x512xf32, #tpu.memory_space<vmem>>, vector<2x512xf32>,
    return
  }
  func.func @transform_0(%arg0: i32) -> (i32, i32) {
    %c0_i32 = arith.constant 0 : i32
    %c0_i32_0 = arith.constant 0 : i32
    return %arg0, %c0_i32 : i32, i32
  }
  func.func @transform_1(%arg0: i32) -> (i32, i32) {
    %c0_i32 = arith.constant 0 : i32
    %c0_i32_0 = arith.constant 0 : i32
    %c0_i32_1 = arith.constant 0 : i32
    return %c0_i32, %c0_i32_0 : i32, i32
  }
}

module attributes {stable_mosaic.version = 11 : i64} {
  func.func @_matmul_kernel(%arg0: i32, %arg1: i32, %arg2: i32, %arg3: memref<104x256xbf16, #tpu.memory_space<vmem>>, %arg4: memref<256x256xbf16, #tpu.memory_space<vmem>>, %arg5: memref<104x256xf32, #tpu.memory_space<vmem>>) attributes {dimension_semantics = [#tpu.dimension_semantics<parallel>, #tpu.dimension_semantics<parallel>, #tpu.dimension_semantics<arbitrary>], iteration_bounds = array<i64: 1, 16, 2>, scalar_prefetch = 0 : i64, scratch_operands = 0 : i64, tpu.core_type = #tpu.core_type<tc>, window_params = [{transform_indices = @transform_0, window_bounds = array<i64: 104, 256>}, {transform_indices = @transform_1, window_bounds = array<i64: 256, 256>}, {transform_indices = @transform_2, window_bounds = array<i64: 104, 256>}]} {
    %c0_i32 = arith.constant 0 : i32
    %0 = arith.cmpi eq, %arg2, %c0_i32 : i32
    %1 = arith.extui %0 : i1 to i32
    %c0_i32_0 = arith.constant 0 : i32
    %2 = arith.cmpi ne, %1, %c0_i32_0 : i32
    scf.if %2 {
      %cst_8 = arith.constant 0.000000e+00 : f32
      %9 = vector.broadcast %cst_8 : f32 to vector<104x256xf32>
      %c0_9 = arith.constant 0 : index
      %c0_10 = arith.constant 0 : index
      %10 = vector.load %arg5[%c0_9, %c0_10] : memref<104x256xf32, #tpu.memory_space<vmem>>, vector<104x256xf32>
      tpu.vector_store %arg5[%c0_9, %c0_10], %9 {strides = array<i32>} : memref<104x256xf32, #tpu.memory_space<vmem>>, vector<104x256xf32>,
    } else {
    }
    %c0 = arith.constant 0 : index
    %c0_1 = arith.constant 0 : index
    %3 = vector.load %arg5[%c0, %c0_1] : memref<104x256xf32, #tpu.memory_space<vmem>>, vector<104x256xf32>
    %c0_2 = arith.constant 0 : index
    %c0_3 = arith.constant 0 : index
    %4 = vector.load %arg3[%c0_2, %c0_3] : memref<104x256xbf16, #tpu.memory_space<vmem>>, vector<104x256xbf16>
    %c0_4 = arith.constant 0 : index
    %c0_5 = arith.constant 0 : index
    %5 = vector.load %arg4[%c0_4, %c0_5] : memref<256x256xbf16, #tpu.memory_space<vmem>>, vector<256x256xbf16>
    %cst = arith.constant dense<0.000000e+00> : vector<104x256xf32>
    %6 = tpu.matmul %4, %5, %cst {dimension_numbers = #tpu.dot_dimension_numbers<[1], [0], [0], [1], [0, 0, 1, 1], [], []>} : vector<104x256xbf16>, vector<256x256xbf16>, vector<104x256xf32> -> vector<104x256xf32>
    %7 = arith.addf %3, %6 : vector<104x256xf32>
    %c0_6 = arith.constant 0 : index
    %c0_7 = arith.constant 0 : index
    %8 = vector.load %arg5[%c0_6, %c0_7] : memref<104x256xf32, #tpu.memory_space<vmem>>, vector<104x256xf32>
    tpu.vector_store %arg5[%c0_6, %c0_7], %7 {strides = array<i32>} : memref<104x256xf32, #tpu.memory_space<vmem>>, vector<104x256xf32>,
    return
  }
  func.func @transform_0(%arg0: i32, %arg1: i32, %arg2: i32) -> (i32, i32) {
    %c0_i32 = arith.constant 0 : i32
    return %arg0, %arg2 : i32, i32
  }
  func.func @transform_1(%arg0: i32, %arg1: i32, %arg2: i32) -> (i32, i32) {
    %c0_i32 = arith.constant 0 : i32
    return %arg2, %arg1 : i32, i32
  }
  func.func @transform_2(%arg0: i32, %arg1: i32, %arg2: i32) -> (i32, i32) {
    %c0_i32 = arith.constant 0 : i32
    return %arg0, %arg1 : i32, i32
  }
}

module attributes {stable_mosaic.version = 11 : i64} {
  func.func @_bn_relu_kernel(%arg0: i32, %arg1: memref<104x512xf32, #tpu.memory_space<vmem>>, %arg2: memref<1x512xf32, #tpu.memory_space<vmem>>, %arg3: memref<1x512xf32, #tpu.memory_space<vmem>>, %arg4: memref<104x512xbf16, #tpu.memory_space<vmem>>) attributes {dimension_semantics = [#tpu.dimension_semantics<parallel>], iteration_bounds = array<i64: 1>, scalar_prefetch = 0 : i64, scratch_operands = 0 : i64, tpu.core_type = #tpu.core_type<tc>, window_params = [{transform_indices = @transform_0, window_bounds = array<i64: 104, 512>}, {pipeline_mode = #tpu.pipeline_mode<synchronous>, transform_indices = @transform_1, window_bounds = array<i64: 1, 512>}, {pipeline_mode = #tpu.pipeline_mode<synchronous>, transform_indices = @transform_2, window_bounds = array<i64: 1, 512>}, {transform_indices = @transform_3, window_bounds = array<i64: 104, 512>}]} {
    %c0 = arith.constant 0 : index
    %c0_0 = arith.constant 0 : index
    %0 = vector.load %arg1[%c0, %c0_0] : memref<104x512xf32, #tpu.memory_space<vmem>>, vector<104x512xf32>
    %c0_1 = arith.constant 0 : index
    %c0_2 = arith.constant 0 : index
    %1 = vector.load %arg2[%c0_1, %c0_2] : memref<1x512xf32, #tpu.memory_space<vmem>>, vector<1x512xf32>
    %2 = vector.broadcast %1 : vector<1x512xf32> to vector<104x512xf32>
    %3 = arith.mulf %0, %2 : vector<104x512xf32>
    %c0_3 = arith.constant 0 : index
    %c0_4 = arith.constant 0 : index
    %4 = vector.load %arg3[%c0_3, %c0_4] : memref<1x512xf32, #tpu.memory_space<vmem>>, vector<1x512xf32>
    %5 = vector.broadcast %4 : vector<1x512xf32> to vector<104x512xf32>
    %6 = arith.addf %3, %5 : vector<104x512xf32>
    %cst = arith.constant 0.000000e+00 : f32
    %7 = vector.broadcast %cst : f32 to vector<104x512xf32>
    %8 = arith.maximumf %6, %7 : vector<104x512xf32>
    %9 = arith.truncf %8 : vector<104x512xf32> to vector<104x512xbf16>
    %c0_5 = arith.constant 0 : index
    %c0_6 = arith.constant 0 : index
    %10 = vector.load %arg4[%c0_5, %c0_6] : memref<104x512xbf16, #tpu.memory_space<vmem>>, vector<104x512xbf16>
    tpu.vector_store %arg4[%c0_5, %c0_6], %9 {strides = array<i32>} : memref<104x512xbf16, #tpu.memory_space<vmem>>, vector<104x512xbf16>,
    return
  }
  func.func @transform_0(%arg0: i32) -> (i32, i32) {
    %c0_i32 = arith.constant 0 : i32
    %c0_i32_0 = arith.constant 0 : i32
    return %arg0, %c0_i32 : i32, i32
  }
  func.func @transform_1(%arg0: i32) -> (i32, i32) {
    %c0_i32 = arith.constant 0 : i32
    %c0_i32_0 = arith.constant 0 : i32
    %c0_i32_1 = arith.constant 0 : i32
    return %c0_i32, %c0_i32_0 : i32, i32
  }
  func.func @transform_2(%arg0: i32) -> (i32, i32) {
    %c0_i32 = arith.constant 0 : i32
    %c0_i32_0 = arith.constant 0 : i32
    %c0_i32_1 = arith.constant 0 : i32
    return %c0_i32, %c0_i32_0 : i32, i32
  }
  func.func @transform_3(%arg0: i32) -> (i32, i32) {
    %c0_i32 = arith.constant 0 : i32
    %c0_i32_0 = arith.constant 0 : i32
    return %arg0, %c0_i32 : i32, i32
  }
}

module attributes {stable_mosaic.version = 11 : i64} {
  func.func @_colstats_kernel(%arg0: i32, %arg1: memref<392x256xf32, #tpu.memory_space<vmem>>, %arg2: memref<2x256xf32, #tpu.memory_space<vmem>>) attributes {dimension_semantics = [#tpu.dimension_semantics<arbitrary>], iteration_bounds = array<i64: 1>, scalar_prefetch = 0 : i64, scratch_operands = 0 : i64, tpu.core_type = #tpu.core_type<tc>, window_params = [{transform_indices = @transform_0, window_bounds = array<i64: 392, 256>}, {pipeline_mode = #tpu.pipeline_mode<synchronous>, transform_indices = @transform_1, window_bounds = array<i64: 2, 256>}]} {
    %c0_i32 = arith.constant 0 : i32
    %0 = arith.cmpi eq, %arg0, %c0_i32 : i32
    %1 = arith.extui %0 : i1 to i32
    %c0_i32_0 = arith.constant 0 : i32
    %2 = arith.cmpi ne, %1, %c0_i32_0 : i32
    scf.if %2 {
      %cst_7 = arith.constant 0.000000e+00 : f32
      %13 = vector.broadcast %cst_7 : f32 to vector<2x256xf32>
      %c0_8 = arith.constant 0 : index
      %c0_9 = arith.constant 0 : index
      %14 = vector.load %arg2[%c0_8, %c0_9] : memref<2x256xf32, #tpu.memory_space<vmem>>, vector<2x256xf32>
      tpu.vector_store %arg2[%c0_8, %c0_9], %13 {strides = array<i32>} : memref<2x256xf32, #tpu.memory_space<vmem>>, vector<2x256xf32>,
    } else {
    }
    %c0 = arith.constant 0 : index
    %c0_1 = arith.constant 0 : index
    %3 = vector.load %arg1[%c0, %c0_1] : memref<392x256xf32, #tpu.memory_space<vmem>>, vector<392x256xf32>
    %cst = arith.constant dense<0.000000e+00> : vector<256xf32>
    %4 = vector.multi_reduction <add>, %3, %cst [0] : vector<392x256xf32> to vector<256xf32>
    %5 = vector.shape_cast %4 : vector<256xf32> to vector<1x256xf32>
    %6 = arith.mulf %3, %3 : vector<392x256xf32>
    %cst_2 = arith.constant dense<0.000000e+00> : vector<256xf32>
    %7 = vector.multi_reduction <add>, %6, %cst_2 [0] : vector<392x256xf32> to vector<256xf32>
    %8 = vector.shape_cast %7 : vector<256xf32> to vector<1x256xf32>
    %c0_3 = arith.constant 0 : index
    %c0_4 = arith.constant 0 : index
    %9 = vector.load %arg2[%c0_3, %c0_4] : memref<2x256xf32, #tpu.memory_space<vmem>>, vector<2x256xf32>
    %10 = tpu.concatenate %5, %8 in 0 : vector<1x256xf32>, vector<1x256xf32> -> vector<2x256xf32>
    %11 = arith.addf %9, %10 : vector<2x256xf32>
    %c0_5 = arith.constant 0 : index
    %c0_6 = arith.constant 0 : index
    %12 = vector.load %arg2[%c0_5, %c0_6] : memref<2x256xf32, #tpu.memory_space<vmem>>, vector<2x256xf32>
    tpu.vector_store %arg2[%c0_5, %c0_6], %11 {strides = array<i32>} : memref<2x256xf32, #tpu.memory_space<vmem>>, vector<2x256xf32>,
    return
  }
  func.func @transform_0(%arg0: i32) -> (i32, i32) {
    %c0_i32 = arith.constant 0 : i32
    %c0_i32_0 = arith.constant 0 : i32
    return %arg0, %c0_i32 : i32, i32
  }
  func.func @transform_1(%arg0: i32) -> (i32, i32) {
    %c0_i32 = arith.constant 0 : i32
    %c0_i32_0 = arith.constant 0 : i32
    %c0_i32_1 = arith.constant 0 : i32
    return %c0_i32, %c0_i32_0 : i32, i32
  }
}

module attributes {stable_mosaic.version = 11 : i64} {
  func.func @_bn_relu_kernel(%arg0: i32, %arg1: memref<392x256xf32, #tpu.memory_space<vmem>>, %arg2: memref<1x256xf32, #tpu.memory_space<vmem>>, %arg3: memref<1x256xf32, #tpu.memory_space<vmem>>, %arg4: memref<392x256xbf16, #tpu.memory_space<vmem>>) attributes {dimension_semantics = [#tpu.dimension_semantics<parallel>], iteration_bounds = array<i64: 1>, scalar_prefetch = 0 : i64, scratch_operands = 0 : i64, tpu.core_type = #tpu.core_type<tc>, window_params = [{transform_indices = @transform_0, window_bounds = array<i64: 392, 256>}, {pipeline_mode = #tpu.pipeline_mode<synchronous>, transform_indices = @transform_1, window_bounds = array<i64: 1, 256>}, {pipeline_mode = #tpu.pipeline_mode<synchronous>, transform_indices = @transform_2, window_bounds = array<i64: 1, 256>}, {transform_indices = @transform_3, window_bounds = array<i64: 392, 256>}]} {
    %c0 = arith.constant 0 : index
    %c0_0 = arith.constant 0 : index
    %0 = vector.load %arg1[%c0, %c0_0] : memref<392x256xf32, #tpu.memory_space<vmem>>, vector<392x256xf32>
    %c0_1 = arith.constant 0 : index
    %c0_2 = arith.constant 0 : index
    %1 = vector.load %arg2[%c0_1, %c0_2] : memref<1x256xf32, #tpu.memory_space<vmem>>, vector<1x256xf32>
    %2 = vector.broadcast %1 : vector<1x256xf32> to vector<392x256xf32>
    %3 = arith.mulf %0, %2 : vector<392x256xf32>
    %c0_3 = arith.constant 0 : index
    %c0_4 = arith.constant 0 : index
    %4 = vector.load %arg3[%c0_3, %c0_4] : memref<1x256xf32, #tpu.memory_space<vmem>>, vector<1x256xf32>
    %5 = vector.broadcast %4 : vector<1x256xf32> to vector<392x256xf32>
    %6 = arith.addf %3, %5 : vector<392x256xf32>
    %cst = arith.constant 0.000000e+00 : f32
    %7 = vector.broadcast %cst : f32 to vector<392x256xf32>
    %8 = arith.maximumf %6, %7 : vector<392x256xf32>
    %9 = arith.truncf %8 : vector<392x256xf32> to vector<392x256xbf16>
    %c0_5 = arith.constant 0 : index
    %c0_6 = arith.constant 0 : index
    %10 = vector.load %arg4[%c0_5, %c0_6] : memref<392x256xbf16, #tpu.memory_space<vmem>>, vector<392x256xbf16>
    tpu.vector_store %arg4[%c0_5, %c0_6], %9 {strides = array<i32>} : memref<392x256xbf16, #tpu.memory_space<vmem>>, vector<392x256xbf16>,
    return
  }
  func.func @transform_0(%arg0: i32) -> (i32, i32) {
    %c0_i32 = arith.constant 0 : i32
    %c0_i32_0 = arith.constant 0 : i32
    return %arg0, %c0_i32 : i32, i32
  }
  func.func @transform_1(%arg0: i32) -> (i32, i32) {
    %c0_i32 = arith.constant 0 : i32
    %c0_i32_0 = arith.constant 0 : i32
    %c0_i32_1 = arith.constant 0 : i32
    return %c0_i32, %c0_i32_0 : i32, i32
  }
  func.func @transform_2(%arg0: i32) -> (i32, i32) {
    %c0_i32 = arith.constant 0 : i32
    %c0_i32_0 = arith.constant 0 : i32
    %c0_i32_1 = arith.constant 0 : i32
    return %c0_i32, %c0_i32_0 : i32, i32
  }
  func.func @transform_3(%arg0: i32) -> (i32, i32) {
    %c0_i32 = arith.constant 0 : i32
    %c0_i32_0 = arith.constant 0 : i32
    return %arg0, %c0_i32 : i32, i32
  }
}

module attributes {stable_mosaic.version = 11 : i64} {
  func.func @_matmul_kernel(%arg0: i32, %arg1: i32, %arg2: i32, %arg3: memref<256x256xbf16, #tpu.memory_space<vmem>>, %arg4: memref<256x256xbf16, #tpu.memory_space<vmem>>, %arg5: memref<256x256xf32, #tpu.memory_space<vmem>>) attributes {dimension_semantics = [#tpu.dimension_semantics<parallel>, #tpu.dimension_semantics<parallel>, #tpu.dimension_semantics<arbitrary>], iteration_bounds = array<i64: 2, 8, 1>, scalar_prefetch = 0 : i64, scratch_operands = 0 : i64, tpu.core_type = #tpu.core_type<tc>, window_params = [{transform_indices = @transform_0, window_bounds = array<i64: 256, 256>}, {transform_indices = @transform_1, window_bounds = array<i64: 256, 256>}, {transform_indices = @transform_2, window_bounds = array<i64: 256, 256>}]} {
    %c0_i32 = arith.constant 0 : i32
    %0 = arith.cmpi eq, %arg2, %c0_i32 : i32
    %1 = arith.extui %0 : i1 to i32
    %c0_i32_0 = arith.constant 0 : i32
    %2 = arith.cmpi ne, %1, %c0_i32_0 : i32
    scf.if %2 {
      %cst_8 = arith.constant 0.000000e+00 : f32
      %9 = vector.broadcast %cst_8 : f32 to vector<256x256xf32>
      %c0_9 = arith.constant 0 : index
      %c0_10 = arith.constant 0 : index
      %10 = vector.load %arg5[%c0_9, %c0_10] : memref<256x256xf32, #tpu.memory_space<vmem>>, vector<256x256xf32>
      tpu.vector_store %arg5[%c0_9, %c0_10], %9 {strides = array<i32>} : memref<256x256xf32, #tpu.memory_space<vmem>>, vector<256x256xf32>,
    } else {
    }
    %c0 = arith.constant 0 : index
    %c0_1 = arith.constant 0 : index
    %3 = vector.load %arg5[%c0, %c0_1] : memref<256x256xf32, #tpu.memory_space<vmem>>, vector<256x256xf32>
    %c0_2 = arith.constant 0 : index
    %c0_3 = arith.constant 0 : index
    %4 = vector.load %arg3[%c0_2, %c0_3] : memref<256x256xbf16, #tpu.memory_space<vmem>>, vector<256x256xbf16>
    %c0_4 = arith.constant 0 : index
    %c0_5 = arith.constant 0 : index
    %5 = vector.load %arg4[%c0_4, %c0_5] : memref<256x256xbf16, #tpu.memory_space<vmem>>, vector<256x256xbf16>
    %cst = arith.constant dense<0.000000e+00> : vector<256x256xf32>
    %6 = tpu.matmul %4, %5, %cst {dimension_numbers = #tpu.dot_dimension_numbers<[1], [0], [0], [1], [0, 0, 1, 1], [], []>} : vector<256x256xbf16>, vector<256x256xbf16>, vector<256x256xf32> -> vector<256x256xf32>
    %7 = arith.addf %3, %6 : vector<256x256xf32>
    %c0_6 = arith.constant 0 : index
    %c0_7 = arith.constant 0 : index
    %8 = vector.load %arg5[%c0_6, %c0_7] : memref<256x256xf32, #tpu.memory_space<vmem>>, vector<256x256xf32>
    tpu.vector_store %arg5[%c0_6, %c0_7], %7 {strides = array<i32>} : memref<256x256xf32, #tpu.memory_space<vmem>>, vector<256x256xf32>,
    return
  }
  func.func @transform_0(%arg0: i32, %arg1: i32, %arg2: i32) -> (i32, i32) {
    %c0_i32 = arith.constant 0 : i32
    return %arg0, %arg2 : i32, i32
  }
  func.func @transform_1(%arg0: i32, %arg1: i32, %arg2: i32) -> (i32, i32) {
    %c0_i32 = arith.constant 0 : i32
    return %arg2, %arg1 : i32, i32
  }
  func.func @transform_2(%arg0: i32, %arg1: i32, %arg2: i32) -> (i32, i32) {
    %c0_i32 = arith.constant 0 : i32
    return %arg0, %arg1 : i32, i32
  }
}

module attributes {stable_mosaic.version = 11 : i64} {
  func.func @_colstats_kernel(%arg0: i32, %arg1: memref<512x128xf32, #tpu.memory_space<vmem>>, %arg2: memref<2x128xf32, #tpu.memory_space<vmem>>) attributes {dimension_semantics = [#tpu.dimension_semantics<arbitrary>], iteration_bounds = array<i64: 4>, scalar_prefetch = 0 : i64, scratch_operands = 0 : i64, tpu.core_type = #tpu.core_type<tc>, window_params = [{transform_indices = @transform_0, window_bounds = array<i64: 512, 128>}, {pipeline_mode = #tpu.pipeline_mode<synchronous>, transform_indices = @transform_1, window_bounds = array<i64: 2, 128>}]} {
    %c0_i32 = arith.constant 0 : i32
    %0 = arith.cmpi eq, %arg0, %c0_i32 : i32
    %1 = arith.extui %0 : i1 to i32
    %c0_i32_0 = arith.constant 0 : i32
    %2 = arith.cmpi ne, %1, %c0_i32_0 : i32
    scf.if %2 {
      %cst_7 = arith.constant 0.000000e+00 : f32
      %13 = vector.broadcast %cst_7 : f32 to vector<2x128xf32>
      %c0_8 = arith.constant 0 : index
      %c0_9 = arith.constant 0 : index
      %14 = vector.load %arg2[%c0_8, %c0_9] : memref<2x128xf32, #tpu.memory_space<vmem>>, vector<2x128xf32>
      tpu.vector_store %arg2[%c0_8, %c0_9], %13 {strides = array<i32>} : memref<2x128xf32, #tpu.memory_space<vmem>>, vector<2x128xf32>,
    } else {
    }
    %c0 = arith.constant 0 : index
    %c0_1 = arith.constant 0 : index
    %3 = vector.load %arg1[%c0, %c0_1] : memref<512x128xf32, #tpu.memory_space<vmem>>, vector<512x128xf32>
    %cst = arith.constant dense<0.000000e+00> : vector<128xf32>
    %4 = vector.multi_reduction <add>, %3, %cst [0] : vector<512x128xf32> to vector<128xf32>
    %5 = vector.shape_cast %4 : vector<128xf32> to vector<1x128xf32>
    %6 = arith.mulf %3, %3 : vector<512x128xf32>
    %cst_2 = arith.constant dense<0.000000e+00> : vector<128xf32>
    %7 = vector.multi_reduction <add>, %6, %cst_2 [0] : vector<512x128xf32> to vector<128xf32>
    %8 = vector.shape_cast %7 : vector<128xf32> to vector<1x128xf32>
    %c0_3 = arith.constant 0 : index
    %c0_4 = arith.constant 0 : index
    %9 = vector.load %arg2[%c0_3, %c0_4] : memref<2x128xf32, #tpu.memory_space<vmem>>, vector<2x128xf32>
    %10 = tpu.concatenate %5, %8 in 0 : vector<1x128xf32>, vector<1x128xf32> -> vector<2x128xf32>
    %11 = arith.addf %9, %10 : vector<2x128xf32>
    %c0_5 = arith.constant 0 : index
    %c0_6 = arith.constant 0 : index
    %12 = vector.load %arg2[%c0_5, %c0_6] : memref<2x128xf32, #tpu.memory_space<vmem>>, vector<2x128xf32>
    tpu.vector_store %arg2[%c0_5, %c0_6], %11 {strides = array<i32>} : memref<2x128xf32, #tpu.memory_space<vmem>>, vector<2x128xf32>,
    return
  }
  func.func @transform_0(%arg0: i32) -> (i32, i32) {
    %c0_i32 = arith.constant 0 : i32
    %c0_i32_0 = arith.constant 0 : i32
    return %arg0, %c0_i32 : i32, i32
  }
  func.func @transform_1(%arg0: i32) -> (i32, i32) {
    %c0_i32 = arith.constant 0 : i32
    %c0_i32_0 = arith.constant 0 : i32
    %c0_i32_1 = arith.constant 0 : i32
    return %c0_i32, %c0_i32_0 : i32, i32
  }
}

module attributes {stable_mosaic.version = 11 : i64} {
  func.func @_bn_relu_kernel(%arg0: i32, %arg1: memref<512x128xf32, #tpu.memory_space<vmem>>, %arg2: memref<1x128xf32, #tpu.memory_space<vmem>>, %arg3: memref<1x128xf32, #tpu.memory_space<vmem>>, %arg4: memref<512x128xbf16, #tpu.memory_space<vmem>>) attributes {dimension_semantics = [#tpu.dimension_semantics<parallel>], iteration_bounds = array<i64: 4>, scalar_prefetch = 0 : i64, scratch_operands = 0 : i64, tpu.core_type = #tpu.core_type<tc>, window_params = [{transform_indices = @transform_0, window_bounds = array<i64: 512, 128>}, {pipeline_mode = #tpu.pipeline_mode<synchronous>, transform_indices = @transform_1, window_bounds = array<i64: 1, 128>}, {pipeline_mode = #tpu.pipeline_mode<synchronous>, transform_indices = @transform_2, window_bounds = array<i64: 1, 128>}, {transform_indices = @transform_3, window_bounds = array<i64: 512, 128>}]} {
    %c0 = arith.constant 0 : index
    %c0_0 = arith.constant 0 : index
    %0 = vector.load %arg1[%c0, %c0_0] : memref<512x128xf32, #tpu.memory_space<vmem>>, vector<512x128xf32>
    %c0_1 = arith.constant 0 : index
    %c0_2 = arith.constant 0 : index
    %1 = vector.load %arg2[%c0_1, %c0_2] : memref<1x128xf32, #tpu.memory_space<vmem>>, vector<1x128xf32>
    %2 = vector.broadcast %1 : vector<1x128xf32> to vector<512x128xf32>
    %3 = arith.mulf %0, %2 : vector<512x128xf32>
    %c0_3 = arith.constant 0 : index
    %c0_4 = arith.constant 0 : index
    %4 = vector.load %arg3[%c0_3, %c0_4] : memref<1x128xf32, #tpu.memory_space<vmem>>, vector<1x128xf32>
    %5 = vector.broadcast %4 : vector<1x128xf32> to vector<512x128xf32>
    %6 = arith.addf %3, %5 : vector<512x128xf32>
    %cst = arith.constant 0.000000e+00 : f32
    %7 = vector.broadcast %cst : f32 to vector<512x128xf32>
    %8 = arith.maximumf %6, %7 : vector<512x128xf32>
    %9 = arith.truncf %8 : vector<512x128xf32> to vector<512x128xbf16>
    %c0_5 = arith.constant 0 : index
    %c0_6 = arith.constant 0 : index
    %10 = vector.load %arg4[%c0_5, %c0_6] : memref<512x128xbf16, #tpu.memory_space<vmem>>, vector<512x128xbf16>
    tpu.vector_store %arg4[%c0_5, %c0_6], %9 {strides = array<i32>} : memref<512x128xbf16, #tpu.memory_space<vmem>>, vector<512x128xbf16>,
    return
  }
  func.func @transform_0(%arg0: i32) -> (i32, i32) {
    %c0_i32 = arith.constant 0 : i32
    %c0_i32_0 = arith.constant 0 : i32
    return %arg0, %c0_i32 : i32, i32
  }
  func.func @transform_1(%arg0: i32) -> (i32, i32) {
    %c0_i32 = arith.constant 0 : i32
    %c0_i32_0 = arith.constant 0 : i32
    %c0_i32_1 = arith.constant 0 : i32
    return %c0_i32, %c0_i32_0 : i32, i32
  }
  func.func @transform_2(%arg0: i32) -> (i32, i32) {
    %c0_i32 = arith.constant 0 : i32
    %c0_i32_0 = arith.constant 0 : i32
    %c0_i32_1 = arith.constant 0 : i32
    return %c0_i32, %c0_i32_0 : i32, i32
  }
  func.func @transform_3(%arg0: i32) -> (i32, i32) {
    %c0_i32 = arith.constant 0 : i32
    %c0_i32_0 = arith.constant 0 : i32
    return %arg0, %c0_i32 : i32, i32
  }
}

module attributes {stable_mosaic.version = 11 : i64} {
  func.func @_matmul_kernel(%arg0: i32, %arg1: i32, %arg2: i32, %arg3: memref<256x128xbf16, #tpu.memory_space<vmem>>, %arg4: memref<128x256xbf16, #tpu.memory_space<vmem>>, %arg5: memref<256x256xf32, #tpu.memory_space<vmem>>) attributes {dimension_semantics = [#tpu.dimension_semantics<parallel>, #tpu.dimension_semantics<parallel>, #tpu.dimension_semantics<arbitrary>], iteration_bounds = array<i64: 7, 4, 1>, scalar_prefetch = 0 : i64, scratch_operands = 0 : i64, tpu.core_type = #tpu.core_type<tc>, window_params = [{transform_indices = @transform_0, window_bounds = array<i64: 256, 128>}, {transform_indices = @transform_1, window_bounds = array<i64: 128, 256>}, {transform_indices = @transform_2, window_bounds = array<i64: 256, 256>}]} {
    %c0_i32 = arith.constant 0 : i32
    %0 = arith.cmpi eq, %arg2, %c0_i32 : i32
    %1 = arith.extui %0 : i1 to i32
    %c0_i32_0 = arith.constant 0 : i32
    %2 = arith.cmpi ne, %1, %c0_i32_0 : i32
    scf.if %2 {
      %cst_8 = arith.constant 0.000000e+00 : f32
      %9 = vector.broadcast %cst_8 : f32 to vector<256x256xf32>
      %c0_9 = arith.constant 0 : index
      %c0_10 = arith.constant 0 : index
      %10 = vector.load %arg5[%c0_9, %c0_10] : memref<256x256xf32, #tpu.memory_space<vmem>>, vector<256x256xf32>
      tpu.vector_store %arg5[%c0_9, %c0_10], %9 {strides = array<i32>} : memref<256x256xf32, #tpu.memory_space<vmem>>, vector<256x256xf32>,
    } else {
    }
    %c0 = arith.constant 0 : index
    %c0_1 = arith.constant 0 : index
    %3 = vector.load %arg5[%c0, %c0_1] : memref<256x256xf32, #tpu.memory_space<vmem>>, vector<256x256xf32>
    %c0_2 = arith.constant 0 : index
    %c0_3 = arith.constant 0 : index
    %4 = vector.load %arg3[%c0_2, %c0_3] : memref<256x128xbf16, #tpu.memory_space<vmem>>, vector<256x128xbf16>
    %c0_4 = arith.constant 0 : index
    %c0_5 = arith.constant 0 : index
    %5 = vector.load %arg4[%c0_4, %c0_5] : memref<128x256xbf16, #tpu.memory_space<vmem>>, vector<128x256xbf16>
    %cst = arith.constant dense<0.000000e+00> : vector<256x256xf32>
    %6 = tpu.matmul %4, %5, %cst {dimension_numbers = #tpu.dot_dimension_numbers<[1], [0], [0], [1], [0, 0, 1, 1], [], []>} : vector<256x128xbf16>, vector<128x256xbf16>, vector<256x256xf32> -> vector<256x256xf32>
    %7 = arith.addf %3, %6 : vector<256x256xf32>
    %c0_6 = arith.constant 0 : index
    %c0_7 = arith.constant 0 : index
    %8 = vector.load %arg5[%c0_6, %c0_7] : memref<256x256xf32, #tpu.memory_space<vmem>>, vector<256x256xf32>
    tpu.vector_store %arg5[%c0_6, %c0_7], %7 {strides = array<i32>} : memref<256x256xf32, #tpu.memory_space<vmem>>, vector<256x256xf32>,
    return
  }
  func.func @transform_0(%arg0: i32, %arg1: i32, %arg2: i32) -> (i32, i32) {
    %c0_i32 = arith.constant 0 : i32
    return %arg0, %arg2 : i32, i32
  }
  func.func @transform_1(%arg0: i32, %arg1: i32, %arg2: i32) -> (i32, i32) {
    %c0_i32 = arith.constant 0 : i32
    return %arg2, %arg1 : i32, i32
  }
  func.func @transform_2(%arg0: i32, %arg1: i32, %arg2: i32) -> (i32, i32) {
    %c0_i32 = arith.constant 0 : i32
    return %arg0, %arg1 : i32, i32
  }
}

module attributes {stable_mosaic.version = 11 : i64} {
  func.func @_colstats_kernel(%arg0: i32, %arg1: memref<512x128xf32, #tpu.memory_space<vmem>>, %arg2: memref<2x128xf32, #tpu.memory_space<vmem>>) attributes {dimension_semantics = [#tpu.dimension_semantics<arbitrary>], iteration_bounds = array<i64: 25>, scalar_prefetch = 0 : i64, scratch_operands = 0 : i64, tpu.core_type = #tpu.core_type<tc>, window_params = [{transform_indices = @transform_0, window_bounds = array<i64: 512, 128>}, {pipeline_mode = #tpu.pipeline_mode<synchronous>, transform_indices = @transform_1, window_bounds = array<i64: 2, 128>}]} {
    %c0_i32 = arith.constant 0 : i32
    %0 = arith.cmpi eq, %arg0, %c0_i32 : i32
    %1 = arith.extui %0 : i1 to i32
    %c0_i32_0 = arith.constant 0 : i32
    %2 = arith.cmpi ne, %1, %c0_i32_0 : i32
    scf.if %2 {
      %cst_7 = arith.constant 0.000000e+00 : f32
      %13 = vector.broadcast %cst_7 : f32 to vector<2x128xf32>
      %c0_8 = arith.constant 0 : index
      %c0_9 = arith.constant 0 : index
      %14 = vector.load %arg2[%c0_8, %c0_9] : memref<2x128xf32, #tpu.memory_space<vmem>>, vector<2x128xf32>
      tpu.vector_store %arg2[%c0_8, %c0_9], %13 {strides = array<i32>} : memref<2x128xf32, #tpu.memory_space<vmem>>, vector<2x128xf32>,
    } else {
    }
    %c0 = arith.constant 0 : index
    %c0_1 = arith.constant 0 : index
    %3 = vector.load %arg1[%c0, %c0_1] : memref<512x128xf32, #tpu.memory_space<vmem>>, vector<512x128xf32>
    %cst = arith.constant dense<0.000000e+00> : vector<128xf32>
    %4 = vector.multi_reduction <add>, %3, %cst [0] : vector<512x128xf32> to vector<128xf32>
    %5 = vector.shape_cast %4 : vector<128xf32> to vector<1x128xf32>
    %6 = arith.mulf %3, %3 : vector<512x128xf32>
    %cst_2 = arith.constant dense<0.000000e+00> : vector<128xf32>
    %7 = vector.multi_reduction <add>, %6, %cst_2 [0] : vector<512x128xf32> to vector<128xf32>
    %8 = vector.shape_cast %7 : vector<128xf32> to vector<1x128xf32>
    %c0_3 = arith.constant 0 : index
    %c0_4 = arith.constant 0 : index
    %9 = vector.load %arg2[%c0_3, %c0_4] : memref<2x128xf32, #tpu.memory_space<vmem>>, vector<2x128xf32>
    %10 = tpu.concatenate %5, %8 in 0 : vector<1x128xf32>, vector<1x128xf32> -> vector<2x128xf32>
    %11 = arith.addf %9, %10 : vector<2x128xf32>
    %c0_5 = arith.constant 0 : index
    %c0_6 = arith.constant 0 : index
    %12 = vector.load %arg2[%c0_5, %c0_6] : memref<2x128xf32, #tpu.memory_space<vmem>>, vector<2x128xf32>
    tpu.vector_store %arg2[%c0_5, %c0_6], %11 {strides = array<i32>} : memref<2x128xf32, #tpu.memory_space<vmem>>, vector<2x128xf32>,
    return
  }
  func.func @transform_0(%arg0: i32) -> (i32, i32) {
    %c0_i32 = arith.constant 0 : i32
    %c0_i32_0 = arith.constant 0 : i32
    return %arg0, %c0_i32 : i32, i32
  }
  func.func @transform_1(%arg0: i32) -> (i32, i32) {
    %c0_i32 = arith.constant 0 : i32
    %c0_i32_0 = arith.constant 0 : i32
    %c0_i32_1 = arith.constant 0 : i32
    return %c0_i32, %c0_i32_0 : i32, i32
  }
}

module attributes {stable_mosaic.version = 11 : i64} {
  func.func @_bn_relu_kernel(%arg0: i32, %arg1: memref<512x128xf32, #tpu.memory_space<vmem>>, %arg2: memref<1x128xf32, #tpu.memory_space<vmem>>, %arg3: memref<1x128xf32, #tpu.memory_space<vmem>>, %arg4: memref<512x128xbf16, #tpu.memory_space<vmem>>) attributes {dimension_semantics = [#tpu.dimension_semantics<parallel>], iteration_bounds = array<i64: 25>, scalar_prefetch = 0 : i64, scratch_operands = 0 : i64, tpu.core_type = #tpu.core_type<tc>, window_params = [{transform_indices = @transform_0, window_bounds = array<i64: 512, 128>}, {pipeline_mode = #tpu.pipeline_mode<synchronous>, transform_indices = @transform_1, window_bounds = array<i64: 1, 128>}, {pipeline_mode = #tpu.pipeline_mode<synchronous>, transform_indices = @transform_2, window_bounds = array<i64: 1, 128>}, {transform_indices = @transform_3, window_bounds = array<i64: 512, 128>}]} {
    %c0 = arith.constant 0 : index
    %c0_0 = arith.constant 0 : index
    %0 = vector.load %arg1[%c0, %c0_0] : memref<512x128xf32, #tpu.memory_space<vmem>>, vector<512x128xf32>
    %c0_1 = arith.constant 0 : index
    %c0_2 = arith.constant 0 : index
    %1 = vector.load %arg2[%c0_1, %c0_2] : memref<1x128xf32, #tpu.memory_space<vmem>>, vector<1x128xf32>
    %2 = vector.broadcast %1 : vector<1x128xf32> to vector<512x128xf32>
    %3 = arith.mulf %0, %2 : vector<512x128xf32>
    %c0_3 = arith.constant 0 : index
    %c0_4 = arith.constant 0 : index
    %4 = vector.load %arg3[%c0_3, %c0_4] : memref<1x128xf32, #tpu.memory_space<vmem>>, vector<1x128xf32>
    %5 = vector.broadcast %4 : vector<1x128xf32> to vector<512x128xf32>
    %6 = arith.addf %3, %5 : vector<512x128xf32>
    %cst = arith.constant 0.000000e+00 : f32
    %7 = vector.broadcast %cst : f32 to vector<512x128xf32>
    %8 = arith.maximumf %6, %7 : vector<512x128xf32>
    %9 = arith.truncf %8 : vector<512x128xf32> to vector<512x128xbf16>
    %c0_5 = arith.constant 0 : index
    %c0_6 = arith.constant 0 : index
    %10 = vector.load %arg4[%c0_5, %c0_6] : memref<512x128xbf16, #tpu.memory_space<vmem>>, vector<512x128xbf16>
    tpu.vector_store %arg4[%c0_5, %c0_6], %9 {strides = array<i32>} : memref<512x128xbf16, #tpu.memory_space<vmem>>, vector<512x128xbf16>,
    return
  }
  func.func @transform_0(%arg0: i32) -> (i32, i32) {
    %c0_i32 = arith.constant 0 : i32
    %c0_i32_0 = arith.constant 0 : i32
    return %arg0, %c0_i32 : i32, i32
  }
  func.func @transform_1(%arg0: i32) -> (i32, i32) {
    %c0_i32 = arith.constant 0 : i32
    %c0_i32_0 = arith.constant 0 : i32
    %c0_i32_1 = arith.constant 0 : i32
    return %c0_i32, %c0_i32_0 : i32, i32
  }
  func.func @transform_2(%arg0: i32) -> (i32, i32) {
    %c0_i32 = arith.constant 0 : i32
    %c0_i32_0 = arith.constant 0 : i32
    %c0_i32_1 = arith.constant 0 : i32
    return %c0_i32, %c0_i32_0 : i32, i32
  }
  func.func @transform_3(%arg0: i32) -> (i32, i32) {
    %c0_i32 = arith.constant 0 : i32
    %c0_i32_0 = arith.constant 0 : i32
    return %arg0, %c0_i32 : i32, i32
  }
}

module attributes {stable_mosaic.version = 11 : i64} {
  func.func @_matmul_kernel(%arg0: i32, %arg1: i32, %arg2: i32, %arg3: memref<256x128xbf16, #tpu.memory_space<vmem>>, %arg4: memref<128x128xbf16, #tpu.memory_space<vmem>>, %arg5: memref<256x128xf32, #tpu.memory_space<vmem>>) attributes {dimension_semantics = [#tpu.dimension_semantics<parallel>, #tpu.dimension_semantics<parallel>, #tpu.dimension_semantics<arbitrary>], iteration_bounds = array<i64: 98, 1, 1>, scalar_prefetch = 0 : i64, scratch_operands = 0 : i64, tpu.core_type = #tpu.core_type<tc>, window_params = [{transform_indices = @transform_0, window_bounds = array<i64: 256, 128>}, {transform_indices = @transform_1, window_bounds = array<i64: 128, 128>}, {transform_indices = @transform_2, window_bounds = array<i64: 256, 128>}]} {
    %c0_i32 = arith.constant 0 : i32
    %0 = arith.cmpi eq, %arg2, %c0_i32 : i32
    %1 = arith.extui %0 : i1 to i32
    %c0_i32_0 = arith.constant 0 : i32
    %2 = arith.cmpi ne, %1, %c0_i32_0 : i32
    scf.if %2 {
      %cst_8 = arith.constant 0.000000e+00 : f32
      %9 = vector.broadcast %cst_8 : f32 to vector<256x128xf32>
      %c0_9 = arith.constant 0 : index
      %c0_10 = arith.constant 0 : index
      %10 = vector.load %arg5[%c0_9, %c0_10] : memref<256x128xf32, #tpu.memory_space<vmem>>, vector<256x128xf32>
      tpu.vector_store %arg5[%c0_9, %c0_10], %9 {strides = array<i32>} : memref<256x128xf32, #tpu.memory_space<vmem>>, vector<256x128xf32>,
    } else {
    }
    %c0 = arith.constant 0 : index
    %c0_1 = arith.constant 0 : index
    %3 = vector.load %arg5[%c0, %c0_1] : memref<256x128xf32, #tpu.memory_space<vmem>>, vector<256x128xf32>
    %c0_2 = arith.constant 0 : index
    %c0_3 = arith.constant 0 : index
    %4 = vector.load %arg3[%c0_2, %c0_3] : memref<256x128xbf16, #tpu.memory_space<vmem>>, vector<256x128xbf16>
    %c0_4 = arith.constant 0 : index
    %c0_5 = arith.constant 0 : index
    %5 = vector.load %arg4[%c0_4, %c0_5] : memref<128x128xbf16, #tpu.memory_space<vmem>>, vector<128x128xbf16>
    %cst = arith.constant dense<0.000000e+00> : vector<256x128xf32>
    %6 = tpu.matmul %4, %5, %cst {dimension_numbers = #tpu.dot_dimension_numbers<[1], [0], [0], [1], [0, 0, 1, 1], [], []>} : vector<256x128xbf16>, vector<128x128xbf16>, vector<256x128xf32> -> vector<256x128xf32>
    %7 = arith.addf %3, %6 : vector<256x128xf32>
    %c0_6 = arith.constant 0 : index
    %c0_7 = arith.constant 0 : index
    %8 = vector.load %arg5[%c0_6, %c0_7] : memref<256x128xf32, #tpu.memory_space<vmem>>, vector<256x128xf32>
    tpu.vector_store %arg5[%c0_6, %c0_7], %7 {strides = array<i32>} : memref<256x128xf32, #tpu.memory_space<vmem>>, vector<256x128xf32>,
    return
  }
  func.func @transform_0(%arg0: i32, %arg1: i32, %arg2: i32) -> (i32, i32) {
    %c0_i32 = arith.constant 0 : i32
    return %arg0, %arg2 : i32, i32
  }
  func.func @transform_1(%arg0: i32, %arg1: i32, %arg2: i32) -> (i32, i32) {
    %c0_i32 = arith.constant 0 : i32
    return %arg2, %arg1 : i32, i32
  }
  func.func @transform_2(%arg0: i32, %arg1: i32, %arg2: i32) -> (i32, i32) {
    %c0_i32 = arith.constant 0 : i32
    return %arg0, %arg1 : i32, i32
  }
}

module attributes {stable_mosaic.version = 11 : i64} {
  func.func @_tanh_kernel(%arg0: i32, %arg1: memref<256x512xf32, #tpu.memory_space<vmem>>, %arg2: memref<256x512xf32, #tpu.memory_space<vmem>>) attributes {dimension_semantics = [#tpu.dimension_semantics<parallel>], iteration_bounds = array<i64: 3>, scalar_prefetch = 0 : i64, scratch_operands = 0 : i64, tpu.core_type = #tpu.core_type<tc>, window_params = [{transform_indices = @transform_0, window_bounds = array<i64: 256, 512>}, {transform_indices = @transform_1, window_bounds = array<i64: 256, 512>}]} {
    %c0 = arith.constant 0 : index
    %c0_0 = arith.constant 0 : index
    %0 = vector.load %arg1[%c0, %c0_0] : memref<256x512xf32, #tpu.memory_space<vmem>>, vector<256x512xf32>
    %1 = math.tanh %0 : vector<256x512xf32>
    %c0_1 = arith.constant 0 : index
    %c0_2 = arith.constant 0 : index
    %2 = vector.load %arg2[%c0_1, %c0_2] : memref<256x512xf32, #tpu.memory_space<vmem>>, vector<256x512xf32>
    tpu.vector_store %arg2[%c0_1, %c0_2], %1 {strides = array<i32>} : memref<256x512xf32, #tpu.memory_space<vmem>>, vector<256x512xf32>,
    return
  }
  func.func @transform_0(%arg0: i32) -> (i32, i32) {
    %c0_i32 = arith.constant 0 : i32
    %c0_i32_0 = arith.constant 0 : i32
    return %arg0, %c0_i32 : i32, i32
  }
  func.func @transform_1(%arg0: i32) -> (i32, i32) {
    %c0_i32 = arith.constant 0 : i32
    %c0_i32_0 = arith.constant 0 : i32
    return %arg0, %c0_i32 : i32, i32
  }
}

</mosaic_0001>

<bundles_post_ra>
// kernel: generator_forward.14
= control target key start
LH: loop header
LB: loop body
LE: loop exit
PB: predicated region body
PF: predicated region fallthrough
CT: control target
= control target key end

     0   :  { %s719_s9 = smov 0   ;;  %s721_s10 = smov 0   ;;  %s805_s0 = inlined_call_operand.vmem [shape: bf16[8,128], index: 0, kind: input, shape index: {}]   ;;  %s806_s1 = inlined_call_operand.vmem [shape: bf16[128,25088], index: 1, kind: input, shape index: {}]   ;;  %s807_s2 = inlined_call_operand.vmem [shape: f32[8,25088], index: 2, kind: output, shape index: {}]  }
   0x1   :  { %s723_s11 = smov 0   ;;  %s725_s12 = smov 0  }
   0x2   :  { %s727_s13 = smov 0  }
   0x3 LB: > { %s27_s14 = sadd.s32 1, %s697_s12  ;;  %p75_p1 = scmp.ne.s32.totalorder %s689_s10, %s685_s9  ;;  %s701_s13 = sphi %s727_s13, %s12_s13   ;;  %s697_s12 = sphi %s725_s12, %s811_s12   ;;  %s693_s11 = sphi %s723_s11, %s810_s11   ;;  %s689_s10 = sphi %s721_s10, %s809_s10   ;;  %s685_s9 = sphi %s719_s9, %s808_s9  }
   0x4   : > { %p29_p0 = scmp.ge.s32.totalorder %s27_s14, 98  ;;  %p76_p2 = scmp.eq.s32.totalorder %s701_s13, 0 }
   0x5   : > { %s68_s16 = sadd.s32 1, %s689_s10  ;;  %p570_p5 = scmp.ge.s32.totalorder %s701_s13, 98 }
   0x6   : > { %s813_s14 = smov (%p29_p0, %s27_s14), 0  ;;  %p77_p3 = por %p76_p2, %p75_p1 }
   0x7   : > { %s64_s15 = ssub.s32 %s697_s12, %s813_s14  ;;  %139 = sbr.rel (%p570_p5) target bundleno = 26 (0x1a), region = 20 }
   0x8   : > { %p66_p4 = scmp.eq.s32.totalorder %s64_s15, 0 }
   0xa   : > { %s754_s17 = scalar_select %p66_p4, %s689_s10, %s68_s16  }
   0xe   : > { %142 = sbr.rel (!%p77_p3) target bundleno = 26 (0x1a), region = 24  ;;  %s144_s18 = sand.u32 (%p77_p3), 1, %s689_s10  }
   0xf   : > { %s596_s19 = sshll.u32 (%p77_p3), %s697_s12, 3  ;;  %s571_s20 = sshll.u32 (%p77_p3), %s144_s18, 7 }
  0x10   : > { %s762_s23 = scalar_lea.vmem (%p77_p3), %s806_s1, %s596_s19  ;;  %s146_s24 = scalar_lea.vmem (%p77_p3), [#allocation2], %s571_s20 }
  0x11   : > { %v210_v0 = vld [vmem:[%s762_s23] sm:$0xff] (%p77_p3)  ;;  %v212_v1 = vld [vmem:[%s762_s23 + $0x310] sm:$0xff] (%p77_p3) }
  0x12   : > { %v214_v2 = vld [vmem:[%s762_s23 + $0x620] sm:$0xff] (%p77_p3)  ;;  %211 = vst [vmem:[%s146_s24] sm:$0xff] (%p77_p3), %v210_v0  ;;  %213 = vst [vmem:[%s146_s24 + $0x8] sm:$0xff] (%p77_p3), %v212_v1  ;;  %v216_v3 = vld [vmem:[%s762_s23 + $0x930] sm:$0xff] (%p77_p3) }
  0x13   : > { %215 = vst [vmem:[%s146_s24 + $0x10] sm:$0xff] (%p77_p3), %v214_v2  ;;  %v218_v4 = vld [vmem:[%s762_s23 + $0xc40] sm:$0xff] (%p77_p3)  ;;  %v220_v5 = vld [vmem:[%s762_s23 + $0xf50] sm:$0xff] (%p77_p3)  ;;  %217 = vst [vmem:[%s146_s24 + $0x18] sm:$0xff] (%p77_p3), %v216_v3 }
  0x14   : > { %219 = vst [vmem:[%s146_s24 + $0x20] sm:$0xff] (%p77_p3), %v218_v4  ;;  %221 = vst [vmem:[%s146_s24 + $0x28] sm:$0xff] (%p77_p3), %v220_v5  ;;  %v222_v6 = vld [vmem:[%s762_s23 + $0x1260] sm:$0xff] (%p77_p3)  ;;  %v224_v7 = vld [vmem:[%s762_s23 + $0x1570] sm:$0xff] (%p77_p3) }
  0x15   : > { %v226_v8 = vld [vmem:[%s762_s23 + $0x1880] sm:$0xff]  ;;  %223 = vst [vmem:[%s146_s24 + $0x30] sm:$0xff] %v222_v6  ;;  %225 = vst [vmem:[%s146_s24 + $0x38] sm:$0xff] %v224_v7  ;;  %v228_v9 = vld [vmem:[%s762_s23 + $0x1b90] sm:$0xff] }
  0x16   : > { %227 = vst [vmem:[%s146_s24 + $0x40] sm:$0xff] %v226_v8  ;;  %v230_v10 = vld [vmem:[%s762_s23 + $0x1ea0] sm:$0xff]  ;;  %v232_v11 = vld [vmem:[%s762_s23 + $0x21b0] sm:$0xff]  ;;  %229 = vst [vmem:[%s146_s24 + $0x48] sm:$0xff] %v228_v9 }
  0x17   : > { %231 = vst [vmem:[%s146_s24 + $0x50] sm:$0xff] %v230_v10  ;;  %233 = vst [vmem:[%s146_s24 + $0x58] sm:$0xff] %v232_v11  ;;  %v234_v12 = vld [vmem:[%s762_s23 + $0x24c0] sm:$0xff]  ;;  %v236_v13 = vld [vmem:[%s762_s23 + $0x27d0] sm:$0xff] }
  0x18   : > { %v238_v14 = vld [vmem:[%s762_s23 + $0x2ae0] sm:$0xff]  ;;  %235 = vst [vmem:[%s146_s24 + $0x60] sm:$0xff] %v234_v12  ;;  %237 = vst [vmem:[%s146_s24 + $0x68] sm:$0xff] %v236_v13  ;;  %v240_v15 = vld [vmem:[%s762_s23 + $0x2df0] sm:$0xff] }
  0x19   : > { %239 = vst [vmem:[%s146_s24 + $0x70] sm:$0xff] %v238_v14  ;;  %241 = vst [vmem:[%s146_s24 + $0x78] sm:$0xff] %v240_v15 }
  0x1a PF: > { %p574_p6 = scmp.ge.s32.totalorder %s701_s13, 1  ;;  %p246_p7 = scmp.lt.s32.totalorder %s701_s13, 99 }
  0x1c   : > { %p247_p8 = pnand %p574_p6, %p246_p7 }
  0x1d   : > { %s253_s25 = sand.u32 (!%p247_p8), 1, %s685_s9   ;;  %v703_v16 = vmov (!%p247_p8), 0   ;;  %v313_v33 = vld [vmem:[%s805_s0] sm:$0xf] (!%p247_p8)  ;;  %s576_s30 = sshll.u32 (!%p247_p8), %s693_s11, 1 }
  0x1e   : > { %250 = sbr.rel (%p247_p8) target bundleno = 280 (0x118), region = 62  ;;  %s575_s26 = sshll.u32 (!%p247_p8), %s253_s25, 7  ;;  %442 = vmatprep.mubr.bf16.mxu0 (!%p247_p8), %v703_v16 }
  0x1f   : > { %s255_s27 = scalar_lea.vmem (!%p247_p8), [#allocation2], %s575_s26  ;;  %p297_p9 = scmp.lt.s32.totalorder (!%p247_p8), %s576_s30, 195 }
  0x20   : > { %v639_v17 = vld [vmem:[%s255_s27 + $0x4] ss:$8 sps:$4 sm:$0xff] (!%p247_p8)   ;;  %v641_v18 = vld [vmem:[%s255_s27] ss:$8 sps:$4 sm:$0xff] (!%p247_p8)   ;;  %v642_v19 = vld [vmem:[%s255_s27 + $0x14] ss:$8 sps:$4 sm:$0xff] (!%p247_p8)  }
  0x21   : > { %410 = vmatprep.subr.bf16.mxu0 (!%p247_p8), %v639_v17  ;;  %v644_v20 = vld [vmem:[%s255_s27 + $0x10] ss:$8 sps:$4 sm:$0xff] (!%p247_p8)   ;;  %v645_v21 = vld [vmem:[%s255_s27 + $0x24] ss:$8 sps:$4 sm:$0xff] (!%p247_p8)   ;;  %v647_v22 = vld [vmem:[%s255_s27 + $0x20] ss:$8 sps:$4 sm:$0xff] (!%p247_p8)  }
  0x22   : > { %411 = vmatpush1.bf16.msra.mxu0 (!%p247_p8), %v641_v18  ;;  %v648_v23 = vld [vmem:[%s255_s27 + $0x34] ss:$8 sps:$4 sm:$0xff] (!%p247_p8)   ;;  %v650_v24 = vld [vmem:[%s255_s27 + $0x30] ss:$8 sps:$4 sm:$0xff] (!%p247_p8)   ;;  %v651_v25 = vld [vmem:[%s255_s27 + $0x44] ss:$8 sps:$4 sm:$0xff] (!%p247_p8)  }
  0x23   : > { %412 = vmatprep.subr.bf16.mxu0 (!%p247_p8), %v642_v19  ;;  %v653_v26 = vld [vmem:[%s255_s27 + $0x40] ss:$8 sps:$4 sm:$0xff] (!%p247_p8)   ;;  %v654_v27 = vld [vmem:[%s255_s27 + $0x54] ss:$8 sps:$4 sm:$0xff] (!%p247_p8)   ;;  %v656_v28 = vld [vmem:[%s255_s27 + $0x50] ss:$8 sps:$4 sm:$0xff] (!%p247_p8)  }
  0x24   : > { %v657_v29 = vld [vmem:[%s255_s27 + $0x64] ss:$8 sps:$4 sm:$0xff] (!%p247_p8)   ;;  %v659_v30 = vld [vmem:[%s255_s27 + $0x60] ss:$8 sps:$4 sm:$0xff] (!%p247_p8)   ;;  %v660_v31 = vld [vmem:[%s255_s27 + $0x74] ss:$8 sps:$4 sm:$0xff] (!%p247_p8)  }
  0x25   : > { %v662_v32 = vld [vmem:[%s255_s27 + $0x70] ss:$8 sps:$4 sm:$0xff]   ;;  %s815_s30 = smov (!%p297_p9, %s576_s30), 195 }
  0x26   : > { %413 = vmatpush1.bf16.msra.mxu0 %v644_v20  ;;  %s577_s3 = sshll.u32 %s815_s30, 3 }
  0x27   : > { %414 = vmatprep.subr.bf16.mxu0 %v645_v21  ;;  %s302_s6 = scalar_lea.vmem %s807_s2, %s577_s3 }
  0x2a   : > { %415 = vmatpush1.bf16.msra.mxu0 %v647_v22 }
  0x2b   : > { %416 = vmatprep.subr.bf16.mxu0 %v648_v23 }
  0x2e   : > { %417 = vmatpush1.bf16.msra.mxu0 %v650_v24 }
  0x2f   : > { %418 = vmatprep.subr.bf16.mxu0 %v651_v25 }
  0x32   : > { %419 = vmatpush1.bf16.msra.mxu0 %v653_v26 }
  0x33   : > { %420 = vmatprep.subr.bf16.mxu0 %v654_v27 }
  0x36   : > { %421 = vmatpush1.bf16.msra.mxu0 %v656_v28 }
  0x37   : > { %422 = vmatprep.subr.bf16.mxu0 %v657_v29 }
  0x3a   : > { %423 = vmatpush1.bf16.msra.mxu0 %v659_v30 }
  0x3b   : > { %424 = vmatprep.subr.bf16.mxu0 %v660_v31 }
  0x3e   : > { %425 = vmatpush1.bf16.msra.mxu0 %v662_v32 }
  0x41   : > { %443 = vmatmul.mubr.bf16.vlgmr.msra.gmra.mrb[0].mxu0 %v313_v33 }
 0x114   : > { %v444_v34 = vpop.f32.mrb[0].mxu0 }
 0x115   : > { %v446_v35 = vpop.f32.mrb[1].mxu0  ;;  %453 = vst [vmem:[%s302_s6] sm:$0xff] %v444_v34 }
 0x116   : > { %v448_v36 = vpop.f32.mrb[2].mxu0  ;;  %454 = vst [vmem:[%s302_s6 + $0x8] sm:$0xff] %v446_v35 }
 0x117   : > { %v449_v37 = vpop.f32.mrb[3].mxu0 }
 0x118 PF: > { %s12_s13 = sadd.s32 1, %s701_s13   ;;  %s808_s9 = smov %s689_s10 }
 0x119   : > { %p9_p10 = scmp.ge.s32.totalorder %s12_s13, 100   ;;  %s809_s10 = smov %s754_s17 }
 0x11a   : > { %s810_s11 = smov %s697_s12  ;;  %s811_s12 = smov %s813_s14 }
 0x11b   :  { %11 = sbr.rel (!%p9_p10) target bundleno = 3 (0x3), region = 108 }

// kernel: generator_forward.15
= control target key start
LH: loop header
LB: loop body
LE: loop exit
PB: predicated region body
PF: predicated region fallthrough
CT: control target
= control target key end

     0   :  { %vm262_vm0 = vcmask 1040384   ;;  %s514_s0 = inlined_call_operand.vmem [shape: f32[104,512], index: 0, kind: input, shape index: {}]   ;;  %s515_s1 = inlined_call_operand.vmem [shape: f32[2,512], index: 1, kind: output, shape index: {}]  }
   0x1   :  { %v13_v0 = vld [vmem:[%s514_s0] sm:$0xff]  ;;  %v14_v1 = vld [vmem:[%s514_s0 + $0x8] sm:$0xff]  ;;  %v15_v2 = vld [vmem:[%s514_s0 + $0x10] sm:$0xff] }
   0x2   :  { %v17_v3 = vld [vmem:[%s514_s0 + $0x20] sm:$0xff]  ;;  %v18_v4 = vld [vmem:[%s514_s0 + $0x28] sm:$0xff]  ;;  %v16_v5 = vld [vmem:[%s514_s0 + $0x18] sm:$0xff]  ;;  %v137_v60 = vmul.f32 %v13_v0, %v13_v0  ;;  %v138_v61 = vmul.f32 %v14_v1, %v14_v1  ;;  %v139_v63 = vmul.f32 %v15_v2, %v15_v2 }
   0x3   :  { %v329_v6 = vld [vmem:[%s514_s0 + $0x30] sm:$0xff]  ;;  %v334_v7 = vld [vmem:[%s514_s0 + $0x38] sm:$0xff]  ;;  %v65_v8 = vadd.f32 %v17_v3, %v13_v0  ;;  %v83_v9 = vadd.f32 %v18_v4, %v14_v1  ;;  %v21_v10 = vld [vmem:[%s514_s0 + $0x40] sm:$0xff] }
   0x4   :  { %v342_v11 = vld [vmem:[%s514_s0 + $0x48] sm:$0xff]  ;;  %v101_v12 = vadd.f32 %v329_v6, %v15_v2  ;;  %v119_v13 = vadd.f32 %v334_v7, %v16_v5  ;;  %v349_v14 = vld [vmem:[%s514_s0 + $0x50] sm:$0xff]  ;;  %v354_v15 = vld [vmem:[%s514_s0 + $0x58] sm:$0xff]  ;;  %v143_v0 = vmul.f32 %v329_v6, %v329_v6  ;;  %v144_v1 = vmul.f32 %v334_v7, %v334_v7 }
   0x5   :  { %v66_v16 = vadd.f32 %v65_v8, %v21_v10  ;;  %v84_v17 = vadd.f32 %v83_v9, %v342_v11  ;;  %v25_v18 = vld [vmem:[%s514_s0 + $0x60] sm:$0xff]  ;;  %v26_v19 = vld [vmem:[%s514_s0 + $0x68] sm:$0xff]  ;;  %v27_v22 = vld [vmem:[%s514_s0 + $0x70] sm:$0xff]  ;;  %v140_v8 = vmul.f32 %v16_v5, %v16_v5  ;;  %v141_v9 = vmul.f32 %v17_v3, %v17_v3 }
   0x6   :  { %v102_v20 = vadd.f32 %v101_v12, %v349_v14  ;;  %v120_v21 = vadd.f32 %v119_v13, %v354_v15  ;;  %v28_v23 = vld [vmem:[%s514_s0 + $0x78] sm:$0xff]  ;;  %v29_v26 = vld [vmem:[%s514_s0 + $0x80] sm:$0xff]  ;;  %v30_v27 = vld [vmem:[%s514_s0 + $0x88] sm:$0xff]  ;;  %v142_v12 = vmul.f32 %v18_v4, %v18_v4  ;;  %v146_v5 = vmul.f32 %v342_v11, %v342_v11 }
   0x7   :  { %v67_v24 = vadd.f32 %v66_v16, %v25_v18  ;;  %v85_v25 = vadd.f32 %v84_v17, %v26_v19  ;;  %v31_v30 = vld [vmem:[%s514_s0 + $0x90] sm:$0xff]  ;;  %v32_v31 = vld [vmem:[%s514_s0 + $0x98] sm:$0xff]  ;;  %v33_v34 = vld [vmem:[%s514_s0 + $0xa0] sm:$0xff]  ;;  %v148_v6 = vmul.f32 %v354_v15, %v354_v15 }
   0x8   :  { %v103_v28 = vadd.f32 %v102_v20, %v27_v22  ;;  %v121_v29 = vadd.f32 %v120_v21, %v28_v23  ;;  %v34_v35 = vld [vmem:[%s514_s0 + $0xa8] sm:$0xff]  ;;  %v35_v38 = vld [vmem:[%s514_s0 + $0xb0] sm:$0xff]  ;;  %v36_v39 = vld [vmem:[%s514_s0 + $0xb8] sm:$0xff]  ;;  %v145_v20 = vmul.f32 %v21_v10, %v21_v10  ;;  %v147_v21 = vmul.f32 %v349_v14, %v349_v14 }
   0x9   :  { %v68_v32 = vadd.f32 %v67_v24, %v29_v26  ;;  %v86_v33 = vadd.f32 %v85_v25, %v30_v27  ;;  %v37_v42 = vld [vmem:[%s514_s0 + $0xc0] sm:$0xff]  ;;  %v38_v43 = vld [vmem:[%s514_s0 + $0xc8] sm:$0xff]  ;;  %v39_v46 = vld [vmem:[%s514_s0 + $0xd0] sm:$0xff]  ;;  %v149_v25 = vmul.f32 %v25_v18, %v25_v18  ;;  %v151_v10 = vmul.f32 %v27_v22, %v27_v22 }
   0xa   :  { %v104_v36 = vadd.f32 %v103_v28, %v31_v30  ;;  %v122_v37 = vadd.f32 %v121_v29, %v32_v31  ;;  %v40_v47 = vld [vmem:[%s514_s0 + $0xd8] sm:$0xff]  ;;  %v41_v50 = vld [vmem:[%s514_s0 + $0xe0] sm:$0xff]  ;;  %v42_v53 = vld [vmem:[%s514_s0 + $0xe8] sm:$0xff]  ;;  %v150_v28 = vmul.f32 %v26_v19, %v26_v19  ;;  %v152_v29 = vmul.f32 %v28_v23, %v28_v23 }
   0xb   :  { %v69_v40 = vadd.f32 %v68_v32, %v33_v34  ;;  %v87_v41 = vadd.f32 %v86_v33, %v34_v35  ;;  %v43_v54 = vld [vmem:[%s514_s0 + $0xf0] sm:$0xff]  ;;  %v44_v56 = vld [vmem:[%s514_s0 + $0xf8] sm:$0xff]  ;;  %v45_v62 = vld [vmem:[%s514_s0 + $0x100] sm:$0xff]  ;;  %v153_v32 = vmul.f32 %v29_v26, %v29_v26  ;;  %v154_v33 = vmul.f32 %v30_v27, %v30_v27 }
   0xc   :  { %v105_v44 = vadd.f32 %v104_v36, %v35_v38  ;;  %v123_v45 = vadd.f32 %v122_v37, %v36_v39  ;;  %v46_v13 = vld [vmem:[%s514_s0 + $0x108] sm:$0xff]  ;;  %v47_v16 = vld [vmem:[%s514_s0 + $0x110] sm:$0xff]  ;;  %v48_v2 = vld [vmem:[%s514_s0 + $0x118] sm:$0xff]  ;;  %v155_v15 = vmul.f32 %v31_v30, %v31_v30  ;;  %v156_v18 = vmul.f32 %v32_v31, %v32_v31 }
   0xd   :  { %v70_v48 = vadd.f32 %v69_v40, %v37_v42  ;;  %v88_v49 = vadd.f32 %v87_v41, %v38_v43  ;;  %v49_v7 = vld [vmem:[%s514_s0 + $0x120] sm:$0xff]  ;;  %v50_v11 = vld [vmem:[%s514_s0 + $0x128] sm:$0xff]  ;;  %v51_v14 = vld [vmem:[%s514_s0 + $0x130] sm:$0xff]  ;;  %v157_v19 = vmul.f32 %v33_v34, %v33_v34  ;;  %v158_v26 = vmul.f32 %v34_v35, %v34_v35 }
   0xe   :  { %v106_v51 = vadd.f32 %v105_v44, %v39_v46  ;;  %v124_v52 = vadd.f32 %v123_v45, %v40_v47  ;;  %v52_v37 = vld [vmem:[%s514_s0 + $0x138] sm:$0xff]  ;;  %v159_v27 = vmul.f32 %v35_v38, %v35_v38  ;;  %v160_v41 = vmul.f32 %v36_v39, %v36_v39  ;;  %v54_v35 = vld [vmem:[%s514_s0 + $0x148] sm:$0xff]  ;;  %v55_v38 = vld [vmem:[%s514_s0 + $0x150] sm:$0xff] }
   0xf   :  { %v71_v55 = vadd.f32 %v70_v48, %v41_v50  ;;  %v89_v57 = vadd.f32 %v88_v49, %v42_v53  ;;  %v161_v44 = vmul.f32 %v37_v42, %v37_v42  ;;  %v453_v45 = vmul.f32 %v38_v43, %v38_v43  ;;  %v53_v48 = vld [vmem:[%s514_s0 + $0x140] sm:$0xff] }
  0x10   :  { %v107_v58 = vadd.f32 %v106_v51, %v43_v54  ;;  %v125_v59 = vadd.f32 %v124_v52, %v44_v56  ;;  %v163_v30 = vmul.f32 %v39_v46, %v39_v46  ;;  %v458_v31 = vmul.f32 %v40_v47, %v40_v47  ;;  %v56_v47 = vld [vmem:[%s514_s0 + $0x158] sm:$0xff] }
  0x11   :  { %v72_v17 = vadd.f32 %v71_v55, %v45_v62  ;;  %v90_v3 = vadd.f32 %v89_v57, %v46_v13  ;;  %v460_v34 = vmul.f32 %v41_v50, %v41_v50  ;;  %v462_v49 = vmul.f32 %v42_v53, %v42_v53 }
  0x12   :  { %v108_v4 = vadd.f32 %v107_v58, %v47_v16  ;;  %v126_v24 = vadd.f32 %v125_v59, %v48_v2  ;;  %v470_v42 = vmul.f32 %v43_v54, %v43_v54  ;;  %v472_v43 = vmul.f32 %v44_v56, %v44_v56  ;;  %v57_v54 = vld [vmem:[%s514_s0 + $0x160] sm:$0xff] }
  0x13   :  { %v73_v36 = vadd.f32 %v72_v17, %v49_v7  ;;  %v91_v22 = vadd.f32 %v90_v3, %v50_v11  ;;  %v189_v46 = vadd.f32 %v141_v9, %v137_v60  ;;  %v207_v52 = vadd.f32 %v142_v12, %v138_v61  ;;  %v58_v9 = vld [vmem:[%s514_s0 + $0x168] sm:$0xff]  ;;  %v59_v61 = vld [vmem:[%s514_s0 + $0x170] sm:$0xff] }
  0x14   :  { %v109_v23 = vadd.f32 %v108_v4, %v51_v14  ;;  %v127_v40 = vadd.f32 %v126_v24, %v52_v37  ;;  %v225_v53 = vadd.f32 %v143_v0, %v139_v63  ;;  %v169_v57 = vmul.f32 %v45_v62, %v45_v62  ;;  %v60_v0 = vld [vmem:[%s514_s0 + $0x178] sm:$0xff] }
  0x15   :  { %v74_v39 = vadd.f32 %v73_v36, %v53_v48  ;;  %v92_v50 = vadd.f32 %v91_v22, %v54_v35  ;;  %v190_v58 = vadd.f32 %v189_v46, %v145_v20  ;;  %v243_v59 = vadd.f32 %v144_v1, %v140_v8  ;;  %v61_v36 = vld [vmem:[%s514_s0 + $0x180] sm:$0xff] }
  0x16   :  { %v110_v51 = vadd.f32 %v109_v23, %v55_v38  ;;  %v128_v55 = vadd.f32 %v127_v40, %v56_v47  ;;  %v170_v17 = vmul.f32 %v46_v13, %v46_v13  ;;  %v171_v56 = vmul.f32 %v47_v16, %v47_v16  ;;  %v62_v23 = vld [vmem:[%s514_s0 + $0x188] sm:$0xff]  ;;  %v64_v40 = vld [vmem:[%s514_s0 + $0x198] sm:$0xff] }
  0x17   :  { %v208_v3 = vadd.f32 %v207_v52, %v146_v5  ;;  %v226_v60 = vadd.f32 %v225_v53, %v147_v21  ;;  %v75_v63 = vadd.f32 %v74_v39, %v57_v54  ;;  %v172_v62 = vmul.f32 %v48_v2, %v48_v2 }
  0x18   :  { %v191_v12 = vadd.f32 %v190_v58, %v149_v25  ;;  %v244_v8 = vadd.f32 %v243_v59, %v148_v6  ;;  %v93_v13 = vadd.f32 %v92_v50, %v58_v9  ;;  %v111_v16 = vadd.f32 %v110_v51, %v59_v61 }
  0x19   :  { %v209_v1 = vadd.f32 %v208_v3, %v150_v28  ;;  %v227_v20 = vadd.f32 %v226_v60, %v151_v10  ;;  %v129_v4 = vadd.f32 %v128_v55, %v60_v0  ;;  %v173_v5 = vmul.f32 %v49_v7, %v49_v7  ;;  %v63_v28 = vld [vmem:[%s514_s0 + $0x190] sm:$0xff] }
  0x1a   :  { %v192_v21 = vadd.f32 %v191_v12, %v153_v32  ;;  %v245_v24 = vadd.f32 %v244_v8, %v152_v29  ;;  %v174_v22 = vmul.f32 %v50_v11, %v50_v11  ;;  %v175_v2 = vmul.f32 %v51_v14, %v51_v14 }
  0x1b   :  { %v210_v25 = vadd.f32 %v209_v1, %v154_v33  ;;  %v228_v6 = vadd.f32 %v227_v20, %v155_v15  ;;  %v76_v10 = vadd.f32 %v75_v63, %v61_v36  ;;  %v176_v7 = vmul.f32 %v52_v37, %v52_v37 }
  0x1c   :  { %v193_v32 = vadd.f32 %v192_v21, %v157_v19  ;;  %v246_v29 = vadd.f32 %v245_v24, %v156_v18  ;;  %v94_v11 = vadd.f32 %v93_v13, %v62_v23  ;;  %v112_v14 = vadd.f32 %v111_v16, %v63_v28 }
  0x1d   :  { %v211_v33 = vadd.f32 %v210_v25, %v158_v26  ;;  %v229_v15 = vadd.f32 %v228_v6, %v159_v27  ;;  %v130_v39 = vadd.f32 %v129_v4, %v64_v40  ;;  %v177_v46 = vmul.f32 %v53_v48, %v53_v48 }
  0x1e   :  { %v194_v50 = vadd.f32 %v193_v32, %v161_v44  ;;  %v247_v51 = vadd.f32 %v246_v29, %v160_v41  ;;  %v178_v52 = vmul.f32 %v54_v35, %v54_v35  ;;  %v179_v53 = vmul.f32 %v55_v38, %v55_v38 }
  0x1f   :  { %v212_v55 = vadd.f32 %v211_v33, %v453_v45  ;;  %v230_v58 = vadd.f32 %v229_v15, %v163_v30  ;;  %v77_v37 = vrot.slane %v76_v10, 4  ;;  %v180_v19 = vmul.f32 %v56_v47, %v56_v47 }
  0x20   :  { %v195_v18 = vadd.f32 %v194_v50, %v460_v34  ;;  %v248_v59 = vadd.f32 %v247_v51, %v458_v31  ;;  %v95_v3 = vrot.slane %v94_v11, 4  ;;  %v113_v60 = vrot.slane %v112_v14, 4 }
  0x21   :  { %v213_v26 = vadd.f32 %v212_v55, %v462_v49  ;;  %v231_v27 = vadd.f32 %v230_v58, %v470_v42  ;;  %v131_v48 = vrot.slane %v130_v39, 4  ;;  %v181_v44 = vmul.f32 %v57_v54, %v57_v54 }
  0x22   :  { %v196_v41 = vadd.f32 %v195_v18, %v169_v57  ;;  %v249_v35 = vadd.f32 %v248_v59, %v472_v43  ;;  %v182_v38 = vmul.f32 %v58_v9, %v58_v9  ;;  %v183_v45 = vmul.f32 %v59_v61, %v59_v61 }
  0x23   :  { %v214_v30 = vadd.f32 %v213_v26, %v170_v17  ;;  %v232_v63 = vadd.f32 %v231_v27, %v171_v56  ;;  %v78_v47 = vadd.f32 %v77_v37, %v76_v10  ;;  %v184_v12 = vmul.f32 %v60_v0, %v60_v0 }
  0x24   :  { %v197_v34 = vadd.f32 %v196_v41, %v173_v5  ;;  %v250_v8 = vadd.f32 %v249_v35, %v172_v62  ;;  %v96_v31 = vadd.f32 %v95_v3, %v94_v11  ;;  %v114_v13 = vadd.f32 %v113_v60, %v112_v14 }
  0x25   :  { %v215_v16 = vadd.f32 %v214_v30, %v174_v22  ;;  %v233_v1 = vadd.f32 %v232_v63, %v175_v2  ;;  %v132_v49 = vadd.f32 %v131_v48, %v130_v39  ;;  %v185_v20 = vmul.f32 %v61_v36, %v61_v36 }
  0x26   :  { %v198_v42 = vadd.f32 %v197_v34, %v177_v46  ;;  %v251_v4 = vadd.f32 %v250_v8, %v176_v7  ;;  %v186_v54 = vmul.f32 %v62_v23, %v62_v23  ;;  %v187_v57 = vmul.f32 %v63_v28, %v63_v28 }
  0x27   :  { %v216_v21 = vadd.f32 %v215_v16, %v178_v52  ;;  %v234_v43 = vadd.f32 %v233_v1, %v179_v53  ;;  %v79_v9 = vrot.slane %v78_v47, 2  ;;  %v188_v61 = vmul.f32 %v64_v40, %v64_v40 }
  0x28   :  { %v199_v17 = vadd.f32 %v198_v42, %v181_v44  ;;  %v252_v56 = vadd.f32 %v251_v4, %v180_v19  ;;  %v97_v24 = vrot.slane %v96_v31, 2  ;;  %v115_v0 = vrot.slane %v114_v13, 2 }
  0x29   :  { %v217_v5 = vadd.f32 %v216_v21, %v182_v38  ;;  %v235_v62 = vadd.f32 %v234_v43, %v183_v45  ;;  %v133_v25 = vrot.slane %v132_v49, 2  ;;  %v80_v36 = vadd.f32 %v79_v9, %v78_v47 }
  0x2a   :  { %v200_v6 = vadd.f32 %v199_v17, %v185_v20  ;;  %v253_v22 = vadd.f32 %v252_v56, %v184_v12  ;;  %v98_v23 = vadd.f32 %v97_v24, %v96_v31  ;;  %v116_v28 = vadd.f32 %v115_v0, %v114_v13 }
  0x2b   :  { %v218_v2 = vadd.f32 %v217_v5, %v186_v54  ;;  %v236_v10 = vadd.f32 %v235_v62, %v187_v57  ;;  %v134_v14 = vadd.f32 %v133_v25, %v132_v49  ;;  %v276_v46 = vlaneseq }
  0x2c   :  { %v201_v32 = vrot.slane %v200_v6, 4  ;;  %v254_v7 = vadd.f32 %v253_v22, %v188_v61  ;;  %v81_v50 = vrot.slane %v80_v36, 1  ;;  %v297_v53 = vmov 1983009808  }
  0x2d   :  { %v219_v29 = vrot.slane %v218_v2, 4  ;;  %v237_v11 = vrot.slane %v236_v10, 4  ;;  %v274_v55 = vunpack.c.l.s4 %v297_v53  ;;  %v99_v58 = vrot.slane %v98_v23, 1 }
  0x2e   :  { %v202_v40 = vadd.f32 %v201_v32, %v200_v6  ;;  %v255_v33 = vrot.slane %v254_v7, 4  ;;  %v117_v37 = vrot.slane %v116_v28, 1  ;;  %v135_v59 = vrot.slane %v134_v14, 1 }
  0x2f   :  { %v220_v15 = vadd.f32 %v219_v29, %v218_v2  ;;  %v238_v39 = vadd.f32 %v237_v11, %v236_v10  ;;  %v277_v48 = vshrl.u32 %v276_v46, 7  ;;  %v82_v44 = vadd.f32 %v81_v50, %v80_v36 }
  0x30   :  { %v203_v51 = vrot.slane %v202_v40, 2  ;;  %v256_v52 = vadd.f32 %v255_v33, %v254_v7  ;;  %v275_v38 = vunpack.c.0.s8 %v274_v55  ;;  %v100_v45 = vadd.f32 %v99_v58, %v98_v23 }
  0x31   :  { %v221_v19 = vrot.slane %v220_v15, 2  ;;  %v239_v18 = vrot.slane %v238_v39, 2  ;;  %v118_v30 = vadd.f32 %v117_v37, %v116_v28  ;;  %v136_v12 = vadd.f32 %v135_v59, %v134_v14 }
  0x32   :  { %v204_v3 = vadd.f32 %v203_v51, %v202_v40  ;;  %v257_v60 = vrot.slane %v256_v52, 2  ;;  %v278_v49 = vsub.s32 %v275_v38, %v277_v48 }
  0x33   :  { %v222_v26 = vadd.f32 %v221_v19, %v220_v15  ;;  %v240_v27 = vadd.f32 %v239_v18, %v238_v39 }
  0x34   :  { %v205_v41 = vrot.slane %v204_v3, 1  ;;  %v258_v35 = vadd.f32 %v257_v60, %v256_v52 }
  0x35   :  { %v223_v63 = vrot.slane %v222_v26, 1  ;;  %v241_v47 = vrot.slane %v240_v27, 1 }
  0x36   :  { %v206_v34 = vadd.f32 %v205_v41, %v204_v3  ;;  %v259_v8 = vrot.slane %v258_v35, 1 }
  0x37   :  { %v224_v31 = vadd.f32 %v223_v63, %v222_v26  ;;  %v242_v13 = vadd.f32 %v241_v47, %v240_v27 }
  0x38   :  { %v260_v16 = vadd.f32 %v259_v8, %v258_v35  ;;  %v263_v1 = vsel %vm262_vm0, %v82_v44, %v206_v34 }
  0x39   :  { %v264_v20 = vsel %vm262_vm0, %v100_v45, %v224_v31  ;;  %v265_v42 = vsel %vm262_vm0, %v118_v30, %v242_v13 }
  0x3a   :  { %v266_v4 = vsel %vm262_vm0, %v136_v12, %v260_v16  ;;  %v271_v54 = vcombine.low %v263_v1, %v264_v20 }
  0x3b   :  { %v272_v57 = vcombine.low %v265_v42, %v266_v4 }
  0x3c   :  { %v279_v21 = vrot.slane %v271_v54, %v278_v49 }
  0x3d   :  { %v286_v43 = vrot.slane %v272_v57, %v278_v49 }
  0x3f   :  { %v287_v9 = vcombine.low %v279_v21, %v286_v43 }
  0x41   :  { %290 = vst [vmem:[%s515_s1] sm:$0xff] %v287_v9 }

// kernel: generator_forward.16
= control target key start
LH: loop header
LB: loop body
LE: loop exit
PB: predicated region body
PF: predicated region fallthrough
CT: control target
= control target key end

     0   :  { %v68_v0 = vlaneseq  ;;  %s888_s1 = inlined_call_operand.vmem [shape: f32[1,512], index: 1, kind: input, shape index: {}]   ;;  %s889_s2 = inlined_call_operand.vmem [shape: f32[1,512], index: 2, kind: input, shape index: {}]   ;;  %s890_s0 = inlined_call_operand.vmem [shape: f32[104,512], index: 0, kind: input, shape index: {}]   ;;  %s891_s3 = inlined_call_operand.vmem [shape: bf16[104,512], index: 3, kind: output, shape index: {}]  }
   0x1   :  { %v66_v2 = vld [vmem:[%s888_s1] sm:$0xf]  ;;  %v15_v5 = vld [vmem:[%s890_s0 + $0x8] sm:$0xff]  ;;  %v16_v10 = vld [vmem:[%s890_s0 + $0x10] sm:$0xff] }
   0x2   :  { %v69_v1 = vshrl.u32 %v68_v0, 7  ;;  %v140_v3 = vld [vmem:[%s889_s2] sm:$0xf]  ;;  %v19_v12 = vld [vmem:[%s890_s0 + $0x28] sm:$0xff]  ;;  %v17_v17 = vld [vmem:[%s890_s0 + $0x18] sm:$0xff] }
   0x3   :  { %v14_v4 = vld [vmem:[%s890_s0] sm:$0xff]  ;;  %v20_v18 = vld [vmem:[%s890_s0 + $0x30] sm:$0xff]  ;;  %v21_v19 = vld [vmem:[%s890_s0 + $0x38] sm:$0xff] }
   0x4   :  { %v70_v6 = vsub.s32 0, %v69_v1  ;;  %v74_v7 = vsub.s32 1, %v69_v1  ;;  %v78_v8 = vsub.s32 2, %v69_v1  ;;  %v82_v9 = vsub.s32 3, %v69_v1  ;;  %v18_v11 = vld [vmem:[%s890_s0 + $0x20] sm:$0xff]  ;;  %v23_v41 = vld [vmem:[%s890_s0 + $0x48] sm:$0xff] }
   0x5   :  { %v22_v40 = vld [vmem:[%s890_s0 + $0x40] sm:$0xff]  ;;  %v24_v46 = vld [vmem:[%s890_s0 + $0x50] sm:$0xff]  ;;  %v25_v47 = vld [vmem:[%s890_s0 + $0x58] sm:$0xff] }
   0x6   :  { %v549_v13 = vrot.slane %v66_v2, %v70_v6  ;;  %v551_v14 = vrot.slane %v66_v2, %v74_v7  ;;  %v553_v15 = vrot.slane %v140_v3, %v70_v6  ;;  %v555_v16 = vrot.slane %v140_v3, %v74_v7  ;;  %v26_v52 = vld [vmem:[%s890_s0 + $0x60] sm:$0xff]  ;;  %v27_v53 = vld [vmem:[%s890_s0 + $0x68] sm:$0xff]  ;;  %v28_v58 = vld [vmem:[%s890_s0 + $0x70] sm:$0xff] }
   0x7   :  { %v566_v20 = vrot.slane %v66_v2, %v78_v8  ;;  %v568_v21 = vrot.slane %v66_v2, %v82_v9  ;;  %v570_v22 = vrot.slane %v140_v3, %v78_v8  ;;  %v572_v23 = vrot.slane %v140_v3, %v82_v9  ;;  %v29_v59 = vld [vmem:[%s890_s0 + $0x78] sm:$0xff]  ;;  %v30_v8 = vld [vmem:[%s890_s0 + $0x80] sm:$0xff] }
   0x8   :  { %v88_v24 = vmul.f32 %v549_v13, %v14_v4  ;;  %v89_v25 = vmul.f32 %v551_v14, %v15_v5  ;;  %v92_v26 = vmul.f32 %v549_v13, %v18_v11  ;;  %v93_v27 = vmul.f32 %v551_v14, %v19_v12 }
   0x9   :  { %v90_v28 = vmul.f32 %v566_v20, %v16_v10  ;;  %v91_v29 = vmul.f32 %v568_v21, %v17_v17  ;;  %v94_v30 = vmul.f32 %v566_v20, %v20_v18  ;;  %v95_v31 = vmul.f32 %v568_v21, %v21_v19  ;;  %v31_v17 = vld [vmem:[%s890_s0 + $0x88] sm:$0xff] }
   0xa   :  { %v162_v32 = vadd.f32 %v553_v15, %v88_v24  ;;  %v163_v33 = vadd.f32 %v555_v16, %v89_v25  ;;  %v166_v34 = vadd.f32 %v553_v15, %v92_v26  ;;  %v167_v35 = vadd.f32 %v555_v16, %v93_v27  ;;  %v32_v26 = vld [vmem:[%s890_s0 + $0x90] sm:$0xff]  ;;  %v33_v27 = vld [vmem:[%s890_s0 + $0x98] sm:$0xff] }
   0xb   :  { %v164_v36 = vadd.f32 %v570_v22, %v90_v28  ;;  %v165_v37 = vadd.f32 %v572_v23, %v91_v29  ;;  %v168_v38 = vadd.f32 %v570_v22, %v94_v30  ;;  %v169_v39 = vadd.f32 %v572_v23, %v95_v31 }
   0xc   :  { %v214_v42 = vmax.f32 %v162_v32, 0.0  ;;  %v215_v43 = vmax.f32 %v163_v33, 0.0  ;;  %v218_v44 = vmax.f32 %v166_v34, 0.0  ;;  %v219_v45 = vmax.f32 %v167_v35, 0.0  ;;  %v34_v32 = vld [vmem:[%s890_s0 + $0xa0] sm:$0xff]  ;;  %v35_v33 = vld [vmem:[%s890_s0 + $0xa8] sm:$0xff] }
   0xd   :  { %v216_v48 = vmax.f32 %v164_v36, 0.0  ;;  %v217_v49 = vmax.f32 %v165_v37, 0.0  ;;  %v220_v50 = vmax.f32 %v168_v38, 0.0  ;;  %v221_v51 = vmax.f32 %v169_v39, 0.0  ;;  %v36_v38 = vld [vmem:[%s890_s0 + $0xb0] sm:$0xff] }
   0xe   :  { %v482_v54 = vpack.c.bf16 %v215_v43, %v214_v42  ;;  %v484_v55 = vpack.c.bf16 %v219_v45, %v218_v44  ;;  %v96_v56 = vmul.f32 %v549_v13, %v22_v40  ;;  %v97_v57 = vmul.f32 %v551_v14, %v23_v41  ;;  %v37_v43 = vld [vmem:[%s890_s0 + $0xb8] sm:$0xff] }
   0xf   :  { %v483_v60 = vpack.c.bf16 %v217_v49, %v216_v48  ;;  %v485_v61 = vpack.c.bf16 %v221_v51, %v220_v50  ;;  %v98_v62 = vmul.f32 %v566_v20, %v24_v46  ;;  %v99_v63 = vmul.f32 %v568_v21, %v25_v47  ;;  %v38_v48 = vld [vmem:[%s890_s0 + $0xc0] sm:$0xff] }
  0x10   :  { %426 = vst [vmem:[%s891_s3] sm:$0xff] %v482_v54  ;;  %428 = vst [vmem:[%s891_s3 + $0x10] sm:$0xff] %v484_v55  ;;  %v170_v0 = vadd.f32 %v553_v15, %v96_v56  ;;  %v171_v1 = vadd.f32 %v555_v16, %v97_v57  ;;  %v100_v2 = vmul.f32 %v549_v13, %v26_v52  ;;  %v39_v57 = vld [vmem:[%s890_s0 + $0xc8] sm:$0xff] }
  0x11   :  { %v101_v3 = vmul.f32 %v551_v14, %v27_v53  ;;  %427 = vst [vmem:[%s891_s3 + $0x8] sm:$0xff] %v483_v60  ;;  %429 = vst [vmem:[%s891_s3 + $0x18] sm:$0xff] %v485_v61  ;;  %v172_v4 = vadd.f32 %v570_v22, %v98_v62  ;;  %v173_v5 = vadd.f32 %v572_v23, %v99_v63  ;;  %v40_v62 = vld [vmem:[%s890_s0 + $0xd0] sm:$0xff]  ;;  %v41_v63 = vld [vmem:[%s890_s0 + $0xd8] sm:$0xff] }
  0x12   :  { %v102_v6 = vmul.f32 %v566_v20, %v28_v58  ;;  %v103_v7 = vmul.f32 %v568_v21, %v29_v59  ;;  %v222_v9 = vmax.f32 %v170_v0, 0.0  ;;  %v223_v10 = vmax.f32 %v171_v1, 0.0 }
  0x13   :  { %v174_v11 = vadd.f32 %v553_v15, %v100_v2  ;;  %v175_v12 = vadd.f32 %v555_v16, %v101_v3  ;;  %v224_v18 = vmax.f32 %v172_v4, 0.0  ;;  %v225_v19 = vmax.f32 %v173_v5, 0.0  ;;  %v42_v4 = vld [vmem:[%s890_s0 + $0xe0] sm:$0xff]  ;;  %v43_v5 = vld [vmem:[%s890_s0 + $0xe8] sm:$0xff] }
  0x14   :  { %v176_v24 = vadd.f32 %v570_v22, %v102_v6  ;;  %v177_v25 = vadd.f32 %v572_v23, %v103_v7  ;;  %v486_v28 = vpack.c.bf16 %v223_v10, %v222_v9  ;;  %v104_v31 = vmul.f32 %v549_v13, %v30_v8  ;;  %v44_v10 = vld [vmem:[%s890_s0 + $0xf0] sm:$0xff] }
  0x15   :  { %v226_v29 = vmax.f32 %v174_v11, 0.0  ;;  %v227_v30 = vmax.f32 %v175_v12, 0.0  ;;  %v487_v34 = vpack.c.bf16 %v225_v19, %v224_v18  ;;  %v105_v37 = vmul.f32 %v551_v14, %v31_v17  ;;  %v45_v19 = vld [vmem:[%s890_s0 + $0xf8] sm:$0xff] }
  0x16   :  { %v228_v35 = vmax.f32 %v176_v24, 0.0  ;;  %v229_v36 = vmax.f32 %v177_v25, 0.0  ;;  %430 = vst [vmem:[%s891_s3 + $0x20] sm:$0xff] %v486_v28  ;;  %v178_v40 = vadd.f32 %v553_v15, %v104_v31  ;;  %v106_v41 = vmul.f32 %v566_v20, %v32_v26  ;;  %v46_v28 = vld [vmem:[%s890_s0 + $0x100] sm:$0xff] }
  0x17   :  { %v488_v39 = vpack.c.bf16 %v227_v30, %v226_v29  ;;  %v107_v42 = vmul.f32 %v568_v21, %v33_v27  ;;  %431 = vst [vmem:[%s891_s3 + $0x28] sm:$0xff] %v487_v34  ;;  %v179_v45 = vadd.f32 %v555_v16, %v105_v37  ;;  %v108_v46 = vmul.f32 %v549_v13, %v34_v32  ;;  %v47_v37 = vld [vmem:[%s890_s0 + $0x108] sm:$0xff] }
  0x18   :  { %v489_v44 = vpack.c.bf16 %v229_v36, %v228_v35  ;;  %v109_v47 = vmul.f32 %v551_v14, %v35_v33  ;;  %v230_v49 = vmax.f32 %v178_v40, 0.0  ;;  %v180_v50 = vadd.f32 %v570_v22, %v106_v41 }
  0x19   :  { %432 = vst [vmem:[%s891_s3 + $0x30] sm:$0xff] %v488_v39  ;;  %v181_v51 = vadd.f32 %v572_v23, %v107_v42  ;;  %v110_v52 = vmul.f32 %v566_v20, %v36_v38  ;;  %v231_v53 = vmax.f32 %v179_v45, 0.0  ;;  %v182_v54 = vadd.f32 %v553_v15, %v108_v46  ;;  %v48_v42 = vld [vmem:[%s890_s0 + $0x110] sm:$0xff] }
  0x1a   :  { %433 = vst [vmem:[%s891_s3 + $0x38] sm:$0xff] %v489_v44  ;;  %v183_v55 = vadd.f32 %v555_v16, %v109_v47  ;;  %v111_v56 = vmul.f32 %v568_v21, %v37_v43  ;;  %v232_v58 = vmax.f32 %v180_v50, 0.0  ;;  %v112_v61 = vmul.f32 %v549_v13, %v38_v48  ;;  %v49_v43 = vld [vmem:[%s890_s0 + $0x118] sm:$0xff]  ;;  %v50_v48 = vld [vmem:[%s890_s0 + $0x120] sm:$0xff] }
  0x1b   :  { %v233_v59 = vmax.f32 %v181_v51, 0.0  ;;  %v184_v60 = vadd.f32 %v570_v22, %v110_v52  ;;  %v490_v0 = vpack.c.bf16 %v231_v53, %v230_v49  ;;  %v234_v1 = vmax.f32 %v182_v54, 0.0  ;;  %v51_v49 = vld [vmem:[%s890_s0 + $0x128] sm:$0xff]  ;;  %v52_v54 = vld [vmem:[%s890_s0 + $0x130] sm:$0xff] }
  0x1c   :  { %v235_v2 = vmax.f32 %v183_v55, 0.0  ;;  %v185_v3 = vadd.f32 %v572_v23, %v111_v56  ;;  %v113_v8 = vmul.f32 %v551_v14, %v39_v57  ;;  %v186_v9 = vadd.f32 %v553_v15, %v112_v61 }
  0x1d   :  { %v491_v6 = vpack.c.bf16 %v233_v59, %v232_v58  ;;  %v236_v7 = vmax.f32 %v184_v60, 0.0  ;;  %434 = vst [vmem:[%s891_s3 + $0x40] sm:$0xff] %v490_v0  ;;  %v114_v17 = vmul.f32 %v566_v20, %v40_v62  ;;  %v115_v18 = vmul.f32 %v568_v21, %v41_v63  ;;  %v53_v59 = vld [vmem:[%s890_s0 + $0x138] sm:$0xff]  ;;  %v54_v0 = vld [vmem:[%s890_s0 + $0x140] sm:$0xff] }
  0x1e   :  { %v492_v11 = vpack.c.bf16 %v235_v2, %v234_v1  ;;  %v237_v12 = vmax.f32 %v185_v3, 0.0  ;;  %v187_v24 = vadd.f32 %v555_v16, %v113_v8  ;;  %v238_v25 = vmax.f32 %v186_v9, 0.0  ;;  %v55_v9 = vld [vmem:[%s890_s0 + $0x148] sm:$0xff] }
  0x1f   :  { %435 = vst [vmem:[%s891_s3 + $0x48] sm:$0xff] %v491_v6  ;;  %v116_v26 = vmul.f32 %v549_v13, %v42_v4  ;;  %v117_v27 = vmul.f32 %v551_v14, %v43_v5  ;;  %v188_v30 = vadd.f32 %v570_v22, %v114_v17  ;;  %v189_v31 = vadd.f32 %v572_v23, %v115_v18  ;;  %v56_v18 = vld [vmem:[%s890_s0 + $0x150] sm:$0xff] }
  0x20   :  { %436 = vst [vmem:[%s891_s3 + $0x50] sm:$0xff] %v492_v11  ;;  %v493_v29 = vpack.c.bf16 %v237_v12, %v236_v7  ;;  %v118_v32 = vmul.f32 %v566_v20, %v44_v10  ;;  %v239_v33 = vmax.f32 %v187_v24, 0.0  ;;  %v119_v36 = vmul.f32 %v568_v21, %v45_v19  ;;  %v57_v19 = vld [vmem:[%s890_s0 + $0x158] sm:$0xff] }
  0x21   :  { %v190_v34 = vadd.f32 %v553_v15, %v116_v26  ;;  %v191_v35 = vadd.f32 %v555_v16, %v117_v27  ;;  %v240_v38 = vmax.f32 %v188_v30, 0.0  ;;  %v241_v39 = vmax.f32 %v189_v31, 0.0 }
  0x22   :  { %437 = vst [vmem:[%s891_s3 + $0x58] sm:$0xff] %v493_v29  ;;  %v192_v40 = vadd.f32 %v570_v22, %v118_v32  ;;  %v120_v41 = vmul.f32 %v549_v13, %v46_v28  ;;  %v494_v44 = vpack.c.bf16 %v239_v33, %v238_v25  ;;  %v193_v47 = vadd.f32 %v572_v23, %v119_v36  ;;  %v58_v28 = vld [vmem:[%s890_s0 + $0x160] sm:$0xff]  ;;  %v59_v29 = vld [vmem:[%s890_s0 + $0x168] sm:$0xff] }
  0x23   :  { %v242_v45 = vmax.f32 %v190_v34, 0.0  ;;  %v243_v46 = vmax.f32 %v191_v35, 0.0  ;;  %v495_v50 = vpack.c.bf16 %v241_v39, %v240_v38  ;;  %v121_v52 = vmul.f32 %v551_v14, %v47_v37  ;;  %v60_v34 = vld [vmem:[%s890_s0 + $0x170] sm:$0xff]  ;;  %v61_v39 = vld [vmem:[%s890_s0 + $0x178] sm:$0xff] }
  0x24   :  { %v244_v51 = vmax.f32 %v192_v40, 0.0  ;;  %v194_v53 = vadd.f32 %v553_v15, %v120_v41  ;;  %438 = vst [vmem:[%s891_s3 + $0x60] sm:$0xff] %v494_v44  ;;  %v245_v56 = vmax.f32 %v193_v47, 0.0  ;;  %v122_v57 = vmul.f32 %v566_v20, %v48_v42  ;;  %v62_v44 = vld [vmem:[%s890_s0 + $0x180] sm:$0xff] }
  0x25   :  { %v496_v55 = vpack.c.bf16 %v243_v46, %v242_v45  ;;  %v123_v58 = vmul.f32 %v568_v21, %v49_v43  ;;  %439 = vst [vmem:[%s891_s3 + $0x68] sm:$0xff] %v495_v50  ;;  %v195_v60 = vadd.f32 %v555_v16, %v121_v52  ;;  %v124_v62 = vmul.f32 %v549_v13, %v50_v48 }
  0x26   :  { %v246_v61 = vmax.f32 %v194_v53, 0.0  ;;  %v125_v63 = vmul.f32 %v551_v14, %v51_v49  ;;  %v497_v1 = vpack.c.bf16 %v245_v56, %v244_v51  ;;  %v196_v2 = vadd.f32 %v570_v22, %v122_v57  ;;  %v63_v53 = vld [vmem:[%s890_s0 + $0x188] sm:$0xff] }
  0x27   :  { %440 = vst [vmem:[%s891_s3 + $0x70] sm:$0xff] %v496_v55  ;;  %v197_v3 = vadd.f32 %v572_v23, %v123_v58  ;;  %v126_v4 = vmul.f32 %v566_v20, %v52_v54  ;;  %v247_v5 = vmax.f32 %v195_v60, 0.0  ;;  %v198_v6 = vadd.f32 %v553_v15, %v124_v62  ;;  %v64_v58 = vld [vmem:[%s890_s0 + $0x190] sm:$0xff] }
  0x28   :  { %v199_v7 = vadd.f32 %v555_v16, %v125_v63  ;;  %v127_v8 = vmul.f32 %v568_v21, %v53_v59  ;;  %441 = vst [vmem:[%s891_s3 + $0x78] sm:$0xff] %v497_v1  ;;  %v248_v10 = vmax.f32 %v196_v2, 0.0  ;;  %v128_v17 = vmul.f32 %v549_v13, %v54_v0  ;;  %v65_v59 = vld [vmem:[%s890_s0 + $0x198] sm:$0xff] }
  0x29   :  { %v249_v11 = vmax.f32 %v197_v3, 0.0  ;;  %v200_v12 = vadd.f32 %v570_v22, %v126_v4  ;;  %v498_v24 = vpack.c.bf16 %v247_v5, %v246_v61  ;;  %v250_v25 = vmax.f32 %v198_v6, 0.0 }
  0x2a   :  { %v251_v26 = vmax.f32 %v199_v7, 0.0  ;;  %v201_v27 = vadd.f32 %v572_v23, %v127_v8  ;;  %v129_v32 = vmul.f32 %v551_v14, %v55_v9  ;;  %v202_v33 = vadd.f32 %v553_v15, %v128_v17 }
  0x2b   :  { %v499_v30 = vpack.c.bf16 %v249_v11, %v248_v10  ;;  %v252_v31 = vmax.f32 %v200_v12, 0.0  ;;  %442 = vst [vmem:[%s891_s3 + $0x80] sm:$0xff] %v498_v24  ;;  %v130_v37 = vmul.f32 %v566_v20, %v56_v18  ;;  %v131_v38 = vmul.f32 %v568_v21, %v57_v19 }
  0x2c   :  { %v500_v35 = vpack.c.bf16 %v251_v26, %v250_v25  ;;  %v253_v36 = vmax.f32 %v201_v27, 0.0  ;;  %v203_v40 = vadd.f32 %v555_v16, %v129_v32  ;;  %v254_v41 = vmax.f32 %v202_v33, 0.0 }
  0x2d   :  { %443 = vst [vmem:[%s891_s3 + $0x88] sm:$0xff] %v499_v30  ;;  %v132_v42 = vmul.f32 %v549_v13, %v58_v28  ;;  %v133_v43 = vmul.f32 %v551_v14, %v59_v29  ;;  %v204_v46 = vadd.f32 %v570_v22, %v130_v37  ;;  %v205_v47 = vadd.f32 %v572_v23, %v131_v38 }
  0x2e   :  { %444 = vst [vmem:[%s891_s3 + $0x90] sm:$0xff] %v500_v35  ;;  %v501_v45 = vpack.c.bf16 %v253_v36, %v252_v31  ;;  %v134_v48 = vmul.f32 %v566_v20, %v60_v34  ;;  %v255_v49 = vmax.f32 %v203_v40, 0.0  ;;  %v135_v52 = vmul.f32 %v568_v21, %v61_v39 }
  0x2f   :  { %v206_v50 = vadd.f32 %v553_v15, %v132_v42  ;;  %v207_v51 = vadd.f32 %v555_v16, %v133_v43  ;;  %v256_v54 = vmax.f32 %v204_v46, 0.0  ;;  %v257_v55 = vmax.f32 %v205_v47, 0.0 }
  0x30   :  { %445 = vst [vmem:[%s891_s3 + $0x98] sm:$0xff] %v501_v45  ;;  %v208_v56 = vadd.f32 %v570_v22, %v134_v48  ;;  %v136_v57 = vmul.f32 %v549_v13, %v62_v44  ;;  %v502_v60 = vpack.c.bf16 %v255_v49, %v254_v41  ;;  %v209_v63 = vadd.f32 %v572_v23, %v135_v52 }
  0x31   :  { %v258_v61 = vmax.f32 %v206_v50, 0.0  ;;  %v259_v62 = vmax.f32 %v207_v51, 0.0  ;;  %v503_v0 = vpack.c.bf16 %v257_v55, %v256_v54  ;;  %v137_v2 = vmul.f32 %v551_v14, %v63_v53 }
  0x32   :  { %v260_v1 = vmax.f32 %v208_v56, 0.0  ;;  %v210_v3 = vadd.f32 %v553_v15, %v136_v57  ;;  %446 = vst [vmem:[%s891_s3 + $0xa0] sm:$0xff] %v502_v60  ;;  %v261_v4 = vmax.f32 %v209_v63, 0.0  ;;  %v138_v5 = vmul.f32 %v566_v20, %v64_v58 }
  0x33   :  { %v504_v13 = vpack.c.bf16 %v259_v62, %v258_v61  ;;  %v139_v6 = vmul.f32 %v568_v21, %v65_v59  ;;  %447 = vst [vmem:[%s891_s3 + $0xa8] sm:$0xff] %v503_v0  ;;  %v211_v7 = vadd.f32 %v555_v16, %v137_v2 }
  0x34   :  { %v262_v8 = vmax.f32 %v210_v3, 0.0  ;;  %v505_v14 = vpack.c.bf16 %v261_v4, %v260_v1  ;;  %v212_v15 = vadd.f32 %v570_v22, %v138_v5 }
  0x35   :  { %448 = vst [vmem:[%s891_s3 + $0xb0] sm:$0xff] %v504_v13  ;;  %v213_v9 = vadd.f32 %v572_v23, %v139_v6  ;;  %v263_v10 = vmax.f32 %v211_v7, 0.0 }
  0x36   :  { %449 = vst [vmem:[%s891_s3 + $0xb8] sm:$0xff] %v505_v14  ;;  %v264_v20 = vmax.f32 %v212_v15, 0.0 }
  0x37   :  { %v265_v21 = vmax.f32 %v213_v9, 0.0  ;;  %v506_v11 = vpack.c.bf16 %v263_v10, %v262_v8 }
  0x39   :  { %v507_v12 = vpack.c.bf16 %v265_v21, %v264_v20  ;;  %450 = vst [vmem:[%s891_s3 + $0xc0] sm:$0xff] %v506_v11 }
  0x3b   :  { %451 = vst [vmem:[%s891_s3 + $0xc8] sm:$0xff] %v507_v12 }

// kernel: generator_forward.17
= control target key start
LH: loop header
LB: loop body
LE: loop exit
PB: predicated region body
PF: predicated region fallthrough
CT: control target
= control target key end

     0   :  { %s1869_s0 = inlined_call_operand.vmem [shape: bf16[104,512], index: 0, kind: input, shape index: {}]   ;;  %s1870_s1 = inlined_call_operand.vmem [shape: bf16[512,4096], index: 1, kind: input, shape index: {}]   ;;  %s1871_s2 = inlined_call_operand.vmem [shape: f32[104,4096], index: 2, kind: output, shape index: {}]  }
   0x1   :  { %1872 = sst [smem:[#allocation5_spill]] %s1869_s0 }
   0x2   :  { %s1459_s9 = smov 0   ;;  %s1461_s10 = smov 0  }
   0x3   :  { %s1463_s11 = smov 0   ;;  %s1465_s12 = smov 0  }
   0x4   :  { %s1467_s13 = smov 0   ;;  %s1469_s14 = smov 0  }
   0x5   :  { %s1471_s15 = smov 0   ;;  %s1473_s16 = smov 0  }
   0x6   :  { %s1475_s17 = smov 0   ;;  %s1477_s18 = smov 0  }
   0x7   :  { %s1479_s19 = smov 0  }
   0x8 LB: > { %s1096_s20 = sadd.s32 4294967295, %s1441_s19   ;;  %s24_s21 = sadd.s32 1, %s1433_s17  ;;  %s1441_s19 = sphi %s1479_s19, %s12_s19   ;;  %s1437_s18 = sphi %s1477_s18, %s1886_s18   ;;  %s1433_s17 = sphi %s1475_s17, %s1885_s17   ;;  %s1429_s16 = sphi %s1473_s16, %s1884_s16   ;;  %s1425_s15 = sphi %s1471_s15, %s1883_s15   ;;  %s1421_s14 = sphi %s1469_s14, %s1882_s14   ;;  %s1417_s13 = sphi %s1467_s13, %s1881_s13   ;;  %s1413_s12 = sphi %s1465_s12, %s1880_s12   ;;  %s1409_s11 = sphi %s1463_s11, %s1879_s11   ;;  %s1405_s10 = sphi %s1461_s10, %s1878_s10   ;;  %s1401_s9 = sphi %s1459_s9, %s1877_s9  }
   0x9   : > { %p25_p0 = scmp.ge.s32.totalorder %s24_s21, 2  ;;  %s27_s22 = sadd.s32 1, %s1437_s18 }
   0xa   : > { %s40_s23 = sadd.s32 1, %s1421_s14  ;;  %p47_p1 = scmp.ne.s32.totalorder %s1421_s14, %s1417_s13 }
   0xb   : > { %s1888_s21 = smov (%p25_p0, %s24_s21), 0  ;;  %s1890_s22 = smov (!%p25_p0, %s27_s22), %s1437_s18 }
   0xc   : > { %s36_s24 = ssub.s32 %s1433_s17, %s1888_s21  ;;  %p48_p2 = scmp.eq.s32.totalorder %s1441_s19, 0 }
   0xd   : > { %p29_p3 = scmp.ge.s32.totalorder %s1890_s22, 16  ;;  %p38_p4 = scmp.eq.s32.totalorder %s36_s24, 0 }
   0xe   : > { %p1526_p5 = por %p48_p2, %p47_p1  ;;  %s68_s26 = sadd.s32 1, %s1413_s12 }
   0xf   : > { %s1892_s22 = smov (%p29_p3, %s1890_s22), 0  ;;  %p75_p6 = scmp.ne.s32.totalorder %s1413_s12, %s1409_s11 }
  0x10   : > { %s1534_s27 = scalar_select %p38_p4, %s1421_s14, %s40_s23  }
  0x11   : > { %s64_s28 = ssub.s32 %s1437_s18, %s1892_s22  ;;  %p1540_p9 = por %p75_p6, %p48_p2 }
  0x12   : > { %s65_s29 = sor.u32 %s64_s28, %s36_s24  ;;  %p94_p7 = scmp.eq.s32.totalorder %s64_s28, 0 }
  0x13   : > { %p66_p8 = scmp.eq.s32.totalorder %s65_s29, 0  ;;  %s96_s3 = sadd.s32 1, %s1405_s10 }
  0x14   : > { %p106_p10 = scmp.ne.s32.totalorder %s1405_s10, %s1401_s9  ;;  %p107_p11 = scmp.eq.s32.totalorder %s1096_s20, 31 }
  0x15   : > { %s1548_s4 = scalar_select %p66_p8, %s1413_s12, %s68_s26  }
  0x16   : > { %s1551_s5 = scalar_select %p94_p7, %s1405_s10, %s96_s3  }
  0x17   : > { %p1553_p12 = por %p107_p11, %p106_p10  ;;  %p1099_p13 = scmp.ge.s32.totalorder %s1441_s19, 32 }
  0x19   : > { %129 = sbr.rel (%p1099_p13) target bundleno = 88 (0x58), region = 16 }
  0x20   : > { %132 = sbr.rel (!%p1526_p5) target bundleno = 49 (0x31), region = 20  ;;  %s134_s7 = sand.u32 (%p1526_p5), 1, %s1421_s14  }
  0x21   : > { %s1160_s8 = sshll.u32 (%p1526_p5), %s1433_s17, 3  ;;  %s1195_s23 = smul.u32 (%p1526_p5), 104, %s134_s7 }
  0x22   : > { %s1876_s0 = sld [smem:[#allocation5_spill]] (%p1526_p5) }
  0x23   : > { %s136_s20 = scalar_lea.vmem (%p1526_p5), [#allocation2], %s1195_s23 }
  0x28   : > { %s142_s28 = scalar_lea.vmem %s1876_s0, %s1160_s8 }
  0x29   : > { %v194_v0 = vld [vmem:[%s142_s28] sm:$0xff]  ;;  %v196_v1 = vld [vmem:[%s142_s28 + $0x10] sm:$0xff] }
  0x2a   : > { %v198_v2 = vld [vmem:[%s142_s28 + $0x20] sm:$0xff]  ;;  %v200_v3 = vld [vmem:[%s142_s28 + $0x30] sm:$0xff]  ;;  %195 = vst [vmem:[%s136_s20] sm:$0xff] %v194_v0  ;;  %197 = vst [vmem:[%s136_s20 + $0x8] sm:$0xff] %v196_v1 }
  0x2b   : > { %v202_v4 = vld [vmem:[%s142_s28 + $0x40] sm:$0xff]  ;;  %v204_v5 = vld [vmem:[%s142_s28 + $0x50] sm:$0xff]  ;;  %199 = vst [vmem:[%s136_s20 + $0x10] sm:$0xff] %v198_v2  ;;  %201 = vst [vmem:[%s136_s20 + $0x18] sm:$0xff] %v200_v3 }
  0x2c   : > { %203 = vst [vmem:[%s136_s20 + $0x20] sm:$0xff] %v202_v4  ;;  %205 = vst [vmem:[%s136_s20 + $0x28] sm:$0xff] %v204_v5  ;;  %v206_v6 = vld [vmem:[%s142_s28 + $0x60] sm:$0xff]  ;;  %v208_v7 = vld [vmem:[%s142_s28 + $0x70] sm:$0xff] }
  0x2d   : > { %v210_v8 = vld [vmem:[%s142_s28 + $0x80] sm:$0xff]  ;;  %207 = vst [vmem:[%s136_s20 + $0x30] sm:$0xff] %v206_v6  ;;  %209 = vst [vmem:[%s136_s20 + $0x38] sm:$0xff] %v208_v7  ;;  %v212_v9 = vld [vmem:[%s142_s28 + $0x90] sm:$0xff] }
  0x2e   : > { %211 = vst [vmem:[%s136_s20 + $0x40] sm:$0xff] %v210_v8  ;;  %v214_v10 = vld [vmem:[%s142_s28 + $0xa0] sm:$0xff]  ;;  %v216_v11 = vld [vmem:[%s142_s28 + $0xb0] sm:$0xff]  ;;  %213 = vst [vmem:[%s136_s20 + $0x48] sm:$0xff] %v212_v9 }
  0x2f   : > { %215 = vst [vmem:[%s136_s20 + $0x50] sm:$0xff] %v214_v10  ;;  %217 = vst [vmem:[%s136_s20 + $0x58] sm:$0xff] %v216_v11  ;;  %v218_v12 = vld [vmem:[%s142_s28 + $0xc0] sm:$0xff] }
  0x30   : > { %219 = vst [vmem:[%s136_s20 + $0x60] sm:$0xff] %v218_v12 }
  0x31 PF: > { %225 = sbr.rel (!%p1540_p9) target bundleno = 88 (0x58), region = 58  ;;  %s227_s25 = sand.u32 (%p1540_p9), 1, %s1413_s12  }
  0x32   : > { %s1104_s29 = sshll.u32 (%p1540_p9), %s1437_s18, 1  ;;  %s1102_s3 = sshll.u32 (%p1540_p9), %s227_s25, 8 }
  0x33   : > { %s1161_s7 = sshll.u32 (%p1540_p9), %s1433_s17, 10  ;;  %s1578_s30 = scalar_lea.vmem (%p1540_p9), [#allocation3], %s1102_s3 }
  0x34   : > { %s233_s8 = sadd.s32 (%p1540_p9), %s1161_s7, %s1104_s29 }
  0x35   : > { %s1106_s23 = sshll.u32 (%p1540_p9), %s233_s8, 2 }
  0x36   : > { %s1573_s0 = scalar_lea.vmem (%p1540_p9), %s1870_s1, %s1106_s23 }
  0x37   : > { %v325_v13 = vld [vmem:[%s1573_s0] sm:$0xff] (%p1540_p9) }
  0x38   : > { %v327_v14 = vld [vmem:[%s1573_s0 + $0x80] sm:$0xff]  ;;  %326 = vst [vmem:[%s1578_s30] sm:$0xff] %v325_v13 }
  0x39   : > { %v329_v15 = vld [vmem:[%s1573_s0 + $0x100] sm:$0xff]  ;;  %328 = vst [vmem:[%s1578_s30 + $0x8] sm:$0xff] %v327_v14 }
  0x3a   : > { %330 = vst [vmem:[%s1578_s30 + $0x10] sm:$0xff] %v329_v15  ;;  %v331_v16 = vld [vmem:[%s1573_s0 + $0x180] sm:$0xff] }
  0x3b   : > { %v333_v17 = vld [vmem:[%s1573_s0 + $0x200] sm:$0xff]  ;;  %332 = vst [vmem:[%s1578_s30 + $0x18] sm:$0xff] %v331_v16 }
  0x3c   : > { %v335_v18 = vld [vmem:[%s1573_s0 + $0x280] sm:$0xff]  ;;  %334 = vst [vmem:[%s1578_s30 + $0x20] sm:$0xff] %v333_v17 }
  0x3d   : > { %336 = vst [vmem:[%s1578_s30 + $0x28] sm:$0xff] %v335_v18  ;;  %v337_v19 = vld [vmem:[%s1573_s0 + $0x300] sm:$0xff] }
  0x3e   : > { %v339_v20 = vld [vmem:[%s1573_s0 + $0x380] sm:$0xff]  ;;  %338 = vst [vmem:[%s1578_s30 + $0x30] sm:$0xff] %v337_v19 }
  0x3f   : > { %v341_v21 = vld [vmem:[%s1573_s0 + $0x400] sm:$0xff]  ;;  %340 = vst [vmem:[%s1578_s30 + $0x38] sm:$0xff] %v339_v20 }
  0x40   : > { %342 = vst [vmem:[%s1578_s30 + $0x40] sm:$0xff] %v341_v21  ;;  %v343_v22 = vld [vmem:[%s1573_s0 + $0x480] sm:$0xff] }
  0x41   : > { %v345_v23 = vld [vmem:[%s1573_s0 + $0x500] sm:$0xff]  ;;  %344 = vst [vmem:[%s1578_s30 + $0x48] sm:$0xff] %v343_v22 }
  0x42   : > { %v347_v24 = vld [vmem:[%s1573_s0 + $0x580] sm:$0xff]  ;;  %346 = vst [vmem:[%s1578_s30 + $0x50] sm:$0xff] %v345_v23 }
  0x43   : > { %348 = vst [vmem:[%s1578_s30 + $0x58] sm:$0xff] %v347_v24  ;;  %v349_v25 = vld [vmem:[%s1573_s0 + $0x600] sm:$0xff] }
  0x44   : > { %v351_v26 = vld [vmem:[%s1573_s0 + $0x680] sm:$0xff]  ;;  %350 = vst [vmem:[%s1578_s30 + $0x60] sm:$0xff] %v349_v25 }
  0x45   : > { %v353_v27 = vld [vmem:[%s1573_s0 + $0x700] sm:$0xff]  ;;  %352 = vst [vmem:[%s1578_s30 + $0x68] sm:$0xff] %v351_v26 }
  0x46   : > { %354 = vst [vmem:[%s1578_s30 + $0x70] sm:$0xff] %v353_v27  ;;  %v355_v28 = vld [vmem:[%s1573_s0 + $0x780] sm:$0xff] }
  0x47   : > { %v357_v29 = vld [vmem:[%s1573_s0 + $0x800] sm:$0xff]  ;;  %356 = vst [vmem:[%s1578_s30 + $0x78] sm:$0xff] %v355_v28 }
  0x48   : > { %v359_v30 = vld [vmem:[%s1573_s0 + $0x880] sm:$0xff]  ;;  %358 = vst [vmem:[%s1578_s30 + $0x80] sm:$0xff] %v357_v29 }
  0x49   : > { %360 = vst [vmem:[%s1578_s30 + $0x88] sm:$0xff] %v359_v30  ;;  %v361_v31 = vld [vmem:[%s1573_s0 + $0x900] sm:$0xff] }
  0x4a   : > { %v363_v32 = vld [vmem:[%s1573_s0 + $0x980] sm:$0xff]  ;;  %362 = vst [vmem:[%s1578_s30 + $0x90] sm:$0xff] %v361_v31 }
  0x4b   : > { %v365_v33 = vld [vmem:[%s1573_s0 + $0xa00] sm:$0xff]  ;;  %364 = vst [vmem:[%s1578_s30 + $0x98] sm:$0xff] %v363_v32 }
  0x4c   : > { %366 = vst [vmem:[%s1578_s30 + $0xa0] sm:$0xff] %v365_v33  ;;  %v367_v34 = vld [vmem:[%s1573_s0 + $0xa80] sm:$0xff] }
  0x4d   : > { %v369_v35 = vld [vmem:[%s1573_s0 + $0xb00] sm:$0xff]  ;;  %368 = vst [vmem:[%s1578_s30 + $0xa8] sm:$0xff] %v367_v34 }
  0x4e   : > { %v371_v36 = vld [vmem:[%s1573_s0 + $0xb80] sm:$0xff]  ;;  %370 = vst [vmem:[%s1578_s30 + $0xb0] sm:$0xff] %v369_v35 }
  0x4f   : > { %372 = vst [vmem:[%s1578_s30 + $0xb8] sm:$0xff] %v371_v36  ;;  %v373_v37 = vld [vmem:[%s1573_s0 + $0xc00] sm:$0xff] }
  0x50   : > { %v375_v38 = vld [vmem:[%s1573_s0 + $0xc80] sm:$0xff]  ;;  %374 = vst [vmem:[%s1578_s30 + $0xc0] sm:$0xff] %v373_v37 }
  0x51   : > { %v377_v39 = vld [vmem:[%s1573_s0 + $0xd00] sm:$0xff]  ;;  %376 = vst [vmem:[%s1578_s30 + $0xc8] sm:$0xff] %v375_v38 }
  0x52   : > { %378 = vst [vmem:[%s1578_s30 + $0xd0] sm:$0xff] %v377_v39  ;;  %v379_v40 = vld [vmem:[%s1573_s0 + $0xd80] sm:$0xff] }
  0x53   : > { %v381_v41 = vld [vmem:[%s1573_s0 + $0xe00] sm:$0xff]  ;;  %380 = vst [vmem:[%s1578_s30 + $0xd8] sm:$0xff] %v379_v40 }
  0x54   : > { %v383_v42 = vld [vmem:[%s1573_s0 + $0xe80] sm:$0xff]  ;;  %382 = vst [vmem:[%s1578_s30 + $0xe0] sm:$0xff] %v381_v41 }
  0x55   : > { %384 = vst [vmem:[%s1578_s30 + $0xe8] sm:$0xff] %v383_v42  ;;  %v385_v43 = vld [vmem:[%s1573_s0 + $0xf00] sm:$0xff] }
  0x56   : > { %v387_v44 = vld [vmem:[%s1573_s0 + $0xf80] sm:$0xff]  ;;  %386 = vst [vmem:[%s1578_s30 + $0xf0] sm:$0xff] %v385_v43 }
  0x57   : > { %388 = vst [vmem:[%s1578_s30 + $0xf8] sm:$0xff] %v387_v44 }
  0x58 PF: > { %p1107_p0 = scmp.ge.s32.totalorder %s1441_s19, 1  ;;  %p393_p1 = scmp.lt.s32.totalorder %s1441_s19, 33 }
  0x5a   : > { %p394_p2 = pnand %p1107_p0, %p393_p1 }
  0x5b   : > { %s400_s28 = sand.u32 (!%p394_p2), 1, %s1417_s13   ;;  %s407_s20 = sand.u32 (!%p394_p2), 1, %s1409_s11  }
  0x5c   : > { %397 = sbr.rel (%p394_p2) target bundleno = 428 (0x1ac), region = 96  ;;  %s1108_s29 = sshll.u32 (!%p394_p2), %s407_s20, 8 }
  0x5d   : > { %s1196_s25 = smul.u32 (!%p394_p2), 104, %s400_s28  ;;  %s428_s3 = sand.u32 (!%p394_p2), 1, %s1401_s9  }
  0x5e   : > { %s1197_s7 = smul.u32 (!%p394_p2), 208, %s428_s3  ;;  %s1648_s8 = scalar_lea.vmem (!%p394_p2), [#allocation3], %s1108_s29 }
  0x5f   : > { %s1646_s0 = scalar_lea.vmem (!%p394_p2), [#allocation2], %s1196_s25  ;;  %p1109_p3 = scmp.ne.s32.totalorder (!%p394_p2), %s1425_s15, 0 }
  0x60   : > { %s1650_s23 = scalar_lea.vmem (!%p394_p2), [#allocation4], %s1197_s7 }
  0x63   : > { %440 = sbr.rel (%p1109_p3) target bundleno = 113 (0x71), region = 108  ;;  %v1443_v45 = vmov (!%p1109_p3), 0.0  }
  0x64   : > { %441 = vst [vmem:[%s1650_s23] sm:$0xff] (!%p1109_p3), %v1443_v45  ;;  %442 = vst [vmem:[%s1650_s23 + $0x8] sm:$0xff] (!%p1109_p3), %v1443_v45 }
  0x65   : > { %443 = vst [vmem:[%s1650_s23 + $0x10] sm:$0xff] (!%p1109_p3), %v1443_v45  ;;  %444 = vst [vmem:[%s1650_s23 + $0x18] sm:$0xff] (!%p1109_p3), %v1443_v45 }
  0x66   : > { %445 = vst [vmem:[%s1650_s23 + $0x20] sm:$0xff] (!%p1109_p3), %v1443_v45  ;;  %446 = vst [vmem:[%s1650_s23 + $0x28] sm:$0xff] (!%p1109_p3), %v1443_v45 }
  0x67   : > { %447 = vst [vmem:[%s1650_s23 + $0x30] sm:$0xff] (!%p1109_p3), %v1443_v45  ;;  %448 = vst [vmem:[%s1650_s23 + $0x38] sm:$0xff] (!%p1109_p3), %v1443_v45 }
  0x68   : > { %449 = vst [vmem:[%s1650_s23 + $0x40] sm:$0xff] (!%p1109_p3), %v1443_v45  ;;  %450 = vst [vmem:[%s1650_s23 + $0x48] sm:$0xff] (!%p1109_p3), %v1443_v45 }
  0x69   : > { %451 = vst [vmem:[%s1650_s23 + $0x50] sm:$0xff] (!%p1109_p3), %v1443_v45  ;;  %452 = vst [vmem:[%s1650_s23 + $0x58] sm:$0xff] (!%p1109_p3), %v1443_v45 }
  0x6a   : > { %453 = vst [vmem:[%s1650_s23 + $0x60] sm:$0xff] %v1443_v45  ;;  %454 = vst [vmem:[%s1650_s23 + $0x68] sm:$0xff] %v1443_v45 }
  0x6b   : > { %455 = vst [vmem:[%s1650_s23 + $0x70] sm:$0xff] %v1443_v45  ;;  %456 = vst [vmem:[%s1650_s23 + $0x78] sm:$0xff] %v1443_v45 }
  0x6c   : > { %457 = vst [vmem:[%s1650_s23 + $0x80] sm:$0xff] %v1443_v45  ;;  %458 = vst [vmem:[%s1650_s23 + $0x88] sm:$0xff] %v1443_v45 }
  0x6d   : > { %459 = vst [vmem:[%s1650_s23 + $0x90] sm:$0xff] %v1443_v45  ;;  %460 = vst [vmem:[%s1650_s23 + $0x98] sm:$0xff] %v1443_v45 }
  0x6e   : > { %461 = vst [vmem:[%s1650_s23 + $0xa0] sm:$0xff] %v1443_v45  ;;  %462 = vst [vmem:[%s1650_s23 + $0xa8] sm:$0xff] %v1443_v45 }
  0x6f   : > { %463 = vst [vmem:[%s1650_s23 + $0xb0] sm:$0xff] %v1443_v45  ;;  %464 = vst [vmem:[%s1650_s23 + $0xb8] sm:$0xff] %v1443_v45 }
  0x70   : > { %465 = vst [vmem:[%s1650_s23 + $0xc0] sm:$0xff] %v1443_v45  ;;  %466 = vst [vmem:[%s1650_s23 + $0xc8] sm:$0xff] %v1443_v45 }
  0x71 PF: > { %v1287_v46 = vld [vmem:[%s1648_s8 + $0x4] ss:$8 sps:$4 sm:$0xff]   ;;  %v1289_v47 = vld [vmem:[%s1648_s8] ss:$8 sps:$4 sm:$0xff]   ;;  %v1290_v48 = vld [vmem:[%s1648_s8 + $0x14] ss:$8 sps:$4 sm:$0xff]  }
  0x72   : > { %765 = vmatprep.subr.bf16.mxu0 %v1287_v46  ;;  %1163 = vmatprep.subr.bf16.mxu1 %v1287_v46  ;;  %v1292_v49 = vld [vmem:[%s1648_s8 + $0x10] ss:$8 sps:$4 sm:$0xff]   ;;  %v1293_v50 = vld [vmem:[%s1648_s8 + $0x24] ss:$8 sps:$4 sm:$0xff]   ;;  %v1295_v51 = vld [vmem:[%s1648_s8 + $0x20] ss:$8 sps:$4 sm:$0xff]  }
  0x73   : > { %766 = vmatpush1.bf16.msra.mxu0 %v1289_v47  ;;  %1179 = vmatpush1.bf16.msra.mxu1 %v1289_v47  ;;  %v1296_v52 = vld [vmem:[%s1648_s8 + $0x34] ss:$8 sps:$4 sm:$0xff]   ;;  %v1298_v53 = vld [vmem:[%s1648_s8 + $0x30] ss:$8 sps:$4 sm:$0xff]   ;;  %v1299_v54 = vld [vmem:[%s1648_s8 + $0x44] ss:$8 sps:$4 sm:$0xff]  }
  0x74   : > { %767 = vmatprep.subr.bf16.mxu0 %v1290_v48  ;;  %1164 = vmatprep.subr.bf16.mxu1 %v1290_v48  ;;  %v1301_v55 = vld [vmem:[%s1648_s8 + $0x40] ss:$8 sps:$4 sm:$0xff]   ;;  %v1302_v56 = vld [vmem:[%s1648_s8 + $0x54] ss:$8 sps:$4 sm:$0xff]   ;;  %v1304_v57 = vld [vmem:[%s1648_s8 + $0x50] ss:$8 sps:$4 sm:$0xff]  }
  0x75   : > { %v1305_v58 = vld [vmem:[%s1648_s8 + $0x64] ss:$8 sps:$4 sm:$0xff]   ;;  %v1307_v60 = vld [vmem:[%s1648_s8 + $0x60] ss:$8 sps:$4 sm:$0xff]   ;;  %v1308_v62 = vld [vmem:[%s1648_s8 + $0x74] ss:$8 sps:$4 sm:$0xff]  }
  0x76   : > { %v1337_v59 = vld [vmem:[%s1646_s0 + $0x4] ss:$8 sps:$4 sm:$0xff]   ;;  %v1310_v63 = vld [vmem:[%s1648_s8 + $0x70] ss:$8 sps:$4 sm:$0xff]   ;;  %v1313_v1 = vld [vmem:[%s1648_s8 + $0x80] ss:$8 sps:$4 sm:$0xff]  }
  0x77   : > { %768 = vmatpush1.bf16.msra.mxu0 %v1292_v49  ;;  %1180 = vmatpush1.bf16.msra.mxu1 %v1292_v49  ;;  %v1340_v61 = vld [vmem:[%s1646_s0 + $0x44] ss:$8 sps:$4 sm:$0xff]   ;;  %v1316_v3 = vld [vmem:[%s1648_s8 + $0x90] ss:$8 sps:$4 sm:$0xff]   ;;  %v1319_v5 = vld [vmem:[%s1648_s8 + $0xa0] ss:$8 sps:$4 sm:$0xff]  }
  0x78   : > { %769 = vmatprep.subr.bf16.mxu0 %v1293_v50  ;;  %1165 = vmatprep.subr.bf16.mxu1 %v1293_v50  ;;  %v1311_v0 = vld [vmem:[%s1648_s8 + $0x84] ss:$8 sps:$4 sm:$0xff]   ;;  %v1314_v2 = vld [vmem:[%s1648_s8 + $0x94] ss:$8 sps:$4 sm:$0xff]   ;;  %v1322_v7 = vld [vmem:[%s1648_s8 + $0xb0] ss:$8 sps:$4 sm:$0xff]  }
  0x79   : > { %797 = vmatprep.mubr.bf16.mxu0 %v1337_v59  ;;  %837 = vmatprep.mubr.bf16.mxu1 %v1340_v61  ;;  %v1317_v4 = vld [vmem:[%s1648_s8 + $0xa4] ss:$8 sps:$4 sm:$0xff]   ;;  %v1320_v6 = vld [vmem:[%s1648_s8 + $0xb4] ss:$8 sps:$4 sm:$0xff]   ;;  %v1325_v9 = vld [vmem:[%s1648_s8 + $0xc0] ss:$8 sps:$4 sm:$0xff]  }
  0x7a   : > { %v1323_v8 = vld [vmem:[%s1648_s8 + $0xc4] ss:$8 sps:$4 sm:$0xff]   ;;  %v1326_v10 = vld [vmem:[%s1648_s8 + $0xd4] ss:$8 sps:$4 sm:$0xff]   ;;  %v1328_v11 = vld [vmem:[%s1648_s8 + $0xd0] ss:$8 sps:$4 sm:$0xff]  }
  0x7b   : > { %770 = vmatpush1.bf16.msra.mxu0 %v1295_v51  ;;  %1181 = vmatpush1.bf16.msra.mxu1 %v1295_v51  ;;  %v1329_v12 = vld [vmem:[%s1648_s8 + $0xe4] ss:$8 sps:$4 sm:$0xff]   ;;  %v1331_v13 = vld [vmem:[%s1648_s8 + $0xe0] ss:$8 sps:$4 sm:$0xff]   ;;  %v1332_v14 = vld [vmem:[%s1648_s8 + $0xf4] ss:$8 sps:$4 sm:$0xff]  }
  0x7c   : > { %771 = vmatprep.subr.bf16.mxu0 %v1296_v52  ;;  %1166 = vmatprep.subr.bf16.mxu1 %v1296_v52  ;;  %v1334_v15 = vld [vmem:[%s1648_s8 + $0xf0] ss:$8 sps:$4 sm:$0xff]   ;;  %v1341_v18 = vld [vmem:[%s1646_s0 + $0x14] ss:$8 sps:$4 sm:$0xff]   ;;  %v1346_v23 = vld [vmem:[%s1646_s0 + $0x24] ss:$8 sps:$4 sm:$0xff]  }
  0x7d   : > { %v1335_v16 = vld [vmem:[%s1646_s0] ss:$8 sps:$4 sm:$0xff]   ;;  %v1344_v19 = vld [vmem:[%s1646_s0 + $0x54] ss:$8 sps:$4 sm:$0xff]   ;;  %v1343_v21 = vld [vmem:[%s1646_s0 + $0x10] ss:$8 sps:$4 sm:$0xff]  }
  0x7e   : > { %v1338_v17 = vld [vmem:[%s1646_s0 + $0x40] ss:$8 sps:$4 sm:$0xff]   ;;  %v1348_v22 = vld [vmem:[%s1646_s0 + $0x50] ss:$8 sps:$4 sm:$0xff]   ;;  %v1351_v27 = vld [vmem:[%s1646_s0 + $0x34] ss:$8 sps:$4 sm:$0xff]  }
  0x7f   : > { %772 = vmatpush1.bf16.msra.mxu0 %v1298_v53  ;;  %1182 = vmatpush1.bf16.msra.mxu1 %v1298_v53  ;;  %v505_v20 = vld [vmem:[%s1646_s0 + $0x60] sm:$0xff]  ;;  %v1354_v28 = vld [vmem:[%s1646_s0 + $0x30] ss:$8 sps:$4 sm:$0xff]   ;;  %s1162_s9 = sshll.u32 (%p1553_p12), %s1429_s16, 4 }
  0x80   : > { %773 = vmatprep.subr.bf16.mxu0 %v1299_v54  ;;  %1167 = vmatprep.subr.bf16.mxu1 %v1299_v54  ;;  %v1123_v24 = vcombine.high %v505_v20, %v505_v20  ;;  %v1349_v25 = vld [vmem:[%s1646_s0 + $0x20] ss:$8 sps:$4 sm:$0xff]   ;;  %v1122_v26 = vcombine.low %v505_v20, %v505_v20  ;;  %v467_v29 = vld [vmem:[%s1650_s23] sm:$0xff]  ;;  %s1785_s15 = scalar_lea.vmem (%p1553_p12), %s1871_s2, %s1162_s9 }
  0x81   : > { %v483_v30 = vld [vmem:[%s1650_s23 + $0x80] sm:$0xff]  ;;  %v468_v31 = vld [vmem:[%s1650_s23 + $0x8] sm:$0xff]  ;;  %v469_v34 = vld [vmem:[%s1650_s23 + $0x10] sm:$0xff] }
  0x82   : > { %v484_v32 = vld [vmem:[%s1650_s23 + $0x88] sm:$0xff]  ;;  %v485_v36 = vld [vmem:[%s1650_s23 + $0x90] sm:$0xff]  ;;  %v470_v39 = vld [vmem:[%s1650_s23 + $0x18] sm:$0xff] }
  0x83   : > { %774 = vmatpush1.bf16.msra.mxu0 %v1301_v55  ;;  %1183 = vmatpush1.bf16.msra.mxu1 %v1301_v55  ;;  %v486_v42 = vld [vmem:[%s1650_s23 + $0x98] sm:$0xff]  ;;  %v471_v53 = vld [vmem:[%s1650_s23 + $0x20] sm:$0xff]  ;;  %v472_v55 = vld [vmem:[%s1650_s23 + $0x28] sm:$0xff] }
  0x84   : > { %775 = vmatprep.subr.bf16.mxu0 %v1302_v56  ;;  %1168 = vmatprep.subr.bf16.mxu1 %v1302_v56  ;;  %v487_v54 = vld [vmem:[%s1650_s23 + $0xa0] sm:$0xff]  ;;  %v488_v56 = vld [vmem:[%s1650_s23 + $0xa8] sm:$0xff] }
  0x87   : > { %776 = vmatpush1.bf16.msra.mxu0 %v1304_v57  ;;  %1184 = vmatpush1.bf16.msra.mxu1 %v1304_v57 }
  0x88   : > { %777 = vmatprep.subr.bf16.mxu0 %v1305_v58  ;;  %1169 = vmatprep.subr.bf16.mxu1 %v1305_v58  ;;  %v473_v58 = vld [vmem:[%s1650_s23 + $0x30] sm:$0xff] }
  0x8b   : > { %778 = vmatpush1.bf16.msra.mxu0 %v1307_v60  ;;  %1185 = vmatpush1.bf16.msra.mxu1 %v1307_v60  ;;  %v489_v60 = vld [vmem:[%s1650_s23 + $0xb0] sm:$0xff] }
  0x8c   : > { %779 = vmatprep.subr.bf16.mxu0 %v1308_v62  ;;  %1170 = vmatprep.subr.bf16.mxu1 %v1308_v62 }
  0x8f   : > { %780 = vmatpush1.bf16.msra.mxu0 %v1310_v63  ;;  %1186 = vmatpush1.bf16.msra.mxu1 %v1310_v63  ;;  %v474_v63 = vld [vmem:[%s1650_s23 + $0x38] sm:$0xff] }
  0x90   : > { %781 = vmatprep.subr.bf16.mxu0 %v1311_v0  ;;  %1171 = vmatprep.subr.bf16.mxu1 %v1311_v0 }
  0x93   : > { %782 = vmatpush1.bf16.msra.mxu0 %v1313_v1  ;;  %1187 = vmatpush1.bf16.msra.mxu1 %v1313_v1 }
  0x94   : > { %783 = vmatprep.subr.bf16.mxu0 %v1314_v2  ;;  %1172 = vmatprep.subr.bf16.mxu1 %v1314_v2  ;;  %v490_v2 = vld [vmem:[%s1650_s23 + $0xb8] sm:$0xff] }
  0x97   : > { %784 = vmatpush1.bf16.msra.mxu0 %v1316_v3  ;;  %1188 = vmatpush1.bf16.msra.mxu1 %v1316_v3 }
  0x98   : > { %785 = vmatprep.subr.bf16.mxu0 %v1317_v4  ;;  %1173 = vmatprep.subr.bf16.mxu1 %v1317_v4 }
  0x9b   : > { %786 = vmatpush1.bf16.msra.mxu0 %v1319_v5  ;;  %1189 = vmatpush1.bf16.msra.mxu1 %v1319_v5 }
  0x9c   : > { %787 = vmatprep.subr.bf16.mxu0 %v1320_v6  ;;  %1174 = vmatprep.subr.bf16.mxu1 %v1320_v6 }
  0x9f   : > { %788 = vmatpush1.bf16.msra.mxu0 %v1322_v7  ;;  %1190 = vmatpush1.bf16.msra.mxu1 %v1322_v7 }
  0xa0   : > { %789 = vmatprep.subr.bf16.mxu0 %v1323_v8  ;;  %1175 = vmatprep.subr.bf16.mxu1 %v1323_v8 }
  0xa3   : > { %790 = vmatpush1.bf16.msra.mxu0 %v1325_v9  ;;  %1191 = vmatpush1.bf16.msra.mxu1 %v1325_v9 }
  0xa4   : > { %791 = vmatprep.subr.bf16.mxu0 %v1326_v10  ;;  %1176 = vmatprep.subr.bf16.mxu1 %v1326_v10 }
  0xa7   : > { %792 = vmatpush1.bf16.msra.mxu0 %v1328_v11  ;;  %1192 = vmatpush1.bf16.msra.mxu1 %v1328_v11 }
  0xa8   : > { %793 = vmatprep.subr.bf16.mxu0 %v1329_v12  ;;  %1177 = vmatprep.subr.bf16.mxu1 %v1329_v12 }
  0xab   : > { %794 = vmatpush1.bf16.msra.mxu0 %v1331_v13  ;;  %1193 = vmatpush1.bf16.msra.mxu1 %v1331_v13  ;;  %v475_v13 = vld [vmem:[%s1650_s23 + $0x40] sm:$0xff] }
  0xac   : > { %795 = vmatprep.subr.bf16.mxu0 %v1332_v14  ;;  %1178 = vmatprep.subr.bf16.mxu1 %v1332_v14  ;;  %v491_v14 = vld [vmem:[%s1650_s23 + $0xc0] sm:$0xff] }
  0xaf   : > { %796 = vmatpush1.bf16.msra.mxu0 %v1334_v15  ;;  %1194 = vmatpush1.bf16.msra.mxu1 %v1334_v15  ;;  %v476_v15 = vld [vmem:[%s1650_s23 + $0x48] sm:$0xff] }
  0xb2   : > { %798 = vmatmul.mubr.bf16.vlgmr.msra.gmra.mrb[0].mxu0 %v1335_v16  ;;  %838 = vmatmul.mubr.bf16.vlgmr.msra.gmra.mrb[0].mxu1 %v1338_v17  ;;  %v492_v16 = vld [vmem:[%s1650_s23 + $0xc8] sm:$0xff] }
  0xb3   : > { %807 = vmatprep.mubr.bf16.mxu0 %v1341_v18  ;;  %847 = vmatprep.mubr.bf16.mxu1 %v1344_v19  ;;  %v477_v18 = vld [vmem:[%s1650_s23 + $0x50] sm:$0xff] }
  0xba   : > { %808 = vmatmul.mubr.bf16.gmra.mrb[4].mxu0 %v1343_v21  ;;  %848 = vmatmul.mubr.bf16.gmra.mrb[4].mxu1 %v1348_v22  ;;  %v478_v22 = vld [vmem:[%s1650_s23 + $0x58] sm:$0xff] }
  0xbb   : > { %817 = vmatprep.mubr.bf16.mxu0 %v1346_v23  ;;  %857 = vmatprep.mubr.bf16.mxu1 %v1123_v24 }
  0xc2   : > { %818 = vmatmul.mubr.bf16.gmra.mrb[8].mxu0 %v1349_v25  ;;  %858 = vmatmul.mubr.bf16.gmra.mrb[8].mxu1 %v1122_v26 }
  0xc3   : > { %827 = vmatprep.mubr.bf16.mxu0 %v1351_v27 }
  0xca   : > { %828 = vmatmul.mubr.bf16.gmra.mrb[12].mxu0 %v1354_v28 }
 0x185   : > { %v799_v33 = vpop.f32.mrb[0].mxu0  ;;  %v839_v35 = vpop.f32.mrb[0].mxu1 }
 0x186   : > { %v866_v37 = vadd.f32 %v799_v33, %v467_v29  ;;  %v801_v38 = vpop.f32.mrb[1].mxu0  ;;  %v882_v40 = vadd.f32 %v839_v35, %v483_v30  ;;  %v841_v41 = vpop.f32.mrb[1].mxu1  ;;  %v479_v33 = vld [vmem:[%s1650_s23 + $0x60] sm:$0xff] }
 0x187   : > { %v867_v43 = vadd.f32 %v801_v38, %v468_v31  ;;  %v803_v44 = vpop.f32.mrb[2].mxu0  ;;  %v883_v45 = vadd.f32 %v841_v41, %v484_v32  ;;  %v843_v46 = vpop.f32.mrb[2].mxu1 }
 0x188   : > { %892 = vst [vmem:[%s1650_s23] sm:$0xff] %v866_v37  ;;  %v868_v47 = vadd.f32 %v803_v44, %v469_v34  ;;  %v805_v48 = vpop.f32.mrb[3].mxu0  ;;  %908 = vst [vmem:[%s1650_s23 + $0x80] sm:$0xff] %v882_v40  ;;  %v884_v49 = vadd.f32 %v843_v46, %v485_v36  ;;  %v845_v50 = vpop.f32.mrb[3].mxu1  ;;  %v480_v34 = vld [vmem:[%s1650_s23 + $0x68] sm:$0xff]  ;;  %v481_v36 = vld [vmem:[%s1650_s23 + $0x70] sm:$0xff] }
 0x189   : > { %893 = vst [vmem:[%s1650_s23 + $0x8] sm:$0xff] %v867_v43  ;;  %v869_v51 = vadd.f32 %v805_v48, %v470_v39  ;;  %909 = vst [vmem:[%s1650_s23 + $0x88] sm:$0xff] %v883_v45  ;;  %v885_v52 = vadd.f32 %v845_v50, %v486_v42  ;;  %v482_v39 = vld [vmem:[%s1650_s23 + $0x78] sm:$0xff] }
 0x18a   : > { %894 = vst [vmem:[%s1650_s23 + $0x10] sm:$0xff] %v868_v47  ;;  %910 = vst [vmem:[%s1650_s23 + $0x90] sm:$0xff] %v884_v49 }
 0x18b   : > { %895 = vst [vmem:[%s1650_s23 + $0x18] sm:$0xff] %v869_v51  ;;  %911 = vst [vmem:[%s1650_s23 + $0x98] sm:$0xff] %v885_v52 }
 0x18d   : > { %v809_v57 = vpop.f32.mrb[4].mxu0  ;;  %v849_v59 = vpop.f32.mrb[4].mxu1 }
 0x18e   : > { %v870_v61 = vadd.f32 %v809_v57, %v471_v53  ;;  %v811_v62 = vpop.f32.mrb[5].mxu0  ;;  %v886_v0 = vadd.f32 %v849_v59, %v487_v54  ;;  %v851_v1 = vpop.f32.mrb[5].mxu1 }
 0x18f   : > { %v871_v3 = vadd.f32 %v811_v62, %v472_v55  ;;  %v813_v4 = vpop.f32.mrb[6].mxu0  ;;  %v887_v5 = vadd.f32 %v851_v1, %v488_v56  ;;  %v853_v6 = vpop.f32.mrb[6].mxu1  ;;  %v943_v45 = vld [vmem:[%s1650_s23] sm:$0xff] (%p1553_p12) }
 0x190   : > { %896 = vst [vmem:[%s1650_s23 + $0x20] sm:$0xff] %v870_v61  ;;  %v872_v7 = vadd.f32 %v813_v4, %v473_v58  ;;  %v815_v8 = vpop.f32.mrb[7].mxu0  ;;  %912 = vst [vmem:[%s1650_s23 + $0xa0] sm:$0xff] %v886_v0  ;;  %v888_v9 = vadd.f32 %v853_v6, %v489_v60  ;;  %v855_v10 = vpop.f32.mrb[7].mxu1  ;;  %v945_v46 = vld [vmem:[%s1650_s23 + $0x8] sm:$0xff] (%p1553_p12)  ;;  %v975_v61 = vld [vmem:[%s1650_s23 + $0x80] sm:$0xff] (%p1553_p12) }
 0x191   : > { %897 = vst [vmem:[%s1650_s23 + $0x28] sm:$0xff] %v871_v3  ;;  %v873_v11 = vadd.f32 %v815_v8, %v474_v63  ;;  %913 = vst [vmem:[%s1650_s23 + $0xa8] sm:$0xff] %v887_v5  ;;  %v889_v12 = vadd.f32 %v855_v10, %v490_v2  ;;  %v947_v47 = vld [vmem:[%s1650_s23 + $0x10] sm:$0xff] (%p1553_p12)  ;;  %v977_v62 = vld [vmem:[%s1650_s23 + $0x88] sm:$0xff] (%p1553_p12) }
 0x192   : > { %898 = vst [vmem:[%s1650_s23 + $0x30] sm:$0xff] %v872_v7  ;;  %914 = vst [vmem:[%s1650_s23 + $0xb0] sm:$0xff] %v888_v9  ;;  %v949_v48 = vld [vmem:[%s1650_s23 + $0x18] sm:$0xff] (%p1553_p12)  ;;  %v979_v63 = vld [vmem:[%s1650_s23 + $0x90] sm:$0xff] (%p1553_p12) }
 0x193   : > { %899 = vst [vmem:[%s1650_s23 + $0x38] sm:$0xff] %v873_v11  ;;  %915 = vst [vmem:[%s1650_s23 + $0xb8] sm:$0xff] %v889_v12  ;;  %v981_v0 = vld [vmem:[%s1650_s23 + $0x98] sm:$0xff] (%p1553_p12) }
 0x194   : > { %944 = vst [vmem:[%s1785_s15] sm:$0xff] (%p1553_p12), %v943_v45  ;;  %946 = vst [vmem:[%s1785_s15 + $0x8] sm:$0xff] (%p1553_p12), %v945_v46 }
 0x195   : > { %v819_v17 = vpop.f32.mrb[8].mxu0  ;;  %v859_v19 = vpop.f32.mrb[8].mxu1  ;;  %948 = vst [vmem:[%s1785_s15 + $0x100] sm:$0xff] (%p1553_p12), %v947_v47  ;;  %950 = vst [vmem:[%s1785_s15 + $0x108] sm:$0xff] (%p1553_p12), %v949_v48 }
 0x196   : > { %v874_v20 = vadd.f32 %v819_v17, %v475_v13  ;;  %v821_v21 = vpop.f32.mrb[9].mxu0  ;;  %v890_v23 = vadd.f32 %v859_v19, %v491_v14  ;;  %v861_v24 = vpop.f32.mrb[9].mxu1  ;;  %976 = vst [vmem:[%s1785_s15 + $0x800] sm:$0xff] (%p1553_p12), %v975_v61  ;;  %978 = vst [vmem:[%s1785_s15 + $0x808] sm:$0xff] (%p1553_p12), %v977_v62 }
 0x197   : > { %v875_v25 = vadd.f32 %v821_v21, %v476_v15  ;;  %v823_v26 = vpop.f32.mrb[10].mxu0  ;;  %v891_v27 = vadd.f32 %v861_v24, %v492_v16  ;;  %v863_v28 = vpop.f32.mrb[10].mxu1  ;;  %v951_v49 = vld [vmem:[%s1650_s23 + $0x20] sm:$0xff] (%p1553_p12)  ;;  %980 = vst [vmem:[%s1785_s15 + $0x900] sm:$0xff] (%p1553_p12), %v979_v63  ;;  %982 = vst [vmem:[%s1785_s15 + $0x908] sm:$0xff] (%p1553_p12), %v981_v0 }
 0x198   : > { %900 = vst [vmem:[%s1650_s23 + $0x40] sm:$0xff] %v874_v20  ;;  %v876_v29 = vadd.f32 %v823_v26, %v477_v18  ;;  %v825_v30 = vpop.f32.mrb[11].mxu0  ;;  %916 = vst [vmem:[%s1650_s23 + $0xc0] sm:$0xff] %v890_v23  ;;  %v864_v31 = vpop.f32.mrb[11].mxu1  ;;  %v953_v50 = vld [vmem:[%s1650_s23 + $0x28] sm:$0xff] (%p1553_p12)  ;;  %v983_v1 = vld [vmem:[%s1650_s23 + $0xa0] sm:$0xff] (%p1553_p12) }
 0x199   : > { %901 = vst [vmem:[%s1650_s23 + $0x48] sm:$0xff] %v875_v25  ;;  %v877_v32 = vadd.f32 %v825_v30, %v478_v22  ;;  %917 = vst [vmem:[%s1650_s23 + $0xc8] sm:$0xff] %v891_v27  ;;  %v955_v51 = vld [vmem:[%s1650_s23 + $0x30] sm:$0xff] (%p1553_p12)  ;;  %v985_v2 = vld [vmem:[%s1650_s23 + $0xa8] sm:$0xff] (%p1553_p12) }
 0x19a   : > { %902 = vst [vmem:[%s1650_s23 + $0x50] sm:$0xff] %v876_v29  ;;  %952 = vst [vmem:[%s1785_s15 + $0x200] sm:$0xff] (%p1553_p12), %v951_v49  ;;  %v957_v52 = vld [vmem:[%s1650_s23 + $0x38] sm:$0xff] (%p1553_p12)  ;;  %v987_v3 = vld [vmem:[%s1650_s23 + $0xb0] sm:$0xff] (%p1553_p12) }
 0x19b   : > { %903 = vst [vmem:[%s1650_s23 + $0x58] sm:$0xff] %v877_v32  ;;  %954 = vst [vmem:[%s1785_s15 + $0x208] sm:$0xff] (%p1553_p12), %v953_v50  ;;  %v989_v4 = vld [vmem:[%s1650_s23 + $0xb8] sm:$0xff] (%p1553_p12) }
 0x19c   : > { %956 = vst [vmem:[%s1785_s15 + $0x300] sm:$0xff] (%p1553_p12), %v955_v51  ;;  %958 = vst [vmem:[%s1785_s15 + $0x308] sm:$0xff] (%p1553_p12), %v957_v52 }
 0x19d   : > { %v829_v35 = vpop.f32.mrb[12].mxu0  ;;  %924 = sbr.rel (!%p1553_p12) target bundleno = 428 (0x1ac), region = 112  ;;  %984 = vst [vmem:[%s1785_s15 + $0xa00] sm:$0xff] (%p1553_p12), %v983_v1  ;;  %986 = vst [vmem:[%s1785_s15 + $0xa08] sm:$0xff] (%p1553_p12), %v985_v2 }
 0x19e   : > { %v878_v37 = vadd.f32 %v829_v35, %v479_v33  ;;  %v831_v38 = vpop.f32.mrb[13].mxu0  ;;  %988 = vst [vmem:[%s1785_s15 + $0xb00] sm:$0xff] (%p1553_p12), %v987_v3  ;;  %990 = vst [vmem:[%s1785_s15 + $0xb08] sm:$0xff] (%p1553_p12), %v989_v4 }
 0x19f   : > { %v879_v40 = vadd.f32 %v831_v38, %v480_v34  ;;  %v833_v41 = vpop.f32.mrb[14].mxu0  ;;  %v959_v53 = vld [vmem:[%s1650_s23 + $0x40] sm:$0xff] (%p1553_p12) }
 0x1a0   : > { %904 = vst [vmem:[%s1650_s23 + $0x60] sm:$0xff] %v878_v37  ;;  %v880_v42 = vadd.f32 %v833_v41, %v481_v36  ;;  %v835_v43 = vpop.f32.mrb[15].mxu0  ;;  %960 = vst [vmem:[%s1785_s15 + $0x400] sm:$0xff] (%p1553_p12), %v959_v53  ;;  %v961_v54 = vld [vmem:[%s1650_s23 + $0x48] sm:$0xff] (%p1553_p12)  ;;  %v991_v5 = vld [vmem:[%s1650_s23 + $0xc0] sm:$0xff] (%p1553_p12) }
 0x1a1   : > { %905 = vst [vmem:[%s1650_s23 + $0x68] sm:$0xff] %v879_v40  ;;  %v881_v44 = vadd.f32 %v835_v43, %v482_v39  ;;  %v963_v55 = vld [vmem:[%s1650_s23 + $0x50] sm:$0xff] (%p1553_p12)  ;;  %962 = vst [vmem:[%s1785_s15 + $0x408] sm:$0xff] (%p1553_p12), %v961_v54  ;;  %v993_v6 = vld [vmem:[%s1650_s23 + $0xc8] sm:$0xff] (%p1553_p12) }
 0x1a2   : > { %906 = vst [vmem:[%s1650_s23 + $0x70] sm:$0xff] %v880_v42  ;;  %v965_v56 = vld [vmem:[%s1650_s23 + $0x58] sm:$0xff] (%p1553_p12)  ;;  %964 = vst [vmem:[%s1785_s15 + $0x500] sm:$0xff] (%p1553_p12), %v963_v55 }
 0x1a3   : > { %907 = vst [vmem:[%s1650_s23 + $0x78] sm:$0xff] %v881_v44  ;;  %966 = vst [vmem:[%s1785_s15 + $0x508] sm:$0xff] (%p1553_p12), %v965_v56 }
 0x1a4   : > { %992 = vst [vmem:[%s1785_s15 + $0xc00] sm:$0xff] %v991_v5  ;;  %994 = vst [vmem:[%s1785_s15 + $0xc08] sm:$0xff] %v993_v6 }
 0x1a7   : > { %v967_v57 = vld [vmem:[%s1650_s23 + $0x60] sm:$0xff] }
 0x1a8   : > { %v969_v58 = vld [vmem:[%s1650_s23 + $0x68] sm:$0xff]  ;;  %968 = vst [vmem:[%s1785_s15 + $0x600] sm:$0xff] %v967_v57 }
 0x1a9   : > { %v971_v59 = vld [vmem:[%s1650_s23 + $0x70] sm:$0xff]  ;;  %970 = vst [vmem:[%s1785_s15 + $0x608] sm:$0xff] %v969_v58 }
 0x1aa   : > { %972 = vst [vmem:[%s1785_s15 + $0x700] sm:$0xff] %v971_v59  ;;  %v973_v60 = vld [vmem:[%s1650_s23 + $0x78] sm:$0xff] }
 0x1ab   : > { %974 = vst [vmem:[%s1785_s15 + $0x708] sm:$0xff] %v973_v60 }
 0x1ac PF: > { %s12_s19 = sadd.s32 1, %s1441_s19   ;;  %s1877_s9 = smov %s1405_s10 }
 0x1ad   : > { %p9_p4 = scmp.ge.s32.totalorder %s12_s19, 34   ;;  %s1878_s10 = smov %s1551_s5 }
 0x1ae   : > { %s1879_s11 = smov %s1413_s12  ;;  %s1880_s12 = smov %s1548_s4 }
 0x1af   : > { %s1881_s13 = smov %s1421_s14  ;;  %s1882_s14 = smov %s1534_s27 }
 0x1b0   : > { %s1883_s15 = smov %s1433_s17  ;;  %s1884_s16 = smov %s1437_s18 }
 0x1b1   : > { %s1885_s17 = smov %s1888_s21  ;;  %s1886_s18 = smov %s1892_s22 }
 0x1b2   :  { %11 = sbr.rel (!%p9_p4) target bundleno = 8 (0x8), region = 174 }

// kernel: generator_forward.18
= control target key start
LH: loop header
LB: loop body
LE: loop exit
PB: predicated region body
PF: predicated region fallthrough
CT: control target
= control target key end

     0   :  { %v448_v0 = vmov 0.0   ;;  %vm426_vm0 = vcmask 1040384   ;;  %s1193_s0 = inlined_call_operand.vmem [shape: f32[392,256], index: 0, kind: input, shape index: {}]   ;;  %s1194_s1 = inlined_call_operand.vmem [shape: f32[2,256], index: 1, kind: output, shape index: {}]  }
   0x1   :  { %12 = vst [vmem:[%s1194_s1] sm:$0xf] %v448_v0  ;;  %v13_v1 = vld [vmem:[%s1193_s0] sm:$0xff]  ;;  %v15_v2 = vld [vmem:[%s1193_s0 + $0x10] sm:$0xff]  ;;  %v472_v3 = vld [vmem:[%s1193_s0 + $0x8] sm:$0xff] }
   0x2   :  { %v477_v4 = vld [vmem:[%s1193_s0 + $0x18] sm:$0xff]  ;;  %v111_v5 = vadd.f32 %v15_v2, %v13_v1  ;;  %v482_v6 = vld [vmem:[%s1193_s0 + $0x20] sm:$0xff]  ;;  %v489_v8 = vld [vmem:[%s1193_s0 + $0x28] sm:$0xff]  ;;  %v219_v62 = vmul.f32 %v13_v1, %v13_v1  ;;  %v221_v63 = vmul.f32 %v15_v2, %v15_v2 }
   0x3   :  { %v165_v7 = vadd.f32 %v477_v4, %v472_v3  ;;  %v495_v10 = vld [vmem:[%s1193_s0 + $0x30] sm:$0xff]  ;;  %v501_v12 = vld [vmem:[%s1193_s0 + $0x38] sm:$0xff]  ;;  %v507_v14 = vld [vmem:[%s1193_s0 + $0x40] sm:$0xff]  ;;  %v223_v2 = vmul.f32 %v482_v6, %v482_v6 }
   0x4   :  { %v112_v9 = vadd.f32 %v111_v5, %v482_v6  ;;  %v513_v16 = vld [vmem:[%s1193_s0 + $0x48] sm:$0xff]  ;;  %v519_v18 = vld [vmem:[%s1193_s0 + $0x50] sm:$0xff]  ;;  %v525_v20 = vld [vmem:[%s1193_s0 + $0x58] sm:$0xff]  ;;  %v225_v6 = vmul.f32 %v495_v10, %v495_v10 }
   0x5   :  { %v166_v11 = vadd.f32 %v165_v7, %v489_v8  ;;  %v531_v22 = vld [vmem:[%s1193_s0 + $0x60] sm:$0xff]  ;;  %v537_v24 = vld [vmem:[%s1193_s0 + $0x68] sm:$0xff]  ;;  %v543_v26 = vld [vmem:[%s1193_s0 + $0x70] sm:$0xff]  ;;  %v220_v7 = vmul.f32 %v472_v3, %v472_v3 }
   0x6   :  { %v113_v13 = vadd.f32 %v112_v9, %v495_v10  ;;  %v549_v28 = vld [vmem:[%s1193_s0 + $0x78] sm:$0xff]  ;;  %v555_v30 = vld [vmem:[%s1193_s0 + $0x80] sm:$0xff]  ;;  %v561_v32 = vld [vmem:[%s1193_s0 + $0x88] sm:$0xff]  ;;  %v222_v9 = vmul.f32 %v477_v4, %v477_v4  ;;  %v224_v4 = vmul.f32 %v489_v8, %v489_v8  ;;  %v226_v8 = vmul.f32 %v501_v12, %v501_v12 }
   0x7   :  { %v167_v15 = vadd.f32 %v166_v11, %v501_v12  ;;  %v567_v34 = vld [vmem:[%s1193_s0 + $0x90] sm:$0xff]  ;;  %v573_v36 = vld [vmem:[%s1193_s0 + $0x98] sm:$0xff]  ;;  %v579_v38 = vld [vmem:[%s1193_s0 + $0xa0] sm:$0xff]  ;;  %v227_v10 = vmul.f32 %v507_v14, %v507_v14  ;;  %v228_v12 = vmul.f32 %v513_v16, %v513_v16 }
   0x8   :  { %v114_v17 = vadd.f32 %v113_v13, %v507_v14  ;;  %v585_v40 = vld [vmem:[%s1193_s0 + $0xa8] sm:$0xff]  ;;  %v591_v42 = vld [vmem:[%s1193_s0 + $0xb0] sm:$0xff]  ;;  %v597_v44 = vld [vmem:[%s1193_s0 + $0xb8] sm:$0xff]  ;;  %v229_v14 = vmul.f32 %v519_v18, %v519_v18 }
   0x9   :  { %v168_v19 = vadd.f32 %v167_v15, %v513_v16  ;;  %v603_v46 = vld [vmem:[%s1193_s0 + $0xc0] sm:$0xff]  ;;  %v609_v48 = vld [vmem:[%s1193_s0 + $0xc8] sm:$0xff]  ;;  %v615_v50 = vld [vmem:[%s1193_s0 + $0xd0] sm:$0xff]  ;;  %v230_v16 = vmul.f32 %v525_v20, %v525_v20 }
   0xa   :  { %v115_v21 = vadd.f32 %v114_v17, %v519_v18  ;;  %v621_v52 = vld [vmem:[%s1193_s0 + $0xd8] sm:$0xff]  ;;  %v627_v54 = vld [vmem:[%s1193_s0 + $0xe0] sm:$0xff]  ;;  %v633_v56 = vld [vmem:[%s1193_s0 + $0xe8] sm:$0xff]  ;;  %v231_v18 = vmul.f32 %v531_v22, %v531_v22 }
   0xb   :  { %v169_v23 = vadd.f32 %v168_v19, %v525_v20  ;;  %v639_v58 = vld [vmem:[%s1193_s0 + $0xf0] sm:$0xff]  ;;  %v645_v60 = vld [vmem:[%s1193_s0 + $0xf8] sm:$0xff]  ;;  %v651_v0 = vld [vmem:[%s1193_s0 + $0x100] sm:$0xff]  ;;  %v317_v19 = vadd.f32 %v221_v63, %v219_v62  ;;  %v232_v20 = vmul.f32 %v537_v24, %v537_v24 }
   0xc   :  { %v116_v25 = vadd.f32 %v115_v21, %v531_v22  ;;  %v661_v11 = vld [vmem:[%s1193_s0 + $0x108] sm:$0xff]  ;;  %v669_v13 = vld [vmem:[%s1193_s0 + $0x110] sm:$0xff]  ;;  %v677_v15 = vld [vmem:[%s1193_s0 + $0x118] sm:$0xff]  ;;  %v233_v22 = vmul.f32 %v543_v26, %v543_v26 }
   0xd   :  { %v170_v27 = vadd.f32 %v169_v23, %v537_v24  ;;  %v685_v21 = vld [vmem:[%s1193_s0 + $0x120] sm:$0xff]  ;;  %v741_v62 = vld [vmem:[%s1193_s0 + $0x158] sm:$0xff]  ;;  %v234_v24 = vmul.f32 %v549_v28, %v549_v28 }
   0xe   :  { %v117_v29 = vadd.f32 %v116_v25, %v543_v26  ;;  %v371_v25 = vadd.f32 %v222_v9, %v220_v7  ;;  %v749_v7 = vld [vmem:[%s1193_s0 + $0x160] sm:$0xff]  ;;  %v235_v26 = vmul.f32 %v555_v30, %v555_v30 }
   0xf   :  { %v171_v31 = vadd.f32 %v170_v27, %v549_v28  ;;  %v693_v27 = vld [vmem:[%s1193_s0 + $0x128] sm:$0xff]  ;;  %v236_v28 = vmul.f32 %v561_v32, %v561_v32 }
  0x10   :  { %v118_v33 = vadd.f32 %v117_v29, %v555_v30  ;;  %v237_v30 = vmul.f32 %v567_v34, %v567_v34 }
  0x11   :  { %v172_v35 = vadd.f32 %v171_v31, %v561_v32  ;;  %v318_v31 = vadd.f32 %v317_v19, %v223_v2  ;;  %v757_v2 = vld [vmem:[%s1193_s0 + $0x168] sm:$0xff]  ;;  %v238_v32 = vmul.f32 %v573_v36, %v573_v36 }
  0x12   :  { %v119_v37 = vadd.f32 %v118_v33, %v567_v34  ;;  %v701_v33 = vld [vmem:[%s1193_s0 + $0x130] sm:$0xff]  ;;  %v239_v34 = vmul.f32 %v579_v38, %v579_v38 }
  0x13   :  { %v173_v39 = vadd.f32 %v172_v35, %v573_v36  ;;  %v240_v36 = vmul.f32 %v585_v40, %v585_v40 }
  0x14   :  { %v120_v41 = vadd.f32 %v119_v37, %v579_v38  ;;  %v372_v37 = vadd.f32 %v371_v25, %v224_v4  ;;  %v241_v38 = vmul.f32 %v591_v42, %v591_v42 }
  0x15   :  { %v174_v43 = vadd.f32 %v173_v39, %v585_v40  ;;  %v709_v39 = vld [vmem:[%s1193_s0 + $0x138] sm:$0xff]  ;;  %v242_v40 = vmul.f32 %v597_v44, %v597_v44 }
  0x16   :  { %v121_v45 = vadd.f32 %v120_v41, %v591_v42  ;;  %v243_v42 = vmul.f32 %v603_v46, %v603_v46 }
  0x17   :  { %v175_v47 = vadd.f32 %v174_v43, %v597_v44  ;;  %v319_v43 = vadd.f32 %v318_v31, %v225_v6  ;;  %v244_v44 = vmul.f32 %v609_v48, %v609_v48 }
  0x18   :  { %v122_v49 = vadd.f32 %v121_v45, %v603_v46  ;;  %v717_v45 = vld [vmem:[%s1193_s0 + $0x140] sm:$0xff]  ;;  %v245_v46 = vmul.f32 %v615_v50, %v615_v50 }
  0x19   :  { %v176_v51 = vadd.f32 %v175_v47, %v609_v48  ;;  %v246_v48 = vmul.f32 %v621_v52, %v621_v52 }
  0x1a   :  { %v123_v53 = vadd.f32 %v122_v49, %v615_v50  ;;  %v373_v49 = vadd.f32 %v372_v37, %v226_v8  ;;  %v247_v50 = vmul.f32 %v627_v54, %v627_v54 }
  0x1b   :  { %v177_v55 = vadd.f32 %v176_v51, %v621_v52  ;;  %v725_v51 = vld [vmem:[%s1193_s0 + $0x148] sm:$0xff]  ;;  %v248_v52 = vmul.f32 %v633_v56, %v633_v56 }
  0x1c   :  { %v124_v57 = vadd.f32 %v123_v53, %v627_v54  ;;  %v249_v54 = vmul.f32 %v639_v58, %v639_v58 }
  0x1d   :  { %v178_v59 = vadd.f32 %v177_v55, %v633_v56  ;;  %v320_v55 = vadd.f32 %v319_v43, %v227_v10  ;;  %v250_v56 = vmul.f32 %v645_v60, %v645_v60 }
  0x1e   :  { %v125_v61 = vadd.f32 %v124_v57, %v639_v58  ;;  %v733_v57 = vld [vmem:[%s1193_s0 + $0x150] sm:$0xff]  ;;  %v251_v58 = vmul.f32 %v651_v0, %v651_v0 }
  0x1f   :  { %v179_v5 = vadd.f32 %v178_v59, %v645_v60  ;;  %v252_v60 = vmul.f32 %v661_v11, %v661_v11 }
  0x20   :  { %v126_v1 = vadd.f32 %v125_v61, %v651_v0  ;;  %v374_v61 = vadd.f32 %v373_v49, %v228_v12  ;;  %v253_v0 = vmul.f32 %v669_v13, %v669_v13 }
  0x21   :  { %v180_v3 = vadd.f32 %v179_v5, %v661_v11  ;;  %v321_v5 = vadd.f32 %v320_v55, %v229_v14  ;;  %v254_v11 = vmul.f32 %v677_v15, %v677_v15 }
  0x22   :  { %v127_v17 = vadd.f32 %v126_v1, %v669_v13  ;;  %v375_v1 = vadd.f32 %v374_v61, %v230_v16  ;;  %v255_v13 = vmul.f32 %v685_v21, %v685_v21 }
  0x23   :  { %v181_v23 = vadd.f32 %v180_v3, %v677_v15  ;;  %v322_v4 = vadd.f32 %v321_v5, %v231_v18  ;;  %v256_v15 = vmul.f32 %v693_v27, %v693_v27 }
  0x24   :  { %v128_v29 = vadd.f32 %v127_v17, %v685_v21  ;;  %v765_v17 = vld [vmem:[%s1193_s0 + $0x170] sm:$0xff]  ;;  %v376_v19 = vadd.f32 %v375_v1, %v232_v20  ;;  %v257_v21 = vmul.f32 %v701_v33, %v701_v33 }
  0x25   :  { %v182_v35 = vadd.f32 %v181_v23, %v693_v27  ;;  %v773_v23 = vld [vmem:[%s1193_s0 + $0x178] sm:$0xff]  ;;  %v323_v25 = vadd.f32 %v322_v4, %v233_v22  ;;  %v258_v27 = vmul.f32 %v709_v39, %v709_v39 }
  0x26   :  { %v129_v41 = vadd.f32 %v128_v29, %v701_v33  ;;  %v781_v29 = vld [vmem:[%s1193_s0 + $0x180] sm:$0xff]  ;;  %v377_v31 = vadd.f32 %v376_v19, %v234_v24  ;;  %v259_v33 = vmul.f32 %v717_v45, %v717_v45 }
  0x27   :  { %v183_v47 = vadd.f32 %v182_v35, %v709_v39  ;;  %v789_v35 = vld [vmem:[%s1193_s0 + $0x188] sm:$0xff]  ;;  %v324_v37 = vadd.f32 %v323_v25, %v235_v26  ;;  %v260_v39 = vmul.f32 %v725_v51, %v725_v51 }
  0x28   :  { %v130_v53 = vadd.f32 %v129_v41, %v717_v45  ;;  %v797_v41 = vld [vmem:[%s1193_s0 + $0x190] sm:$0xff]  ;;  %v378_v43 = vadd.f32 %v377_v31, %v236_v28  ;;  %v261_v45 = vmul.f32 %v733_v57, %v733_v57 }
  0x29   :  { %v184_v59 = vadd.f32 %v183_v47, %v725_v51  ;;  %v805_v47 = vld [vmem:[%s1193_s0 + $0x198] sm:$0xff]  ;;  %v325_v49 = vadd.f32 %v324_v37, %v237_v30  ;;  %v262_v51 = vmul.f32 %v741_v62, %v741_v62 }
  0x2a   :  { %v131_v63 = vadd.f32 %v130_v53, %v733_v57  ;;  %v813_v53 = vld [vmem:[%s1193_s0 + $0x1a0] sm:$0xff]  ;;  %v379_v55 = vadd.f32 %v378_v43, %v238_v32  ;;  %v263_v57 = vmul.f32 %v749_v7, %v749_v7 }
  0x2b   :  { %v185_v9 = vadd.f32 %v184_v59, %v741_v62  ;;  %v821_v59 = vld [vmem:[%s1193_s0 + $0x1a8] sm:$0xff]  ;;  %v326_v61 = vadd.f32 %v325_v49, %v239_v34  ;;  %v264_v62 = vmul.f32 %v757_v2, %v757_v2 }
  0x2c   :  { %v132_v3 = vadd.f32 %v131_v63, %v749_v7  ;;  %v829_v63 = vld [vmem:[%s1193_s0 + $0x1b0] sm:$0xff]  ;;  %v380_v5 = vadd.f32 %v379_v55, %v240_v36  ;;  %v265_v7 = vmul.f32 %v765_v17, %v765_v17 }
  0x2d   :  { %v186_v6 = vadd.f32 %v185_v9, %v757_v2  ;;  %v837_v9 = vld [vmem:[%s1193_s0 + $0x1b8] sm:$0xff]  ;;  %v327_v1 = vadd.f32 %v326_v61, %v241_v38  ;;  %v266_v2 = vmul.f32 %v773_v23, %v773_v23 }
  0x2e   :  { %v133_v8 = vadd.f32 %v132_v3, %v765_v17  ;;  %v845_v3 = vld [vmem:[%s1193_s0 + $0x1c0] sm:$0xff]  ;;  %v381_v4 = vadd.f32 %v380_v5, %v242_v40  ;;  %v267_v17 = vmul.f32 %v781_v29, %v781_v29 }
  0x2f   :  { %v187_v10 = vadd.f32 %v186_v6, %v773_v23  ;;  %v853_v6 = vld [vmem:[%s1193_s0 + $0x1c8] sm:$0xff]  ;;  %v328_v19 = vadd.f32 %v327_v1, %v243_v42  ;;  %v268_v23 = vmul.f32 %v789_v35, %v789_v35 }
  0x30   :  { %v134_v12 = vadd.f32 %v133_v8, %v781_v29  ;;  %v861_v8 = vld [vmem:[%s1193_s0 + $0x1d0] sm:$0xff]  ;;  %v382_v25 = vadd.f32 %v381_v4, %v244_v44  ;;  %v269_v29 = vmul.f32 %v797_v41, %v797_v41 }
  0x31   :  { %v188_v14 = vadd.f32 %v187_v10, %v789_v35  ;;  %v869_v10 = vld [vmem:[%s1193_s0 + $0x1d8] sm:$0xff]  ;;  %v329_v31 = vadd.f32 %v328_v19, %v245_v46  ;;  %v271_v35 = vmul.f32 %v813_v53, %v813_v53 }
  0x32   :  { %v135_v16 = vadd.f32 %v134_v12, %v797_v41  ;;  %v877_v12 = vld [vmem:[%s1193_s0 + $0x1e0] sm:$0xff]  ;;  %v383_v37 = vadd.f32 %v382_v25, %v246_v48 }
  0x33   :  { %v189_v18 = vadd.f32 %v188_v14, %v805_v47  ;;  %v885_v14 = vld [vmem:[%s1193_s0 + $0x1e8] sm:$0xff]  ;;  %v330_v43 = vadd.f32 %v329_v31, %v247_v50 }
  0x34   :  { %v136_v20 = vadd.f32 %v135_v16, %v813_v53  ;;  %v893_v16 = vld [vmem:[%s1193_s0 + $0x1f0] sm:$0xff]  ;;  %v384_v49 = vadd.f32 %v383_v37, %v248_v52  ;;  %v273_v53 = vmul.f32 %v829_v63, %v829_v63 }
  0x35   :  { %v190_v22 = vadd.f32 %v189_v18, %v821_v59  ;;  %v901_v18 = vld [vmem:[%s1193_s0 + $0x1f8] sm:$0xff]  ;;  %v331_v55 = vadd.f32 %v330_v43, %v249_v54 }
  0x36   :  { %v137_v24 = vadd.f32 %v136_v20, %v829_v63  ;;  %v909_v20 = vld [vmem:[%s1193_s0 + $0x200] sm:$0xff]  ;;  %v385_v61 = vadd.f32 %v384_v49, %v250_v56 }
  0x37   :  { %v191_v26 = vadd.f32 %v190_v22, %v837_v9  ;;  %v917_v22 = vld [vmem:[%s1193_s0 + $0x208] sm:$0xff]  ;;  %v332_v5 = vadd.f32 %v331_v55, %v251_v58 }
  0x38   :  { %v138_v28 = vadd.f32 %v137_v24, %v845_v3  ;;  %v925_v24 = vld [vmem:[%s1193_s0 + $0x210] sm:$0xff]  ;;  %v386_v1 = vadd.f32 %v385_v61, %v252_v60 }
  0x39   :  { %v192_v30 = vadd.f32 %v191_v26, %v853_v6  ;;  %v933_v26 = vld [vmem:[%s1193_s0 + $0x218] sm:$0xff]  ;;  %v333_v4 = vadd.f32 %v332_v5, %v253_v0 }
  0x3a   :  { %v139_v32 = vadd.f32 %v138_v28, %v861_v8  ;;  %v941_v28 = vld [vmem:[%s1193_s0 + $0x220] sm:$0xff]  ;;  %v387_v19 = vadd.f32 %v386_v1, %v254_v11 }
  0x3b   :  { %v193_v34 = vadd.f32 %v192_v30, %v869_v10  ;;  %v949_v30 = vld [vmem:[%s1193_s0 + $0x228] sm:$0xff]  ;;  %v334_v25 = vadd.f32 %v333_v4, %v255_v13 }
  0x3c   :  { %v140_v36 = vadd.f32 %v139_v32, %v877_v12  ;;  %v957_v32 = vld [vmem:[%s1193_s0 + $0x230] sm:$0xff]  ;;  %v388_v31 = vadd.f32 %v387_v19, %v256_v15 }
  0x3d   :  { %v194_v38 = vadd.f32 %v193_v34, %v885_v14  ;;  %v965_v34 = vld [vmem:[%s1193_s0 + $0x238] sm:$0xff]  ;;  %v335_v37 = vadd.f32 %v334_v25, %v257_v21 }
  0x3e   :  { %v141_v40 = vadd.f32 %v140_v36, %v893_v16  ;;  %v973_v36 = vld [vmem:[%s1193_s0 + $0x240] sm:$0xff]  ;;  %v389_v43 = vadd.f32 %v388_v31, %v258_v27  ;;  %v272_v31 = vmul.f32 %v821_v59, %v821_v59  ;;  %v275_v59 = vmul.f32 %v845_v3, %v845_v3 }
  0x3f   :  { %v195_v42 = vadd.f32 %v194_v38, %v901_v18  ;;  %v981_v38 = vld [vmem:[%s1193_s0 + $0x248] sm:$0xff]  ;;  %v336_v49 = vadd.f32 %v335_v37, %v259_v33  ;;  %v270_v33 = vmul.f32 %v805_v47, %v805_v47  ;;  %v277_v3 = vmul.f32 %v861_v8, %v861_v8 }
  0x40   :  { %v142_v44 = vadd.f32 %v141_v40, %v909_v20  ;;  %v989_v40 = vld [vmem:[%s1193_s0 + $0x250] sm:$0xff]  ;;  %v390_v55 = vadd.f32 %v389_v43, %v260_v39  ;;  %v1042_v39 = vld [vmem:[%s1193_s0 + $0x280] sm:$0xff] }
  0x41   :  { %v196_v46 = vadd.f32 %v195_v42, %v917_v22  ;;  %v997_v42 = vld [vmem:[%s1193_s0 + $0x258] sm:$0xff]  ;;  %v337_v61 = vadd.f32 %v336_v49, %v261_v45 }
  0x42   :  { %v143_v48 = vadd.f32 %v142_v44, %v925_v24  ;;  %v1005_v44 = vld [vmem:[%s1193_s0 + $0x260] sm:$0xff]  ;;  %v391_v5 = vadd.f32 %v390_v55, %v262_v51  ;;  %v1069_v49 = vld [vmem:[%s1193_s0 + $0x298] sm:$0xff]  ;;  %v278_v55 = vmul.f32 %v869_v10, %v869_v10 }
  0x43   :  { %v197_v50 = vadd.f32 %v196_v46, %v933_v26  ;;  %v1013_v46 = vld [vmem:[%s1193_s0 + $0x268] sm:$0xff]  ;;  %v338_v1 = vadd.f32 %v337_v61, %v263_v57  ;;  %v276_v57 = vmul.f32 %v853_v6, %v853_v6  ;;  %v279_v6 = vmul.f32 %v877_v12, %v877_v12  ;;  %v1082_v61 = vld [vmem:[%s1193_s0 + $0x2a0] sm:$0xff] }
  0x44   :  { %v144_v52 = vadd.f32 %v143_v48, %v941_v28  ;;  %v1021_v48 = vld [vmem:[%s1193_s0 + $0x270] sm:$0xff]  ;;  %v392_v4 = vadd.f32 %v391_v5, %v264_v62  ;;  %v281_v12 = vmul.f32 %v893_v16, %v893_v16 }
  0x45   :  { %v198_v54 = vadd.f32 %v197_v50, %v949_v30  ;;  %v1029_v50 = vld [vmem:[%s1193_s0 + $0x278] sm:$0xff]  ;;  %v339_v19 = vadd.f32 %v338_v1, %v265_v7 }
  0x46   :  { %v145_v56 = vadd.f32 %v144_v52, %v957_v32  ;;  %v393_v25 = vadd.f32 %v392_v4, %v266_v2  ;;  %v1089_v2 = vld [vmem:[%s1193_s0 + $0x2a8] sm:$0xff]  ;;  %v284_v4 = vmul.f32 %v917_v22, %v917_v22  ;;  %v287_v22 = vmul.f32 %v941_v28, %v941_v28 }
  0x47   :  { %v199_v58 = vadd.f32 %v198_v54, %v965_v34  ;;  %v340_v54 = vadd.f32 %v339_v19, %v267_v17  ;;  %v282_v17 = vmul.f32 %v901_v18, %v901_v18  ;;  %v290_v28 = vmul.f32 %v965_v34, %v965_v34 }
  0x48   :  { %v146_v60 = vadd.f32 %v145_v56, %v973_v36  ;;  %v394_v41 = vadd.f32 %v393_v25, %v268_v23  ;;  %v1049_v56 = vld [vmem:[%s1193_s0 + $0x288] sm:$0xff]  ;;  %v1102_v23 = vld [vmem:[%s1193_s0 + $0x2b0] sm:$0xff]  ;;  %v293_v34 = vmul.f32 %v989_v40, %v989_v40 }
  0x49   :  { %v200_v0 = vadd.f32 %v199_v58, %v981_v38  ;;  %v341_v45 = vadd.f32 %v340_v54, %v269_v29  ;;  %v274_v58 = vmul.f32 %v837_v9, %v837_v9  ;;  %v288_v54 = vmul.f32 %v949_v30, %v949_v30  ;;  %v103_v30 = vld [vmem:[%s1193_s0 + $0x2d0] sm:$0xff] }
  0x4a   :  { %v147_v11 = vadd.f32 %v146_v60, %v989_v40  ;;  %v395_v51 = vadd.f32 %v394_v41, %v270_v33  ;;  %v1062_v60 = vld [vmem:[%s1193_s0 + $0x290] sm:$0xff]  ;;  %v106_v40 = vld [vmem:[%s1193_s0 + $0x2e8] sm:$0xff] }
  0x4b   :  { %v201_v13 = vadd.f32 %v200_v0, %v997_v42  ;;  %v342_v43 = vadd.f32 %v341_v45, %v271_v35  ;;  %v101_v35 = vld [vmem:[%s1193_s0 + $0x2c0] sm:$0xff] }
  0x4c   :  { %v148_v15 = vadd.f32 %v147_v11, %v1005_v44  ;;  %v396_v63 = vadd.f32 %v395_v51, %v272_v31  ;;  %v292_v51 = vmul.f32 %v981_v38, %v981_v38  ;;  %v105_v38 = vld [vmem:[%s1193_s0 + $0x2e0] sm:$0xff] }
  0x4d   :  { %v202_v21 = vadd.f32 %v201_v13, %v1013_v46  ;;  %v343_v0 = vadd.f32 %v342_v43, %v273_v53  ;;  %v280_v13 = vmul.f32 %v885_v14, %v885_v14  ;;  %v283_v14 = vmul.f32 %v909_v20, %v909_v20 }
  0x4e   :  { %v149_v27 = vadd.f32 %v148_v15, %v1021_v48  ;;  %v397_v11 = vadd.f32 %v396_v63, %v274_v58  ;;  %v285_v20 = vmul.f32 %v925_v24, %v925_v24  ;;  %v102_v24 = vld [vmem:[%s1193_s0 + $0x2c8] sm:$0xff] }
  0x4f   :  { %v203_v52 = vadd.f32 %v202_v21, %v1029_v50  ;;  %v344_v7 = vadd.f32 %v343_v0, %v275_v59 }
  0x50   :  { %v150_v47 = vadd.f32 %v149_v27, %v1042_v39  ;;  %v398_v8 = vadd.f32 %v397_v11, %v276_v57  ;;  %v1109_v27 = vld [vmem:[%s1193_s0 + $0x2b8] sm:$0xff] }
  0x51   :  { %v204_v37 = vadd.f32 %v203_v52, %v1049_v56  ;;  %v345_v5 = vadd.f32 %v344_v7, %v277_v3  ;;  %v286_v52 = vmul.f32 %v933_v26, %v933_v26  ;;  %v289_v26 = vmul.f32 %v957_v32, %v957_v32  ;;  %v104_v32 = vld [vmem:[%s1193_s0 + $0x2d8] sm:$0xff] }
  0x52   :  { %v151_v9 = vadd.f32 %v150_v47, %v1062_v60  ;;  %v399_v1 = vadd.f32 %v398_v8, %v278_v55  ;;  %v295_v3 = vmul.f32 %v1005_v44, %v1005_v44  ;;  %v298_v44 = vmul.f32 %v1029_v50, %v1029_v50 }
  0x53   :  { %v205_v62 = vadd.f32 %v204_v37, %v1069_v49  ;;  %v346_v21 = vadd.f32 %v345_v5, %v279_v6  ;;  %v291_v37 = vmul.f32 %v973_v36, %v973_v36  ;;  %v294_v36 = vmul.f32 %v997_v42, %v997_v42 }
  0x54   :  { %v152_v10 = vadd.f32 %v151_v9, %v1082_v61  ;;  %v400_v16 = vadd.f32 %v399_v1, %v280_v13  ;;  %v297_v42 = vmul.f32 %v1021_v48, %v1021_v48  ;;  %v299_v8 = vmul.f32 %v1042_v39, %v1042_v39  ;;  %v108_v48 = vld [vmem:[%s1193_s0 + $0x2f8] sm:$0xff] }
  0x55   :  { %v206_v15 = vadd.f32 %v205_v62, %v1089_v2  ;;  %v347_v29 = vadd.f32 %v346_v21, %v281_v12  ;;  %v296_v62 = vmul.f32 %v1013_v46, %v1013_v46  ;;  %v107_v46 = vld [vmem:[%s1193_s0 + $0x2f0] sm:$0xff]  ;;  %v300_v12 = vmul.f32 %v1049_v56, %v1049_v56  ;;  %v109_v56 = vld [vmem:[%s1193_s0 + $0x300] sm:$0xff] }
  0x56   :  { %v153_v18 = vadd.f32 %v152_v10, %v1102_v23  ;;  %v401_v33 = vadd.f32 %v400_v16, %v282_v17  ;;  %v301_v50 = vmul.f32 %v1062_v60, %v1062_v60  ;;  %v302_v39 = vmul.f32 %v1069_v49, %v1069_v49  ;;  %v110_v60 = vld [vmem:[%s1193_s0 + $0x308] sm:$0xff] }
  0x57   :  { %v207_v19 = vadd.f32 %v206_v15, %v1109_v27  ;;  %v348_v25 = vadd.f32 %v347_v29, %v283_v14  ;;  %v303_v21 = vmul.f32 %v1082_v61, %v1082_v61  ;;  %v304_v16 = vmul.f32 %v1089_v2, %v1089_v2 }
  0x58   :  { %v402_v31 = vadd.f32 %v401_v33, %v284_v4  ;;  %v154_v41 = vadd.f32 %v153_v18, %v101_v35  ;;  %v305_v49 = vmul.f32 %v1102_v23, %v1102_v23  ;;  %v306_v61 = vmul.f32 %v1109_v27, %v1109_v27 }
  0x59   :  { %v349_v47 = vadd.f32 %v348_v25, %v285_v20  ;;  %v208_v53 = vadd.f32 %v207_v19, %v102_v24  ;;  %v307_v33 = vmul.f32 %v101_v35, %v101_v35  ;;  %v308_v25 = vmul.f32 %v102_v24, %v102_v24 }
  0x5a   :  { %v403_v45 = vadd.f32 %v402_v31, %v286_v52  ;;  %v155_v43 = vadd.f32 %v154_v41, %v103_v30  ;;  %v309_v31 = vmul.f32 %v103_v30, %v103_v30  ;;  %v314_v27 = vmul.f32 %v108_v48, %v108_v48 }
  0x5b   :  { %v350_v58 = vadd.f32 %v349_v47, %v287_v22  ;;  %v209_v63 = vadd.f32 %v208_v53, %v104_v32  ;;  %v310_v47 = vmul.f32 %v104_v32, %v104_v32  ;;  %v315_v35 = vmul.f32 %v109_v56, %v109_v56 }
  0x5c   :  { %v404_v59 = vadd.f32 %v403_v45, %v288_v54  ;;  %v156_v11 = vadd.f32 %v155_v43, %v105_v38  ;;  %v316_v24 = vmul.f32 %v110_v60, %v110_v60 }
  0x5d   :  { %v351_v57 = vadd.f32 %v350_v58, %v289_v26  ;;  %v210_v7 = vadd.f32 %v209_v63, %v106_v40 }
  0x5e   :  { %v405_v9 = vadd.f32 %v404_v59, %v290_v28  ;;  %v157_v15 = vadd.f32 %v156_v11, %v107_v46  ;;  %v311_v28 = vmul.f32 %v105_v38, %v105_v38 }
  0x5f   :  { %v352_v0 = vadd.f32 %v351_v57, %v291_v37  ;;  %v211_v1 = vadd.f32 %v210_v7, %v108_v48  ;;  %v312_v37 = vmul.f32 %v106_v40, %v106_v40 }
  0x60   :  { %v406_v55 = vadd.f32 %v405_v9, %v292_v51  ;;  %v158_v20 = vadd.f32 %v157_v15, %v109_v56  ;;  %v313_v51 = vmul.f32 %v107_v46, %v107_v46 }
  0x61   :  { %v353_v6 = vadd.f32 %v352_v0, %v293_v34  ;;  %v212_v19 = vadd.f32 %v211_v1, %v110_v60  ;;  %v425_v60 = vld [vmem:[%s1194_s1] sm:$0xf] }
  0x62   :  { %v407_v13 = vadd.f32 %v406_v55, %v294_v36  ;;  %v159_v2 = vrot.slane %v158_v20, 4 }
  0x63   :  { %v354_v10 = vadd.f32 %v353_v6, %v295_v3  ;;  %v213_v26 = vrot.slane %v212_v19, 4 }
  0x64   :  { %v408_v5 = vadd.f32 %v407_v13, %v296_v62  ;;  %v160_v58 = vadd.f32 %v159_v2, %v158_v20 }
  0x65   :  { %v355_v17 = vadd.f32 %v354_v10, %v297_v42  ;;  %v214_v43 = vadd.f32 %v213_v26, %v212_v19 }
  0x66   :  { %v409_v14 = vadd.f32 %v408_v5, %v298_v44  ;;  %v161_v36 = vrot.slane %v160_v58, 2  ;;  %v449_v44 = vmov 1983009808  }
  0x67   :  { %v356_v4 = vadd.f32 %v355_v17, %v299_v8  ;;  %v215_v9 = vrot.slane %v214_v43, 2  ;;  %v433_v13 = vunpack.c.l.s4 %v449_v44  ;;  %v435_v8 = vlaneseq }
  0x68   :  { %v410_v18 = vadd.f32 %v409_v14, %v300_v12  ;;  %v162_v38 = vadd.f32 %v161_v36, %v160_v58 }
  0x69   :  { %v357_v29 = vadd.f32 %v356_v4, %v301_v50  ;;  %v216_v55 = vadd.f32 %v215_v9, %v214_v43  ;;  %v434_v50 = vunpack.c.0.s8 %v433_v13  ;;  %v436_v17 = vshrl.u32 %v435_v8, 7 }
  0x6a   :  { %v411_v52 = vadd.f32 %v410_v18, %v302_v39  ;;  %v163_v6 = vrot.slane %v162_v38, 1 }
  0x6b   :  { %v358_v22 = vadd.f32 %v357_v29, %v303_v21  ;;  %v217_v10 = vrot.slane %v216_v55, 1  ;;  %v437_v56 = vsub.s32 %v434_v50, %v436_v17 }
  0x6c   :  { %v412_v54 = vadd.f32 %v411_v52, %v304_v16  ;;  %v164_v48 = vadd.f32 %v163_v6, %v162_v38 }
  0x6d   :  { %v359_v41 = vadd.f32 %v358_v22, %v305_v49  ;;  %v218_v1 = vadd.f32 %v217_v10, %v216_v55 }
  0x6e   :  { %v413_v53 = vadd.f32 %v412_v54, %v306_v61 }
  0x6f   :  { %v360_v45 = vadd.f32 %v359_v41, %v307_v33 }
  0x70   :  { %v414_v23 = vadd.f32 %v413_v53, %v308_v25 }
  0x71   :  { %v361_v59 = vadd.f32 %v360_v45, %v309_v31 }
  0x72   :  { %v415_v34 = vadd.f32 %v414_v23, %v310_v47 }
  0x73   :  { %v362_v57 = vadd.f32 %v361_v59, %v311_v28 }
  0x74   :  { %v416_v63 = vadd.f32 %v415_v34, %v312_v37 }
  0x75   :  { %v363_v30 = vadd.f32 %v362_v57, %v313_v51 }
  0x76   :  { %v417_v3 = vadd.f32 %v416_v63, %v314_v27 }
  0x77   :  { %v364_v32 = vadd.f32 %v363_v30, %v315_v35 }
  0x78   :  { %v418_v0 = vadd.f32 %v417_v3, %v316_v24 }
  0x79   :  { %v365_v62 = vrot.slane %v364_v32, 4 }
  0x7a   :  { %v419_v40 = vrot.slane %v418_v0, 4 }
  0x7b   :  { %v366_v11 = vadd.f32 %v365_v62, %v364_v32 }
  0x7c   :  { %v420_v42 = vadd.f32 %v419_v40, %v418_v0 }
  0x7d   :  { %v367_v7 = vrot.slane %v366_v11, 2 }
  0x7e   :  { %v421_v46 = vrot.slane %v420_v42, 2 }
  0x7f   :  { %v368_v12 = vadd.f32 %v367_v7, %v366_v11 }
  0x80   :  { %v422_v5 = vadd.f32 %v421_v46, %v420_v42 }
  0x81   :  { %v369_v15 = vrot.slane %v368_v12, 1 }
  0x82   :  { %v423_v39 = vrot.slane %v422_v5, 1 }
  0x83   :  { %v370_v14 = vadd.f32 %v369_v15, %v368_v12 }
  0x84   :  { %v424_v21 = vadd.f32 %v423_v39, %v422_v5 }
  0x85   :  { %v427_v4 = vsel %vm426_vm0, %v164_v48, %v370_v14 }
  0x86   :  { %v428_v16 = vsel %vm426_vm0, %v218_v1, %v424_v21 }
  0x87   :  { %v431_v18 = vcombine.low %v427_v4, %v428_v16 }
  0x89   :  { %v438_v20 = vrot.slane %v431_v18, %v437_v56 }
  0x8b   :  { %v440_v49 = vadd.f32 %v438_v20, %v425_v60 }
  0x8d   :  { %441 = vst [vmem:[%s1194_s1] sm:$0xf] %v440_v49 }

// kernel: generator_forward.19
= control target key start
LH: loop header
LB: loop body
LE: loop exit
PB: predicated region body
PF: predicated region fallthrough
CT: control target
= control target key end

     0   :  { %v114_v0 = vlaneseq  ;;  %s1548_s1 = inlined_call_operand.vmem [shape: f32[1,256], index: 1, kind: input, shape index: {}]   ;;  %s1549_s2 = inlined_call_operand.vmem [shape: f32[1,256], index: 2, kind: input, shape index: {}]   ;;  %s1550_s0 = inlined_call_operand.vmem [shape: f32[392,256], index: 0, kind: input, shape index: {}]   ;;  %s1551_s3 = inlined_call_operand.vmem [shape: bf16[392,256], index: 3, kind: output, shape index: {}]  }
   0x1   :  { %v112_v2 = vld [vmem:[%s1548_s1] sm:$0x3]  ;;  %v15_v5 = vld [vmem:[%s1550_s0 + $0x8] sm:$0xff]  ;;  %v16_v8 = vld [vmem:[%s1550_s0 + $0x10] sm:$0xff] }
   0x2   :  { %v115_v1 = vshrl.u32 %v114_v0, 7  ;;  %v222_v3 = vld [vmem:[%s1549_s2] sm:$0x3]  ;;  %v17_v9 = vld [vmem:[%s1550_s0 + $0x18] sm:$0xff]  ;;  %v19_v15 = vld [vmem:[%s1550_s0 + $0x28] sm:$0xff] }
   0x3   :  { %v14_v4 = vld [vmem:[%s1550_s0] sm:$0xff]  ;;  %v20_v16 = vld [vmem:[%s1550_s0 + $0x30] sm:$0xff]  ;;  %v21_v17 = vld [vmem:[%s1550_s0 + $0x38] sm:$0xff] }
   0x4   :  { %v116_v6 = vsub.s32 0, %v115_v1  ;;  %v120_v7 = vsub.s32 1, %v115_v1  ;;  %v18_v10 = vld [vmem:[%s1550_s0 + $0x20] sm:$0xff]  ;;  %v23_v35 = vld [vmem:[%s1550_s0 + $0x48] sm:$0xff]  ;;  %v24_v40 = vld [vmem:[%s1550_s0 + $0x50] sm:$0xff] }
   0x5   :  { %v22_v34 = vld [vmem:[%s1550_s0 + $0x40] sm:$0xff]  ;;  %v25_v41 = vld [vmem:[%s1550_s0 + $0x58] sm:$0xff]  ;;  %v27_v47 = vld [vmem:[%s1550_s0 + $0x68] sm:$0xff] }
   0x6   :  { %v918_v11 = vrot.slane %v112_v2, %v116_v6  ;;  %v920_v12 = vrot.slane %v112_v2, %v120_v7  ;;  %v922_v13 = vrot.slane %v222_v3, %v116_v6  ;;  %v924_v14 = vrot.slane %v222_v3, %v120_v7  ;;  %v26_v46 = vld [vmem:[%s1550_s0 + $0x60] sm:$0xff]  ;;  %v28_v52 = vld [vmem:[%s1550_s0 + $0x70] sm:$0xff]  ;;  %v29_v53 = vld [vmem:[%s1550_s0 + $0x78] sm:$0xff] }
   0x7   :  { %v30_v2 = vld [vmem:[%s1550_s0 + $0x80] sm:$0xff]  ;;  %v31_v7 = vld [vmem:[%s1550_s0 + $0x88] sm:$0xff] }
   0x8   :  { %v124_v18 = vmul.f32 %v918_v11, %v14_v4  ;;  %v125_v19 = vmul.f32 %v920_v12, %v15_v5  ;;  %v126_v20 = vmul.f32 %v918_v11, %v16_v8  ;;  %v127_v21 = vmul.f32 %v920_v12, %v17_v9 }
   0x9   :  { %v128_v22 = vmul.f32 %v918_v11, %v18_v10  ;;  %v129_v23 = vmul.f32 %v920_v12, %v19_v15  ;;  %v130_v24 = vmul.f32 %v918_v11, %v20_v16  ;;  %v131_v25 = vmul.f32 %v920_v12, %v21_v17  ;;  %v32_v16 = vld [vmem:[%s1550_s0 + $0x90] sm:$0xff]  ;;  %v33_v17 = vld [vmem:[%s1550_s0 + $0x98] sm:$0xff] }
   0xa   :  { %v234_v26 = vadd.f32 %v922_v13, %v124_v18  ;;  %v235_v27 = vadd.f32 %v924_v14, %v125_v19  ;;  %v236_v28 = vadd.f32 %v922_v13, %v126_v20  ;;  %v237_v29 = vadd.f32 %v924_v14, %v127_v21 }
   0xb   :  { %v238_v30 = vadd.f32 %v922_v13, %v128_v22  ;;  %v239_v31 = vadd.f32 %v924_v14, %v129_v23  ;;  %v240_v32 = vadd.f32 %v922_v13, %v130_v24  ;;  %v241_v33 = vadd.f32 %v924_v14, %v131_v25  ;;  %v34_v22 = vld [vmem:[%s1550_s0 + $0xa0] sm:$0xff]  ;;  %v35_v23 = vld [vmem:[%s1550_s0 + $0xa8] sm:$0xff] }
   0xc   :  { %v332_v36 = vmax.f32 %v234_v26, 0.0  ;;  %v333_v37 = vmax.f32 %v235_v27, 0.0  ;;  %v334_v38 = vmax.f32 %v236_v28, 0.0  ;;  %v335_v39 = vmax.f32 %v237_v29, 0.0  ;;  %v36_v28 = vld [vmem:[%s1550_s0 + $0xb0] sm:$0xff] }
   0xd   :  { %v336_v42 = vmax.f32 %v238_v30, 0.0  ;;  %v337_v43 = vmax.f32 %v239_v31, 0.0  ;;  %v338_v44 = vmax.f32 %v240_v32, 0.0  ;;  %v339_v45 = vmax.f32 %v241_v33, 0.0  ;;  %v37_v33 = vld [vmem:[%s1550_s0 + $0xb8] sm:$0xff] }
   0xe   :  { %v828_v48 = vpack.c.bf16 %v333_v37, %v332_v36  ;;  %v829_v49 = vpack.c.bf16 %v335_v39, %v334_v38  ;;  %v132_v50 = vmul.f32 %v918_v11, %v22_v34  ;;  %v133_v51 = vmul.f32 %v920_v12, %v23_v35  ;;  %v38_v38 = vld [vmem:[%s1550_s0 + $0xc0] sm:$0xff] }
   0xf   :  { %v830_v54 = vpack.c.bf16 %v337_v43, %v336_v42  ;;  %v831_v55 = vpack.c.bf16 %v339_v45, %v338_v44  ;;  %v134_v56 = vmul.f32 %v918_v11, %v24_v40  ;;  %v135_v57 = vmul.f32 %v920_v12, %v25_v41 }
  0x10   :  { %726 = vst [vmem:[%s1551_s3] sm:$0xff] %v828_v48  ;;  %727 = vst [vmem:[%s1551_s3 + $0x8] sm:$0xff] %v829_v49  ;;  %v242_v58 = vadd.f32 %v922_v13, %v132_v50  ;;  %v243_v59 = vadd.f32 %v924_v14, %v133_v51  ;;  %v136_v60 = vmul.f32 %v918_v11, %v26_v46 }
  0x11   :  { %v137_v61 = vmul.f32 %v920_v12, %v27_v47  ;;  %728 = vst [vmem:[%s1551_s3 + $0x10] sm:$0xff] %v830_v54  ;;  %729 = vst [vmem:[%s1551_s3 + $0x18] sm:$0xff] %v831_v55  ;;  %v244_v62 = vadd.f32 %v922_v13, %v134_v56  ;;  %v245_v63 = vadd.f32 %v924_v14, %v135_v57  ;;  %v39_v47 = vld [vmem:[%s1550_s0 + $0xc8] sm:$0xff] }
  0x12   :  { %v138_v0 = vmul.f32 %v918_v11, %v28_v52  ;;  %v139_v1 = vmul.f32 %v920_v12, %v29_v53  ;;  %v340_v3 = vmax.f32 %v242_v58, 0.0  ;;  %v341_v4 = vmax.f32 %v243_v59, 0.0  ;;  %v40_v52 = vld [vmem:[%s1550_s0 + $0xd0] sm:$0xff]  ;;  %v41_v53 = vld [vmem:[%s1550_s0 + $0xd8] sm:$0xff]  ;;  %v42_v58 = vld [vmem:[%s1550_s0 + $0xe0] sm:$0xff] }
  0x13   :  { %v246_v5 = vadd.f32 %v922_v13, %v136_v60  ;;  %v247_v6 = vadd.f32 %v924_v14, %v137_v61  ;;  %v342_v8 = vmax.f32 %v244_v62, 0.0  ;;  %v343_v9 = vmax.f32 %v245_v63, 0.0  ;;  %v43_v59 = vld [vmem:[%s1550_s0 + $0xe8] sm:$0xff] }
  0x14   :  { %v248_v10 = vadd.f32 %v922_v13, %v138_v0  ;;  %v249_v15 = vadd.f32 %v924_v14, %v139_v1  ;;  %v832_v18 = vpack.c.bf16 %v341_v4, %v340_v3  ;;  %v140_v21 = vmul.f32 %v918_v11, %v30_v2  ;;  %v44_v0 = vld [vmem:[%s1550_s0 + $0xf0] sm:$0xff] }
  0x15   :  { %v344_v19 = vmax.f32 %v246_v5, 0.0  ;;  %v345_v20 = vmax.f32 %v247_v6, 0.0  ;;  %v833_v24 = vpack.c.bf16 %v343_v9, %v342_v8  ;;  %v141_v27 = vmul.f32 %v920_v12, %v31_v7  ;;  %v45_v5 = vld [vmem:[%s1550_s0 + $0xf8] sm:$0xff] }
  0x16   :  { %v346_v25 = vmax.f32 %v248_v10, 0.0  ;;  %v347_v26 = vmax.f32 %v249_v15, 0.0  ;;  %730 = vst [vmem:[%s1551_s3 + $0x20] sm:$0xff] %v832_v18  ;;  %v250_v30 = vadd.f32 %v922_v13, %v140_v21  ;;  %v142_v31 = vmul.f32 %v918_v11, %v32_v16  ;;  %v46_v10 = vld [vmem:[%s1550_s0 + $0x100] sm:$0xff] }
  0x17   :  { %v834_v29 = vpack.c.bf16 %v345_v20, %v344_v19  ;;  %v143_v32 = vmul.f32 %v920_v12, %v33_v17  ;;  %731 = vst [vmem:[%s1551_s3 + $0x28] sm:$0xff] %v833_v24  ;;  %v251_v35 = vadd.f32 %v924_v14, %v141_v27  ;;  %v144_v36 = vmul.f32 %v918_v11, %v34_v22 }
  0x18   :  { %v835_v34 = vpack.c.bf16 %v347_v26, %v346_v25  ;;  %v145_v37 = vmul.f32 %v920_v12, %v35_v23  ;;  %v348_v39 = vmax.f32 %v250_v30, 0.0  ;;  %v252_v40 = vadd.f32 %v922_v13, %v142_v31  ;;  %v47_v23 = vld [vmem:[%s1550_s0 + $0x108] sm:$0xff] }
  0x19   :  { %732 = vst [vmem:[%s1551_s3 + $0x30] sm:$0xff] %v834_v29  ;;  %v253_v41 = vadd.f32 %v924_v14, %v143_v32  ;;  %v146_v42 = vmul.f32 %v918_v11, %v36_v28  ;;  %v349_v43 = vmax.f32 %v251_v35, 0.0  ;;  %v254_v44 = vadd.f32 %v922_v13, %v144_v36  ;;  %v48_v28 = vld [vmem:[%s1550_s0 + $0x110] sm:$0xff]  ;;  %v49_v29 = vld [vmem:[%s1550_s0 + $0x118] sm:$0xff]  ;;  %v51_v35 = vld [vmem:[%s1550_s0 + $0x128] sm:$0xff] }
  0x1a   :  { %733 = vst [vmem:[%s1551_s3 + $0x38] sm:$0xff] %v835_v34  ;;  %v255_v45 = vadd.f32 %v924_v14, %v145_v37  ;;  %v147_v46 = vmul.f32 %v920_v12, %v37_v33  ;;  %v350_v48 = vmax.f32 %v252_v40, 0.0  ;;  %v148_v51 = vmul.f32 %v918_v11, %v38_v38  ;;  %v50_v34 = vld [vmem:[%s1550_s0 + $0x120] sm:$0xff]  ;;  %v52_v40 = vld [vmem:[%s1550_s0 + $0x130] sm:$0xff] }
  0x1b   :  { %v351_v49 = vmax.f32 %v253_v41, 0.0  ;;  %v256_v50 = vadd.f32 %v922_v13, %v146_v42  ;;  %v836_v54 = vpack.c.bf16 %v349_v43, %v348_v39  ;;  %v352_v55 = vmax.f32 %v254_v44, 0.0 }
  0x1c   :  { %v353_v56 = vmax.f32 %v255_v45, 0.0  ;;  %v257_v57 = vadd.f32 %v924_v14, %v147_v46  ;;  %v149_v62 = vmul.f32 %v920_v12, %v39_v47  ;;  %v258_v63 = vadd.f32 %v922_v13, %v148_v51  ;;  %v53_v45 = vld [vmem:[%s1550_s0 + $0x138] sm:$0xff] }
  0x1d   :  { %v837_v60 = vpack.c.bf16 %v351_v49, %v350_v48  ;;  %v354_v61 = vmax.f32 %v256_v50, 0.0  ;;  %734 = vst [vmem:[%s1551_s3 + $0x40] sm:$0xff] %v836_v54  ;;  %v150_v3 = vmul.f32 %v918_v11, %v40_v52  ;;  %v151_v4 = vmul.f32 %v920_v12, %v41_v53  ;;  %v54_v50 = vld [vmem:[%s1550_s0 + $0x140] sm:$0xff] }
  0x1e   :  { %v838_v1 = vpack.c.bf16 %v353_v56, %v352_v55  ;;  %v355_v2 = vmax.f32 %v257_v57, 0.0  ;;  %v259_v6 = vadd.f32 %v924_v14, %v149_v62  ;;  %v356_v7 = vmax.f32 %v258_v63, 0.0 }
  0x1f   :  { %735 = vst [vmem:[%s1551_s3 + $0x48] sm:$0xff] %v837_v60  ;;  %v152_v8 = vmul.f32 %v918_v11, %v42_v58  ;;  %v153_v9 = vmul.f32 %v920_v12, %v43_v59  ;;  %v260_v16 = vadd.f32 %v922_v13, %v150_v3  ;;  %v261_v17 = vadd.f32 %v924_v14, %v151_v4  ;;  %v55_v59 = vld [vmem:[%s1550_s0 + $0x148] sm:$0xff] }
  0x20   :  { %736 = vst [vmem:[%s1551_s3 + $0x50] sm:$0xff] %v838_v1  ;;  %v839_v15 = vpack.c.bf16 %v355_v2, %v354_v61  ;;  %v154_v18 = vmul.f32 %v918_v11, %v44_v0  ;;  %v357_v19 = vmax.f32 %v259_v6, 0.0  ;;  %v155_v22 = vmul.f32 %v920_v12, %v45_v5  ;;  %v56_v0 = vld [vmem:[%s1550_s0 + $0x150] sm:$0xff]  ;;  %v57_v1 = vld [vmem:[%s1550_s0 + $0x158] sm:$0xff]  ;;  %v58_v6 = vld [vmem:[%s1550_s0 + $0x160] sm:$0xff] }
  0x21   :  { %v262_v20 = vadd.f32 %v922_v13, %v152_v8  ;;  %v263_v21 = vadd.f32 %v924_v14, %v153_v9  ;;  %v358_v24 = vmax.f32 %v260_v16, 0.0  ;;  %v359_v25 = vmax.f32 %v261_v17, 0.0  ;;  %v60_v16 = vld [vmem:[%s1550_s0 + $0x170] sm:$0xff] }
  0x22   :  { %737 = vst [vmem:[%s1551_s3 + $0x58] sm:$0xff] %v839_v15  ;;  %v264_v26 = vadd.f32 %v922_v13, %v154_v18  ;;  %v156_v27 = vmul.f32 %v918_v11, %v46_v10  ;;  %v840_v30 = vpack.c.bf16 %v357_v19, %v356_v7  ;;  %v265_v33 = vadd.f32 %v924_v14, %v155_v22  ;;  %v59_v7 = vld [vmem:[%s1550_s0 + $0x168] sm:$0xff] }
  0x23   :  { %v360_v31 = vmax.f32 %v262_v20, 0.0  ;;  %v361_v32 = vmax.f32 %v263_v21, 0.0  ;;  %v841_v36 = vpack.c.bf16 %v359_v25, %v358_v24  ;;  %v157_v38 = vmul.f32 %v920_v12, %v47_v23  ;;  %v61_v21 = vld [vmem:[%s1550_s0 + $0x178] sm:$0xff] }
  0x24   :  { %v362_v37 = vmax.f32 %v264_v26, 0.0  ;;  %v266_v39 = vadd.f32 %v922_v13, %v156_v27  ;;  %738 = vst [vmem:[%s1551_s3 + $0x60] sm:$0xff] %v840_v30  ;;  %v363_v42 = vmax.f32 %v265_v33, 0.0  ;;  %v158_v43 = vmul.f32 %v918_v11, %v48_v28  ;;  %v62_v26 = vld [vmem:[%s1550_s0 + $0x180] sm:$0xff] }
  0x25   :  { %v842_v41 = vpack.c.bf16 %v361_v32, %v360_v31  ;;  %v159_v44 = vmul.f32 %v920_v12, %v49_v29  ;;  %739 = vst [vmem:[%s1551_s3 + $0x68] sm:$0xff] %v841_v36  ;;  %v267_v46 = vadd.f32 %v924_v14, %v157_v38  ;;  %v160_v48 = vmul.f32 %v918_v11, %v50_v34 }
  0x26   :  { %v364_v47 = vmax.f32 %v266_v39, 0.0  ;;  %v161_v49 = vmul.f32 %v920_v12, %v51_v35  ;;  %v843_v51 = vpack.c.bf16 %v363_v42, %v362_v37  ;;  %v268_v52 = vadd.f32 %v922_v13, %v158_v43  ;;  %v63_v35 = vld [vmem:[%s1550_s0 + $0x188] sm:$0xff] }
  0x27   :  { %740 = vst [vmem:[%s1551_s3 + $0x70] sm:$0xff] %v842_v41  ;;  %v269_v53 = vadd.f32 %v924_v14, %v159_v44  ;;  %v162_v54 = vmul.f32 %v918_v11, %v52_v40  ;;  %v365_v55 = vmax.f32 %v267_v46, 0.0  ;;  %v270_v56 = vadd.f32 %v922_v13, %v160_v48  ;;  %v64_v40 = vld [vmem:[%s1550_s0 + $0x190] sm:$0xff]  ;;  %v65_v41 = vld [vmem:[%s1550_s0 + $0x198] sm:$0xff]  ;;  %v66_v46 = vld [vmem:[%s1550_s0 + $0x1a0] sm:$0xff] }
  0x28   :  { %v271_v57 = vadd.f32 %v924_v14, %v161_v49  ;;  %v163_v58 = vmul.f32 %v920_v12, %v53_v45  ;;  %741 = vst [vmem:[%s1551_s3 + $0x78] sm:$0xff] %v843_v51  ;;  %v366_v60 = vmax.f32 %v268_v52, 0.0  ;;  %v164_v63 = vmul.f32 %v918_v11, %v54_v50  ;;  %v68_v52 = vld [vmem:[%s1550_s0 + $0x1b0] sm:$0xff] }
  0x29   :  { %v367_v61 = vmax.f32 %v269_v53, 0.0  ;;  %v272_v62 = vadd.f32 %v922_v13, %v162_v54  ;;  %v844_v2 = vpack.c.bf16 %v365_v55, %v364_v47  ;;  %v368_v3 = vmax.f32 %v270_v56, 0.0  ;;  %v67_v47 = vld [vmem:[%s1550_s0 + $0x1a8] sm:$0xff] }
  0x2a   :  { %v369_v4 = vmax.f32 %v271_v57, 0.0  ;;  %v273_v5 = vadd.f32 %v924_v14, %v163_v58  ;;  %v165_v10 = vmul.f32 %v920_v12, %v55_v59  ;;  %v274_v15 = vadd.f32 %v922_v13, %v164_v63  ;;  %v69_v57 = vld [vmem:[%s1550_s0 + $0x1b8] sm:$0xff] }
  0x2b   :  { %v845_v8 = vpack.c.bf16 %v367_v61, %v366_v60  ;;  %v370_v9 = vmax.f32 %v272_v62, 0.0  ;;  %742 = vst [vmem:[%s1551_s3 + $0x80] sm:$0xff] %v844_v2  ;;  %v166_v19 = vmul.f32 %v918_v11, %v56_v0  ;;  %v167_v20 = vmul.f32 %v920_v12, %v57_v1  ;;  %v70_v62 = vld [vmem:[%s1550_s0 + $0x1c0] sm:$0xff] }
  0x2c   :  { %v846_v17 = vpack.c.bf16 %v369_v4, %v368_v3  ;;  %v371_v18 = vmax.f32 %v273_v5, 0.0  ;;  %v275_v22 = vadd.f32 %v924_v14, %v165_v10  ;;  %v372_v23 = vmax.f32 %v274_v15, 0.0 }
  0x2d   :  { %743 = vst [vmem:[%s1551_s3 + $0x88] sm:$0xff] %v845_v8  ;;  %v168_v24 = vmul.f32 %v918_v11, %v58_v6  ;;  %v169_v25 = vmul.f32 %v920_v12, %v59_v7  ;;  %v276_v28 = vadd.f32 %v922_v13, %v166_v19  ;;  %v277_v29 = vadd.f32 %v924_v14, %v167_v20  ;;  %v71_v7 = vld [vmem:[%s1550_s0 + $0x1c8] sm:$0xff] }
  0x2e   :  { %744 = vst [vmem:[%s1551_s3 + $0x90] sm:$0xff] %v846_v17  ;;  %v847_v27 = vpack.c.bf16 %v371_v18, %v370_v9  ;;  %v170_v30 = vmul.f32 %v918_v11, %v60_v16  ;;  %v373_v31 = vmax.f32 %v275_v22, 0.0  ;;  %v171_v34 = vmul.f32 %v920_v12, %v61_v21  ;;  %v72_v16 = vld [vmem:[%s1550_s0 + $0x1d0] sm:$0xff]  ;;  %v73_v17 = vld [vmem:[%s1550_s0 + $0x1d8] sm:$0xff]  ;;  %v74_v22 = vld [vmem:[%s1550_s0 + $0x1e0] sm:$0xff] }
  0x2f   :  { %v278_v32 = vadd.f32 %v922_v13, %v168_v24  ;;  %v279_v33 = vadd.f32 %v924_v14, %v169_v25  ;;  %v374_v36 = vmax.f32 %v276_v28, 0.0  ;;  %v375_v37 = vmax.f32 %v277_v29, 0.0  ;;  %v76_v28 = vld [vmem:[%s1550_s0 + $0x1f0] sm:$0xff] }
  0x30   :  { %745 = vst [vmem:[%s1551_s3 + $0x98] sm:$0xff] %v847_v27  ;;  %v280_v38 = vadd.f32 %v922_v13, %v170_v30  ;;  %v172_v39 = vmul.f32 %v918_v11, %v62_v26  ;;  %v848_v42 = vpack.c.bf16 %v373_v31, %v372_v23  ;;  %v281_v45 = vadd.f32 %v924_v14, %v171_v34  ;;  %v75_v23 = vld [vmem:[%s1550_s0 + $0x1e8] sm:$0xff] }
  0x31   :  { %v376_v43 = vmax.f32 %v278_v32, 0.0  ;;  %v377_v44 = vmax.f32 %v279_v33, 0.0  ;;  %v849_v48 = vpack.c.bf16 %v375_v37, %v374_v36  ;;  %v173_v50 = vmul.f32 %v920_v12, %v63_v35  ;;  %v77_v33 = vld [vmem:[%s1550_s0 + $0x1f8] sm:$0xff] }
  0x32   :  { %v378_v49 = vmax.f32 %v280_v38, 0.0  ;;  %v282_v51 = vadd.f32 %v922_v13, %v172_v39  ;;  %746 = vst [vmem:[%s1551_s3 + $0xa0] sm:$0xff] %v848_v42  ;;  %v379_v54 = vmax.f32 %v281_v45, 0.0  ;;  %v174_v55 = vmul.f32 %v918_v11, %v64_v40  ;;  %v78_v38 = vld [vmem:[%s1550_s0 + $0x200] sm:$0xff] }
  0x33   :  { %v850_v53 = vpack.c.bf16 %v377_v44, %v376_v43  ;;  %v175_v56 = vmul.f32 %v920_v12, %v65_v41  ;;  %747 = vst [vmem:[%s1551_s3 + $0xa8] sm:$0xff] %v849_v48  ;;  %v283_v58 = vadd.f32 %v924_v14, %v173_v50  ;;  %v176_v60 = vmul.f32 %v918_v11, %v66_v46 }
  0x34   :  { %v380_v59 = vmax.f32 %v282_v51, 0.0  ;;  %v177_v61 = vmul.f32 %v920_v12, %v67_v47  ;;  %v851_v63 = vpack.c.bf16 %v379_v54, %v378_v49  ;;  %v284_v0 = vadd.f32 %v922_v13, %v174_v55  ;;  %v79_v47 = vld [vmem:[%s1550_s0 + $0x208] sm:$0xff] }
  0x35   :  { %748 = vst [vmem:[%s1551_s3 + $0xb0] sm:$0xff] %v850_v53  ;;  %v285_v1 = vadd.f32 %v924_v14, %v175_v56  ;;  %v178_v2 = vmul.f32 %v918_v11, %v68_v52  ;;  %v381_v3 = vmax.f32 %v283_v58, 0.0  ;;  %v286_v4 = vadd.f32 %v922_v13, %v176_v60  ;;  %v80_v52 = vld [vmem:[%s1550_s0 + $0x210] sm:$0xff]  ;;  %v81_v53 = vld [vmem:[%s1550_s0 + $0x218] sm:$0xff]  ;;  %v82_v58 = vld [vmem:[%s1550_s0 + $0x220] sm:$0xff] }
  0x36   :  { %v287_v5 = vadd.f32 %v924_v14, %v177_v61  ;;  %v179_v6 = vmul.f32 %v920_v12, %v69_v57  ;;  %749 = vst [vmem:[%s1551_s3 + $0xb8] sm:$0xff] %v851_v63  ;;  %v382_v8 = vmax.f32 %v284_v0, 0.0  ;;  %v180_v15 = vmul.f32 %v918_v11, %v70_v62  ;;  %v84_v0 = vld [vmem:[%s1550_s0 + $0x230] sm:$0xff] }
  0x37   :  { %v383_v9 = vmax.f32 %v285_v1, 0.0  ;;  %v288_v10 = vadd.f32 %v922_v13, %v178_v2  ;;  %v852_v18 = vpack.c.bf16 %v381_v3, %v380_v59  ;;  %v384_v19 = vmax.f32 %v286_v4, 0.0  ;;  %v83_v59 = vld [vmem:[%s1550_s0 + $0x228] sm:$0xff] }
  0x38   :  { %v385_v20 = vmax.f32 %v287_v5, 0.0  ;;  %v289_v21 = vadd.f32 %v924_v14, %v179_v6  ;;  %v181_v26 = vmul.f32 %v920_v12, %v71_v7  ;;  %v290_v27 = vadd.f32 %v922_v13, %v180_v15  ;;  %v85_v5 = vld [vmem:[%s1550_s0 + $0x238] sm:$0xff] }
  0x39   :  { %v853_v24 = vpack.c.bf16 %v383_v9, %v382_v8  ;;  %v386_v25 = vmax.f32 %v288_v10, 0.0  ;;  %750 = vst [vmem:[%s1551_s3 + $0xc0] sm:$0xff] %v852_v18  ;;  %v182_v31 = vmul.f32 %v918_v11, %v72_v16  ;;  %v183_v32 = vmul.f32 %v920_v12, %v73_v17  ;;  %v86_v10 = vld [vmem:[%s1550_s0 + $0x240] sm:$0xff] }
  0x3a   :  { %v854_v29 = vpack.c.bf16 %v385_v20, %v384_v19  ;;  %v387_v30 = vmax.f32 %v289_v21, 0.0  ;;  %v291_v34 = vadd.f32 %v924_v14, %v181_v26  ;;  %v388_v35 = vmax.f32 %v290_v27, 0.0 }
  0x3b   :  { %751 = vst [vmem:[%s1551_s3 + $0xc8] sm:$0xff] %v853_v24  ;;  %v184_v36 = vmul.f32 %v918_v11, %v74_v22  ;;  %v185_v37 = vmul.f32 %v920_v12, %v75_v23  ;;  %v292_v40 = vadd.f32 %v922_v13, %v182_v31  ;;  %v293_v41 = vadd.f32 %v924_v14, %v183_v32  ;;  %v87_v23 = vld [vmem:[%s1550_s0 + $0x248] sm:$0xff] }
  0x3c   :  { %752 = vst [vmem:[%s1551_s3 + $0xd0] sm:$0xff] %v854_v29  ;;  %v855_v39 = vpack.c.bf16 %v387_v30, %v386_v25  ;;  %v186_v42 = vmul.f32 %v918_v11, %v76_v28  ;;  %v389_v43 = vmax.f32 %v291_v34, 0.0  ;;  %v187_v46 = vmul.f32 %v920_v12, %v77_v33  ;;  %v88_v28 = vld [vmem:[%s1550_s0 + $0x250] sm:$0xff]  ;;  %v89_v29 = vld [vmem:[%s1550_s0 + $0x258] sm:$0xff]  ;;  %v90_v34 = vld [vmem:[%s1550_s0 + $0x260] sm:$0xff] }
  0x3d   :  { %v294_v44 = vadd.f32 %v922_v13, %v184_v36  ;;  %v295_v45 = vadd.f32 %v924_v14, %v185_v37  ;;  %v390_v48 = vmax.f32 %v292_v40, 0.0  ;;  %v391_v49 = vmax.f32 %v293_v41, 0.0  ;;  %v92_v40 = vld [vmem:[%s1550_s0 + $0x270] sm:$0xff] }
  0x3e   :  { %753 = vst [vmem:[%s1551_s3 + $0xd8] sm:$0xff] %v855_v39  ;;  %v296_v50 = vadd.f32 %v922_v13, %v186_v42  ;;  %v188_v51 = vmul.f32 %v918_v11, %v78_v38  ;;  %v856_v54 = vpack.c.bf16 %v389_v43, %v388_v35  ;;  %v297_v57 = vadd.f32 %v924_v14, %v187_v46  ;;  %v91_v35 = vld [vmem:[%s1550_s0 + $0x268] sm:$0xff] }
  0x3f   :  { %v392_v55 = vmax.f32 %v294_v44, 0.0  ;;  %v393_v56 = vmax.f32 %v295_v45, 0.0  ;;  %v857_v60 = vpack.c.bf16 %v391_v49, %v390_v48  ;;  %v189_v62 = vmul.f32 %v920_v12, %v79_v47  ;;  %v93_v45 = vld [vmem:[%s1550_s0 + $0x278] sm:$0xff] }
  0x40   :  { %v394_v61 = vmax.f32 %v296_v50, 0.0  ;;  %v298_v63 = vadd.f32 %v922_v13, %v188_v51  ;;  %754 = vst [vmem:[%s1551_s3 + $0xe0] sm:$0xff] %v856_v54  ;;  %v395_v2 = vmax.f32 %v297_v57, 0.0  ;;  %v190_v3 = vmul.f32 %v918_v11, %v80_v52  ;;  %v94_v50 = vld [vmem:[%s1550_s0 + $0x280] sm:$0xff] }
  0x41   :  { %v858_v1 = vpack.c.bf16 %v393_v56, %v392_v55  ;;  %v191_v4 = vmul.f32 %v920_v12, %v81_v53  ;;  %755 = vst [vmem:[%s1551_s3 + $0xe8] sm:$0xff] %v857_v60  ;;  %v299_v6 = vadd.f32 %v924_v14, %v189_v62  ;;  %v192_v8 = vmul.f32 %v918_v11, %v82_v58 }
  0x42   :  { %v396_v7 = vmax.f32 %v298_v63, 0.0  ;;  %v193_v9 = vmul.f32 %v920_v12, %v83_v59  ;;  %v859_v15 = vpack.c.bf16 %v395_v2, %v394_v61  ;;  %v300_v16 = vadd.f32 %v922_v13, %v190_v3  ;;  %v95_v59 = vld [vmem:[%s1550_s0 + $0x288] sm:$0xff] }
  0x43   :  { %756 = vst [vmem:[%s1551_s3 + $0xf0] sm:$0xff] %v858_v1  ;;  %v301_v17 = vadd.f32 %v924_v14, %v191_v4  ;;  %v194_v18 = vmul.f32 %v918_v11, %v84_v0  ;;  %v397_v19 = vmax.f32 %v299_v6, 0.0  ;;  %v302_v20 = vadd.f32 %v922_v13, %v192_v8  ;;  %v96_v0 = vld [vmem:[%s1550_s0 + $0x290] sm:$0xff]  ;;  %v97_v1 = vld [vmem:[%s1550_s0 + $0x298] sm:$0xff]  ;;  %v98_v6 = vld [vmem:[%s1550_s0 + $0x2a0] sm:$0xff] }
  0x44   :  { %v303_v21 = vadd.f32 %v924_v14, %v193_v9  ;;  %v195_v22 = vmul.f32 %v920_v12, %v85_v5  ;;  %757 = vst [vmem:[%s1551_s3 + $0xf8] sm:$0xff] %v859_v15  ;;  %v398_v24 = vmax.f32 %v300_v16, 0.0  ;;  %v196_v27 = vmul.f32 %v918_v11, %v86_v10  ;;  %v100_v16 = vld [vmem:[%s1550_s0 + $0x2b0] sm:$0xff] }
  0x45   :  { %v399_v25 = vmax.f32 %v301_v17, 0.0  ;;  %v304_v26 = vadd.f32 %v922_v13, %v194_v18  ;;  %v860_v30 = vpack.c.bf16 %v397_v19, %v396_v7  ;;  %v400_v31 = vmax.f32 %v302_v20, 0.0  ;;  %v99_v7 = vld [vmem:[%s1550_s0 + $0x2a8] sm:$0xff] }
  0x46   :  { %v401_v32 = vmax.f32 %v303_v21, 0.0  ;;  %v305_v33 = vadd.f32 %v924_v14, %v195_v22  ;;  %v197_v38 = vmul.f32 %v920_v12, %v87_v23  ;;  %v306_v39 = vadd.f32 %v922_v13, %v196_v27  ;;  %v101_v21 = vld [vmem:[%s1550_s0 + $0x2b8] sm:$0xff] }
  0x47   :  { %v861_v36 = vpack.c.bf16 %v399_v25, %v398_v24  ;;  %v402_v37 = vmax.f32 %v304_v26, 0.0  ;;  %758 = vst [vmem:[%s1551_s3 + $0x100] sm:$0xff] %v860_v30  ;;  %v198_v43 = vmul.f32 %v918_v11, %v88_v28  ;;  %v199_v44 = vmul.f32 %v920_v12, %v89_v29  ;;  %v102_v26 = vld [vmem:[%s1550_s0 + $0x2c0] sm:$0xff] }
  0x48   :  { %v862_v41 = vpack.c.bf16 %v401_v32, %v400_v31  ;;  %v403_v42 = vmax.f32 %v305_v33, 0.0  ;;  %v307_v46 = vadd.f32 %v924_v14, %v197_v38  ;;  %v404_v47 = vmax.f32 %v306_v39, 0.0 }
  0x49   :  { %759 = vst [vmem:[%s1551_s3 + $0x108] sm:$0xff] %v861_v36  ;;  %v200_v48 = vmul.f32 %v918_v11, %v90_v34  ;;  %v201_v49 = vmul.f32 %v920_v12, %v91_v35  ;;  %v308_v52 = vadd.f32 %v922_v13, %v198_v43  ;;  %v309_v53 = vadd.f32 %v924_v14, %v199_v44  ;;  %v103_v35 = vld [vmem:[%s1550_s0 + $0x2c8] sm:$0xff] }
  0x4a   :  { %760 = vst [vmem:[%s1551_s3 + $0x110] sm:$0xff] %v862_v41  ;;  %v863_v51 = vpack.c.bf16 %v403_v42, %v402_v37  ;;  %v202_v54 = vmul.f32 %v918_v11, %v92_v40  ;;  %v405_v55 = vmax.f32 %v307_v46, 0.0  ;;  %v203_v58 = vmul.f32 %v920_v12, %v93_v45  ;;  %v104_v40 = vld [vmem:[%s1550_s0 + $0x2d0] sm:$0xff]  ;;  %v105_v41 = vld [vmem:[%s1550_s0 + $0x2d8] sm:$0xff]  ;;  %v106_v46 = vld [vmem:[%s1550_s0 + $0x2e0] sm:$0xff] }
  0x4b   :  { %v310_v56 = vadd.f32 %v922_v13, %v200_v48  ;;  %v311_v57 = vadd.f32 %v924_v14, %v201_v49  ;;  %v406_v60 = vmax.f32 %v308_v52, 0.0  ;;  %v407_v61 = vmax.f32 %v309_v53, 0.0  ;;  %v108_v52 = vld [vmem:[%s1550_s0 + $0x2f0] sm:$0xff] }
  0x4c   :  { %761 = vst [vmem:[%s1551_s3 + $0x118] sm:$0xff] %v863_v51  ;;  %v312_v62 = vadd.f32 %v922_v13, %v202_v54  ;;  %v204_v63 = vmul.f32 %v918_v11, %v94_v50  ;;  %v864_v2 = vpack.c.bf16 %v405_v55, %v404_v47  ;;  %v313_v5 = vadd.f32 %v924_v14, %v203_v58  ;;  %v107_v47 = vld [vmem:[%s1550_s0 + $0x2e8] sm:$0xff] }
  0x4d   :  { %v408_v3 = vmax.f32 %v310_v56, 0.0  ;;  %v409_v4 = vmax.f32 %v311_v57, 0.0  ;;  %v865_v8 = vpack.c.bf16 %v407_v61, %v406_v60  ;;  %v205_v10 = vmul.f32 %v920_v12, %v95_v59  ;;  %v109_v57 = vld [vmem:[%s1550_s0 + $0x2f8] sm:$0xff] }
  0x4e   :  { %v410_v9 = vmax.f32 %v312_v62, 0.0  ;;  %v314_v15 = vadd.f32 %v922_v13, %v204_v63  ;;  %762 = vst [vmem:[%s1551_s3 + $0x120] sm:$0xff] %v864_v2  ;;  %v411_v18 = vmax.f32 %v313_v5, 0.0  ;;  %v206_v19 = vmul.f32 %v918_v11, %v96_v0  ;;  %v110_v62 = vld [vmem:[%s1550_s0 + $0x300] sm:$0xff] }
  0x4f   :  { %v866_v17 = vpack.c.bf16 %v409_v4, %v408_v3  ;;  %v207_v20 = vmul.f32 %v920_v12, %v97_v1  ;;  %763 = vst [vmem:[%s1551_s3 + $0x128] sm:$0xff] %v865_v8  ;;  %v315_v22 = vadd.f32 %v924_v14, %v205_v10  ;;  %v208_v24 = vmul.f32 %v918_v11, %v98_v6 }
  0x50   :  { %v412_v23 = vmax.f32 %v314_v15, 0.0  ;;  %v209_v25 = vmul.f32 %v920_v12, %v99_v7  ;;  %v867_v27 = vpack.c.bf16 %v411_v18, %v410_v9  ;;  %v316_v28 = vadd.f32 %v922_v13, %v206_v19  ;;  %v111_v7 = vld [vmem:[%s1550_s0 + $0x308] sm:$0xff] }
  0x51   :  { %764 = vst [vmem:[%s1551_s3 + $0x130] sm:$0xff] %v866_v17  ;;  %v317_v29 = vadd.f32 %v924_v14, %v207_v20  ;;  %v210_v30 = vmul.f32 %v918_v11, %v100_v16  ;;  %v413_v31 = vmax.f32 %v315_v22, 0.0  ;;  %v318_v32 = vadd.f32 %v922_v13, %v208_v24 }
  0x52   :  { %v319_v33 = vadd.f32 %v924_v14, %v209_v25  ;;  %v211_v34 = vmul.f32 %v920_v12, %v101_v21  ;;  %765 = vst [vmem:[%s1551_s3 + $0x138] sm:$0xff] %v867_v27  ;;  %v414_v36 = vmax.f32 %v316_v28, 0.0  ;;  %v212_v39 = vmul.f32 %v918_v11, %v102_v26 }
  0x53   :  { %v415_v37 = vmax.f32 %v317_v29, 0.0  ;;  %v320_v38 = vadd.f32 %v922_v13, %v210_v30  ;;  %v868_v42 = vpack.c.bf16 %v413_v31, %v412_v23  ;;  %v416_v43 = vmax.f32 %v318_v32, 0.0 }
  0x54   :  { %v417_v44 = vmax.f32 %v319_v33, 0.0  ;;  %v321_v45 = vadd.f32 %v924_v14, %v211_v34  ;;  %v213_v50 = vmul.f32 %v920_v12, %v103_v35  ;;  %v322_v51 = vadd.f32 %v922_v13, %v212_v39 }
  0x55   :  { %v869_v48 = vpack.c.bf16 %v415_v37, %v414_v36  ;;  %v418_v49 = vmax.f32 %v320_v38, 0.0  ;;  %766 = vst [vmem:[%s1551_s3 + $0x140] sm:$0xff] %v868_v42  ;;  %v214_v55 = vmul.f32 %v918_v11, %v104_v40  ;;  %v215_v56 = vmul.f32 %v920_v12, %v105_v41 }
  0x56   :  { %v870_v53 = vpack.c.bf16 %v417_v44, %v416_v43  ;;  %v419_v54 = vmax.f32 %v321_v45, 0.0  ;;  %v323_v58 = vadd.f32 %v924_v14, %v213_v50  ;;  %v420_v59 = vmax.f32 %v322_v51, 0.0 }
  0x57   :  { %767 = vst [vmem:[%s1551_s3 + $0x148] sm:$0xff] %v869_v48  ;;  %v216_v60 = vmul.f32 %v918_v11, %v106_v46  ;;  %v217_v61 = vmul.f32 %v920_v12, %v107_v47  ;;  %v324_v0 = vadd.f32 %v922_v13, %v214_v55  ;;  %v325_v1 = vadd.f32 %v924_v14, %v215_v56 }
  0x58   :  { %768 = vst [vmem:[%s1551_s3 + $0x150] sm:$0xff] %v870_v53  ;;  %v871_v63 = vpack.c.bf16 %v419_v54, %v418_v49  ;;  %v218_v2 = vmul.f32 %v918_v11, %v108_v52  ;;  %v421_v3 = vmax.f32 %v323_v58, 0.0  ;;  %v219_v6 = vmul.f32 %v920_v12, %v109_v57 }
  0x59   :  { %v326_v4 = vadd.f32 %v922_v13, %v216_v60  ;;  %v327_v5 = vadd.f32 %v924_v14, %v217_v61  ;;  %v422_v8 = vmax.f32 %v324_v0, 0.0  ;;  %v423_v9 = vmax.f32 %v325_v1, 0.0 }
  0x5a   :  { %769 = vst [vmem:[%s1551_s3 + $0x158] sm:$0xff] %v871_v63  ;;  %v328_v10 = vadd.f32 %v922_v13, %v218_v2  ;;  %v220_v15 = vmul.f32 %v918_v11, %v110_v62  ;;  %v872_v16 = vpack.c.bf16 %v421_v3, %v420_v59  ;;  %v329_v19 = vadd.f32 %v924_v14, %v219_v6 }
  0x5b   :  { %v424_v17 = vmax.f32 %v326_v4, 0.0  ;;  %v425_v18 = vmax.f32 %v327_v5, 0.0  ;;  %v873_v20 = vpack.c.bf16 %v423_v9, %v422_v8  ;;  %v221_v22 = vmul.f32 %v920_v12, %v111_v7 }
  0x5c   :  { %v426_v21 = vmax.f32 %v328_v10, 0.0  ;;  %v330_v23 = vadd.f32 %v922_v13, %v220_v15  ;;  %770 = vst [vmem:[%s1551_s3 + $0x160] sm:$0xff] %v872_v16  ;;  %v427_v25 = vmax.f32 %v329_v19, 0.0 }
  0x5d   :  { %v874_v24 = vpack.c.bf16 %v425_v18, %v424_v17  ;;  %771 = vst [vmem:[%s1551_s3 + $0x168] sm:$0xff] %v873_v20  ;;  %v331_v11 = vadd.f32 %v924_v14, %v221_v22 }
  0x5e   :  { %v428_v26 = vmax.f32 %v330_v23, 0.0  ;;  %v875_v12 = vpack.c.bf16 %v427_v25, %v426_v21 }
  0x5f   :  { %772 = vst [vmem:[%s1551_s3 + $0x170] sm:$0xff] %v874_v24  ;;  %v429_v27 = vmax.f32 %v331_v11, 0.0 }
  0x60   :  { %773 = vst [vmem:[%s1551_s3 + $0x178] sm:$0xff] %v875_v12 }
  0x61   :  { %v876_v13 = vpack.c.bf16 %v429_v27, %v428_v26 }
  0x63   :  { %774 = vst [vmem:[%s1551_s3 + $0x180] sm:$0xff] %v876_v13 }

// kernel: generator_forward.20
= control target key start
LH: loop header
LB: loop body
LE: loop exit
PB: predicated region body
PF: predicated region fallthrough
CT: control target
= control target key end

     0   :  { %s1831_s9 = smov 0   ;;  %s1833_s10 = smov 0   ;;  %s2285_s0 = inlined_call_operand.vmem [shape: bf16[512,256], index: 0, kind: input, shape index: {}]   ;;  %s2286_s1 = inlined_call_operand.vmem [shape: bf16[256,2048], index: 1, kind: input, shape index: {}]   ;;  %s2287_s2 = inlined_call_operand.vmem [shape: f32[512,2048], index: 2, kind: output, shape index: {}]  }
   0x1   :  { %s1835_s11 = smov 0   ;;  %s1837_s12 = smov 0  }
   0x2   :  { %s1839_s13 = smov 0   ;;  %s1841_s14 = smov 0  }
   0x3   :  { %s1843_s15 = smov 0   ;;  %s1845_s16 = smov 0  }
   0x4   :  { %s1847_s17 = smov 0  }
   0x5 LB: > { %s1456_s18 = sadd.s32 4294967295, %s1814_s17   ;;  %s27_s19 = sadd.s32 1, %s1806_s15  ;;  %s1814_s17 = sphi %s1847_s17, %s12_s17   ;;  %s1810_s16 = sphi %s1845_s16, %s2296_s16   ;;  %s1806_s15 = sphi %s1843_s15, %s2295_s15   ;;  %s1802_s14 = sphi %s1841_s14, %s2294_s14   ;;  %s1798_s13 = sphi %s1839_s13, %s2293_s13   ;;  %s1794_s12 = sphi %s1837_s12, %s2292_s12   ;;  %s1790_s11 = sphi %s1835_s11, %s2291_s11   ;;  %s1786_s10 = sphi %s1833_s10, %s2290_s10   ;;  %s1782_s9 = sphi %s1831_s9, %s2289_s9  }
   0x6   : > { %p29_p0 = scmp.ge.s32.totalorder %s27_s19, 8  ;;  %s31_s20 = sadd.s32 1, %s1810_s16 }
   0x7   : > { %s68_s21 = sadd.s32 1, %s1794_s12  ;;  %p75_p1 = scmp.ne.s32.totalorder %s1794_s12, %s1790_s11 }
   0x8   : > { %s2298_s19 = smov (%p29_p0, %s27_s19), 0  ;;  %s2300_s20 = smov (!%p29_p0, %s31_s20), %s1810_s16 }
   0x9   : > { %s64_s22 = ssub.s32 %s1806_s15, %s2298_s19  ;;  %p76_p2 = scmp.eq.s32.totalorder %s1814_s17, 0 }
   0xa   : > { %p33_p3 = scmp.ge.s32.totalorder %s2300_s20, 2  ;;  %p66_p4 = scmp.eq.s32.totalorder %s64_s22, 0 }
   0xb   : > { %p77_p5 = por %p76_p2, %p75_p1  ;;  %s96_s23 = sadd.s32 1, %s1786_s10 }
   0xc   : > { %s2302_s20 = smov (%p33_p3, %s2300_s20), 0  ;;  %p106_p6 = scmp.ne.s32.totalorder %s1786_s10, %s1782_s9 }
   0xd   : > { %s1892_s24 = scalar_select %p66_p4, %s1794_s12, %s68_s21  }
   0xe   : > { %s91_s25 = ssub.s32 %s1810_s16, %s2302_s20  ;;  %p107_p7 = scmp.eq.s32.totalorder %s1456_s18, 15 }
   0xf   : > { %s93_s26 = sor.u32 %s91_s25, %s64_s22  ;;  %p1459_p10 = scmp.ge.s32.totalorder %s1814_s17, 16 }
  0x10   : > { %p94_p8 = scmp.eq.s32.totalorder %s93_s26, 0  ;;  %p1898_p9 = por %p107_p7, %p106_p6 }
  0x11   : > { %129 = sbr.rel (%p1459_p10) target bundleno = 60 (0x3c), region = 16 }
  0x12   : > { %s1903_s28 = scalar_select %p94_p8, %s1786_s10, %s96_s23  }
  0x18   : > { %147 = sbr.rel (!%p77_p5) target bundleno = 60 (0x3c), region = 24  ;;  %s149_s29 = sand.u32 (%p77_p5), 1, %s1794_s12  }
  0x19   : > { %s1540_s30 = sshll.u32 (%p77_p5), %s1806_s15, 3  ;;  %s1460_s3 = sshll.u32 (%p77_p5), %s149_s29, 8 }
  0x1a   : > { %s1911_s6 = scalar_lea.vmem (%p77_p5), %s2286_s1, %s1540_s30  ;;  %s1916_s7 = scalar_lea.vmem (%p77_p5), [#allocation2], %s1460_s3 }
  0x1b   : > { %v247_v0 = vld [vmem:[%s1911_s6] sm:$0xff] (%p77_p5) }
  0x1c   : > { %v249_v1 = vld [vmem:[%s1911_s6 + $0x40] sm:$0xff] (%p77_p5)  ;;  %248 = vst [vmem:[%s1916_s7] sm:$0xff] (%p77_p5), %v247_v0 }
  0x1d   : > { %v251_v2 = vld [vmem:[%s1911_s6 + $0x80] sm:$0xff] (%p77_p5)  ;;  %250 = vst [vmem:[%s1916_s7 + $0x8] sm:$0xff] (%p77_p5), %v249_v1 }
  0x1e   : > { %252 = vst [vmem:[%s1916_s7 + $0x10] sm:$0xff] (%p77_p5), %v251_v2  ;;  %v253_v3 = vld [vmem:[%s1911_s6 + $0xc0] sm:$0xff] (%p77_p5) }
  0x1f   : > { %v255_v4 = vld [vmem:[%s1911_s6 + $0x100] sm:$0xff]  ;;  %254 = vst [vmem:[%s1916_s7 + $0x18] sm:$0xff] %v253_v3 }
  0x20   : > { %v257_v5 = vld [vmem:[%s1911_s6 + $0x140] sm:$0xff]  ;;  %256 = vst [vmem:[%s1916_s7 + $0x20] sm:$0xff] %v255_v4 }
  0x21   : > { %258 = vst [vmem:[%s1916_s7 + $0x28] sm:$0xff] %v257_v5  ;;  %v259_v6 = vld [vmem:[%s1911_s6 + $0x180] sm:$0xff] }
  0x22   : > { %v261_v7 = vld [vmem:[%s1911_s6 + $0x1c0] sm:$0xff]  ;;  %260 = vst [vmem:[%s1916_s7 + $0x30] sm:$0xff] %v259_v6 }
  0x23   : > { %v263_v8 = vld [vmem:[%s1911_s6 + $0x200] sm:$0xff]  ;;  %262 = vst [vmem:[%s1916_s7 + $0x38] sm:$0xff] %v261_v7 }
  0x24   : > { %264 = vst [vmem:[%s1916_s7 + $0x40] sm:$0xff] %v263_v8  ;;  %v265_v9 = vld [vmem:[%s1911_s6 + $0x240] sm:$0xff] }
  0x25   : > { %v267_v10 = vld [vmem:[%s1911_s6 + $0x280] sm:$0xff]  ;;  %266 = vst [vmem:[%s1916_s7 + $0x48] sm:$0xff] %v265_v9 }
  0x26   : > { %v269_v11 = vld [vmem:[%s1911_s6 + $0x2c0] sm:$0xff]  ;;  %268 = vst [vmem:[%s1916_s7 + $0x50] sm:$0xff] %v267_v10 }
  0x27   : > { %270 = vst [vmem:[%s1916_s7 + $0x58] sm:$0xff] %v269_v11  ;;  %v271_v12 = vld [vmem:[%s1911_s6 + $0x300] sm:$0xff] }
  0x28   : > { %v273_v13 = vld [vmem:[%s1911_s6 + $0x340] sm:$0xff]  ;;  %272 = vst [vmem:[%s1916_s7 + $0x60] sm:$0xff] %v271_v12 }
  0x29   : > { %v275_v14 = vld [vmem:[%s1911_s6 + $0x380] sm:$0xff]  ;;  %274 = vst [vmem:[%s1916_s7 + $0x68] sm:$0xff] %v273_v13 }
  0x2a   : > { %276 = vst [vmem:[%s1916_s7 + $0x70] sm:$0xff] %v275_v14  ;;  %v277_v15 = vld [vmem:[%s1911_s6 + $0x3c0] sm:$0xff] }
  0x2b   : > { %v279_v16 = vld [vmem:[%s1911_s6 + $0x400] sm:$0xff]  ;;  %278 = vst [vmem:[%s1916_s7 + $0x78] sm:$0xff] %v277_v15 }
  0x2c   : > { %v281_v17 = vld [vmem:[%s1911_s6 + $0x440] sm:$0xff]  ;;  %280 = vst [vmem:[%s1916_s7 + $0x80] sm:$0xff] %v279_v16 }
  0x2d   : > { %282 = vst [vmem:[%s1916_s7 + $0x88] sm:$0xff] %v281_v17  ;;  %v283_v18 = vld [vmem:[%s1911_s6 + $0x480] sm:$0xff] }
  0x2e   : > { %v285_v19 = vld [vmem:[%s1911_s6 + $0x4c0] sm:$0xff]  ;;  %284 = vst [vmem:[%s1916_s7 + $0x90] sm:$0xff] %v283_v18 }
  0x2f   : > { %v287_v20 = vld [vmem:[%s1911_s6 + $0x500] sm:$0xff]  ;;  %286 = vst [vmem:[%s1916_s7 + $0x98] sm:$0xff] %v285_v19 }
  0x30   : > { %288 = vst [vmem:[%s1916_s7 + $0xa0] sm:$0xff] %v287_v20  ;;  %v289_v21 = vld [vmem:[%s1911_s6 + $0x540] sm:$0xff] }
  0x31   : > { %v291_v22 = vld [vmem:[%s1911_s6 + $0x580] sm:$0xff]  ;;  %290 = vst [vmem:[%s1916_s7 + $0xa8] sm:$0xff] %v289_v21 }
  0x32   : > { %v293_v23 = vld [vmem:[%s1911_s6 + $0x5c0] sm:$0xff]  ;;  %292 = vst [vmem:[%s1916_s7 + $0xb0] sm:$0xff] %v291_v22 }
  0x33   : > { %294 = vst [vmem:[%s1916_s7 + $0xb8] sm:$0xff] %v293_v23  ;;  %v295_v24 = vld [vmem:[%s1911_s6 + $0x600] sm:$0xff] }
  0x34   : > { %v297_v25 = vld [vmem:[%s1911_s6 + $0x640] sm:$0xff]  ;;  %296 = vst [vmem:[%s1916_s7 + $0xc0] sm:$0xff] %v295_v24 }
  0x35   : > { %v299_v26 = vld [vmem:[%s1911_s6 + $0x680] sm:$0xff]  ;;  %298 = vst [vmem:[%s1916_s7 + $0xc8] sm:$0xff] %v297_v25 }
  0x36   : > { %300 = vst [vmem:[%s1916_s7 + $0xd0] sm:$0xff] %v299_v26  ;;  %v301_v27 = vld [vmem:[%s1911_s6 + $0x6c0] sm:$0xff] }
  0x37   : > { %v303_v28 = vld [vmem:[%s1911_s6 + $0x700] sm:$0xff]  ;;  %302 = vst [vmem:[%s1916_s7 + $0xd8] sm:$0xff] %v301_v27 }
  0x38   : > { %v305_v29 = vld [vmem:[%s1911_s6 + $0x740] sm:$0xff]  ;;  %304 = vst [vmem:[%s1916_s7 + $0xe0] sm:$0xff] %v303_v28 }
  0x39   : > { %306 = vst [vmem:[%s1916_s7 + $0xe8] sm:$0xff] %v305_v29  ;;  %v307_v30 = vld [vmem:[%s1911_s6 + $0x780] sm:$0xff] }
  0x3a   : > { %v309_v31 = vld [vmem:[%s1911_s6 + $0x7c0] sm:$0xff]  ;;  %308 = vst [vmem:[%s1916_s7 + $0xf0] sm:$0xff] %v307_v30 }
  0x3b   : > { %310 = vst [vmem:[%s1916_s7 + $0xf8] sm:$0xff] %v309_v31 }
  0x3c PF: > { %p1463_p11 = scmp.ge.s32.totalorder %s1814_s17, 1  ;;  %p315_p12 = scmp.lt.s32.totalorder %s1814_s17, 17 }
  0x3e   : > { %p316_p13 = pnand %p1463_p11, %p315_p12 }
  0x3f   : > { %s322_s8 = sand.u32 (!%p316_p13), 1, %s1790_s11   ;;  %s1466_s11 = sshll.u32 (!%p316_p13), %s1802_s14, 5 }
  0x40   : > { %319 = sbr.rel (%p316_p13) target bundleno = 417 (0x1a1), region = 62  ;;  %s1464_s18 = sshll.u32 (!%p316_p13), %s322_s8, 8 }
  0x41   : > { %s1982_s21 = scalar_lea.vmem (!%p316_p13), [#allocation2], %s1464_s18  ;;  %p354_p0 = scmp.lt.s32.totalorder (!%p316_p13), %s1466_s11, 63 }
  0x42   : > { %v1648_v32 = vld [vmem:[%s1982_s21 + $0x4] ss:$8 sps:$4 sm:$0xff] (!%p316_p13)   ;;  %v1650_v33 = vld [vmem:[%s1982_s21] ss:$8 sps:$4 sm:$0xff] (!%p316_p13)   ;;  %v1651_v34 = vld [vmem:[%s1982_s21 + $0x14] ss:$8 sps:$4 sm:$0xff] (!%p316_p13)  }
  0x43   : > { %884 = vmatprep.subr.bf16.mxu0 (!%p316_p13), %v1648_v32  ;;  %1543 = vmatprep.subr.bf16.mxu1 (!%p316_p13), %v1648_v32  ;;  %v1653_v35 = vld [vmem:[%s1982_s21 + $0x10] ss:$8 sps:$4 sm:$0xff] (!%p316_p13)   ;;  %v1654_v36 = vld [vmem:[%s1982_s21 + $0x24] ss:$8 sps:$4 sm:$0xff] (!%p316_p13)   ;;  %v1656_v37 = vld [vmem:[%s1982_s21 + $0x20] ss:$8 sps:$4 sm:$0xff] (!%p316_p13)  }
  0x44   : > { %885 = vmatpush1.bf16.msra.mxu0 (!%p316_p13), %v1650_v33  ;;  %1559 = vmatpush1.bf16.msra.mxu1 (!%p316_p13), %v1650_v33  ;;  %v1657_v38 = vld [vmem:[%s1982_s21 + $0x34] ss:$8 sps:$4 sm:$0xff] (!%p316_p13)   ;;  %v1659_v39 = vld [vmem:[%s1982_s21 + $0x30] ss:$8 sps:$4 sm:$0xff] (!%p316_p13)   ;;  %v1660_v40 = vld [vmem:[%s1982_s21 + $0x44] ss:$8 sps:$4 sm:$0xff] (!%p316_p13)  }
  0x45   : > { %886 = vmatprep.subr.bf16.mxu0 (!%p316_p13), %v1651_v34  ;;  %1544 = vmatprep.subr.bf16.mxu1 (!%p316_p13), %v1651_v34  ;;  %v1662_v41 = vld [vmem:[%s1982_s21 + $0x40] ss:$8 sps:$4 sm:$0xff] (!%p316_p13)   ;;  %v1663_v42 = vld [vmem:[%s1982_s21 + $0x54] ss:$8 sps:$4 sm:$0xff] (!%p316_p13)   ;;  %v1665_v43 = vld [vmem:[%s1982_s21 + $0x50] ss:$8 sps:$4 sm:$0xff] (!%p316_p13)  }
  0x46   : > { %v1666_v44 = vld [vmem:[%s1982_s21 + $0x64] ss:$8 sps:$4 sm:$0xff] (!%p316_p13)   ;;  %v1668_v46 = vld [vmem:[%s1982_s21 + $0x60] ss:$8 sps:$4 sm:$0xff] (!%p316_p13)   ;;  %v1669_v48 = vld [vmem:[%s1982_s21 + $0x74] ss:$8 sps:$4 sm:$0xff] (!%p316_p13)  }
  0x47   : > { %s2304_s11 = smov (!%p354_p0, %s1466_s11), 63  ;;  %v1671_v49 = vld [vmem:[%s1982_s21 + $0x70] ss:$8 sps:$4 sm:$0xff]   ;;  %v1672_v50 = vld [vmem:[%s1982_s21 + $0x84] ss:$8 sps:$4 sm:$0xff]   ;;  %s349_s29 = sand.u32 1, %s1782_s9  }
  0x48   : > { %887 = vmatpush1.bf16.msra.mxu0 %v1653_v35  ;;  %1560 = vmatpush1.bf16.msra.mxu1 %v1653_v35  ;;  %s1541_s22 = sshll.u32 %s2304_s11, 3  ;;  %v1674_v51 = vld [vmem:[%s1982_s21 + $0x80] ss:$8 sps:$4 sm:$0xff]   ;;  %v1675_v52 = vld [vmem:[%s1982_s21 + $0x94] ss:$8 sps:$4 sm:$0xff]   ;;  %s1465_s30 = sshll.u32 %s349_s29, 9 }
  0x49   : > { %888 = vmatprep.subr.bf16.mxu0 %v1654_v36  ;;  %1545 = vmatprep.subr.bf16.mxu1 %v1654_v36  ;;  %s2000_s26 = scalar_lea.vmem %s2285_s0, %s1541_s22  ;;  %v1677_v53 = vld [vmem:[%s1982_s21 + $0x90] ss:$8 sps:$4 sm:$0xff]   ;;  %v1678_v54 = vld [vmem:[%s1982_s21 + $0xa4] ss:$8 sps:$4 sm:$0xff]   ;;  %v1680_v55 = vld [vmem:[%s1982_s21 + $0xa0] ss:$8 sps:$4 sm:$0xff]  }
  0x4a   : > { %v1698_v45 = vld [vmem:[%s2000_s26 + $0x4] ss:$8 sps:$4 sm:$0xff]   ;;  %v1681_v56 = vld [vmem:[%s1982_s21 + $0xb4] ss:$8 sps:$4 sm:$0xff]   ;;  %v1683_v57 = vld [vmem:[%s1982_s21 + $0xb0] ss:$8 sps:$4 sm:$0xff]  }
  0x4b   : > { %v1701_v47 = vld [vmem:[%s2000_s26 + $0x84] ss:$8 sps:$4 sm:$0xff]   ;;  %916 = vmatprep.mubr.bf16.mxu0 %v1698_v45  ;;  %v1686_v59 = vld [vmem:[%s1982_s21 + $0xc0] ss:$8 sps:$4 sm:$0xff]   ;;  %v1687_v60 = vld [vmem:[%s1982_s21 + $0xd4] ss:$8 sps:$4 sm:$0xff]  }
  0x4c   : > { %889 = vmatpush1.bf16.msra.mxu0 %v1656_v37  ;;  %1561 = vmatpush1.bf16.msra.mxu1 %v1656_v37  ;;  %v1684_v58 = vld [vmem:[%s1982_s21 + $0xc4] ss:$8 sps:$4 sm:$0xff]   ;;  %v1689_v61 = vld [vmem:[%s1982_s21 + $0xd0] ss:$8 sps:$4 sm:$0xff]   ;;  %v1692_v63 = vld [vmem:[%s1982_s21 + $0xe0] ss:$8 sps:$4 sm:$0xff]  }
  0x4d   : > { %890 = vmatprep.subr.bf16.mxu0 %v1657_v38  ;;  %1546 = vmatprep.subr.bf16.mxu1 %v1657_v38  ;;  %v1690_v62 = vld [vmem:[%s1982_s21 + $0xe4] ss:$8 sps:$4 sm:$0xff]   ;;  %v1693_v0 = vld [vmem:[%s1982_s21 + $0xf4] ss:$8 sps:$4 sm:$0xff]   ;;  %v1695_v1 = vld [vmem:[%s1982_s21 + $0xf0] ss:$8 sps:$4 sm:$0xff]  }
  0x4e   : > { %996 = vmatprep.mubr.bf16.mxu1 %v1701_v47  ;;  %v1696_v2 = vld [vmem:[%s2000_s26] ss:$8 sps:$4 sm:$0xff]   ;;  %v1702_v4 = vld [vmem:[%s2000_s26 + $0x14] ss:$8 sps:$4 sm:$0xff]   ;;  %v1706_v6 = vld [vmem:[%s2000_s26 + $0x10] ss:$8 sps:$4 sm:$0xff]  }
  0x4f   : > { %v1699_v3 = vld [vmem:[%s2000_s26 + $0x80] ss:$8 sps:$4 sm:$0xff]   ;;  %v1704_v5 = vld [vmem:[%s2000_s26 + $0x94] ss:$8 sps:$4 sm:$0xff]   ;;  %v1707_v7 = vld [vmem:[%s2000_s26 + $0x90] ss:$8 sps:$4 sm:$0xff]  }
  0x50   : > { %891 = vmatpush1.bf16.msra.mxu0 %v1659_v39  ;;  %1562 = vmatpush1.bf16.msra.mxu1 %v1659_v39  ;;  %v1708_v8 = vld [vmem:[%s2000_s26 + $0x24] ss:$8 sps:$4 sm:$0xff]   ;;  %v1712_v10 = vld [vmem:[%s2000_s26 + $0x20] ss:$8 sps:$4 sm:$0xff]   ;;  %v1714_v12 = vld [vmem:[%s2000_s26 + $0x34] ss:$8 sps:$4 sm:$0xff]  }
  0x51   : > { %892 = vmatprep.subr.bf16.mxu0 %v1660_v40  ;;  %1547 = vmatprep.subr.bf16.mxu1 %v1660_v40  ;;  %v1710_v9 = vld [vmem:[%s2000_s26 + $0xa4] ss:$8 sps:$4 sm:$0xff]   ;;  %v1713_v11 = vld [vmem:[%s2000_s26 + $0xa0] ss:$8 sps:$4 sm:$0xff]   ;;  %v1716_v13 = vld [vmem:[%s2000_s26 + $0xb4] ss:$8 sps:$4 sm:$0xff]  }
  0x52   : > { %v1718_v14 = vld [vmem:[%s2000_s26 + $0x30] ss:$8 sps:$4 sm:$0xff]   ;;  %v1720_v16 = vld [vmem:[%s2000_s26 + $0x44] ss:$8 sps:$4 sm:$0xff]   ;;  %v1724_v18 = vld [vmem:[%s2000_s26 + $0x40] ss:$8 sps:$4 sm:$0xff]  }
  0x53   : > { %v1719_v15 = vld [vmem:[%s2000_s26 + $0xb0] ss:$8 sps:$4 sm:$0xff]   ;;  %v1722_v17 = vld [vmem:[%s2000_s26 + $0xc4] ss:$8 sps:$4 sm:$0xff]   ;;  %v1725_v19 = vld [vmem:[%s2000_s26 + $0xc0] ss:$8 sps:$4 sm:$0xff]  }
  0x54   : > { %893 = vmatpush1.bf16.msra.mxu0 %v1662_v41  ;;  %1563 = vmatpush1.bf16.msra.mxu1 %v1662_v41  ;;  %v1726_v20 = vld [vmem:[%s2000_s26 + $0x54] ss:$8 sps:$4 sm:$0xff]   ;;  %v1730_v22 = vld [vmem:[%s2000_s26 + $0x50] ss:$8 sps:$4 sm:$0xff]   ;;  %v1732_v24 = vld [vmem:[%s2000_s26 + $0x64] ss:$8 sps:$4 sm:$0xff]  }
  0x55   : > { %894 = vmatprep.subr.bf16.mxu0 %v1663_v42  ;;  %1548 = vmatprep.subr.bf16.mxu1 %v1663_v42  ;;  %v1728_v21 = vld [vmem:[%s2000_s26 + $0xd4] ss:$8 sps:$4 sm:$0xff]   ;;  %v1731_v23 = vld [vmem:[%s2000_s26 + $0xd0] ss:$8 sps:$4 sm:$0xff]   ;;  %v1734_v25 = vld [vmem:[%s2000_s26 + $0xe4] ss:$8 sps:$4 sm:$0xff]  }
  0x56   : > { %v1736_v26 = vld [vmem:[%s2000_s26 + $0x60] ss:$8 sps:$4 sm:$0xff]   ;;  %v1738_v28 = vld [vmem:[%s2000_s26 + $0x74] ss:$8 sps:$4 sm:$0xff]   ;;  %v1742_v30 = vld [vmem:[%s2000_s26 + $0x70] ss:$8 sps:$4 sm:$0xff]  }
  0x57   : > { %v1737_v27 = vld [vmem:[%s2000_s26 + $0xe0] ss:$8 sps:$4 sm:$0xff]   ;;  %v1740_v29 = vld [vmem:[%s2000_s26 + $0xf4] ss:$8 sps:$4 sm:$0xff]   ;;  %v1743_v31 = vld [vmem:[%s2000_s26 + $0xf0] ss:$8 sps:$4 sm:$0xff]  }
  0x58   : > { %895 = vmatpush1.bf16.msra.mxu0 %v1665_v43  ;;  %1564 = vmatpush1.bf16.msra.mxu1 %v1665_v43  ;;  %s2055_s3 = scalar_lea.vmem [#allocation3], %s1465_s30  ;;  %s1535_s9 = sshll.u32 (%p1898_p9), %s1798_s13, 1 }
  0x59   : > { %896 = vmatprep.subr.bf16.mxu0 %v1666_v44  ;;  %1549 = vmatprep.subr.bf16.mxu1 %v1666_v44  ;;  %s1542_s4 = sshll.u32 (%p1898_p9), %s1802_s14, 9 }
  0x5a   : > { %s1215_s27 = sadd.s32 (%p1898_p9), %s1542_s4, %s1535_s9 }
  0x5b   : > { %s1537_s5 = sshll.u32 (%p1898_p9), %s1215_s27, 3 }
  0x5c   : > { %897 = vmatpush1.bf16.msra.mxu0 %v1668_v46  ;;  %1565 = vmatpush1.bf16.msra.mxu1 %v1668_v46  ;;  %s2137_s8 = scalar_lea.vmem (%p1898_p9), %s2287_s2, %s1537_s5 }
  0x5d   : > { %898 = vmatprep.subr.bf16.mxu0 %v1669_v48  ;;  %1550 = vmatprep.subr.bf16.mxu1 %v1669_v48 }
  0x60   : > { %899 = vmatpush1.bf16.msra.mxu0 %v1671_v49  ;;  %1566 = vmatpush1.bf16.msra.mxu1 %v1671_v49 }
  0x61   : > { %900 = vmatprep.subr.bf16.mxu0 %v1672_v50  ;;  %1551 = vmatprep.subr.bf16.mxu1 %v1672_v50 }
  0x64   : > { %901 = vmatpush1.bf16.msra.mxu0 %v1674_v51  ;;  %1567 = vmatpush1.bf16.msra.mxu1 %v1674_v51 }
  0x65   : > { %902 = vmatprep.subr.bf16.mxu0 %v1675_v52  ;;  %1552 = vmatprep.subr.bf16.mxu1 %v1675_v52 }
  0x68   : > { %903 = vmatpush1.bf16.msra.mxu0 %v1677_v53  ;;  %1568 = vmatpush1.bf16.msra.mxu1 %v1677_v53 }
  0x69   : > { %904 = vmatprep.subr.bf16.mxu0 %v1678_v54  ;;  %1553 = vmatprep.subr.bf16.mxu1 %v1678_v54 }
  0x6c   : > { %905 = vmatpush1.bf16.msra.mxu0 %v1680_v55  ;;  %1569 = vmatpush1.bf16.msra.mxu1 %v1680_v55 }
  0x6d   : > { %906 = vmatprep.subr.bf16.mxu0 %v1681_v56  ;;  %1554 = vmatprep.subr.bf16.mxu1 %v1681_v56 }
  0x70   : > { %907 = vmatpush1.bf16.msra.mxu0 %v1683_v57  ;;  %1570 = vmatpush1.bf16.msra.mxu1 %v1683_v57 }
  0x71   : > { %908 = vmatprep.subr.bf16.mxu0 %v1684_v58  ;;  %1555 = vmatprep.subr.bf16.mxu1 %v1684_v58 }
  0x74   : > { %909 = vmatpush1.bf16.msra.mxu0 %v1686_v59  ;;  %1571 = vmatpush1.bf16.msra.mxu1 %v1686_v59 }
  0x75   : > { %910 = vmatprep.subr.bf16.mxu0 %v1687_v60  ;;  %1556 = vmatprep.subr.bf16.mxu1 %v1687_v60 }
  0x78   : > { %911 = vmatpush1.bf16.msra.mxu0 %v1689_v61  ;;  %1572 = vmatpush1.bf16.msra.mxu1 %v1689_v61 }
  0x79   : > { %912 = vmatprep.subr.bf16.mxu0 %v1690_v62  ;;  %1557 = vmatprep.subr.bf16.mxu1 %v1690_v62 }
  0x7c   : > { %913 = vmatpush1.bf16.msra.mxu0 %v1692_v63  ;;  %1573 = vmatpush1.bf16.msra.mxu1 %v1692_v63 }
  0x7d   : > { %914 = vmatprep.subr.bf16.mxu0 %v1693_v0  ;;  %1558 = vmatprep.subr.bf16.mxu1 %v1693_v0 }
  0x80   : > { %915 = vmatpush1.bf16.msra.mxu0 %v1695_v1  ;;  %1574 = vmatpush1.bf16.msra.mxu1 %v1695_v1 }
  0x83   : > { %917 = vmatmul.mubr.bf16.vlgmr.msra.gmra.mrb[0].mxu0 %v1696_v2  ;;  %997 = vmatmul.mubr.bf16.vlgmr.msra.gmra.mrb[0].mxu1 %v1699_v3 }
  0x84   : > { %926 = vmatprep.mubr.bf16.mxu0 %v1702_v4  ;;  %1006 = vmatprep.mubr.bf16.mxu1 %v1704_v5 }
  0x8b   : > { %927 = vmatmul.mubr.bf16.gmra.mrb[4].mxu0 %v1706_v6  ;;  %1007 = vmatmul.mubr.bf16.gmra.mrb[4].mxu1 %v1707_v7 }
  0x8c   : > { %936 = vmatprep.mubr.bf16.mxu0 %v1708_v8  ;;  %1016 = vmatprep.mubr.bf16.mxu1 %v1710_v9 }
  0x93   : > { %937 = vmatmul.mubr.bf16.gmra.mrb[8].mxu0 %v1712_v10  ;;  %1017 = vmatmul.mubr.bf16.gmra.mrb[8].mxu1 %v1713_v11 }
  0x94   : > { %946 = vmatprep.mubr.bf16.mxu0 %v1714_v12  ;;  %1026 = vmatprep.mubr.bf16.mxu1 %v1716_v13 }
  0x9b   : > { %947 = vmatmul.mubr.bf16.gmra.mrb[12].mxu0 %v1718_v14  ;;  %1027 = vmatmul.mubr.bf16.gmra.mrb[12].mxu1 %v1719_v15 }
  0x9c   : > { %956 = vmatprep.mubr.bf16.mxu0 %v1720_v16  ;;  %1036 = vmatprep.mubr.bf16.mxu1 %v1722_v17 }
  0xa3   : > { %957 = vmatmul.mubr.bf16.gmra.mrb[16].mxu0 %v1724_v18  ;;  %1037 = vmatmul.mubr.bf16.gmra.mrb[16].mxu1 %v1725_v19 }
  0xa4   : > { %966 = vmatprep.mubr.bf16.mxu0 %v1726_v20  ;;  %1046 = vmatprep.mubr.bf16.mxu1 %v1728_v21 }
  0xab   : > { %967 = vmatmul.mubr.bf16.gmra.mrb[20].mxu0 %v1730_v22  ;;  %1047 = vmatmul.mubr.bf16.gmra.mrb[20].mxu1 %v1731_v23 }
  0xac   : > { %976 = vmatprep.mubr.bf16.mxu0 %v1732_v24  ;;  %1056 = vmatprep.mubr.bf16.mxu1 %v1734_v25 }
  0xb3   : > { %977 = vmatmul.mubr.bf16.gmra.mrb[24].mxu0 %v1736_v26  ;;  %1057 = vmatmul.mubr.bf16.gmra.mrb[24].mxu1 %v1737_v27 }
  0xb4   : > { %986 = vmatprep.mubr.bf16.mxu0 %v1738_v28  ;;  %1066 = vmatprep.mubr.bf16.mxu1 %v1740_v29 }
  0xbb   : > { %987 = vmatmul.mubr.bf16.gmra.mrb[28].mxu0 %v1742_v30  ;;  %1067 = vmatmul.mubr.bf16.gmra.mrb[28].mxu1 %v1743_v31 }
 0x156   : > { %v918_v32 = vpop.f32.mrb[0].mxu0  ;;  %v998_v33 = vpop.f32.mrb[0].mxu1 }
 0x157   : > { %v920_v34 = vpop.f32.mrb[1].mxu0  ;;  %v1000_v35 = vpop.f32.mrb[1].mxu1  ;;  %1141 = vst [vmem:[%s2055_s3] sm:$0xff] %v918_v32  ;;  %1173 = vst [vmem:[%s2055_s3 + $0x100] sm:$0xff] %v998_v33 }
 0x158   : > { %v922_v36 = vpop.f32.mrb[2].mxu0  ;;  %v1002_v37 = vpop.f32.mrb[2].mxu1  ;;  %1142 = vst [vmem:[%s2055_s3 + $0x8] sm:$0xff] %v920_v34  ;;  %1174 = vst [vmem:[%s2055_s3 + $0x108] sm:$0xff] %v1000_v35 }
 0x159   : > { %v924_v38 = vpop.f32.mrb[3].mxu0  ;;  %v1004_v39 = vpop.f32.mrb[3].mxu1  ;;  %1143 = vst [vmem:[%s2055_s3 + $0x10] sm:$0xff] %v922_v36  ;;  %1175 = vst [vmem:[%s2055_s3 + $0x110] sm:$0xff] %v1002_v37 }
 0x15a   : > { %1144 = vst [vmem:[%s2055_s3 + $0x18] sm:$0xff] %v924_v38  ;;  %1176 = vst [vmem:[%s2055_s3 + $0x118] sm:$0xff] %v1004_v39 }
 0x15e   : > { %v928_v40 = vpop.f32.mrb[4].mxu0  ;;  %v1008_v41 = vpop.f32.mrb[4].mxu1  ;;  %v1230_v32 = vld [vmem:[%s2055_s3] sm:$0xff] (%p1898_p9) }
 0x15f   : > { %v930_v42 = vpop.f32.mrb[5].mxu0  ;;  %v1010_v43 = vpop.f32.mrb[5].mxu1  ;;  %1145 = vst [vmem:[%s2055_s3 + $0x20] sm:$0xff] %v928_v40  ;;  %1177 = vst [vmem:[%s2055_s3 + $0x120] sm:$0xff] %v1008_v41  ;;  %v1232_v33 = vld [vmem:[%s2055_s3 + $0x8] sm:$0xff] (%p1898_p9) }
 0x160   : > { %v932_v44 = vpop.f32.mrb[6].mxu0  ;;  %v1012_v45 = vpop.f32.mrb[6].mxu1  ;;  %1146 = vst [vmem:[%s2055_s3 + $0x28] sm:$0xff] %v930_v42  ;;  %1178 = vst [vmem:[%s2055_s3 + $0x128] sm:$0xff] %v1010_v43  ;;  %v1234_v34 = vld [vmem:[%s2055_s3 + $0x10] sm:$0xff] (%p1898_p9) }
 0x161   : > { %v934_v46 = vpop.f32.mrb[7].mxu0  ;;  %v1014_v47 = vpop.f32.mrb[7].mxu1  ;;  %1147 = vst [vmem:[%s2055_s3 + $0x30] sm:$0xff] %v932_v44  ;;  %1179 = vst [vmem:[%s2055_s3 + $0x130] sm:$0xff] %v1012_v45  ;;  %v1236_v35 = vld [vmem:[%s2055_s3 + $0x18] sm:$0xff] (%p1898_p9) }
 0x162   : > { %1148 = vst [vmem:[%s2055_s3 + $0x38] sm:$0xff] %v934_v46  ;;  %1180 = vst [vmem:[%s2055_s3 + $0x138] sm:$0xff] %v1014_v47 }
 0x163   : > { %1231 = vst [vmem:[%s2137_s8] sm:$0xff] (%p1898_p9), %v1230_v32  ;;  %1233 = vst [vmem:[%s2137_s8 + $0x8] sm:$0xff] (%p1898_p9), %v1232_v33 }
 0x164   : > { %1235 = vst [vmem:[%s2137_s8 + $0x80] sm:$0xff] (%p1898_p9), %v1234_v34  ;;  %1237 = vst [vmem:[%s2137_s8 + $0x88] sm:$0xff] (%p1898_p9), %v1236_v35 }
 0x166   : > { %v938_v48 = vpop.f32.mrb[8].mxu0  ;;  %v1018_v49 = vpop.f32.mrb[8].mxu1  ;;  %v1238_v36 = vld [vmem:[%s2055_s3 + $0x20] sm:$0xff] (%p1898_p9) }
 0x167   : > { %v940_v50 = vpop.f32.mrb[9].mxu0  ;;  %v1020_v51 = vpop.f32.mrb[9].mxu1  ;;  %1149 = vst [vmem:[%s2055_s3 + $0x40] sm:$0xff] %v938_v48  ;;  %1181 = vst [vmem:[%s2055_s3 + $0x140] sm:$0xff] %v1018_v49  ;;  %v1240_v37 = vld [vmem:[%s2055_s3 + $0x28] sm:$0xff] (%p1898_p9) }
 0x168   : > { %v942_v52 = vpop.f32.mrb[10].mxu0  ;;  %v1022_v53 = vpop.f32.mrb[10].mxu1  ;;  %1150 = vst [vmem:[%s2055_s3 + $0x48] sm:$0xff] %v940_v50  ;;  %1182 = vst [vmem:[%s2055_s3 + $0x148] sm:$0xff] %v1020_v51  ;;  %v1242_v38 = vld [vmem:[%s2055_s3 + $0x30] sm:$0xff] (%p1898_p9) }
 0x169   : > { %v944_v54 = vpop.f32.mrb[11].mxu0  ;;  %v1024_v55 = vpop.f32.mrb[11].mxu1  ;;  %1151 = vst [vmem:[%s2055_s3 + $0x50] sm:$0xff] %v942_v52  ;;  %1183 = vst [vmem:[%s2055_s3 + $0x150] sm:$0xff] %v1022_v53  ;;  %v1244_v39 = vld [vmem:[%s2055_s3 + $0x38] sm:$0xff] (%p1898_p9) }
 0x16a   : > { %1152 = vst [vmem:[%s2055_s3 + $0x58] sm:$0xff] %v944_v54  ;;  %1184 = vst [vmem:[%s2055_s3 + $0x158] sm:$0xff] %v1024_v55 }
 0x16b   : > { %1239 = vst [vmem:[%s2137_s8 + $0x100] sm:$0xff] (%p1898_p9), %v1238_v36  ;;  %1241 = vst [vmem:[%s2137_s8 + $0x108] sm:$0xff] (%p1898_p9), %v1240_v37 }
 0x16c   : > { %1243 = vst [vmem:[%s2137_s8 + $0x180] sm:$0xff] (%p1898_p9), %v1242_v38  ;;  %1245 = vst [vmem:[%s2137_s8 + $0x188] sm:$0xff] (%p1898_p9), %v1244_v39 }
 0x16e   : > { %v948_v56 = vpop.f32.mrb[12].mxu0  ;;  %v1028_v57 = vpop.f32.mrb[12].mxu1  ;;  %v1246_v40 = vld [vmem:[%s2055_s3 + $0x40] sm:$0xff] (%p1898_p9) }
 0x16f   : > { %v950_v58 = vpop.f32.mrb[13].mxu0  ;;  %v1030_v59 = vpop.f32.mrb[13].mxu1  ;;  %1153 = vst [vmem:[%s2055_s3 + $0x60] sm:$0xff] %v948_v56  ;;  %1185 = vst [vmem:[%s2055_s3 + $0x160] sm:$0xff] %v1028_v57  ;;  %v1248_v41 = vld [vmem:[%s2055_s3 + $0x48] sm:$0xff] (%p1898_p9) }
 0x170   : > { %v952_v60 = vpop.f32.mrb[14].mxu0  ;;  %v1032_v61 = vpop.f32.mrb[14].mxu1  ;;  %1154 = vst [vmem:[%s2055_s3 + $0x68] sm:$0xff] %v950_v58  ;;  %1186 = vst [vmem:[%s2055_s3 + $0x168] sm:$0xff] %v1030_v59  ;;  %v1250_v42 = vld [vmem:[%s2055_s3 + $0x50] sm:$0xff] (%p1898_p9) }
 0x171   : > { %v954_v62 = vpop.f32.mrb[15].mxu0  ;;  %v1034_v63 = vpop.f32.mrb[15].mxu1  ;;  %1155 = vst [vmem:[%s2055_s3 + $0x70] sm:$0xff] %v952_v60  ;;  %1187 = vst [vmem:[%s2055_s3 + $0x170] sm:$0xff] %v1032_v61  ;;  %v1252_v43 = vld [vmem:[%s2055_s3 + $0x58] sm:$0xff] (%p1898_p9) }
 0x172   : > { %1156 = vst [vmem:[%s2055_s3 + $0x78] sm:$0xff] %v954_v62  ;;  %1188 = vst [vmem:[%s2055_s3 + $0x178] sm:$0xff] %v1034_v63 }
 0x173   : > { %1247 = vst [vmem:[%s2137_s8 + $0x200] sm:$0xff] (%p1898_p9), %v1246_v40  ;;  %1249 = vst [vmem:[%s2137_s8 + $0x208] sm:$0xff] (%p1898_p9), %v1248_v41 }
 0x174   : > { %1251 = vst [vmem:[%s2137_s8 + $0x280] sm:$0xff] (%p1898_p9), %v1250_v42  ;;  %1253 = vst [vmem:[%s2137_s8 + $0x288] sm:$0xff] (%p1898_p9), %v1252_v43 }
 0x176   : > { %v958_v0 = vpop.f32.mrb[16].mxu0  ;;  %v1038_v1 = vpop.f32.mrb[16].mxu1  ;;  %v1254_v44 = vld [vmem:[%s2055_s3 + $0x60] sm:$0xff] (%p1898_p9) }
 0x177   : > { %v960_v2 = vpop.f32.mrb[17].mxu0  ;;  %v1040_v3 = vpop.f32.mrb[17].mxu1  ;;  %1157 = vst [vmem:[%s2055_s3 + $0x80] sm:$0xff] %v958_v0  ;;  %1189 = vst [vmem:[%s2055_s3 + $0x180] sm:$0xff] %v1038_v1  ;;  %v1256_v45 = vld [vmem:[%s2055_s3 + $0x68] sm:$0xff] (%p1898_p9)  ;;  %v1294_v0 = vld [vmem:[%s2055_s3 + $0x100] sm:$0xff] (%p1898_p9) }
 0x178   : > { %v962_v4 = vpop.f32.mrb[18].mxu0  ;;  %v1042_v5 = vpop.f32.mrb[18].mxu1  ;;  %1158 = vst [vmem:[%s2055_s3 + $0x88] sm:$0xff] %v960_v2  ;;  %1190 = vst [vmem:[%s2055_s3 + $0x188] sm:$0xff] %v1040_v3  ;;  %v1258_v46 = vld [vmem:[%s2055_s3 + $0x70] sm:$0xff] (%p1898_p9)  ;;  %v1296_v1 = vld [vmem:[%s2055_s3 + $0x108] sm:$0xff] (%p1898_p9) }
 0x179   : > { %v964_v6 = vpop.f32.mrb[19].mxu0  ;;  %v1044_v7 = vpop.f32.mrb[19].mxu1  ;;  %1159 = vst [vmem:[%s2055_s3 + $0x90] sm:$0xff] %v962_v4  ;;  %1191 = vst [vmem:[%s2055_s3 + $0x190] sm:$0xff] %v1042_v5  ;;  %v1260_v47 = vld [vmem:[%s2055_s3 + $0x78] sm:$0xff] (%p1898_p9)  ;;  %v1298_v2 = vld [vmem:[%s2055_s3 + $0x110] sm:$0xff] (%p1898_p9) }
 0x17a   : > { %1160 = vst [vmem:[%s2055_s3 + $0x98] sm:$0xff] %v964_v6  ;;  %1192 = vst [vmem:[%s2055_s3 + $0x198] sm:$0xff] %v1044_v7  ;;  %v1300_v3 = vld [vmem:[%s2055_s3 + $0x118] sm:$0xff] (%p1898_p9)  ;;  %v1302_v4 = vld [vmem:[%s2055_s3 + $0x120] sm:$0xff] (%p1898_p9) }
 0x17b   : > { %1255 = vst [vmem:[%s2137_s8 + $0x300] sm:$0xff] (%p1898_p9), %v1254_v44  ;;  %1257 = vst [vmem:[%s2137_s8 + $0x308] sm:$0xff] (%p1898_p9), %v1256_v45  ;;  %v1304_v5 = vld [vmem:[%s2055_s3 + $0x128] sm:$0xff] (%p1898_p9)  ;;  %v1306_v6 = vld [vmem:[%s2055_s3 + $0x130] sm:$0xff] (%p1898_p9) }
 0x17c   : > { %1259 = vst [vmem:[%s2137_s8 + $0x380] sm:$0xff] (%p1898_p9), %v1258_v46  ;;  %1261 = vst [vmem:[%s2137_s8 + $0x388] sm:$0xff] (%p1898_p9), %v1260_v47  ;;  %v1308_v7 = vld [vmem:[%s2055_s3 + $0x138] sm:$0xff] (%p1898_p9) }
 0x17d   : > { %1295 = vst [vmem:[%s2137_s8 + $0x800] sm:$0xff] (%p1898_p9), %v1294_v0  ;;  %1297 = vst [vmem:[%s2137_s8 + $0x808] sm:$0xff] (%p1898_p9), %v1296_v1 }
 0x17e   : > { %v968_v8 = vpop.f32.mrb[20].mxu0  ;;  %v1048_v9 = vpop.f32.mrb[20].mxu1  ;;  %v1262_v48 = vld [vmem:[%s2055_s3 + $0x80] sm:$0xff] (%p1898_p9)  ;;  %1299 = vst [vmem:[%s2137_s8 + $0x880] sm:$0xff] (%p1898_p9), %v1298_v2  ;;  %1301 = vst [vmem:[%s2137_s8 + $0x888] sm:$0xff] (%p1898_p9), %v1300_v3 }
 0x17f   : > { %v970_v10 = vpop.f32.mrb[21].mxu0  ;;  %v1050_v11 = vpop.f32.mrb[21].mxu1  ;;  %1161 = vst [vmem:[%s2055_s3 + $0xa0] sm:$0xff] %v968_v8  ;;  %1193 = vst [vmem:[%s2055_s3 + $0x1a0] sm:$0xff] %v1048_v9  ;;  %v1264_v49 = vld [vmem:[%s2055_s3 + $0x88] sm:$0xff] (%p1898_p9)  ;;  %v1310_v8 = vld [vmem:[%s2055_s3 + $0x140] sm:$0xff] (%p1898_p9) }
 0x180   : > { %v972_v12 = vpop.f32.mrb[22].mxu0  ;;  %v1052_v13 = vpop.f32.mrb[22].mxu1  ;;  %1162 = vst [vmem:[%s2055_s3 + $0xa8] sm:$0xff] %v970_v10  ;;  %1194 = vst [vmem:[%s2055_s3 + $0x1a8] sm:$0xff] %v1050_v11  ;;  %v1266_v50 = vld [vmem:[%s2055_s3 + $0x90] sm:$0xff] (%p1898_p9)  ;;  %v1312_v9 = vld [vmem:[%s2055_s3 + $0x148] sm:$0xff] (%p1898_p9) }
 0x181   : > { %v974_v14 = vpop.f32.mrb[23].mxu0  ;;  %v1054_v15 = vpop.f32.mrb[23].mxu1  ;;  %1163 = vst [vmem:[%s2055_s3 + $0xb0] sm:$0xff] %v972_v12  ;;  %1195 = vst [vmem:[%s2055_s3 + $0x1b0] sm:$0xff] %v1052_v13  ;;  %v1268_v51 = vld [vmem:[%s2055_s3 + $0x98] sm:$0xff] (%p1898_p9)  ;;  %v1314_v10 = vld [vmem:[%s2055_s3 + $0x150] sm:$0xff] (%p1898_p9) }
 0x182   : > { %1164 = vst [vmem:[%s2055_s3 + $0xb8] sm:$0xff] %v974_v14  ;;  %1196 = vst [vmem:[%s2055_s3 + $0x1b8] sm:$0xff] %v1054_v15  ;;  %v1316_v11 = vld [vmem:[%s2055_s3 + $0x158] sm:$0xff] (%p1898_p9)  ;;  %v1318_v12 = vld [vmem:[%s2055_s3 + $0x160] sm:$0xff] (%p1898_p9) }
 0x183   : > { %1263 = vst [vmem:[%s2137_s8 + $0x400] sm:$0xff] (%p1898_p9), %v1262_v48  ;;  %1265 = vst [vmem:[%s2137_s8 + $0x408] sm:$0xff] (%p1898_p9), %v1264_v49  ;;  %v1320_v13 = vld [vmem:[%s2055_s3 + $0x168] sm:$0xff] (%p1898_p9)  ;;  %v1322_v14 = vld [vmem:[%s2055_s3 + $0x170] sm:$0xff] (%p1898_p9) }
 0x184   : > { %1267 = vst [vmem:[%s2137_s8 + $0x480] sm:$0xff] (%p1898_p9), %v1266_v50  ;;  %1269 = vst [vmem:[%s2137_s8 + $0x488] sm:$0xff] (%p1898_p9), %v1268_v51  ;;  %v1324_v15 = vld [vmem:[%s2055_s3 + $0x178] sm:$0xff] (%p1898_p9) }
 0x185   : > { %1303 = vst [vmem:[%s2137_s8 + $0x900] sm:$0xff] (%p1898_p9), %v1302_v4  ;;  %1305 = vst [vmem:[%s2137_s8 + $0x908] sm:$0xff] (%p1898_p9), %v1304_v5 }
 0x186   : > { %v978_v16 = vpop.f32.mrb[24].mxu0  ;;  %v1058_v17 = vpop.f32.mrb[24].mxu1  ;;  %v1270_v52 = vld [vmem:[%s2055_s3 + $0xa0] sm:$0xff] (%p1898_p9)  ;;  %1307 = vst [vmem:[%s2137_s8 + $0x980] sm:$0xff] (%p1898_p9), %v1306_v6  ;;  %1309 = vst [vmem:[%s2137_s8 + $0x988] sm:$0xff] (%p1898_p9), %v1308_v7 }
 0x187   : > { %v980_v18 = vpop.f32.mrb[25].mxu0  ;;  %v1060_v19 = vpop.f32.mrb[25].mxu1  ;;  %1165 = vst [vmem:[%s2055_s3 + $0xc0] sm:$0xff] %v978_v16  ;;  %1197 = vst [vmem:[%s2055_s3 + $0x1c0] sm:$0xff] %v1058_v17  ;;  %v1272_v53 = vld [vmem:[%s2055_s3 + $0xa8] sm:$0xff] (%p1898_p9)  ;;  %v1326_v16 = vld [vmem:[%s2055_s3 + $0x180] sm:$0xff] (%p1898_p9) }
 0x188   : > { %v982_v20 = vpop.f32.mrb[26].mxu0  ;;  %v1062_v21 = vpop.f32.mrb[26].mxu1  ;;  %1166 = vst [vmem:[%s2055_s3 + $0xc8] sm:$0xff] %v980_v18  ;;  %1198 = vst [vmem:[%s2055_s3 + $0x1c8] sm:$0xff] %v1060_v19  ;;  %v1274_v54 = vld [vmem:[%s2055_s3 + $0xb0] sm:$0xff] (%p1898_p9)  ;;  %v1328_v17 = vld [vmem:[%s2055_s3 + $0x188] sm:$0xff] (%p1898_p9) }
 0x189   : > { %v984_v22 = vpop.f32.mrb[27].mxu0  ;;  %v1064_v23 = vpop.f32.mrb[27].mxu1  ;;  %1167 = vst [vmem:[%s2055_s3 + $0xd0] sm:$0xff] %v982_v20  ;;  %1199 = vst [vmem:[%s2055_s3 + $0x1d0] sm:$0xff] %v1062_v21  ;;  %v1276_v55 = vld [vmem:[%s2055_s3 + $0xb8] sm:$0xff] (%p1898_p9)  ;;  %v1330_v18 = vld [vmem:[%s2055_s3 + $0x190] sm:$0xff] (%p1898_p9) }
 0x18a   : > { %1168 = vst [vmem:[%s2055_s3 + $0xd8] sm:$0xff] %v984_v22  ;;  %1200 = vst [vmem:[%s2055_s3 + $0x1d8] sm:$0xff] %v1064_v23  ;;  %v1332_v19 = vld [vmem:[%s2055_s3 + $0x198] sm:$0xff] (%p1898_p9)  ;;  %v1334_v20 = vld [vmem:[%s2055_s3 + $0x1a0] sm:$0xff] (%p1898_p9) }
 0x18b   : > { %1271 = vst [vmem:[%s2137_s8 + $0x500] sm:$0xff] (%p1898_p9), %v1270_v52  ;;  %1273 = vst [vmem:[%s2137_s8 + $0x508] sm:$0xff] (%p1898_p9), %v1272_v53  ;;  %v1336_v21 = vld [vmem:[%s2055_s3 + $0x1a8] sm:$0xff] (%p1898_p9)  ;;  %v1338_v22 = vld [vmem:[%s2055_s3 + $0x1b0] sm:$0xff] (%p1898_p9) }
 0x18c   : > { %1211 = sbr.rel (!%p1898_p9) target bundleno = 417 (0x1a1), region = 74  ;;  %1275 = vst [vmem:[%s2137_s8 + $0x580] sm:$0xff] (%p1898_p9), %v1274_v54  ;;  %1277 = vst [vmem:[%s2137_s8 + $0x588] sm:$0xff] (%p1898_p9), %v1276_v55  ;;  %v1340_v23 = vld [vmem:[%s2055_s3 + $0x1b8] sm:$0xff] (%p1898_p9) }
 0x18d   : > { %1311 = vst [vmem:[%s2137_s8 + $0xa00] sm:$0xff] (%p1898_p9), %v1310_v8  ;;  %1313 = vst [vmem:[%s2137_s8 + $0xa08] sm:$0xff] (%p1898_p9), %v1312_v9 }
 0x18e   : > { %v988_v24 = vpop.f32.mrb[28].mxu0  ;;  %v1068_v25 = vpop.f32.mrb[28].mxu1  ;;  %v1278_v56 = vld [vmem:[%s2055_s3 + $0xc0] sm:$0xff] (%p1898_p9)  ;;  %1315 = vst [vmem:[%s2137_s8 + $0xa80] sm:$0xff] (%p1898_p9), %v1314_v10  ;;  %1317 = vst [vmem:[%s2137_s8 + $0xa88] sm:$0xff] (%p1898_p9), %v1316_v11 }
 0x18f   : > { %v990_v26 = vpop.f32.mrb[29].mxu0  ;;  %v1070_v27 = vpop.f32.mrb[29].mxu1  ;;  %1169 = vst [vmem:[%s2055_s3 + $0xe0] sm:$0xff] %v988_v24  ;;  %1201 = vst [vmem:[%s2055_s3 + $0x1e0] sm:$0xff] %v1068_v25  ;;  %v1280_v57 = vld [vmem:[%s2055_s3 + $0xc8] sm:$0xff] (%p1898_p9)  ;;  %v1342_v24 = vld [vmem:[%s2055_s3 + $0x1c0] sm:$0xff] (%p1898_p9) }
 0x190   : > { %v992_v28 = vpop.f32.mrb[30].mxu0  ;;  %v1072_v29 = vpop.f32.mrb[30].mxu1  ;;  %1170 = vst [vmem:[%s2055_s3 + $0xe8] sm:$0xff] %v990_v26  ;;  %1202 = vst [vmem:[%s2055_s3 + $0x1e8] sm:$0xff] %v1070_v27  ;;  %v1282_v58 = vld [vmem:[%s2055_s3 + $0xd0] sm:$0xff] (%p1898_p9)  ;;  %v1344_v25 = vld [vmem:[%s2055_s3 + $0x1c8] sm:$0xff] (%p1898_p9) }
 0x191   : > { %v994_v30 = vpop.f32.mrb[31].mxu0  ;;  %v1074_v31 = vpop.f32.mrb[31].mxu1  ;;  %1171 = vst [vmem:[%s2055_s3 + $0xf0] sm:$0xff] %v992_v28  ;;  %1203 = vst [vmem:[%s2055_s3 + $0x1f0] sm:$0xff] %v1072_v29  ;;  %v1284_v59 = vld [vmem:[%s2055_s3 + $0xd8] sm:$0xff] (%p1898_p9)  ;;  %v1346_v26 = vld [vmem:[%s2055_s3 + $0x1d0] sm:$0xff] (%p1898_p9) }
 0x192   : > { %1172 = vst [vmem:[%s2055_s3 + $0xf8] sm:$0xff] %v994_v30  ;;  %1204 = vst [vmem:[%s2055_s3 + $0x1f8] sm:$0xff] %v1074_v31  ;;  %v1348_v27 = vld [vmem:[%s2055_s3 + $0x1d8] sm:$0xff] (%p1898_p9) }
 0x193   : > { %1279 = vst [vmem:[%s2137_s8 + $0x600] sm:$0xff] %v1278_v56  ;;  %1281 = vst [vmem:[%s2137_s8 + $0x608] sm:$0xff] %v1280_v57 }
 0x194   : > { %1283 = vst [vmem:[%s2137_s8 + $0x680] sm:$0xff] %v1282_v58  ;;  %1285 = vst [vmem:[%s2137_s8 + $0x688] sm:$0xff] %v1284_v59 }
 0x195   : > { %1319 = vst [vmem:[%s2137_s8 + $0xb00] sm:$0xff] %v1318_v12  ;;  %1321 = vst [vmem:[%s2137_s8 + $0xb08] sm:$0xff] %v1320_v13 }
 0x196   : > { %v1286_v60 = vld [vmem:[%s2055_s3 + $0xe0] sm:$0xff]  ;;  %1323 = vst [vmem:[%s2137_s8 + $0xb80] sm:$0xff] %v1322_v14  ;;  %1325 = vst [vmem:[%s2137_s8 + $0xb88] sm:$0xff] %v1324_v15 }
 0x197   : > { %v1288_v61 = vld [vmem:[%s2055_s3 + $0xe8] sm:$0xff]  ;;  %1287 = vst [vmem:[%s2137_s8 + $0x700] sm:$0xff] %v1286_v60  ;;  %1327 = vst [vmem:[%s2137_s8 + $0xc00] sm:$0xff] %v1326_v16  ;;  %v1350_v28 = vld [vmem:[%s2055_s3 + $0x1e0] sm:$0xff] }
 0x198   : > { %1289 = vst [vmem:[%s2137_s8 + $0x708] sm:$0xff] %v1288_v61  ;;  %v1290_v62 = vld [vmem:[%s2055_s3 + $0xf0] sm:$0xff]  ;;  %1329 = vst [vmem:[%s2137_s8 + $0xc08] sm:$0xff] %v1328_v17  ;;  %v1352_v29 = vld [vmem:[%s2055_s3 + $0x1e8] sm:$0xff] }
 0x199   : > { %v1292_v63 = vld [vmem:[%s2055_s3 + $0xf8] sm:$0xff]  ;;  %1291 = vst [vmem:[%s2137_s8 + $0x780] sm:$0xff] %v1290_v62  ;;  %1331 = vst [vmem:[%s2137_s8 + $0xc80] sm:$0xff] %v1330_v18  ;;  %v1354_v30 = vld [vmem:[%s2055_s3 + $0x1f0] sm:$0xff] }
 0x19a   : > { %1293 = vst [vmem:[%s2137_s8 + $0x788] sm:$0xff] %v1292_v63  ;;  %1333 = vst [vmem:[%s2137_s8 + $0xc88] sm:$0xff] %v1332_v19  ;;  %v1356_v31 = vld [vmem:[%s2055_s3 + $0x1f8] sm:$0xff] }
 0x19b   : > { %1335 = vst [vmem:[%s2137_s8 + $0xd00] sm:$0xff] %v1334_v20  ;;  %1337 = vst [vmem:[%s2137_s8 + $0xd08] sm:$0xff] %v1336_v21 }
 0x19c   : > { %1339 = vst [vmem:[%s2137_s8 + $0xd80] sm:$0xff] %v1338_v22  ;;  %1341 = vst [vmem:[%s2137_s8 + $0xd88] sm:$0xff] %v1340_v23 }
 0x19d   : > { %1343 = vst [vmem:[%s2137_s8 + $0xe00] sm:$0xff] %v1342_v24  ;;  %1345 = vst [vmem:[%s2137_s8 + $0xe08] sm:$0xff] %v1344_v25 }
 0x19e   : > { %1347 = vst [vmem:[%s2137_s8 + $0xe80] sm:$0xff] %v1346_v26  ;;  %1349 = vst [vmem:[%s2137_s8 + $0xe88] sm:$0xff] %v1348_v27 }
 0x19f   : > { %1351 = vst [vmem:[%s2137_s8 + $0xf00] sm:$0xff] %v1350_v28  ;;  %1353 = vst [vmem:[%s2137_s8 + $0xf08] sm:$0xff] %v1352_v29 }
 0x1a0   : > { %1355 = vst [vmem:[%s2137_s8 + $0xf80] sm:$0xff] %v1354_v30  ;;  %1357 = vst [vmem:[%s2137_s8 + $0xf88] sm:$0xff] %v1356_v31 }
 0x1a1 PF: > { %s12_s17 = sadd.s32 1, %s1814_s17   ;;  %s2289_s9 = smov %s1786_s10 }
 0x1a2   : > { %p9_p1 = scmp.ge.s32.totalorder %s12_s17, 18   ;;  %s2290_s10 = smov %s1903_s28 }
 0x1a3   : > { %s2291_s11 = smov %s1794_s12  ;;  %s2292_s12 = smov %s1892_s24 }
 0x1a4   : > { %s2293_s13 = smov %s1806_s15  ;;  %s2294_s14 = smov %s1810_s16 }
 0x1a5   : > { %s2295_s15 = smov %s2298_s19  ;;  %s2296_s16 = smov %s2302_s20 }
 0x1a6   :  { %11 = sbr.rel (!%p9_p1) target bundleno = 5 (0x5), region = 131 }

// kernel: generator_forward.21
= control target key start
LH: loop header
LB: loop body
LE: loop exit
PB: predicated region body
PF: predicated region fallthrough
CT: control target
= control target key end

     0   :  { %s445_s6 = smov 0   ;;  %s534_s0 = inlined_call_operand.vmem [shape: f32[2048,128], index: 0, kind: input, shape index: {}]   ;;  %s535_s1 = inlined_call_operand.vmem [shape: f32[2,128], index: 1, kind: output, shape index: {}]  }
   0x1 LB: > { %s408_s7 = sadd.s32 4294967295, %s432_s6   ;;  %p411_p0 = scmp.ge.s32.totalorder %s432_s6, 1  ;;  %s432_s6 = sphi %s445_s6, %s11_s6  }
   0x2   : > { %p83_p1 = scmp.lt.s32.totalorder %s432_s6, 5 }
   0x4   : > { %p84_p2 = pnand %p411_p0, %p83_p1 }
   0x5   : > { %s412_s8 = sshll.u32 (!%p84_p2), %s408_s7, 6  ;;  %p414_p4 = scmp.ne.s32.totalorder (!%p84_p2), %s408_s7, 0 }
   0x6   : > { %87 = sbr.rel (%p84_p2) target bundleno = 165 (0xa5), region = 24  ;;  %p99_p3 = scmp.lt.s32.totalorder (!%p84_p2), %s412_s8, 255 }
   0xd   : > { %s537_s8 = smov (!%p99_p3, %s412_s8), 255  ;;  %107 = sbr.rel (%p414_p4) target bundleno = 20 (0x14), region = 28 }
   0xe   : > { %s413_s9 = sshll.u32 %s537_s8, 3  ;;  %v434_v0 = vmov (!%p414_p4), 0.0  }
   0xf   : > { %s456_s12 = scalar_lea.vmem %s534_s0, %s413_s9  ;;  %108 = vst [vmem:[%s535_s1] sm:$0x3] (!%p414_p4), %v434_v0 }
  0x14 PF: > { %v109_v1 = vld [vmem:[%s456_s12] sm:$0xff]  ;;  %v110_v2 = vld [vmem:[%s456_s12 + $0x8] sm:$0xff]  ;;  %v111_v3 = vld [vmem:[%s456_s12 + $0x10] sm:$0xff]  ;;  %vm376_vm0 = vcmask 1040384  }
  0x15   : > { %v112_v4 = vld [vmem:[%s456_s12 + $0x18] sm:$0xff]  ;;  %v173_v5 = vadd.f32 %v110_v2, %v109_v1  ;;  %v242_v6 = vmul.f32 %v109_v1, %v109_v1  ;;  %v243_v7 = vmul.f32 %v110_v2, %v110_v2  ;;  %v244_v8 = vmul.f32 %v111_v3, %v111_v3  ;;  %v113_v9 = vld [vmem:[%s456_s12 + $0x20] sm:$0xff]  ;;  %v114_v13 = vld [vmem:[%s456_s12 + $0x28] sm:$0xff] }
  0x16   : > { %v245_v11 = vmul.f32 %v112_v4, %v112_v4  ;;  %v246_v15 = vmul.f32 %v113_v9, %v113_v9  ;;  %v115_v17 = vld [vmem:[%s456_s12 + $0x30] sm:$0xff]  ;;  %v247_v19 = vmul.f32 %v114_v13, %v114_v13  ;;  %v116_v21 = vld [vmem:[%s456_s12 + $0x38] sm:$0xff]  ;;  %v117_v25 = vld [vmem:[%s456_s12 + $0x40] sm:$0xff] }
  0x17   : > { %v174_v10 = vadd.f32 %v173_v5, %v111_v3  ;;  %v306_v12 = vadd.f32 %v243_v7, %v242_v6  ;;  %v248_v23 = vmul.f32 %v115_v17, %v115_v17  ;;  %v249_v27 = vmul.f32 %v116_v21, %v116_v21  ;;  %v118_v29 = vld [vmem:[%s456_s12 + $0x48] sm:$0xff]  ;;  %v119_v33 = vld [vmem:[%s456_s12 + $0x50] sm:$0xff]  ;;  %v120_v37 = vld [vmem:[%s456_s12 + $0x58] sm:$0xff] }
  0x18   : > { %v250_v31 = vmul.f32 %v117_v25, %v117_v25  ;;  %v251_v35 = vmul.f32 %v118_v29, %v118_v29  ;;  %v252_v39 = vmul.f32 %v119_v33, %v119_v33  ;;  %v121_v41 = vld [vmem:[%s456_s12 + $0x60] sm:$0xff]  ;;  %v253_v43 = vmul.f32 %v120_v37, %v120_v37  ;;  %v122_v45 = vld [vmem:[%s456_s12 + $0x68] sm:$0xff]  ;;  %v123_v49 = vld [vmem:[%s456_s12 + $0x70] sm:$0xff] }
  0x19   : > { %v175_v14 = vadd.f32 %v174_v10, %v112_v4  ;;  %v307_v16 = vadd.f32 %v306_v12, %v244_v8  ;;  %v254_v47 = vmul.f32 %v121_v41, %v121_v41  ;;  %v255_v51 = vmul.f32 %v122_v45, %v122_v45  ;;  %v124_v53 = vld [vmem:[%s456_s12 + $0x78] sm:$0xff]  ;;  %v125_v57 = vld [vmem:[%s456_s12 + $0x80] sm:$0xff]  ;;  %v126_v61 = vld [vmem:[%s456_s12 + $0x88] sm:$0xff] }
  0x1a   : > { %v256_v55 = vmul.f32 %v123_v49, %v123_v49  ;;  %v257_v59 = vmul.f32 %v124_v53, %v124_v53  ;;  %v258_v63 = vmul.f32 %v125_v57, %v125_v57  ;;  %v127_v1 = vld [vmem:[%s456_s12 + $0x90] sm:$0xff]  ;;  %v259_v3 = vmul.f32 %v126_v61, %v126_v61  ;;  %v128_v5 = vld [vmem:[%s456_s12 + $0x98] sm:$0xff] }
  0x1b   : > { %v176_v18 = vadd.f32 %v175_v14, %v113_v9  ;;  %v308_v20 = vadd.f32 %v307_v16, %v245_v11  ;;  %v260_v7 = vmul.f32 %v127_v1, %v127_v1  ;;  %v129_v9 = vld [vmem:[%s456_s12 + $0xa0] sm:$0xff]  ;;  %v261_v11 = vmul.f32 %v128_v5, %v128_v5 }
  0x1d   : > { %v177_v22 = vadd.f32 %v176_v18, %v114_v13  ;;  %v309_v24 = vadd.f32 %v308_v20, %v246_v15  ;;  %v130_v13 = vld [vmem:[%s456_s12 + $0xa8] sm:$0xff]  ;;  %v262_v15 = vmul.f32 %v129_v9, %v129_v9 }
  0x1f   : > { %v178_v26 = vadd.f32 %v177_v22, %v115_v17  ;;  %v310_v28 = vadd.f32 %v309_v24, %v247_v19  ;;  %v131_v17 = vld [vmem:[%s456_s12 + $0xb0] sm:$0xff]  ;;  %v263_v19 = vmul.f32 %v130_v13, %v130_v13 }
  0x21   : > { %v179_v30 = vadd.f32 %v178_v26, %v116_v21  ;;  %v311_v32 = vadd.f32 %v310_v28, %v248_v23  ;;  %v132_v21 = vld [vmem:[%s456_s12 + $0xb8] sm:$0xff]  ;;  %v264_v23 = vmul.f32 %v131_v17, %v131_v17 }
  0x23   : > { %v180_v34 = vadd.f32 %v179_v30, %v117_v25  ;;  %v312_v36 = vadd.f32 %v311_v32, %v249_v27  ;;  %v133_v25 = vld [vmem:[%s456_s12 + $0xc0] sm:$0xff]  ;;  %v265_v27 = vmul.f32 %v132_v21, %v132_v21 }
  0x25   : > { %v181_v38 = vadd.f32 %v180_v34, %v118_v29  ;;  %v313_v40 = vadd.f32 %v312_v36, %v250_v31  ;;  %v134_v29 = vld [vmem:[%s456_s12 + $0xc8] sm:$0xff]  ;;  %v266_v31 = vmul.f32 %v133_v25, %v133_v25 }
  0x27   : > { %v182_v42 = vadd.f32 %v181_v38, %v119_v33  ;;  %v314_v44 = vadd.f32 %v313_v40, %v251_v35  ;;  %v135_v33 = vld [vmem:[%s456_s12 + $0xd0] sm:$0xff]  ;;  %v267_v35 = vmul.f32 %v134_v29, %v134_v29 }
  0x29   : > { %v183_v46 = vadd.f32 %v182_v42, %v120_v37  ;;  %v315_v48 = vadd.f32 %v314_v44, %v252_v39  ;;  %v136_v37 = vld [vmem:[%s456_s12 + $0xd8] sm:$0xff]  ;;  %v268_v39 = vmul.f32 %v135_v33, %v135_v33 }
  0x2b   : > { %v184_v50 = vadd.f32 %v183_v46, %v121_v41  ;;  %v316_v52 = vadd.f32 %v315_v48, %v253_v43  ;;  %v137_v41 = vld [vmem:[%s456_s12 + $0xe0] sm:$0xff]  ;;  %v269_v43 = vmul.f32 %v136_v37, %v136_v37 }
  0x2d   : > { %v185_v54 = vadd.f32 %v184_v50, %v122_v45  ;;  %v317_v56 = vadd.f32 %v316_v52, %v254_v47  ;;  %v138_v45 = vld [vmem:[%s456_s12 + $0xe8] sm:$0xff]  ;;  %v270_v47 = vmul.f32 %v137_v41, %v137_v41 }
  0x2f   : > { %v186_v58 = vadd.f32 %v185_v54, %v123_v49  ;;  %v318_v60 = vadd.f32 %v317_v56, %v255_v51  ;;  %v139_v49 = vld [vmem:[%s456_s12 + $0xf0] sm:$0xff]  ;;  %v271_v51 = vmul.f32 %v138_v45, %v138_v45 }
  0x31   : > { %v187_v62 = vadd.f32 %v186_v58, %v124_v53  ;;  %v319_v0 = vadd.f32 %v318_v60, %v256_v55  ;;  %v140_v53 = vld [vmem:[%s456_s12 + $0xf8] sm:$0xff]  ;;  %v272_v55 = vmul.f32 %v139_v49, %v139_v49 }
  0x33   : > { %v188_v2 = vadd.f32 %v187_v62, %v125_v57  ;;  %v320_v4 = vadd.f32 %v319_v0, %v257_v59  ;;  %v141_v57 = vld [vmem:[%s456_s12 + $0x100] sm:$0xff]  ;;  %v273_v59 = vmul.f32 %v140_v53, %v140_v53 }
  0x35   : > { %v189_v6 = vadd.f32 %v188_v2, %v126_v61  ;;  %v321_v8 = vadd.f32 %v320_v4, %v258_v63  ;;  %v142_v61 = vld [vmem:[%s456_s12 + $0x108] sm:$0xff]  ;;  %v274_v63 = vmul.f32 %v141_v57, %v141_v57 }
  0x37   : > { %v190_v10 = vadd.f32 %v189_v6, %v127_v1  ;;  %v322_v12 = vadd.f32 %v321_v8, %v259_v3  ;;  %v143_v1 = vld [vmem:[%s456_s12 + $0x110] sm:$0xff]  ;;  %v275_v3 = vmul.f32 %v142_v61, %v142_v61 }
  0x39   : > { %v191_v14 = vadd.f32 %v190_v10, %v128_v5  ;;  %v323_v16 = vadd.f32 %v322_v12, %v260_v7  ;;  %v144_v5 = vld [vmem:[%s456_s12 + $0x118] sm:$0xff]  ;;  %v276_v7 = vmul.f32 %v143_v1, %v143_v1 }
  0x3b   : > { %v192_v18 = vadd.f32 %v191_v14, %v129_v9  ;;  %v324_v20 = vadd.f32 %v323_v16, %v261_v11  ;;  %v145_v9 = vld [vmem:[%s456_s12 + $0x120] sm:$0xff]  ;;  %v277_v11 = vmul.f32 %v144_v5, %v144_v5 }
  0x3d   : > { %v193_v22 = vadd.f32 %v192_v18, %v130_v13  ;;  %v325_v24 = vadd.f32 %v324_v20, %v262_v15  ;;  %v146_v13 = vld [vmem:[%s456_s12 + $0x128] sm:$0xff]  ;;  %v278_v15 = vmul.f32 %v145_v9, %v145_v9 }
  0x3f   : > { %v194_v26 = vadd.f32 %v193_v22, %v131_v17  ;;  %v326_v28 = vadd.f32 %v325_v24, %v263_v19  ;;  %v147_v17 = vld [vmem:[%s456_s12 + $0x130] sm:$0xff]  ;;  %v279_v19 = vmul.f32 %v146_v13, %v146_v13 }
  0x41   : > { %v195_v30 = vadd.f32 %v194_v26, %v132_v21  ;;  %v327_v32 = vadd.f32 %v326_v28, %v264_v23  ;;  %v148_v21 = vld [vmem:[%s456_s12 + $0x138] sm:$0xff]  ;;  %v280_v23 = vmul.f32 %v147_v17, %v147_v17 }
  0x43   : > { %v196_v34 = vadd.f32 %v195_v30, %v133_v25  ;;  %v328_v36 = vadd.f32 %v327_v32, %v265_v27  ;;  %v149_v25 = vld [vmem:[%s456_s12 + $0x140] sm:$0xff]  ;;  %v281_v27 = vmul.f32 %v148_v21, %v148_v21 }
  0x45   : > { %v197_v38 = vadd.f32 %v196_v34, %v134_v29  ;;  %v329_v40 = vadd.f32 %v328_v36, %v266_v31  ;;  %v150_v29 = vld [vmem:[%s456_s12 + $0x148] sm:$0xff]  ;;  %v282_v31 = vmul.f32 %v149_v25, %v149_v25 }
  0x47   : > { %v198_v42 = vadd.f32 %v197_v38, %v135_v33  ;;  %v330_v44 = vadd.f32 %v329_v40, %v267_v35  ;;  %v151_v33 = vld [vmem:[%s456_s12 + $0x150] sm:$0xff]  ;;  %v283_v35 = vmul.f32 %v150_v29, %v150_v29 }
  0x49   : > { %v199_v46 = vadd.f32 %v198_v42, %v136_v37  ;;  %v331_v48 = vadd.f32 %v330_v44, %v268_v39  ;;  %v152_v37 = vld [vmem:[%s456_s12 + $0x158] sm:$0xff]  ;;  %v284_v39 = vmul.f32 %v151_v33, %v151_v33 }
  0x4b   : > { %v200_v50 = vadd.f32 %v199_v46, %v137_v41  ;;  %v332_v52 = vadd.f32 %v331_v48, %v269_v43  ;;  %v153_v41 = vld [vmem:[%s456_s12 + $0x160] sm:$0xff]  ;;  %v285_v43 = vmul.f32 %v152_v37, %v152_v37 }
  0x4d   : > { %v201_v54 = vadd.f32 %v200_v50, %v138_v45  ;;  %v333_v56 = vadd.f32 %v332_v52, %v270_v47  ;;  %v154_v45 = vld [vmem:[%s456_s12 + $0x168] sm:$0xff]  ;;  %v286_v47 = vmul.f32 %v153_v41, %v153_v41 }
  0x4f   : > { %v202_v58 = vadd.f32 %v201_v54, %v139_v49  ;;  %v334_v60 = vadd.f32 %v333_v56, %v271_v51  ;;  %v155_v49 = vld [vmem:[%s456_s12 + $0x170] sm:$0xff]  ;;  %v287_v51 = vmul.f32 %v154_v45, %v154_v45 }
  0x51   : > { %v203_v62 = vadd.f32 %v202_v58, %v140_v53  ;;  %v335_v0 = vadd.f32 %v334_v60, %v272_v55  ;;  %v156_v53 = vld [vmem:[%s456_s12 + $0x178] sm:$0xff]  ;;  %v288_v55 = vmul.f32 %v155_v49, %v155_v49 }
  0x53   : > { %v204_v2 = vadd.f32 %v203_v62, %v141_v57  ;;  %v336_v4 = vadd.f32 %v335_v0, %v273_v59  ;;  %v157_v57 = vld [vmem:[%s456_s12 + $0x180] sm:$0xff]  ;;  %v289_v59 = vmul.f32 %v156_v53, %v156_v53 }
  0x55   : > { %v205_v6 = vadd.f32 %v204_v2, %v142_v61  ;;  %v337_v8 = vadd.f32 %v336_v4, %v274_v63  ;;  %v158_v61 = vld [vmem:[%s456_s12 + $0x188] sm:$0xff]  ;;  %v290_v63 = vmul.f32 %v157_v57, %v157_v57 }
  0x57   : > { %v206_v10 = vadd.f32 %v205_v6, %v143_v1  ;;  %v338_v12 = vadd.f32 %v337_v8, %v275_v3  ;;  %v159_v1 = vld [vmem:[%s456_s12 + $0x190] sm:$0xff]  ;;  %v291_v3 = vmul.f32 %v158_v61, %v158_v61 }
  0x59   : > { %v207_v14 = vadd.f32 %v206_v10, %v144_v5  ;;  %v339_v16 = vadd.f32 %v338_v12, %v276_v7  ;;  %v160_v5 = vld [vmem:[%s456_s12 + $0x198] sm:$0xff]  ;;  %v292_v7 = vmul.f32 %v159_v1, %v159_v1 }
  0x5b   : > { %v208_v18 = vadd.f32 %v207_v14, %v145_v9  ;;  %v340_v20 = vadd.f32 %v339_v16, %v277_v11  ;;  %v161_v9 = vld [vmem:[%s456_s12 + $0x1a0] sm:$0xff]  ;;  %v293_v11 = vmul.f32 %v160_v5, %v160_v5 }
  0x5d   : > { %v209_v22 = vadd.f32 %v208_v18, %v146_v13  ;;  %v341_v24 = vadd.f32 %v340_v20, %v278_v15  ;;  %v162_v13 = vld [vmem:[%s456_s12 + $0x1a8] sm:$0xff]  ;;  %v294_v15 = vmul.f32 %v161_v9, %v161_v9 }
  0x5f   : > { %v210_v26 = vadd.f32 %v209_v22, %v147_v17  ;;  %v342_v28 = vadd.f32 %v341_v24, %v279_v19  ;;  %v163_v17 = vld [vmem:[%s456_s12 + $0x1b0] sm:$0xff]  ;;  %v295_v19 = vmul.f32 %v162_v13, %v162_v13 }
  0x61   : > { %v211_v30 = vadd.f32 %v210_v26, %v148_v21  ;;  %v343_v32 = vadd.f32 %v342_v28, %v280_v23  ;;  %v164_v21 = vld [vmem:[%s456_s12 + $0x1b8] sm:$0xff]  ;;  %v296_v23 = vmul.f32 %v163_v17, %v163_v17 }
  0x63   : > { %v212_v34 = vadd.f32 %v211_v30, %v149_v25  ;;  %v344_v36 = vadd.f32 %v343_v32, %v281_v27  ;;  %v165_v25 = vld [vmem:[%s456_s12 + $0x1c0] sm:$0xff]  ;;  %v297_v27 = vmul.f32 %v164_v21, %v164_v21 }
  0x65   : > { %v213_v38 = vadd.f32 %v212_v34, %v150_v29  ;;  %v345_v40 = vadd.f32 %v344_v36, %v282_v31  ;;  %v166_v29 = vld [vmem:[%s456_s12 + $0x1c8] sm:$0xff]  ;;  %v298_v31 = vmul.f32 %v165_v25, %v165_v25 }
  0x67   : > { %v214_v42 = vadd.f32 %v213_v38, %v151_v33  ;;  %v346_v44 = vadd.f32 %v345_v40, %v283_v35  ;;  %v167_v33 = vld [vmem:[%s456_s12 + $0x1d0] sm:$0xff]  ;;  %v299_v35 = vmul.f32 %v166_v29, %v166_v29 }
  0x69   : > { %v215_v46 = vadd.f32 %v214_v42, %v152_v37  ;;  %v347_v48 = vadd.f32 %v346_v44, %v284_v39  ;;  %v168_v37 = vld [vmem:[%s456_s12 + $0x1d8] sm:$0xff]  ;;  %v300_v39 = vmul.f32 %v167_v33, %v167_v33 }
  0x6b   : > { %v216_v50 = vadd.f32 %v215_v46, %v153_v41  ;;  %v348_v52 = vadd.f32 %v347_v48, %v285_v43  ;;  %v169_v41 = vld [vmem:[%s456_s12 + $0x1e0] sm:$0xff]  ;;  %v301_v43 = vmul.f32 %v168_v37, %v168_v37 }
  0x6d   : > { %v217_v54 = vadd.f32 %v216_v50, %v154_v45  ;;  %v349_v56 = vadd.f32 %v348_v52, %v286_v47  ;;  %v170_v45 = vld [vmem:[%s456_s12 + $0x1e8] sm:$0xff]  ;;  %v302_v47 = vmul.f32 %v169_v41, %v169_v41 }
  0x6f   : > { %v218_v58 = vadd.f32 %v217_v54, %v155_v49  ;;  %v350_v60 = vadd.f32 %v349_v56, %v287_v51  ;;  %v171_v49 = vld [vmem:[%s456_s12 + $0x1f0] sm:$0xff]  ;;  %v303_v51 = vmul.f32 %v170_v45, %v170_v45 }
  0x71   : > { %v219_v62 = vadd.f32 %v218_v58, %v156_v53  ;;  %v351_v0 = vadd.f32 %v350_v60, %v288_v55  ;;  %v172_v53 = vld [vmem:[%s456_s12 + $0x1f8] sm:$0xff]  ;;  %v304_v55 = vmul.f32 %v171_v49, %v171_v49 }
  0x72   : > { %v305_v58 = vmul.f32 %v172_v53, %v172_v53 }
  0x73   : > { %v220_v2 = vadd.f32 %v219_v62, %v157_v57  ;;  %v352_v4 = vadd.f32 %v351_v0, %v289_v59 }
  0x75   : > { %v221_v6 = vadd.f32 %v220_v2, %v158_v61  ;;  %v353_v8 = vadd.f32 %v352_v4, %v290_v63 }
  0x77   : > { %v222_v10 = vadd.f32 %v221_v6, %v159_v1  ;;  %v354_v12 = vadd.f32 %v353_v8, %v291_v3 }
  0x79   : > { %v223_v14 = vadd.f32 %v222_v10, %v160_v5  ;;  %v355_v16 = vadd.f32 %v354_v12, %v292_v7 }
  0x7b   : > { %v224_v18 = vadd.f32 %v223_v14, %v161_v9  ;;  %v356_v20 = vadd.f32 %v355_v16, %v293_v11  ;;  %v375_v11 = vld [vmem:[%s535_s1] sm:$0x3] }
  0x7d   : > { %v225_v22 = vadd.f32 %v224_v18, %v162_v13  ;;  %v357_v24 = vadd.f32 %v356_v20, %v294_v15 }
  0x7f   : > { %v226_v26 = vadd.f32 %v225_v22, %v163_v17  ;;  %v358_v28 = vadd.f32 %v357_v24, %v295_v19 }
  0x81   : > { %v227_v30 = vadd.f32 %v226_v26, %v164_v21  ;;  %v359_v32 = vadd.f32 %v358_v28, %v296_v23 }
  0x83   : > { %v228_v34 = vadd.f32 %v227_v30, %v165_v25  ;;  %v360_v36 = vadd.f32 %v359_v32, %v297_v27 }
  0x85   : > { %v229_v38 = vadd.f32 %v228_v34, %v166_v29  ;;  %v361_v40 = vadd.f32 %v360_v36, %v298_v31 }
  0x87   : > { %v230_v42 = vadd.f32 %v229_v38, %v167_v33  ;;  %v362_v44 = vadd.f32 %v361_v40, %v299_v35 }
  0x89   : > { %v231_v46 = vadd.f32 %v230_v42, %v168_v37  ;;  %v363_v48 = vadd.f32 %v362_v44, %v300_v39 }
  0x8b   : > { %v232_v50 = vadd.f32 %v231_v46, %v169_v41  ;;  %v364_v52 = vadd.f32 %v363_v48, %v301_v43 }
  0x8d   : > { %v233_v54 = vadd.f32 %v232_v50, %v170_v45  ;;  %v365_v56 = vadd.f32 %v364_v52, %v302_v47 }
  0x8f   : > { %v234_v57 = vadd.f32 %v233_v54, %v171_v49  ;;  %v366_v59 = vadd.f32 %v365_v56, %v303_v51 }
  0x91   : > { %v235_v60 = vadd.f32 %v234_v57, %v172_v53  ;;  %v367_v61 = vadd.f32 %v366_v59, %v304_v55 }
  0x93   : > { %v236_v62 = vrot.slane %v235_v60, 4  ;;  %v368_v63 = vadd.f32 %v367_v61, %v305_v58 }
  0x95   : > { %v237_v0 = vadd.f32 %v236_v62, %v235_v60  ;;  %v369_v1 = vrot.slane %v368_v63, 4 }
  0x97   : > { %v238_v2 = vrot.slane %v237_v0, 2  ;;  %v370_v3 = vadd.f32 %v369_v1, %v368_v63 }
  0x99   : > { %v239_v4 = vadd.f32 %v238_v2, %v237_v0  ;;  %v371_v5 = vrot.slane %v370_v3, 2 }
  0x9b   : > { %v240_v6 = vrot.slane %v239_v4, 1  ;;  %v372_v7 = vadd.f32 %v371_v5, %v370_v3 }
  0x9d   : > { %v241_v8 = vadd.f32 %v240_v6, %v239_v4  ;;  %v373_v9 = vrot.slane %v372_v7, 1 }
  0x9f   : > { %v374_v10 = vadd.f32 %v373_v9, %v372_v7 }
  0xa1   : > { %v377_v12 = vsel %vm376_vm0, %v241_v8, %v374_v10 }
  0xa2   : > { %v378_v13 = vadd.f32 %v377_v12, %v375_v11 }
  0xa4   : > { %379 = vst [vmem:[%s535_s1] sm:$0x3] %v378_v13 }
  0xa5 PF: > { %s11_s6 = sadd.s32 1, %s432_s6  }
  0xa6   : > { %p8_p5 = scmp.ge.s32.totalorder %s11_s6, 6  }
  0xa8   :  { %10 = sbr.rel (!%p8_p5) target bundleno = 1 (0x1), region = 54 }

// kernel: generator_forward.22
= control target key start
LH: loop header
LB: loop body
LE: loop exit
PB: predicated region body
PF: predicated region fallthrough
CT: control target
= control target key end

     0   :  { %s1188_s12 = smov 0   ;;  %s1447_s0 = inlined_call_operand.vmem [shape: f32[2048,128], index: 0, kind: input, shape index: {}]   ;;  %s1448_s1 = inlined_call_operand.vmem [shape: f32[1,128], index: 1, kind: input, shape index: {}]   ;;  %s1449_s2 = inlined_call_operand.vmem [shape: f32[1,128], index: 2, kind: input, shape index: {}]   ;;  %s1450_s3 = inlined_call_operand.vmem [shape: bf16[2048,128], index: 3, kind: output, shape index: {}]  }
   0x1 LB: > { %s820_s13 = sadd.s32 4294967295, %s1166_s12   ;;  %p824_p0 = scmp.ge.s32.totalorder %s1166_s12, 1  ;;  %s1166_s12 = sphi %s1188_s12, %s13_s12  }
   0x2   : > { %p138_p1 = scmp.lt.s32.totalorder %s1166_s12, 5 }
   0x4   : > { %p139_p2 = pnand %p824_p0, %p138_p1 }
   0x5   : > { %s825_s14 = sshll.u32 (!%p139_p2), %s820_s13, 6  ;;  %v1202_v0 = vld [vmem:[%s1448_s1] ss:$0 sm:$0xff] (!%p139_p2) }
   0x6   : > { %142 = sbr.rel (%p139_p2) target bundleno = 79 (0x4f), region = 32  ;;  %p163_p3 = scmp.lt.s32.totalorder (!%p139_p2), %s825_s14, 255  ;;  %v1212_v1 = vld [vmem:[%s1449_s2] ss:$0 sm:$0xff] (!%p139_p2) }
   0xd   : > { %s1452_s14 = smov (!%p163_p3, %s825_s14), 255 }
   0xe   : > { %s826_s15 = sshll.u32 %s1452_s14, 3  ;;  %s828_s23 = sshll.u32 %s1452_s14, 2 }
   0xf   : > { %s1207_s20 = scalar_lea.vmem %s1447_s0, %s826_s15  ;;  %s1244_s26 = scalar_lea.vmem %s1450_s3, %s828_s23 }
  0x10   : > { %v174_v2 = vld [vmem:[%s1207_s20] sm:$0xff]  ;;  %v175_v3 = vld [vmem:[%s1207_s20 + $0x8] sm:$0xff]  ;;  %v176_v4 = vld [vmem:[%s1207_s20 + $0x10] sm:$0xff] }
  0x11   : > { %v245_v5 = vmul.f32 %v1202_v0, %v174_v2  ;;  %v246_v6 = vmul.f32 %v1202_v0, %v175_v3  ;;  %v177_v7 = vld [vmem:[%s1207_s20 + $0x18] sm:$0xff]  ;;  %v247_v8 = vmul.f32 %v1202_v0, %v176_v4  ;;  %v178_v9 = vld [vmem:[%s1207_s20 + $0x20] sm:$0xff]  ;;  %v179_v10 = vld [vmem:[%s1207_s20 + $0x28] sm:$0xff] }
  0x12   : > { %v248_v11 = vmul.f32 %v1202_v0, %v177_v7  ;;  %v249_v12 = vmul.f32 %v1202_v0, %v178_v9  ;;  %v250_v13 = vmul.f32 %v1202_v0, %v179_v10  ;;  %v180_v14 = vld [vmem:[%s1207_s20 + $0x30] sm:$0xff]  ;;  %v181_v15 = vld [vmem:[%s1207_s20 + $0x38] sm:$0xff]  ;;  %v182_v24 = vld [vmem:[%s1207_s20 + $0x40] sm:$0xff] }
  0x13   : > { %v316_v16 = vadd.f32 %v1212_v1, %v245_v5  ;;  %v317_v17 = vadd.f32 %v1212_v1, %v246_v6  ;;  %v318_v18 = vadd.f32 %v1212_v1, %v247_v8  ;;  %v251_v19 = vmul.f32 %v1202_v0, %v180_v14  ;;  %v183_v25 = vld [vmem:[%s1207_s20 + $0x48] sm:$0xff]  ;;  %v184_v30 = vld [vmem:[%s1207_s20 + $0x50] sm:$0xff]  ;;  %v185_v35 = vld [vmem:[%s1207_s20 + $0x58] sm:$0xff] }
  0x14   : > { %v319_v20 = vadd.f32 %v1212_v1, %v248_v11  ;;  %v320_v21 = vadd.f32 %v1212_v1, %v249_v12  ;;  %v321_v22 = vadd.f32 %v1212_v1, %v250_v13  ;;  %v252_v23 = vmul.f32 %v1202_v0, %v181_v15  ;;  %v186_v36 = vld [vmem:[%s1207_s20 + $0x60] sm:$0xff]  ;;  %v187_v41 = vld [vmem:[%s1207_s20 + $0x68] sm:$0xff]  ;;  %v188_v42 = vld [vmem:[%s1207_s20 + $0x70] sm:$0xff] }
  0x15   : > { %v380_v26 = vmax.f32 %v316_v16, 0.0  ;;  %v381_v27 = vmax.f32 %v317_v17, 0.0  ;;  %v382_v28 = vmax.f32 %v318_v18, 0.0  ;;  %v322_v29 = vadd.f32 %v1212_v1, %v251_v19  ;;  %v189_v51 = vld [vmem:[%s1207_s20 + $0x78] sm:$0xff]  ;;  %v190_v56 = vld [vmem:[%s1207_s20 + $0x80] sm:$0xff]  ;;  %v191_v61 = vld [vmem:[%s1207_s20 + $0x88] sm:$0xff] }
  0x16   : > { %v383_v31 = vmax.f32 %v319_v20, 0.0  ;;  %v384_v32 = vmax.f32 %v320_v21, 0.0  ;;  %v385_v33 = vmax.f32 %v321_v22, 0.0  ;;  %v323_v34 = vadd.f32 %v1212_v1, %v252_v23  ;;  %v192_v4 = vld [vmem:[%s1207_s20 + $0x90] sm:$0xff]  ;;  %v193_v5 = vld [vmem:[%s1207_s20 + $0x98] sm:$0xff]  ;;  %v194_v10 = vld [vmem:[%s1207_s20 + $0xa0] sm:$0xff] }
  0x17   : > { %v964_v37 = vpack.c.bf16 %v381_v27, %v380_v26  ;;  %v386_v38 = vmax.f32 %v322_v29, 0.0  ;;  %v253_v39 = vmul.f32 %v1202_v0, %v182_v24  ;;  %v254_v40 = vmul.f32 %v1202_v0, %v183_v25  ;;  %v195_v15 = vld [vmem:[%s1207_s20 + $0xa8] sm:$0xff]  ;;  %v196_v20 = vld [vmem:[%s1207_s20 + $0xb0] sm:$0xff]  ;;  %v197_v25 = vld [vmem:[%s1207_s20 + $0xb8] sm:$0xff] }
  0x18   : > { %v969_v43 = vpack.c.bf16 %v383_v31, %v382_v28  ;;  %v974_v44 = vpack.c.bf16 %v385_v33, %v384_v32  ;;  %v387_v45 = vmax.f32 %v323_v34, 0.0  ;;  %v255_v46 = vmul.f32 %v1202_v0, %v184_v30  ;;  %v198_v30 = vld [vmem:[%s1207_s20 + $0xc0] sm:$0xff] }
  0x19   : > { %965 = vst [vmem:[%s1244_s26] sm:$0xff] %v964_v37   ;;  %v324_v47 = vadd.f32 %v1212_v1, %v253_v39  ;;  %v325_v48 = vadd.f32 %v1212_v1, %v254_v40  ;;  %v256_v49 = vmul.f32 %v1202_v0, %v185_v35  ;;  %v257_v50 = vmul.f32 %v1202_v0, %v186_v36  ;;  %v199_v35 = vld [vmem:[%s1207_s20 + $0xc8] sm:$0xff]  ;;  %v200_v40 = vld [vmem:[%s1207_s20 + $0xd0] sm:$0xff] }
  0x1a   : > { %1121 = vst [vmem:[%s1244_s26 + $0x8] sm:$0xff] %v969_v43   ;;  %1122 = vst [vmem:[%s1244_s26 + $0x10] sm:$0xff] %v974_v44   ;;  %v979_v52 = vpack.c.bf16 %v387_v45, %v386_v38  ;;  %v326_v53 = vadd.f32 %v1212_v1, %v255_v46  ;;  %v258_v54 = vmul.f32 %v1202_v0, %v187_v41  ;;  %v201_v41 = vld [vmem:[%s1207_s20 + $0xd8] sm:$0xff]  ;;  %v202_v46 = vld [vmem:[%s1207_s20 + $0xe0] sm:$0xff] }
  0x1b   : > { %v259_v55 = vmul.f32 %v1202_v0, %v188_v42  ;;  %v388_v57 = vmax.f32 %v324_v47, 0.0  ;;  %v389_v58 = vmax.f32 %v325_v48, 0.0  ;;  %v327_v59 = vadd.f32 %v1212_v1, %v256_v49 }
  0x1c   : > { %v328_v60 = vadd.f32 %v1212_v1, %v257_v50  ;;  %1123 = vst [vmem:[%s1244_s26 + $0x18] sm:$0xff] %v979_v52   ;;  %v390_v62 = vmax.f32 %v326_v53, 0.0  ;;  %v329_v63 = vadd.f32 %v1212_v1, %v258_v54  ;;  %v260_v2 = vmul.f32 %v1202_v0, %v189_v51  ;;  %v203_v51 = vld [vmem:[%s1207_s20 + $0xe8] sm:$0xff] }
  0x1d   : > { %v330_v3 = vadd.f32 %v1212_v1, %v259_v55  ;;  %v984_v6 = vpack.c.bf16 %v389_v58, %v388_v57  ;;  %v391_v7 = vmax.f32 %v327_v59, 0.0  ;;  %v261_v9 = vmul.f32 %v1202_v0, %v190_v56  ;;  %v204_v56 = vld [vmem:[%s1207_s20 + $0xf0] sm:$0xff] }
  0x1e   : > { %v392_v8 = vmax.f32 %v328_v60, 0.0  ;;  %v393_v11 = vmax.f32 %v329_v63, 0.0  ;;  %v331_v12 = vadd.f32 %v1212_v1, %v260_v2  ;;  %v262_v14 = vmul.f32 %v1202_v0, %v191_v61  ;;  %v205_v61 = vld [vmem:[%s1207_s20 + $0xf8] sm:$0xff] }
  0x1f   : > { %v394_v13 = vmax.f32 %v330_v3, 0.0  ;;  %1124 = vst [vmem:[%s1244_s26 + $0x20] sm:$0xff] %v984_v6   ;;  %v989_v16 = vpack.c.bf16 %v391_v7, %v390_v62  ;;  %v332_v17 = vadd.f32 %v1212_v1, %v261_v9  ;;  %v263_v18 = vmul.f32 %v1202_v0, %v192_v4  ;;  %v206_v4 = vld [vmem:[%s1207_s20 + $0x100] sm:$0xff]  ;;  %v207_v9 = vld [vmem:[%s1207_s20 + $0x108] sm:$0xff] }
  0x20   : > { %v264_v19 = vmul.f32 %v1202_v0, %v193_v5  ;;  %v994_v21 = vpack.c.bf16 %v393_v11, %v392_v8  ;;  %v395_v22 = vmax.f32 %v331_v12, 0.0  ;;  %v333_v23 = vadd.f32 %v1212_v1, %v262_v14  ;;  %v208_v14 = vld [vmem:[%s1207_s20 + $0x110] sm:$0xff] }
  0x21   : > { %v265_v24 = vmul.f32 %v1202_v0, %v194_v10  ;;  %1125 = vst [vmem:[%s1244_s26 + $0x28] sm:$0xff] %v989_v16   ;;  %v396_v26 = vmax.f32 %v332_v17, 0.0  ;;  %v334_v27 = vadd.f32 %v1212_v1, %v263_v18  ;;  %v266_v29 = vmul.f32 %v1202_v0, %v195_v15  ;;  %v209_v15 = vld [vmem:[%s1207_s20 + $0x118] sm:$0xff] }
  0x22   : > { %v335_v28 = vadd.f32 %v1212_v1, %v264_v19  ;;  %1126 = vst [vmem:[%s1244_s26 + $0x30] sm:$0xff] %v994_v21   ;;  %v999_v31 = vpack.c.bf16 %v395_v22, %v394_v13  ;;  %v397_v32 = vmax.f32 %v333_v23, 0.0  ;;  %v267_v34 = vmul.f32 %v1202_v0, %v196_v20  ;;  %v210_v20 = vld [vmem:[%s1207_s20 + $0x120] sm:$0xff] }
  0x23   : > { %v336_v33 = vadd.f32 %v1212_v1, %v265_v24  ;;  %v398_v36 = vmax.f32 %v334_v27, 0.0  ;;  %v337_v38 = vadd.f32 %v1212_v1, %v266_v29  ;;  %v268_v39 = vmul.f32 %v1202_v0, %v197_v25  ;;  %v211_v25 = vld [vmem:[%s1207_s20 + $0x128] sm:$0xff] }
  0x24   : > { %v399_v37 = vmax.f32 %v335_v28, 0.0  ;;  %1127 = vst [vmem:[%s1244_s26 + $0x38] sm:$0xff] %v999_v31   ;;  %v1004_v42 = vpack.c.bf16 %v397_v32, %v396_v26  ;;  %v338_v44 = vadd.f32 %v1212_v1, %v267_v34  ;;  %v269_v45 = vmul.f32 %v1202_v0, %v198_v30  ;;  %v212_v30 = vld [vmem:[%s1207_s20 + $0x130] sm:$0xff] }
  0x25   : > { %v400_v43 = vmax.f32 %v336_v33, 0.0  ;;  %v401_v48 = vmax.f32 %v337_v38, 0.0  ;;  %v339_v49 = vadd.f32 %v1212_v1, %v268_v39  ;;  %v270_v50 = vmul.f32 %v1202_v0, %v199_v35  ;;  %v213_v35 = vld [vmem:[%s1207_s20 + $0x138] sm:$0xff] }
  0x26   : > { %v1009_v47 = vpack.c.bf16 %v399_v37, %v398_v36  ;;  %1128 = vst [vmem:[%s1244_s26 + $0x40] sm:$0xff] %v1004_v42   ;;  %v402_v52 = vmax.f32 %v338_v44, 0.0  ;;  %v340_v53 = vadd.f32 %v1212_v1, %v269_v45  ;;  %v271_v54 = vmul.f32 %v1202_v0, %v200_v40  ;;  %v214_v40 = vld [vmem:[%s1207_s20 + $0x140] sm:$0xff]  ;;  %v215_v45 = vld [vmem:[%s1207_s20 + $0x148] sm:$0xff] }
  0x27   : > { %v272_v55 = vmul.f32 %v1202_v0, %v201_v41  ;;  %v1014_v57 = vpack.c.bf16 %v401_v48, %v400_v43  ;;  %v403_v58 = vmax.f32 %v339_v49, 0.0  ;;  %v341_v59 = vadd.f32 %v1212_v1, %v270_v50  ;;  %v216_v50 = vld [vmem:[%s1207_s20 + $0x150] sm:$0xff] }
  0x28   : > { %1129 = vst [vmem:[%s1244_s26 + $0x48] sm:$0xff] %v1009_v47   ;;  %v273_v60 = vmul.f32 %v1202_v0, %v202_v46  ;;  %v404_v62 = vmax.f32 %v340_v53, 0.0  ;;  %v342_v63 = vadd.f32 %v1212_v1, %v271_v54  ;;  %v274_v3 = vmul.f32 %v1202_v0, %v203_v51  ;;  %v217_v51 = vld [vmem:[%s1207_s20 + $0x158] sm:$0xff] }
  0x29   : > { %v343_v2 = vadd.f32 %v1212_v1, %v272_v55  ;;  %1130 = vst [vmem:[%s1244_s26 + $0x50] sm:$0xff] %v1014_v57   ;;  %v1019_v5 = vpack.c.bf16 %v403_v58, %v402_v52  ;;  %v405_v6 = vmax.f32 %v341_v59, 0.0  ;;  %v275_v8 = vmul.f32 %v1202_v0, %v204_v56  ;;  %v218_v56 = vld [vmem:[%s1207_s20 + $0x160] sm:$0xff] }
  0x2a   : > { %v344_v7 = vadd.f32 %v1212_v1, %v273_v60  ;;  %v406_v10 = vmax.f32 %v342_v63, 0.0  ;;  %v345_v12 = vadd.f32 %v1212_v1, %v274_v3  ;;  %v276_v13 = vmul.f32 %v1202_v0, %v205_v61  ;;  %v219_v61 = vld [vmem:[%s1207_s20 + $0x168] sm:$0xff] }
  0x2b   : > { %v407_v11 = vmax.f32 %v343_v2, 0.0  ;;  %1131 = vst [vmem:[%s1244_s26 + $0x58] sm:$0xff] %v1019_v5   ;;  %v1024_v16 = vpack.c.bf16 %v405_v6, %v404_v62  ;;  %v346_v18 = vadd.f32 %v1212_v1, %v275_v8  ;;  %v277_v19 = vmul.f32 %v1202_v0, %v206_v4  ;;  %v220_v4 = vld [vmem:[%s1207_s20 + $0x170] sm:$0xff] }
  0x2c   : > { %v408_v17 = vmax.f32 %v344_v7, 0.0  ;;  %v409_v22 = vmax.f32 %v345_v12, 0.0  ;;  %v347_v23 = vadd.f32 %v1212_v1, %v276_v13  ;;  %v278_v24 = vmul.f32 %v1202_v0, %v207_v9  ;;  %v221_v9 = vld [vmem:[%s1207_s20 + $0x178] sm:$0xff] }
  0x2d   : > { %v1029_v21 = vpack.c.bf16 %v407_v11, %v406_v10  ;;  %1132 = vst [vmem:[%s1244_s26 + $0x60] sm:$0xff] %v1024_v16   ;;  %v410_v26 = vmax.f32 %v346_v18, 0.0  ;;  %v348_v27 = vadd.f32 %v1212_v1, %v277_v19  ;;  %v279_v28 = vmul.f32 %v1202_v0, %v208_v14  ;;  %v222_v14 = vld [vmem:[%s1207_s20 + $0x180] sm:$0xff]  ;;  %v223_v19 = vld [vmem:[%s1207_s20 + $0x188] sm:$0xff] }
  0x2e   : > { %v280_v29 = vmul.f32 %v1202_v0, %v209_v15  ;;  %v1034_v31 = vpack.c.bf16 %v409_v22, %v408_v17  ;;  %v411_v32 = vmax.f32 %v347_v23, 0.0  ;;  %v349_v33 = vadd.f32 %v1212_v1, %v278_v24  ;;  %v224_v24 = vld [vmem:[%s1207_s20 + $0x190] sm:$0xff] }
  0x2f   : > { %1133 = vst [vmem:[%s1244_s26 + $0x68] sm:$0xff] %v1029_v21   ;;  %v281_v34 = vmul.f32 %v1202_v0, %v210_v20  ;;  %v412_v36 = vmax.f32 %v348_v27, 0.0  ;;  %v350_v37 = vadd.f32 %v1212_v1, %v279_v28  ;;  %v282_v39 = vmul.f32 %v1202_v0, %v211_v25  ;;  %v225_v25 = vld [vmem:[%s1207_s20 + $0x198] sm:$0xff] }
  0x30   : > { %v351_v38 = vadd.f32 %v1212_v1, %v280_v29  ;;  %1134 = vst [vmem:[%s1244_s26 + $0x70] sm:$0xff] %v1034_v31   ;;  %v1039_v41 = vpack.c.bf16 %v411_v32, %v410_v26  ;;  %v413_v42 = vmax.f32 %v349_v33, 0.0  ;;  %v283_v44 = vmul.f32 %v1202_v0, %v212_v30  ;;  %v226_v30 = vld [vmem:[%s1207_s20 + $0x1a0] sm:$0xff] }
  0x31   : > { %v352_v43 = vadd.f32 %v1212_v1, %v281_v34  ;;  %v414_v46 = vmax.f32 %v350_v37, 0.0  ;;  %v353_v48 = vadd.f32 %v1212_v1, %v282_v39  ;;  %v284_v49 = vmul.f32 %v1202_v0, %v213_v35  ;;  %v227_v35 = vld [vmem:[%s1207_s20 + $0x1a8] sm:$0xff] }
  0x32   : > { %v415_v47 = vmax.f32 %v351_v38, 0.0  ;;  %1135 = vst [vmem:[%s1244_s26 + $0x78] sm:$0xff] %v1039_v41   ;;  %v1044_v52 = vpack.c.bf16 %v413_v42, %v412_v36  ;;  %v354_v54 = vadd.f32 %v1212_v1, %v283_v44  ;;  %v285_v55 = vmul.f32 %v1202_v0, %v214_v40  ;;  %v228_v40 = vld [vmem:[%s1207_s20 + $0x1b0] sm:$0xff] }
  0x33   : > { %v416_v53 = vmax.f32 %v352_v43, 0.0  ;;  %v417_v58 = vmax.f32 %v353_v48, 0.0  ;;  %v355_v59 = vadd.f32 %v1212_v1, %v284_v49  ;;  %v286_v60 = vmul.f32 %v1202_v0, %v215_v45  ;;  %v229_v45 = vld [vmem:[%s1207_s20 + $0x1b8] sm:$0xff] }
  0x34   : > { %v1049_v57 = vpack.c.bf16 %v415_v47, %v414_v46  ;;  %1136 = vst [vmem:[%s1244_s26 + $0x80] sm:$0xff] %v1044_v52   ;;  %v418_v62 = vmax.f32 %v354_v54, 0.0  ;;  %v356_v63 = vadd.f32 %v1212_v1, %v285_v55  ;;  %v287_v2 = vmul.f32 %v1202_v0, %v216_v50  ;;  %v230_v50 = vld [vmem:[%s1207_s20 + $0x1c0] sm:$0xff]  ;;  %v231_v55 = vld [vmem:[%s1207_s20 + $0x1c8] sm:$0xff] }
  0x35   : > { %v288_v3 = vmul.f32 %v1202_v0, %v217_v51  ;;  %v1054_v5 = vpack.c.bf16 %v417_v58, %v416_v53  ;;  %v419_v6 = vmax.f32 %v355_v59, 0.0  ;;  %v357_v7 = vadd.f32 %v1212_v1, %v286_v60  ;;  %v232_v60 = vld [vmem:[%s1207_s20 + $0x1d0] sm:$0xff] }
  0x36   : > { %1137 = vst [vmem:[%s1244_s26 + $0x88] sm:$0xff] %v1049_v57   ;;  %v289_v8 = vmul.f32 %v1202_v0, %v218_v56  ;;  %v420_v10 = vmax.f32 %v356_v63, 0.0  ;;  %v358_v11 = vadd.f32 %v1212_v1, %v287_v2  ;;  %v290_v13 = vmul.f32 %v1202_v0, %v219_v61  ;;  %v233_v61 = vld [vmem:[%s1207_s20 + $0x1d8] sm:$0xff] }
  0x37   : > { %v359_v12 = vadd.f32 %v1212_v1, %v288_v3  ;;  %1138 = vst [vmem:[%s1244_s26 + $0x90] sm:$0xff] %v1054_v5   ;;  %v1059_v15 = vpack.c.bf16 %v419_v6, %v418_v62  ;;  %v421_v16 = vmax.f32 %v357_v7, 0.0  ;;  %v291_v18 = vmul.f32 %v1202_v0, %v220_v4  ;;  %v234_v4 = vld [vmem:[%s1207_s20 + $0x1e0] sm:$0xff] }
  0x38   : > { %v360_v17 = vadd.f32 %v1212_v1, %v289_v8  ;;  %v422_v20 = vmax.f32 %v358_v11, 0.0  ;;  %v361_v22 = vadd.f32 %v1212_v1, %v290_v13  ;;  %v292_v23 = vmul.f32 %v1202_v0, %v221_v9  ;;  %v235_v9 = vld [vmem:[%s1207_s20 + $0x1e8] sm:$0xff] }
  0x39   : > { %v423_v21 = vmax.f32 %v359_v12, 0.0  ;;  %1139 = vst [vmem:[%s1244_s26 + $0x98] sm:$0xff] %v1059_v15   ;;  %v1064_v26 = vpack.c.bf16 %v421_v16, %v420_v10  ;;  %v362_v28 = vadd.f32 %v1212_v1, %v291_v18  ;;  %v293_v29 = vmul.f32 %v1202_v0, %v222_v14  ;;  %v236_v14 = vld [vmem:[%s1207_s20 + $0x1f0] sm:$0xff] }
  0x3a   : > { %v424_v27 = vmax.f32 %v360_v17, 0.0  ;;  %v425_v32 = vmax.f32 %v361_v22, 0.0  ;;  %v363_v33 = vadd.f32 %v1212_v1, %v292_v23  ;;  %v294_v34 = vmul.f32 %v1202_v0, %v223_v19  ;;  %v237_v19 = vld [vmem:[%s1207_s20 + $0x1f8] sm:$0xff] }
  0x3b   : > { %v1069_v31 = vpack.c.bf16 %v423_v21, %v422_v20  ;;  %1140 = vst [vmem:[%s1244_s26 + $0xa0] sm:$0xff] %v1064_v26   ;;  %v426_v36 = vmax.f32 %v362_v28, 0.0  ;;  %v364_v37 = vadd.f32 %v1212_v1, %v293_v29  ;;  %v295_v38 = vmul.f32 %v1202_v0, %v224_v24 }
  0x3c   : > { %v296_v39 = vmul.f32 %v1202_v0, %v225_v25  ;;  %v1074_v41 = vpack.c.bf16 %v425_v32, %v424_v27  ;;  %v427_v42 = vmax.f32 %v363_v33, 0.0  ;;  %v365_v43 = vadd.f32 %v1212_v1, %v294_v34 }
  0x3d   : > { %1141 = vst [vmem:[%s1244_s26 + $0xa8] sm:$0xff] %v1069_v31   ;;  %v297_v44 = vmul.f32 %v1202_v0, %v226_v30  ;;  %v428_v46 = vmax.f32 %v364_v37, 0.0  ;;  %v366_v47 = vadd.f32 %v1212_v1, %v295_v38  ;;  %v298_v49 = vmul.f32 %v1202_v0, %v227_v35 }
  0x3e   : > { %v367_v48 = vadd.f32 %v1212_v1, %v296_v39  ;;  %1142 = vst [vmem:[%s1244_s26 + $0xb0] sm:$0xff] %v1074_v41   ;;  %v1079_v51 = vpack.c.bf16 %v427_v42, %v426_v36  ;;  %v429_v52 = vmax.f32 %v365_v43, 0.0  ;;  %v299_v54 = vmul.f32 %v1202_v0, %v228_v40 }
  0x3f   : > { %v368_v53 = vadd.f32 %v1212_v1, %v297_v44  ;;  %v430_v56 = vmax.f32 %v366_v47, 0.0  ;;  %v369_v58 = vadd.f32 %v1212_v1, %v298_v49  ;;  %v300_v59 = vmul.f32 %v1202_v0, %v229_v45 }
  0x40   : > { %v431_v57 = vmax.f32 %v367_v48, 0.0  ;;  %1143 = vst [vmem:[%s1244_s26 + $0xb8] sm:$0xff] %v1079_v51   ;;  %v1084_v62 = vpack.c.bf16 %v429_v52, %v428_v46  ;;  %v370_v2 = vadd.f32 %v1212_v1, %v299_v54  ;;  %v301_v3 = vmul.f32 %v1202_v0, %v230_v50 }
  0x41   : > { %v432_v63 = vmax.f32 %v368_v53, 0.0  ;;  %v433_v6 = vmax.f32 %v369_v58, 0.0  ;;  %v371_v7 = vadd.f32 %v1212_v1, %v300_v59  ;;  %v302_v8 = vmul.f32 %v1202_v0, %v231_v55 }
  0x42   : > { %v1089_v5 = vpack.c.bf16 %v431_v57, %v430_v56  ;;  %1144 = vst [vmem:[%s1244_s26 + $0xc0] sm:$0xff] %v1084_v62   ;;  %v434_v10 = vmax.f32 %v370_v2, 0.0  ;;  %v372_v11 = vadd.f32 %v1212_v1, %v301_v3  ;;  %v303_v12 = vmul.f32 %v1202_v0, %v232_v60 }
  0x43   : > { %v304_v13 = vmul.f32 %v1202_v0, %v233_v61  ;;  %v1094_v15 = vpack.c.bf16 %v433_v6, %v432_v63  ;;  %v435_v16 = vmax.f32 %v371_v7, 0.0  ;;  %v373_v17 = vadd.f32 %v1212_v1, %v302_v8 }
  0x44   : > { %1145 = vst [vmem:[%s1244_s26 + $0xc8] sm:$0xff] %v1089_v5   ;;  %v305_v18 = vmul.f32 %v1202_v0, %v234_v4  ;;  %v436_v20 = vmax.f32 %v372_v11, 0.0  ;;  %v374_v21 = vadd.f32 %v1212_v1, %v303_v12  ;;  %v306_v23 = vmul.f32 %v1202_v0, %v235_v9 }
  0x45   : > { %v375_v22 = vadd.f32 %v1212_v1, %v304_v13  ;;  %1146 = vst [vmem:[%s1244_s26 + $0xd0] sm:$0xff] %v1094_v15   ;;  %v1099_v24 = vpack.c.bf16 %v435_v16, %v434_v10  ;;  %v437_v25 = vmax.f32 %v373_v17, 0.0  ;;  %v307_v27 = vmul.f32 %v1202_v0, %v236_v14 }
  0x46   : > { %v376_v26 = vadd.f32 %v1212_v1, %v305_v18  ;;  %v438_v28 = vmax.f32 %v374_v21, 0.0  ;;  %v377_v30 = vadd.f32 %v1212_v1, %v306_v23  ;;  %v308_v31 = vmul.f32 %v1202_v0, %v237_v19 }
  0x47   : > { %v439_v29 = vmax.f32 %v375_v22, 0.0  ;;  %1147 = vst [vmem:[%s1244_s26 + $0xd8] sm:$0xff] %v1099_v24   ;;  %v1104_v32 = vpack.c.bf16 %v437_v25, %v436_v20  ;;  %v378_v34 = vadd.f32 %v1212_v1, %v307_v27 }
  0x48   : > { %v440_v33 = vmax.f32 %v376_v26, 0.0  ;;  %v441_v36 = vmax.f32 %v377_v30, 0.0  ;;  %v379_v37 = vadd.f32 %v1212_v1, %v308_v31 }
  0x49   : > { %v1109_v35 = vpack.c.bf16 %v439_v29, %v438_v28  ;;  %1148 = vst [vmem:[%s1244_s26 + $0xe0] sm:$0xff] %v1104_v32   ;;  %v442_v38 = vmax.f32 %v378_v34, 0.0 }
  0x4a   : > { %v1114_v39 = vpack.c.bf16 %v441_v36, %v440_v33  ;;  %v443_v40 = vmax.f32 %v379_v37, 0.0 }
  0x4b   : > { %1149 = vst [vmem:[%s1244_s26 + $0xe8] sm:$0xff] %v1109_v35  }
  0x4c   : > { %1150 = vst [vmem:[%s1244_s26 + $0xf0] sm:$0xff] %v1114_v39   ;;  %v1119_v41 = vpack.c.bf16 %v443_v40, %v442_v38 }
  0x4e   : > { %1151 = vst [vmem:[%s1244_s26 + $0xf8] sm:$0xff] %v1119_v41  }
  0x4f PF: > { %s13_s12 = sadd.s32 1, %s1166_s12  }
  0x50   : > { %p10_p4 = scmp.ge.s32.totalorder %s13_s12, 6  }
  0x52   :  { %12 = sbr.rel (!%p10_p4) target bundleno = 1 (0x1), region = 62 }

// kernel: generator_forward.23
= control target key start
LH: loop header
LB: loop body
LE: loop exit
PB: predicated region body
PF: predicated region fallthrough
CT: control target
= control target key end

     0   :  { %s1493_s9 = smov 0   ;;  %s1495_s10 = smov 0   ;;  %s1881_s0 = inlined_call_operand.vmem [shape: bf16[1792,128], index: 0, kind: input, shape index: {}]   ;;  %s1882_s1 = inlined_call_operand.vmem [shape: bf16[128,1024], index: 1, kind: input, shape index: {}]   ;;  %s1883_s2 = inlined_call_operand.vmem [shape: f32[1792,1024], index: 2, kind: output, shape index: {}]  }
   0x1   :  { %s1497_s11 = smov 0   ;;  %s1499_s12 = smov 0  }
   0x2   :  { %s1501_s13 = smov 0   ;;  %s1503_s14 = smov 0  }
   0x3   :  { %s1505_s15 = smov 0   ;;  %s1507_s16 = smov 0  }
   0x4   :  { %s1509_s17 = smov 0  }
   0x5 LB: > { %s1222_s18 = sadd.s32 4294967295, %s1475_s17   ;;  %s27_s19 = sadd.s32 1, %s1467_s15  ;;  %s1475_s17 = sphi %s1509_s17, %s12_s17   ;;  %s1471_s16 = sphi %s1507_s16, %s1892_s16   ;;  %s1467_s15 = sphi %s1505_s15, %s1891_s15   ;;  %s1463_s14 = sphi %s1503_s14, %s1890_s14   ;;  %s1459_s13 = sphi %s1501_s13, %s1889_s13   ;;  %s1455_s12 = sphi %s1499_s12, %s1888_s12   ;;  %s1451_s11 = sphi %s1497_s11, %s1887_s11   ;;  %s1447_s10 = sphi %s1495_s10, %s1886_s10   ;;  %s1443_s9 = sphi %s1493_s9, %s1885_s9  }
   0x6   : > { %p29_p0 = scmp.ge.s32.totalorder %s27_s19, 4  ;;  %s31_s20 = sadd.s32 1, %s1471_s16 }
   0x7   : > { %s68_s21 = sadd.s32 1, %s1455_s12  ;;  %p75_p1 = scmp.ne.s32.totalorder %s1455_s12, %s1451_s11 }
   0x8   : > { %s1894_s19 = smov (%p29_p0, %s27_s19), 0  ;;  %s1896_s20 = smov (!%p29_p0, %s31_s20), %s1471_s16 }
   0x9   : > { %s64_s22 = ssub.s32 %s1467_s15, %s1894_s19  ;;  %p76_p2 = scmp.eq.s32.totalorder %s1475_s17, 0 }
   0xa   : > { %p33_p3 = scmp.ge.s32.totalorder %s1896_s20, 7  ;;  %p66_p4 = scmp.eq.s32.totalorder %s64_s22, 0 }
   0xb   : > { %p77_p5 = por %p76_p2, %p75_p1  ;;  %s96_s23 = sadd.s32 1, %s1447_s10 }
   0xc   : > { %s1898_s20 = smov (%p33_p3, %s1896_s20), 0  ;;  %p106_p6 = scmp.ne.s32.totalorder %s1447_s10, %s1443_s9 }
   0xd   : > { %s1554_s24 = scalar_select %p66_p4, %s1455_s12, %s68_s21  }
   0xe   : > { %s91_s25 = ssub.s32 %s1471_s16, %s1898_s20  ;;  %p107_p7 = scmp.eq.s32.totalorder %s1222_s18, 27 }
   0xf   : > { %s93_s26 = sor.u32 %s91_s25, %s64_s22  ;;  %p1225_p10 = scmp.ge.s32.totalorder %s1475_s17, 28 }
  0x10   : > { %p94_p8 = scmp.eq.s32.totalorder %s93_s26, 0  ;;  %p1560_p9 = por %p107_p7, %p106_p6 }
  0x11   : > { %129 = sbr.rel (%p1225_p10) target bundleno = 44 (0x2c), region = 16 }
  0x12   : > { %s1565_s28 = scalar_select %p94_p8, %s1447_s10, %s96_s23  }
  0x18   : > { %144 = sbr.rel (!%p77_p5) target bundleno = 44 (0x2c), region = 24  ;;  %s146_s29 = sand.u32 (%p77_p5), 1, %s1455_s12  }
  0x19   : > { %s1273_s30 = sshll.u32 (%p77_p5), %s1467_s15, 3  ;;  %s1226_s3 = sshll.u32 (%p77_p5), %s146_s29, 7 }
  0x1a   : > { %s1573_s6 = scalar_lea.vmem (%p77_p5), %s1882_s1, %s1273_s30  ;;  %s148_s7 = scalar_lea.vmem (%p77_p5), [#allocation2], %s1226_s3 }
  0x1b   : > { %v212_v0 = vld [vmem:[%s1573_s6] sm:$0xff] (%p77_p5) }
  0x1c   : > { %v214_v1 = vld [vmem:[%s1573_s6 + $0x20] sm:$0xff] (%p77_p5)  ;;  %213 = vst [vmem:[%s148_s7] sm:$0xff] (%p77_p5), %v212_v0 }
  0x1d   : > { %v216_v2 = vld [vmem:[%s1573_s6 + $0x40] sm:$0xff] (%p77_p5)  ;;  %215 = vst [vmem:[%s148_s7 + $0x8] sm:$0xff] (%p77_p5), %v214_v1 }
  0x1e   : > { %217 = vst [vmem:[%s148_s7 + $0x10] sm:$0xff] (%p77_p5), %v216_v2  ;;  %v218_v3 = vld [vmem:[%s1573_s6 + $0x60] sm:$0xff] (%p77_p5) }
  0x1f   : > { %v220_v4 = vld [vmem:[%s1573_s6 + $0x80] sm:$0xff]  ;;  %219 = vst [vmem:[%s148_s7 + $0x18] sm:$0xff] %v218_v3 }
  0x20   : > { %v222_v5 = vld [vmem:[%s1573_s6 + $0xa0] sm:$0xff]  ;;  %221 = vst [vmem:[%s148_s7 + $0x20] sm:$0xff] %v220_v4 }
  0x21   : > { %223 = vst [vmem:[%s148_s7 + $0x28] sm:$0xff] %v222_v5  ;;  %v224_v6 = vld [vmem:[%s1573_s6 + $0xc0] sm:$0xff] }
  0x22   : > { %v226_v7 = vld [vmem:[%s1573_s6 + $0xe0] sm:$0xff]  ;;  %225 = vst [vmem:[%s148_s7 + $0x30] sm:$0xff] %v224_v6 }
  0x23   : > { %v228_v8 = vld [vmem:[%s1573_s6 + $0x100] sm:$0xff]  ;;  %227 = vst [vmem:[%s148_s7 + $0x38] sm:$0xff] %v226_v7 }
  0x24   : > { %229 = vst [vmem:[%s148_s7 + $0x40] sm:$0xff] %v228_v8  ;;  %v230_v9 = vld [vmem:[%s1573_s6 + $0x120] sm:$0xff] }
  0x25   : > { %v232_v10 = vld [vmem:[%s1573_s6 + $0x140] sm:$0xff]  ;;  %231 = vst [vmem:[%s148_s7 + $0x48] sm:$0xff] %v230_v9 }
  0x26   : > { %v234_v11 = vld [vmem:[%s1573_s6 + $0x160] sm:$0xff]  ;;  %233 = vst [vmem:[%s148_s7 + $0x50] sm:$0xff] %v232_v10 }
  0x27   : > { %235 = vst [vmem:[%s148_s7 + $0x58] sm:$0xff] %v234_v11  ;;  %v236_v12 = vld [vmem:[%s1573_s6 + $0x180] sm:$0xff] }
  0x28   : > { %v238_v13 = vld [vmem:[%s1573_s6 + $0x1a0] sm:$0xff]  ;;  %237 = vst [vmem:[%s148_s7 + $0x60] sm:$0xff] %v236_v12 }
  0x29   : > { %v240_v14 = vld [vmem:[%s1573_s6 + $0x1c0] sm:$0xff]  ;;  %239 = vst [vmem:[%s148_s7 + $0x68] sm:$0xff] %v238_v13 }
  0x2a   : > { %241 = vst [vmem:[%s148_s7 + $0x70] sm:$0xff] %v240_v14  ;;  %v242_v15 = vld [vmem:[%s1573_s6 + $0x1e0] sm:$0xff] }
  0x2b   : > { %243 = vst [vmem:[%s148_s7 + $0x78] sm:$0xff] %v242_v15 }
  0x2c PF: > { %p1229_p11 = scmp.ge.s32.totalorder %s1475_s17, 1  ;;  %p248_p12 = scmp.lt.s32.totalorder %s1475_s17, 29 }
  0x2e   : > { %p249_p13 = pnand %p1229_p11, %p248_p12 }
  0x2f   : > { %s255_s8 = sand.u32 (!%p249_p13), 1, %s1451_s11   ;;  %s1232_s18 = sshll.u32 (!%p249_p13), %s1463_s14, 5  ;;  %v1477_v16 = vmov (!%p249_p13), 0  }
  0x30   : > { %252 = sbr.rel (%p249_p13) target bundleno = 369 (0x171), region = 62  ;;  %s1230_s21 = sshll.u32 (!%p249_p13), %s255_s8, 7  ;;  %685 = vmatprep.mubr.bf16.mxu0 (!%p249_p13), %v1477_v16  ;;  %765 = vmatprep.mubr.bf16.mxu1 (!%p249_p13), %v1477_v16 }
  0x31   : > { %p284_p0 = scmp.lt.s32.totalorder (!%p249_p13), %s1232_s18, 223  ;;  %s1597_s22 = scalar_lea.vmem (!%p249_p13), [#allocation2], %s1230_s21 }
  0x32   : > { %v1365_v17 = vld [vmem:[%s1597_s22 + $0x4] ss:$8 sps:$4 sm:$0xff] (!%p249_p13)   ;;  %v1367_v18 = vld [vmem:[%s1597_s22] ss:$8 sps:$4 sm:$0xff] (!%p249_p13)   ;;  %v1368_v19 = vld [vmem:[%s1597_s22 + $0x14] ss:$8 sps:$4 sm:$0xff] (!%p249_p13)  }
  0x33   : > { %653 = vmatprep.subr.bf16.mxu0 (!%p249_p13), %v1365_v17  ;;  %1275 = vmatprep.subr.bf16.mxu1 (!%p249_p13), %v1365_v17  ;;  %v1370_v20 = vld [vmem:[%s1597_s22 + $0x10] ss:$8 sps:$4 sm:$0xff] (!%p249_p13)   ;;  %v1371_v21 = vld [vmem:[%s1597_s22 + $0x24] ss:$8 sps:$4 sm:$0xff] (!%p249_p13)   ;;  %v1373_v22 = vld [vmem:[%s1597_s22 + $0x20] ss:$8 sps:$4 sm:$0xff] (!%p249_p13)  }
  0x34   : > { %654 = vmatpush1.bf16.msra.mxu0 (!%p249_p13), %v1367_v18  ;;  %1283 = vmatpush1.bf16.msra.mxu1 (!%p249_p13), %v1367_v18  ;;  %v1374_v23 = vld [vmem:[%s1597_s22 + $0x34] ss:$8 sps:$4 sm:$0xff] (!%p249_p13)   ;;  %v1376_v24 = vld [vmem:[%s1597_s22 + $0x30] ss:$8 sps:$4 sm:$0xff] (!%p249_p13)   ;;  %v1377_v25 = vld [vmem:[%s1597_s22 + $0x44] ss:$8 sps:$4 sm:$0xff] (!%p249_p13)  }
  0x35   : > { %655 = vmatprep.subr.bf16.mxu0 (!%p249_p13), %v1368_v19  ;;  %1276 = vmatprep.subr.bf16.mxu1 (!%p249_p13), %v1368_v19  ;;  %v1379_v26 = vld [vmem:[%s1597_s22 + $0x40] ss:$8 sps:$4 sm:$0xff] (!%p249_p13)   ;;  %v1380_v27 = vld [vmem:[%s1597_s22 + $0x54] ss:$8 sps:$4 sm:$0xff] (!%p249_p13)   ;;  %v1382_v28 = vld [vmem:[%s1597_s22 + $0x50] ss:$8 sps:$4 sm:$0xff] (!%p249_p13)  }
  0x36   : > { %v1383_v29 = vld [vmem:[%s1597_s22 + $0x64] ss:$8 sps:$4 sm:$0xff] (!%p249_p13)   ;;  %v1385_v30 = vld [vmem:[%s1597_s22 + $0x60] ss:$8 sps:$4 sm:$0xff] (!%p249_p13)   ;;  %v1386_v31 = vld [vmem:[%s1597_s22 + $0x74] ss:$8 sps:$4 sm:$0xff] (!%p249_p13)  }
  0x37   : > { %s1900_s18 = smov (!%p284_p0, %s1232_s18), 223  ;;  %v1388_v32 = vld [vmem:[%s1597_s22 + $0x70] ss:$8 sps:$4 sm:$0xff]   ;;  %s280_s29 = sand.u32 1, %s1443_s9  }
  0x38   : > { %s1233_s11 = sshll.u32 %s1900_s18, 2  ;;  %656 = vmatpush1.bf16.msra.mxu0 %v1370_v20  ;;  %1284 = vmatpush1.bf16.msra.mxu1 %v1370_v20  ;;  %s1231_s30 = sshll.u32 %s280_s29, 9 }
  0x39   : > { %657 = vmatprep.subr.bf16.mxu0 %v1371_v21  ;;  %1277 = vmatprep.subr.bf16.mxu1 %v1371_v21  ;;  %s1609_s26 = scalar_lea.vmem %s1881_s0, %s1233_s11  ;;  %s1651_s3 = scalar_lea.vmem [#allocation3], %s1231_s30 }
  0x3a   : > { %v1389_v33 = vld [vmem:[%s1609_s26] sm:$0xff]   ;;  %v1391_v35 = vld [vmem:[%s1609_s26 + $0x8] sm:$0xff]   ;;  %v1393_v37 = vld [vmem:[%s1609_s26 + $0x10] sm:$0xff]   ;;  %s1268_s9 = sshll.u32 (%p1560_p9), %s1459_s13, 1  ;;  %s1274_s4 = sshll.u32 (%p1560_p9), %s1463_s14, 8 }
  0x3b   : > { %v1390_v34 = vld [vmem:[%s1609_s26 + $0x40] sm:$0xff]   ;;  %v1392_v36 = vld [vmem:[%s1609_s26 + $0x48] sm:$0xff]   ;;  %v1394_v38 = vld [vmem:[%s1609_s26 + $0x50] sm:$0xff]   ;;  %s984_s27 = sadd.s32 (%p1560_p9), %s1274_s4, %s1268_s9 }
  0x3c   : > { %658 = vmatpush1.bf16.msra.mxu0 %v1373_v22  ;;  %1285 = vmatpush1.bf16.msra.mxu1 %v1373_v22  ;;  %v1395_v39 = vld [vmem:[%s1609_s26 + $0x18] sm:$0xff]   ;;  %v1397_v41 = vld [vmem:[%s1609_s26 + $0x20] sm:$0xff]   ;;  %v1399_v43 = vld [vmem:[%s1609_s26 + $0x28] sm:$0xff]   ;;  %s1270_s5 = sshll.u32 (%p1560_p9), %s984_s27, 3 }
  0x3d   : > { %659 = vmatprep.subr.bf16.mxu0 %v1374_v23  ;;  %1278 = vmatprep.subr.bf16.mxu1 %v1374_v23  ;;  %v1396_v40 = vld [vmem:[%s1609_s26 + $0x58] sm:$0xff]   ;;  %v1398_v42 = vld [vmem:[%s1609_s26 + $0x60] sm:$0xff]   ;;  %v1400_v44 = vld [vmem:[%s1609_s26 + $0x68] sm:$0xff]   ;;  %s1733_s8 = scalar_lea.vmem (%p1560_p9), %s1883_s2, %s1270_s5 }
  0x3e   : > { %v1401_v45 = vld [vmem:[%s1609_s26 + $0x30] sm:$0xff]   ;;  %v1403_v47 = vld [vmem:[%s1609_s26 + $0x38] sm:$0xff]  }
  0x3f   : > { %v1402_v46 = vld [vmem:[%s1609_s26 + $0x70] sm:$0xff]   ;;  %v1404_v48 = vld [vmem:[%s1609_s26 + $0x78] sm:$0xff]  }
  0x40   : > { %660 = vmatpush1.bf16.msra.mxu0 %v1376_v24  ;;  %1286 = vmatpush1.bf16.msra.mxu1 %v1376_v24 }
  0x41   : > { %661 = vmatprep.subr.bf16.mxu0 %v1377_v25  ;;  %1279 = vmatprep.subr.bf16.mxu1 %v1377_v25 }
  0x44   : > { %662 = vmatpush1.bf16.msra.mxu0 %v1379_v26  ;;  %1287 = vmatpush1.bf16.msra.mxu1 %v1379_v26 }
  0x45   : > { %663 = vmatprep.subr.bf16.mxu0 %v1380_v27  ;;  %1280 = vmatprep.subr.bf16.mxu1 %v1380_v27 }
  0x48   : > { %664 = vmatpush1.bf16.msra.mxu0 %v1382_v28  ;;  %1288 = vmatpush1.bf16.msra.mxu1 %v1382_v28 }
  0x49   : > { %665 = vmatprep.subr.bf16.mxu0 %v1383_v29  ;;  %1281 = vmatprep.subr.bf16.mxu1 %v1383_v29 }
  0x4c   : > { %666 = vmatpush1.bf16.msra.mxu0 %v1385_v30  ;;  %1289 = vmatpush1.bf16.msra.mxu1 %v1385_v30 }
  0x4d   : > { %667 = vmatprep.subr.bf16.mxu0 %v1386_v31  ;;  %1282 = vmatprep.subr.bf16.mxu1 %v1386_v31 }
  0x50   : > { %668 = vmatpush1.bf16.msra.mxu0 %v1388_v32  ;;  %1290 = vmatpush1.bf16.msra.mxu1 %v1388_v32 }
  0x53   : > { %686 = vmatmul.mubr.bf16.vlgmr.msra.gmra.mrb[0].mxu0 %v1389_v33  ;;  %766 = vmatmul.mubr.bf16.vlgmr.msra.gmra.mrb[0].mxu1 %v1390_v34 }
  0x54   : > { %695 = vmatprep.mubr.bf16.mxu0 %v1477_v16  ;;  %775 = vmatprep.mubr.bf16.mxu1 %v1477_v16 }
  0x5b   : > { %696 = vmatmul.mubr.bf16.gmra.mrb[4].mxu0 %v1391_v35  ;;  %776 = vmatmul.mubr.bf16.gmra.mrb[4].mxu1 %v1392_v36 }
  0x5c   : > { %705 = vmatprep.mubr.bf16.mxu0 %v1477_v16  ;;  %785 = vmatprep.mubr.bf16.mxu1 %v1477_v16 }
  0x63   : > { %706 = vmatmul.mubr.bf16.gmra.mrb[8].mxu0 %v1393_v37  ;;  %786 = vmatmul.mubr.bf16.gmra.mrb[8].mxu1 %v1394_v38 }
  0x64   : > { %715 = vmatprep.mubr.bf16.mxu0 %v1477_v16  ;;  %795 = vmatprep.mubr.bf16.mxu1 %v1477_v16 }
  0x6b   : > { %716 = vmatmul.mubr.bf16.gmra.mrb[12].mxu0 %v1395_v39  ;;  %796 = vmatmul.mubr.bf16.gmra.mrb[12].mxu1 %v1396_v40 }
  0x6c   : > { %725 = vmatprep.mubr.bf16.mxu0 %v1477_v16  ;;  %805 = vmatprep.mubr.bf16.mxu1 %v1477_v16 }
  0x73   : > { %726 = vmatmul.mubr.bf16.gmra.mrb[16].mxu0 %v1397_v41  ;;  %806 = vmatmul.mubr.bf16.gmra.mrb[16].mxu1 %v1398_v42 }
  0x74   : > { %735 = vmatprep.mubr.bf16.mxu0 %v1477_v16  ;;  %815 = vmatprep.mubr.bf16.mxu1 %v1477_v16 }
  0x7b   : > { %736 = vmatmul.mubr.bf16.gmra.mrb[20].mxu0 %v1399_v43  ;;  %816 = vmatmul.mubr.bf16.gmra.mrb[20].mxu1 %v1400_v44 }
  0x7c   : > { %745 = vmatprep.mubr.bf16.mxu0 %v1477_v16  ;;  %825 = vmatprep.mubr.bf16.mxu1 %v1477_v16 }
  0x83   : > { %746 = vmatmul.mubr.bf16.gmra.mrb[24].mxu0 %v1401_v45  ;;  %826 = vmatmul.mubr.bf16.gmra.mrb[24].mxu1 %v1402_v46 }
  0x84   : > { %755 = vmatprep.mubr.bf16.mxu0 %v1477_v16  ;;  %835 = vmatprep.mubr.bf16.mxu1 %v1477_v16 }
  0x8b   : > { %756 = vmatmul.mubr.bf16.gmra.mrb[28].mxu0 %v1403_v47  ;;  %836 = vmatmul.mubr.bf16.gmra.mrb[28].mxu1 %v1404_v48 }
 0x126   : > { %v687_v49 = vpop.f32.mrb[0].mxu0  ;;  %v767_v50 = vpop.f32.mrb[0].mxu1 }
 0x127   : > { %v689_v51 = vpop.f32.mrb[1].mxu0  ;;  %v769_v52 = vpop.f32.mrb[1].mxu1  ;;  %910 = vst [vmem:[%s1651_s3] sm:$0xff] %v687_v49  ;;  %942 = vst [vmem:[%s1651_s3 + $0x100] sm:$0xff] %v767_v50 }
 0x128   : > { %v691_v53 = vpop.f32.mrb[2].mxu0  ;;  %v771_v54 = vpop.f32.mrb[2].mxu1  ;;  %911 = vst [vmem:[%s1651_s3 + $0x8] sm:$0xff] %v689_v51  ;;  %943 = vst [vmem:[%s1651_s3 + $0x108] sm:$0xff] %v769_v52 }
 0x129   : > { %v693_v55 = vpop.f32.mrb[3].mxu0  ;;  %v773_v56 = vpop.f32.mrb[3].mxu1  ;;  %912 = vst [vmem:[%s1651_s3 + $0x10] sm:$0xff] %v691_v53  ;;  %944 = vst [vmem:[%s1651_s3 + $0x110] sm:$0xff] %v771_v54 }
 0x12a   : > { %913 = vst [vmem:[%s1651_s3 + $0x18] sm:$0xff] %v693_v55  ;;  %945 = vst [vmem:[%s1651_s3 + $0x118] sm:$0xff] %v773_v56 }
 0x12e   : > { %v697_v57 = vpop.f32.mrb[4].mxu0  ;;  %v777_v58 = vpop.f32.mrb[4].mxu1  ;;  %v999_v49 = vld [vmem:[%s1651_s3] sm:$0xff] (%p1560_p9) }
 0x12f   : > { %v699_v59 = vpop.f32.mrb[5].mxu0  ;;  %v779_v60 = vpop.f32.mrb[5].mxu1  ;;  %914 = vst [vmem:[%s1651_s3 + $0x20] sm:$0xff] %v697_v57  ;;  %946 = vst [vmem:[%s1651_s3 + $0x120] sm:$0xff] %v777_v58  ;;  %v1001_v50 = vld [vmem:[%s1651_s3 + $0x8] sm:$0xff] (%p1560_p9) }
 0x130   : > { %v701_v61 = vpop.f32.mrb[6].mxu0  ;;  %v781_v62 = vpop.f32.mrb[6].mxu1  ;;  %915 = vst [vmem:[%s1651_s3 + $0x28] sm:$0xff] %v699_v59  ;;  %947 = vst [vmem:[%s1651_s3 + $0x128] sm:$0xff] %v779_v60  ;;  %v1003_v51 = vld [vmem:[%s1651_s3 + $0x10] sm:$0xff] (%p1560_p9) }
 0x131   : > { %v703_v63 = vpop.f32.mrb[7].mxu0  ;;  %v783_v0 = vpop.f32.mrb[7].mxu1  ;;  %916 = vst [vmem:[%s1651_s3 + $0x30] sm:$0xff] %v701_v61  ;;  %948 = vst [vmem:[%s1651_s3 + $0x130] sm:$0xff] %v781_v62  ;;  %v1005_v52 = vld [vmem:[%s1651_s3 + $0x18] sm:$0xff] (%p1560_p9) }
 0x132   : > { %917 = vst [vmem:[%s1651_s3 + $0x38] sm:$0xff] %v703_v63  ;;  %949 = vst [vmem:[%s1651_s3 + $0x138] sm:$0xff] %v783_v0 }
 0x133   : > { %1000 = vst [vmem:[%s1733_s8] sm:$0xff] (%p1560_p9), %v999_v49  ;;  %1002 = vst [vmem:[%s1733_s8 + $0x8] sm:$0xff] (%p1560_p9), %v1001_v50 }
 0x134   : > { %1004 = vst [vmem:[%s1733_s8 + $0x40] sm:$0xff] (%p1560_p9), %v1003_v51  ;;  %1006 = vst [vmem:[%s1733_s8 + $0x48] sm:$0xff] (%p1560_p9), %v1005_v52 }
 0x136   : > { %v707_v1 = vpop.f32.mrb[8].mxu0  ;;  %v787_v2 = vpop.f32.mrb[8].mxu1  ;;  %v1007_v53 = vld [vmem:[%s1651_s3 + $0x20] sm:$0xff] (%p1560_p9) }
 0x137   : > { %v709_v3 = vpop.f32.mrb[9].mxu0  ;;  %v789_v4 = vpop.f32.mrb[9].mxu1  ;;  %918 = vst [vmem:[%s1651_s3 + $0x40] sm:$0xff] %v707_v1  ;;  %950 = vst [vmem:[%s1651_s3 + $0x140] sm:$0xff] %v787_v2  ;;  %v1009_v54 = vld [vmem:[%s1651_s3 + $0x28] sm:$0xff] (%p1560_p9) }
 0x138   : > { %v711_v5 = vpop.f32.mrb[10].mxu0  ;;  %v791_v6 = vpop.f32.mrb[10].mxu1  ;;  %919 = vst [vmem:[%s1651_s3 + $0x48] sm:$0xff] %v709_v3  ;;  %951 = vst [vmem:[%s1651_s3 + $0x148] sm:$0xff] %v789_v4  ;;  %v1011_v55 = vld [vmem:[%s1651_s3 + $0x30] sm:$0xff] (%p1560_p9) }
 0x139   : > { %v713_v7 = vpop.f32.mrb[11].mxu0  ;;  %v793_v8 = vpop.f32.mrb[11].mxu1  ;;  %920 = vst [vmem:[%s1651_s3 + $0x50] sm:$0xff] %v711_v5  ;;  %952 = vst [vmem:[%s1651_s3 + $0x150] sm:$0xff] %v791_v6  ;;  %v1013_v56 = vld [vmem:[%s1651_s3 + $0x38] sm:$0xff] (%p1560_p9) }
 0x13a   : > { %921 = vst [vmem:[%s1651_s3 + $0x58] sm:$0xff] %v713_v7  ;;  %953 = vst [vmem:[%s1651_s3 + $0x158] sm:$0xff] %v793_v8 }
 0x13b   : > { %1008 = vst [vmem:[%s1733_s8 + $0x80] sm:$0xff] (%p1560_p9), %v1007_v53  ;;  %1010 = vst [vmem:[%s1733_s8 + $0x88] sm:$0xff] (%p1560_p9), %v1009_v54 }
 0x13c   : > { %1012 = vst [vmem:[%s1733_s8 + $0xc0] sm:$0xff] (%p1560_p9), %v1011_v55  ;;  %1014 = vst [vmem:[%s1733_s8 + $0xc8] sm:$0xff] (%p1560_p9), %v1013_v56 }
 0x13e   : > { %v717_v9 = vpop.f32.mrb[12].mxu0  ;;  %v797_v10 = vpop.f32.mrb[12].mxu1  ;;  %v1015_v57 = vld [vmem:[%s1651_s3 + $0x40] sm:$0xff] (%p1560_p9) }
 0x13f   : > { %v719_v11 = vpop.f32.mrb[13].mxu0  ;;  %v799_v12 = vpop.f32.mrb[13].mxu1  ;;  %922 = vst [vmem:[%s1651_s3 + $0x60] sm:$0xff] %v717_v9  ;;  %954 = vst [vmem:[%s1651_s3 + $0x160] sm:$0xff] %v797_v10  ;;  %v1017_v58 = vld [vmem:[%s1651_s3 + $0x48] sm:$0xff] (%p1560_p9) }
 0x140   : > { %v721_v13 = vpop.f32.mrb[14].mxu0  ;;  %v801_v14 = vpop.f32.mrb[14].mxu1  ;;  %923 = vst [vmem:[%s1651_s3 + $0x68] sm:$0xff] %v719_v11  ;;  %955 = vst [vmem:[%s1651_s3 + $0x168] sm:$0xff] %v799_v12  ;;  %v1019_v59 = vld [vmem:[%s1651_s3 + $0x50] sm:$0xff] (%p1560_p9) }
 0x141   : > { %v723_v15 = vpop.f32.mrb[15].mxu0  ;;  %v803_v16 = vpop.f32.mrb[15].mxu1  ;;  %924 = vst [vmem:[%s1651_s3 + $0x70] sm:$0xff] %v721_v13  ;;  %956 = vst [vmem:[%s1651_s3 + $0x170] sm:$0xff] %v801_v14  ;;  %v1021_v60 = vld [vmem:[%s1651_s3 + $0x58] sm:$0xff] (%p1560_p9) }
 0x142   : > { %925 = vst [vmem:[%s1651_s3 + $0x78] sm:$0xff] %v723_v15  ;;  %957 = vst [vmem:[%s1651_s3 + $0x178] sm:$0xff] %v803_v16 }
 0x143   : > { %1016 = vst [vmem:[%s1733_s8 + $0x100] sm:$0xff] (%p1560_p9), %v1015_v57  ;;  %1018 = vst [vmem:[%s1733_s8 + $0x108] sm:$0xff] (%p1560_p9), %v1017_v58 }
 0x144   : > { %1020 = vst [vmem:[%s1733_s8 + $0x140] sm:$0xff] (%p1560_p9), %v1019_v59  ;;  %1022 = vst [vmem:[%s1733_s8 + $0x148] sm:$0xff] (%p1560_p9), %v1021_v60 }
 0x146   : > { %v727_v17 = vpop.f32.mrb[16].mxu0  ;;  %v807_v18 = vpop.f32.mrb[16].mxu1  ;;  %v1023_v61 = vld [vmem:[%s1651_s3 + $0x60] sm:$0xff] (%p1560_p9) }
 0x147   : > { %v729_v19 = vpop.f32.mrb[17].mxu0  ;;  %v809_v20 = vpop.f32.mrb[17].mxu1  ;;  %926 = vst [vmem:[%s1651_s3 + $0x80] sm:$0xff] %v727_v17  ;;  %958 = vst [vmem:[%s1651_s3 + $0x180] sm:$0xff] %v807_v18  ;;  %v1025_v62 = vld [vmem:[%s1651_s3 + $0x68] sm:$0xff] (%p1560_p9)  ;;  %v1063_v17 = vld [vmem:[%s1651_s3 + $0x100] sm:$0xff] (%p1560_p9) }
 0x148   : > { %v731_v21 = vpop.f32.mrb[18].mxu0  ;;  %v811_v22 = vpop.f32.mrb[18].mxu1  ;;  %927 = vst [vmem:[%s1651_s3 + $0x88] sm:$0xff] %v729_v19  ;;  %959 = vst [vmem:[%s1651_s3 + $0x188] sm:$0xff] %v809_v20  ;;  %v1027_v63 = vld [vmem:[%s1651_s3 + $0x70] sm:$0xff] (%p1560_p9)  ;;  %v1065_v18 = vld [vmem:[%s1651_s3 + $0x108] sm:$0xff] (%p1560_p9) }
 0x149   : > { %v733_v23 = vpop.f32.mrb[19].mxu0  ;;  %v813_v24 = vpop.f32.mrb[19].mxu1  ;;  %928 = vst [vmem:[%s1651_s3 + $0x90] sm:$0xff] %v731_v21  ;;  %960 = vst [vmem:[%s1651_s3 + $0x190] sm:$0xff] %v811_v22  ;;  %v1029_v0 = vld [vmem:[%s1651_s3 + $0x78] sm:$0xff] (%p1560_p9)  ;;  %v1067_v19 = vld [vmem:[%s1651_s3 + $0x110] sm:$0xff] (%p1560_p9) }
 0x14a   : > { %929 = vst [vmem:[%s1651_s3 + $0x98] sm:$0xff] %v733_v23  ;;  %961 = vst [vmem:[%s1651_s3 + $0x198] sm:$0xff] %v813_v24  ;;  %v1069_v20 = vld [vmem:[%s1651_s3 + $0x118] sm:$0xff] (%p1560_p9)  ;;  %v1071_v21 = vld [vmem:[%s1651_s3 + $0x120] sm:$0xff] (%p1560_p9) }
 0x14b   : > { %1024 = vst [vmem:[%s1733_s8 + $0x180] sm:$0xff] (%p1560_p9), %v1023_v61  ;;  %1026 = vst [vmem:[%s1733_s8 + $0x188] sm:$0xff] (%p1560_p9), %v1025_v62  ;;  %v1073_v22 = vld [vmem:[%s1651_s3 + $0x128] sm:$0xff] (%p1560_p9)  ;;  %v1075_v23 = vld [vmem:[%s1651_s3 + $0x130] sm:$0xff] (%p1560_p9) }
 0x14c   : > { %1028 = vst [vmem:[%s1733_s8 + $0x1c0] sm:$0xff] (%p1560_p9), %v1027_v63  ;;  %1030 = vst [vmem:[%s1733_s8 + $0x1c8] sm:$0xff] (%p1560_p9), %v1029_v0  ;;  %v1077_v24 = vld [vmem:[%s1651_s3 + $0x138] sm:$0xff] (%p1560_p9) }
 0x14d   : > { %1064 = vst [vmem:[%s1733_s8 + $0x400] sm:$0xff] (%p1560_p9), %v1063_v17  ;;  %1066 = vst [vmem:[%s1733_s8 + $0x408] sm:$0xff] (%p1560_p9), %v1065_v18 }
 0x14e   : > { %v737_v25 = vpop.f32.mrb[20].mxu0  ;;  %v817_v26 = vpop.f32.mrb[20].mxu1  ;;  %v1031_v1 = vld [vmem:[%s1651_s3 + $0x80] sm:$0xff] (%p1560_p9)  ;;  %1068 = vst [vmem:[%s1733_s8 + $0x440] sm:$0xff] (%p1560_p9), %v1067_v19  ;;  %1070 = vst [vmem:[%s1733_s8 + $0x448] sm:$0xff] (%p1560_p9), %v1069_v20 }
 0x14f   : > { %v739_v27 = vpop.f32.mrb[21].mxu0  ;;  %v819_v28 = vpop.f32.mrb[21].mxu1  ;;  %930 = vst [vmem:[%s1651_s3 + $0xa0] sm:$0xff] %v737_v25  ;;  %962 = vst [vmem:[%s1651_s3 + $0x1a0] sm:$0xff] %v817_v26  ;;  %v1033_v2 = vld [vmem:[%s1651_s3 + $0x88] sm:$0xff] (%p1560_p9)  ;;  %v1079_v25 = vld [vmem:[%s1651_s3 + $0x140] sm:$0xff] (%p1560_p9) }
 0x150   : > { %v741_v29 = vpop.f32.mrb[22].mxu0  ;;  %v821_v30 = vpop.f32.mrb[22].mxu1  ;;  %931 = vst [vmem:[%s1651_s3 + $0xa8] sm:$0xff] %v739_v27  ;;  %963 = vst [vmem:[%s1651_s3 + $0x1a8] sm:$0xff] %v819_v28  ;;  %v1035_v3 = vld [vmem:[%s1651_s3 + $0x90] sm:$0xff] (%p1560_p9)  ;;  %v1081_v26 = vld [vmem:[%s1651_s3 + $0x148] sm:$0xff] (%p1560_p9) }
 0x151   : > { %v743_v31 = vpop.f32.mrb[23].mxu0  ;;  %v823_v32 = vpop.f32.mrb[23].mxu1  ;;  %932 = vst [vmem:[%s1651_s3 + $0xb0] sm:$0xff] %v741_v29  ;;  %964 = vst [vmem:[%s1651_s3 + $0x1b0] sm:$0xff] %v821_v30  ;;  %v1037_v4 = vld [vmem:[%s1651_s3 + $0x98] sm:$0xff] (%p1560_p9)  ;;  %v1083_v27 = vld [vmem:[%s1651_s3 + $0x150] sm:$0xff] (%p1560_p9) }
 0x152   : > { %933 = vst [vmem:[%s1651_s3 + $0xb8] sm:$0xff] %v743_v31  ;;  %965 = vst [vmem:[%s1651_s3 + $0x1b8] sm:$0xff] %v823_v32  ;;  %v1085_v28 = vld [vmem:[%s1651_s3 + $0x158] sm:$0xff] (%p1560_p9)  ;;  %v1087_v29 = vld [vmem:[%s1651_s3 + $0x160] sm:$0xff] (%p1560_p9) }
 0x153   : > { %1032 = vst [vmem:[%s1733_s8 + $0x200] sm:$0xff] (%p1560_p9), %v1031_v1  ;;  %1034 = vst [vmem:[%s1733_s8 + $0x208] sm:$0xff] (%p1560_p9), %v1033_v2  ;;  %v1089_v30 = vld [vmem:[%s1651_s3 + $0x168] sm:$0xff] (%p1560_p9)  ;;  %v1091_v31 = vld [vmem:[%s1651_s3 + $0x170] sm:$0xff] (%p1560_p9) }
 0x154   : > { %1036 = vst [vmem:[%s1733_s8 + $0x240] sm:$0xff] (%p1560_p9), %v1035_v3  ;;  %1038 = vst [vmem:[%s1733_s8 + $0x248] sm:$0xff] (%p1560_p9), %v1037_v4  ;;  %v1093_v32 = vld [vmem:[%s1651_s3 + $0x178] sm:$0xff] (%p1560_p9) }
 0x155   : > { %1072 = vst [vmem:[%s1733_s8 + $0x480] sm:$0xff] (%p1560_p9), %v1071_v21  ;;  %1074 = vst [vmem:[%s1733_s8 + $0x488] sm:$0xff] (%p1560_p9), %v1073_v22 }
 0x156   : > { %v747_v33 = vpop.f32.mrb[24].mxu0  ;;  %v827_v34 = vpop.f32.mrb[24].mxu1  ;;  %v1039_v5 = vld [vmem:[%s1651_s3 + $0xa0] sm:$0xff] (%p1560_p9)  ;;  %1076 = vst [vmem:[%s1733_s8 + $0x4c0] sm:$0xff] (%p1560_p9), %v1075_v23  ;;  %1078 = vst [vmem:[%s1733_s8 + $0x4c8] sm:$0xff] (%p1560_p9), %v1077_v24 }
 0x157   : > { %v749_v35 = vpop.f32.mrb[25].mxu0  ;;  %v829_v36 = vpop.f32.mrb[25].mxu1  ;;  %934 = vst [vmem:[%s1651_s3 + $0xc0] sm:$0xff] %v747_v33  ;;  %966 = vst [vmem:[%s1651_s3 + $0x1c0] sm:$0xff] %v827_v34  ;;  %v1041_v6 = vld [vmem:[%s1651_s3 + $0xa8] sm:$0xff] (%p1560_p9)  ;;  %v1095_v33 = vld [vmem:[%s1651_s3 + $0x180] sm:$0xff] (%p1560_p9) }
 0x158   : > { %v751_v37 = vpop.f32.mrb[26].mxu0  ;;  %v831_v38 = vpop.f32.mrb[26].mxu1  ;;  %935 = vst [vmem:[%s1651_s3 + $0xc8] sm:$0xff] %v749_v35  ;;  %967 = vst [vmem:[%s1651_s3 + $0x1c8] sm:$0xff] %v829_v36  ;;  %v1043_v7 = vld [vmem:[%s1651_s3 + $0xb0] sm:$0xff] (%p1560_p9)  ;;  %v1097_v34 = vld [vmem:[%s1651_s3 + $0x188] sm:$0xff] (%p1560_p9) }
 0x159   : > { %v753_v39 = vpop.f32.mrb[27].mxu0  ;;  %v833_v40 = vpop.f32.mrb[27].mxu1  ;;  %936 = vst [vmem:[%s1651_s3 + $0xd0] sm:$0xff] %v751_v37  ;;  %968 = vst [vmem:[%s1651_s3 + $0x1d0] sm:$0xff] %v831_v38  ;;  %v1045_v8 = vld [vmem:[%s1651_s3 + $0xb8] sm:$0xff] (%p1560_p9)  ;;  %v1099_v35 = vld [vmem:[%s1651_s3 + $0x190] sm:$0xff] (%p1560_p9) }
 0x15a   : > { %937 = vst [vmem:[%s1651_s3 + $0xd8] sm:$0xff] %v753_v39  ;;  %969 = vst [vmem:[%s1651_s3 + $0x1d8] sm:$0xff] %v833_v40  ;;  %v1101_v36 = vld [vmem:[%s1651_s3 + $0x198] sm:$0xff] (%p1560_p9)  ;;  %v1103_v37 = vld [vmem:[%s1651_s3 + $0x1a0] sm:$0xff] (%p1560_p9) }
 0x15b   : > { %1040 = vst [vmem:[%s1733_s8 + $0x280] sm:$0xff] (%p1560_p9), %v1039_v5  ;;  %1042 = vst [vmem:[%s1733_s8 + $0x288] sm:$0xff] (%p1560_p9), %v1041_v6  ;;  %v1105_v38 = vld [vmem:[%s1651_s3 + $0x1a8] sm:$0xff] (%p1560_p9)  ;;  %v1107_v39 = vld [vmem:[%s1651_s3 + $0x1b0] sm:$0xff] (%p1560_p9) }
 0x15c   : > { %980 = sbr.rel (!%p1560_p9) target bundleno = 369 (0x171), region = 74  ;;  %1044 = vst [vmem:[%s1733_s8 + $0x2c0] sm:$0xff] (%p1560_p9), %v1043_v7  ;;  %1046 = vst [vmem:[%s1733_s8 + $0x2c8] sm:$0xff] (%p1560_p9), %v1045_v8  ;;  %v1109_v40 = vld [vmem:[%s1651_s3 + $0x1b8] sm:$0xff] (%p1560_p9) }
 0x15d   : > { %1080 = vst [vmem:[%s1733_s8 + $0x500] sm:$0xff] (%p1560_p9), %v1079_v25  ;;  %1082 = vst [vmem:[%s1733_s8 + $0x508] sm:$0xff] (%p1560_p9), %v1081_v26 }
 0x15e   : > { %v757_v41 = vpop.f32.mrb[28].mxu0  ;;  %v837_v42 = vpop.f32.mrb[28].mxu1  ;;  %v1047_v9 = vld [vmem:[%s1651_s3 + $0xc0] sm:$0xff] (%p1560_p9)  ;;  %1084 = vst [vmem:[%s1733_s8 + $0x540] sm:$0xff] (%p1560_p9), %v1083_v27  ;;  %1086 = vst [vmem:[%s1733_s8 + $0x548] sm:$0xff] (%p1560_p9), %v1085_v28 }
 0x15f   : > { %v759_v43 = vpop.f32.mrb[29].mxu0  ;;  %v839_v44 = vpop.f32.mrb[29].mxu1  ;;  %938 = vst [vmem:[%s1651_s3 + $0xe0] sm:$0xff] %v757_v41  ;;  %970 = vst [vmem:[%s1651_s3 + $0x1e0] sm:$0xff] %v837_v42  ;;  %v1049_v10 = vld [vmem:[%s1651_s3 + $0xc8] sm:$0xff] (%p1560_p9)  ;;  %v1111_v41 = vld [vmem:[%s1651_s3 + $0x1c0] sm:$0xff] (%p1560_p9) }
 0x160   : > { %v761_v45 = vpop.f32.mrb[30].mxu0  ;;  %v841_v46 = vpop.f32.mrb[30].mxu1  ;;  %939 = vst [vmem:[%s1651_s3 + $0xe8] sm:$0xff] %v759_v43  ;;  %971 = vst [vmem:[%s1651_s3 + $0x1e8] sm:$0xff] %v839_v44  ;;  %v1051_v11 = vld [vmem:[%s1651_s3 + $0xd0] sm:$0xff] (%p1560_p9)  ;;  %v1113_v42 = vld [vmem:[%s1651_s3 + $0x1c8] sm:$0xff] (%p1560_p9) }
 0x161   : > { %v763_v47 = vpop.f32.mrb[31].mxu0  ;;  %v843_v48 = vpop.f32.mrb[31].mxu1  ;;  %940 = vst [vmem:[%s1651_s3 + $0xf0] sm:$0xff] %v761_v45  ;;  %972 = vst [vmem:[%s1651_s3 + $0x1f0] sm:$0xff] %v841_v46  ;;  %v1053_v12 = vld [vmem:[%s1651_s3 + $0xd8] sm:$0xff] (%p1560_p9)  ;;  %v1115_v43 = vld [vmem:[%s1651_s3 + $0x1d0] sm:$0xff] (%p1560_p9) }
 0x162   : > { %941 = vst [vmem:[%s1651_s3 + $0xf8] sm:$0xff] %v763_v47  ;;  %973 = vst [vmem:[%s1651_s3 + $0x1f8] sm:$0xff] %v843_v48  ;;  %v1117_v44 = vld [vmem:[%s1651_s3 + $0x1d8] sm:$0xff] (%p1560_p9) }
 0x163   : > { %1048 = vst [vmem:[%s1733_s8 + $0x300] sm:$0xff] %v1047_v9  ;;  %1050 = vst [vmem:[%s1733_s8 + $0x308] sm:$0xff] %v1049_v10 }
 0x164   : > { %1052 = vst [vmem:[%s1733_s8 + $0x340] sm:$0xff] %v1051_v11  ;;  %1054 = vst [vmem:[%s1733_s8 + $0x348] sm:$0xff] %v1053_v12 }
 0x165   : > { %1088 = vst [vmem:[%s1733_s8 + $0x580] sm:$0xff] %v1087_v29  ;;  %1090 = vst [vmem:[%s1733_s8 + $0x588] sm:$0xff] %v1089_v30 }
 0x166   : > { %v1055_v13 = vld [vmem:[%s1651_s3 + $0xe0] sm:$0xff]  ;;  %1092 = vst [vmem:[%s1733_s8 + $0x5c0] sm:$0xff] %v1091_v31  ;;  %1094 = vst [vmem:[%s1733_s8 + $0x5c8] sm:$0xff] %v1093_v32 }
 0x167   : > { %v1057_v14 = vld [vmem:[%s1651_s3 + $0xe8] sm:$0xff]  ;;  %1056 = vst [vmem:[%s1733_s8 + $0x380] sm:$0xff] %v1055_v13  ;;  %1096 = vst [vmem:[%s1733_s8 + $0x600] sm:$0xff] %v1095_v33  ;;  %v1119_v45 = vld [vmem:[%s1651_s3 + $0x1e0] sm:$0xff] }
 0x168   : > { %1058 = vst [vmem:[%s1733_s8 + $0x388] sm:$0xff] %v1057_v14  ;;  %v1059_v15 = vld [vmem:[%s1651_s3 + $0xf0] sm:$0xff]  ;;  %1098 = vst [vmem:[%s1733_s8 + $0x608] sm:$0xff] %v1097_v34  ;;  %v1121_v46 = vld [vmem:[%s1651_s3 + $0x1e8] sm:$0xff] }
 0x169   : > { %v1061_v16 = vld [vmem:[%s1651_s3 + $0xf8] sm:$0xff]  ;;  %1060 = vst [vmem:[%s1733_s8 + $0x3c0] sm:$0xff] %v1059_v15  ;;  %1100 = vst [vmem:[%s1733_s8 + $0x640] sm:$0xff] %v1099_v35  ;;  %v1123_v47 = vld [vmem:[%s1651_s3 + $0x1f0] sm:$0xff] }
 0x16a   : > { %1062 = vst [vmem:[%s1733_s8 + $0x3c8] sm:$0xff] %v1061_v16  ;;  %1102 = vst [vmem:[%s1733_s8 + $0x648] sm:$0xff] %v1101_v36  ;;  %v1125_v48 = vld [vmem:[%s1651_s3 + $0x1f8] sm:$0xff] }
 0x16b   : > { %1104 = vst [vmem:[%s1733_s8 + $0x680] sm:$0xff] %v1103_v37  ;;  %1106 = vst [vmem:[%s1733_s8 + $0x688] sm:$0xff] %v1105_v38 }
 0x16c   : > { %1108 = vst [vmem:[%s1733_s8 + $0x6c0] sm:$0xff] %v1107_v39  ;;  %1110 = vst [vmem:[%s1733_s8 + $0x6c8] sm:$0xff] %v1109_v40 }
 0x16d   : > { %1112 = vst [vmem:[%s1733_s8 + $0x700] sm:$0xff] %v1111_v41  ;;  %1114 = vst [vmem:[%s1733_s8 + $0x708] sm:$0xff] %v1113_v42 }
 0x16e   : > { %1116 = vst [vmem:[%s1733_s8 + $0x740] sm:$0xff] %v1115_v43  ;;  %1118 = vst [vmem:[%s1733_s8 + $0x748] sm:$0xff] %v1117_v44 }
 0x16f   : > { %1120 = vst [vmem:[%s1733_s8 + $0x780] sm:$0xff] %v1119_v45  ;;  %1122 = vst [vmem:[%s1733_s8 + $0x788] sm:$0xff] %v1121_v46 }
 0x170   : > { %1124 = vst [vmem:[%s1733_s8 + $0x7c0] sm:$0xff] %v1123_v47  ;;  %1126 = vst [vmem:[%s1733_s8 + $0x7c8] sm:$0xff] %v1125_v48 }
 0x171 PF: > { %s12_s17 = sadd.s32 1, %s1475_s17   ;;  %s1885_s9 = smov %s1447_s10 }
 0x172   : > { %p9_p1 = scmp.ge.s32.totalorder %s12_s17, 30   ;;  %s1886_s10 = smov %s1565_s28 }
 0x173   : > { %s1887_s11 = smov %s1455_s12  ;;  %s1888_s12 = smov %s1554_s24 }
 0x174   : > { %s1889_s13 = smov %s1467_s15  ;;  %s1890_s14 = smov %s1471_s16 }
 0x175   : > { %s1891_s15 = smov %s1894_s19  ;;  %s1892_s16 = smov %s1898_s20 }
 0x176   :  { %11 = sbr.rel (!%p9_p1) target bundleno = 5 (0x5), region = 131 }

// kernel: generator_forward.24
= control target key start
LH: loop header
LB: loop body
LE: loop exit
PB: predicated region body
PF: predicated region fallthrough
CT: control target
= control target key end

     0   :  { %s445_s6 = smov 0   ;;  %s534_s0 = inlined_call_operand.vmem [shape: f32[12800,128], index: 0, kind: input, shape index: {}]   ;;  %s535_s1 = inlined_call_operand.vmem [shape: f32[2,128], index: 1, kind: output, shape index: {}]  }
   0x1 LB: > { %s408_s7 = sadd.s32 4294967295, %s432_s6   ;;  %p411_p0 = scmp.ge.s32.totalorder %s432_s6, 1  ;;  %s432_s6 = sphi %s445_s6, %s11_s6  }
   0x2   : > { %p83_p1 = scmp.lt.s32.totalorder %s432_s6, 26 }
   0x4   : > { %p84_p2 = pnand %p411_p0, %p83_p1 }
   0x5   : > { %s412_s8 = sshll.u32 (!%p84_p2), %s408_s7, 6  ;;  %p414_p4 = scmp.ne.s32.totalorder (!%p84_p2), %s408_s7, 0 }
   0x6   : > { %87 = sbr.rel (%p84_p2) target bundleno = 165 (0xa5), region = 24  ;;  %p99_p3 = scmp.lt.s32.totalorder (!%p84_p2), %s412_s8, 1599 }
   0xd   : > { %s537_s8 = smov (!%p99_p3, %s412_s8), 1599  ;;  %107 = sbr.rel (%p414_p4) target bundleno = 20 (0x14), region = 28 }
   0xe   : > { %s413_s9 = sshll.u32 %s537_s8, 3  ;;  %v434_v0 = vmov (!%p414_p4), 0.0  }
   0xf   : > { %s456_s12 = scalar_lea.vmem %s534_s0, %s413_s9  ;;  %108 = vst [vmem:[%s535_s1] sm:$0x3] (!%p414_p4), %v434_v0 }
  0x14 PF: > { %v109_v1 = vld [vmem:[%s456_s12] sm:$0xff]  ;;  %v110_v2 = vld [vmem:[%s456_s12 + $0x8] sm:$0xff]  ;;  %v111_v3 = vld [vmem:[%s456_s12 + $0x10] sm:$0xff]  ;;  %vm376_vm0 = vcmask 1040384  }
  0x15   : > { %v112_v4 = vld [vmem:[%s456_s12 + $0x18] sm:$0xff]  ;;  %v173_v5 = vadd.f32 %v110_v2, %v109_v1  ;;  %v242_v6 = vmul.f32 %v109_v1, %v109_v1  ;;  %v243_v7 = vmul.f32 %v110_v2, %v110_v2  ;;  %v244_v8 = vmul.f32 %v111_v3, %v111_v3  ;;  %v113_v9 = vld [vmem:[%s456_s12 + $0x20] sm:$0xff]  ;;  %v114_v13 = vld [vmem:[%s456_s12 + $0x28] sm:$0xff] }
  0x16   : > { %v245_v11 = vmul.f32 %v112_v4, %v112_v4  ;;  %v246_v15 = vmul.f32 %v113_v9, %v113_v9  ;;  %v115_v17 = vld [vmem:[%s456_s12 + $0x30] sm:$0xff]  ;;  %v247_v19 = vmul.f32 %v114_v13, %v114_v13  ;;  %v116_v21 = vld [vmem:[%s456_s12 + $0x38] sm:$0xff]  ;;  %v117_v25 = vld [vmem:[%s456_s12 + $0x40] sm:$0xff] }
  0x17   : > { %v174_v10 = vadd.f32 %v173_v5, %v111_v3  ;;  %v306_v12 = vadd.f32 %v243_v7, %v242_v6  ;;  %v248_v23 = vmul.f32 %v115_v17, %v115_v17  ;;  %v249_v27 = vmul.f32 %v116_v21, %v116_v21  ;;  %v118_v29 = vld [vmem:[%s456_s12 + $0x48] sm:$0xff]  ;;  %v119_v33 = vld [vmem:[%s456_s12 + $0x50] sm:$0xff]  ;;  %v120_v37 = vld [vmem:[%s456_s12 + $0x58] sm:$0xff] }
  0x18   : > { %v250_v31 = vmul.f32 %v117_v25, %v117_v25  ;;  %v251_v35 = vmul.f32 %v118_v29, %v118_v29  ;;  %v252_v39 = vmul.f32 %v119_v33, %v119_v33  ;;  %v121_v41 = vld [vmem:[%s456_s12 + $0x60] sm:$0xff]  ;;  %v253_v43 = vmul.f32 %v120_v37, %v120_v37  ;;  %v122_v45 = vld [vmem:[%s456_s12 + $0x68] sm:$0xff]  ;;  %v123_v49 = vld [vmem:[%s456_s12 + $0x70] sm:$0xff] }
  0x19   : > { %v175_v14 = vadd.f32 %v174_v10, %v112_v4  ;;  %v307_v16 = vadd.f32 %v306_v12, %v244_v8  ;;  %v254_v47 = vmul.f32 %v121_v41, %v121_v41  ;;  %v255_v51 = vmul.f32 %v122_v45, %v122_v45  ;;  %v124_v53 = vld [vmem:[%s456_s12 + $0x78] sm:$0xff]  ;;  %v125_v57 = vld [vmem:[%s456_s12 + $0x80] sm:$0xff]  ;;  %v126_v61 = vld [vmem:[%s456_s12 + $0x88] sm:$0xff] }
  0x1a   : > { %v256_v55 = vmul.f32 %v123_v49, %v123_v49  ;;  %v257_v59 = vmul.f32 %v124_v53, %v124_v53  ;;  %v258_v63 = vmul.f32 %v125_v57, %v125_v57  ;;  %v127_v1 = vld [vmem:[%s456_s12 + $0x90] sm:$0xff]  ;;  %v259_v3 = vmul.f32 %v126_v61, %v126_v61  ;;  %v128_v5 = vld [vmem:[%s456_s12 + $0x98] sm:$0xff] }
  0x1b   : > { %v176_v18 = vadd.f32 %v175_v14, %v113_v9  ;;  %v308_v20 = vadd.f32 %v307_v16, %v245_v11  ;;  %v260_v7 = vmul.f32 %v127_v1, %v127_v1  ;;  %v129_v9 = vld [vmem:[%s456_s12 + $0xa0] sm:$0xff]  ;;  %v261_v11 = vmul.f32 %v128_v5, %v128_v5 }
  0x1d   : > { %v177_v22 = vadd.f32 %v176_v18, %v114_v13  ;;  %v309_v24 = vadd.f32 %v308_v20, %v246_v15  ;;  %v130_v13 = vld [vmem:[%s456_s12 + $0xa8] sm:$0xff]  ;;  %v262_v15 = vmul.f32 %v129_v9, %v129_v9 }
  0x1f   : > { %v178_v26 = vadd.f32 %v177_v22, %v115_v17  ;;  %v310_v28 = vadd.f32 %v309_v24, %v247_v19  ;;  %v131_v17 = vld [vmem:[%s456_s12 + $0xb0] sm:$0xff]  ;;  %v263_v19 = vmul.f32 %v130_v13, %v130_v13 }
  0x21   : > { %v179_v30 = vadd.f32 %v178_v26, %v116_v21  ;;  %v311_v32 = vadd.f32 %v310_v28, %v248_v23  ;;  %v132_v21 = vld [vmem:[%s456_s12 + $0xb8] sm:$0xff]  ;;  %v264_v23 = vmul.f32 %v131_v17, %v131_v17 }
  0x23   : > { %v180_v34 = vadd.f32 %v179_v30, %v117_v25  ;;  %v312_v36 = vadd.f32 %v311_v32, %v249_v27  ;;  %v133_v25 = vld [vmem:[%s456_s12 + $0xc0] sm:$0xff]  ;;  %v265_v27 = vmul.f32 %v132_v21, %v132_v21 }
  0x25   : > { %v181_v38 = vadd.f32 %v180_v34, %v118_v29  ;;  %v313_v40 = vadd.f32 %v312_v36, %v250_v31  ;;  %v134_v29 = vld [vmem:[%s456_s12 + $0xc8] sm:$0xff]  ;;  %v266_v31 = vmul.f32 %v133_v25, %v133_v25 }
  0x27   : > { %v182_v42 = vadd.f32 %v181_v38, %v119_v33  ;;  %v314_v44 = vadd.f32 %v313_v40, %v251_v35  ;;  %v135_v33 = vld [vmem:[%s456_s12 + $0xd0] sm:$0xff]  ;;  %v267_v35 = vmul.f32 %v134_v29, %v134_v29 }
  0x29   : > { %v183_v46 = vadd.f32 %v182_v42, %v120_v37  ;;  %v315_v48 = vadd.f32 %v314_v44, %v252_v39  ;;  %v136_v37 = vld [vmem:[%s456_s12 + $0xd8] sm:$0xff]  ;;  %v268_v39 = vmul.f32 %v135_v33, %v135_v33 }
  0x2b   : > { %v184_v50 = vadd.f32 %v183_v46, %v121_v41  ;;  %v316_v52 = vadd.f32 %v315_v48, %v253_v43  ;;  %v137_v41 = vld [vmem:[%s456_s12 + $0xe0] sm:$0xff]  ;;  %v269_v43 = vmul.f32 %v136_v37, %v136_v37 }
  0x2d   : > { %v185_v54 = vadd.f32 %v184_v50, %v122_v45  ;;  %v317_v56 = vadd.f32 %v316_v52, %v254_v47  ;;  %v138_v45 = vld [vmem:[%s456_s12 + $0xe8] sm:$0xff]  ;;  %v270_v47 = vmul.f32 %v137_v41, %v137_v41 }
  0x2f   : > { %v186_v58 = vadd.f32 %v185_v54, %v123_v49  ;;  %v318_v60 = vadd.f32 %v317_v56, %v255_v51  ;;  %v139_v49 = vld [vmem:[%s456_s12 + $0xf0] sm:$0xff]  ;;  %v271_v51 = vmul.f32 %v138_v45, %v138_v45 }
  0x31   : > { %v187_v62 = vadd.f32 %v186_v58, %v124_v53  ;;  %v319_v0 = vadd.f32 %v318_v60, %v256_v55  ;;  %v140_v53 = vld [vmem:[%s456_s12 + $0xf8] sm:$0xff]  ;;  %v272_v55 = vmul.f32 %v139_v49, %v139_v49 }
  0x33   : > { %v188_v2 = vadd.f32 %v187_v62, %v125_v57  ;;  %v320_v4 = vadd.f32 %v319_v0, %v257_v59  ;;  %v141_v57 = vld [vmem:[%s456_s12 + $0x100] sm:$0xff]  ;;  %v273_v59 = vmul.f32 %v140_v53, %v140_v53 }
  0x35   : > { %v189_v6 = vadd.f32 %v188_v2, %v126_v61  ;;  %v321_v8 = vadd.f32 %v320_v4, %v258_v63  ;;  %v142_v61 = vld [vmem:[%s456_s12 + $0x108] sm:$0xff]  ;;  %v274_v63 = vmul.f32 %v141_v57, %v141_v57 }
  0x37   : > { %v190_v10 = vadd.f32 %v189_v6, %v127_v1  ;;  %v322_v12 = vadd.f32 %v321_v8, %v259_v3  ;;  %v143_v1 = vld [vmem:[%s456_s12 + $0x110] sm:$0xff]  ;;  %v275_v3 = vmul.f32 %v142_v61, %v142_v61 }
  0x39   : > { %v191_v14 = vadd.f32 %v190_v10, %v128_v5  ;;  %v323_v16 = vadd.f32 %v322_v12, %v260_v7  ;;  %v144_v5 = vld [vmem:[%s456_s12 + $0x118] sm:$0xff]  ;;  %v276_v7 = vmul.f32 %v143_v1, %v143_v1 }
  0x3b   : > { %v192_v18 = vadd.f32 %v191_v14, %v129_v9  ;;  %v324_v20 = vadd.f32 %v323_v16, %v261_v11  ;;  %v145_v9 = vld [vmem:[%s456_s12 + $0x120] sm:$0xff]  ;;  %v277_v11 = vmul.f32 %v144_v5, %v144_v5 }
  0x3d   : > { %v193_v22 = vadd.f32 %v192_v18, %v130_v13  ;;  %v325_v24 = vadd.f32 %v324_v20, %v262_v15  ;;  %v146_v13 = vld [vmem:[%s456_s12 + $0x128] sm:$0xff]  ;;  %v278_v15 = vmul.f32 %v145_v9, %v145_v9 }
  0x3f   : > { %v194_v26 = vadd.f32 %v193_v22, %v131_v17  ;;  %v326_v28 = vadd.f32 %v325_v24, %v263_v19  ;;  %v147_v17 = vld [vmem:[%s456_s12 + $0x130] sm:$0xff]  ;;  %v279_v19 = vmul.f32 %v146_v13, %v146_v13 }
  0x41   : > { %v195_v30 = vadd.f32 %v194_v26, %v132_v21  ;;  %v327_v32 = vadd.f32 %v326_v28, %v264_v23  ;;  %v148_v21 = vld [vmem:[%s456_s12 + $0x138] sm:$0xff]  ;;  %v280_v23 = vmul.f32 %v147_v17, %v147_v17 }
  0x43   : > { %v196_v34 = vadd.f32 %v195_v30, %v133_v25  ;;  %v328_v36 = vadd.f32 %v327_v32, %v265_v27  ;;  %v149_v25 = vld [vmem:[%s456_s12 + $0x140] sm:$0xff]  ;;  %v281_v27 = vmul.f32 %v148_v21, %v148_v21 }
  0x45   : > { %v197_v38 = vadd.f32 %v196_v34, %v134_v29  ;;  %v329_v40 = vadd.f32 %v328_v36, %v266_v31  ;;  %v150_v29 = vld [vmem:[%s456_s12 + $0x148] sm:$0xff]  ;;  %v282_v31 = vmul.f32 %v149_v25, %v149_v25 }
  0x47   : > { %v198_v42 = vadd.f32 %v197_v38, %v135_v33  ;;  %v330_v44 = vadd.f32 %v329_v40, %v267_v35  ;;  %v151_v33 = vld [vmem:[%s456_s12 + $0x150] sm:$0xff]  ;;  %v283_v35 = vmul.f32 %v150_v29, %v150_v29 }
  0x49   : > { %v199_v46 = vadd.f32 %v198_v42, %v136_v37  ;;  %v331_v48 = vadd.f32 %v330_v44, %v268_v39  ;;  %v152_v37 = vld [vmem:[%s456_s12 + $0x158] sm:$0xff]  ;;  %v284_v39 = vmul.f32 %v151_v33, %v151_v33 }
  0x4b   : > { %v200_v50 = vadd.f32 %v199_v46, %v137_v41  ;;  %v332_v52 = vadd.f32 %v331_v48, %v269_v43  ;;  %v153_v41 = vld [vmem:[%s456_s12 + $0x160] sm:$0xff]  ;;  %v285_v43 = vmul.f32 %v152_v37, %v152_v37 }
  0x4d   : > { %v201_v54 = vadd.f32 %v200_v50, %v138_v45  ;;  %v333_v56 = vadd.f32 %v332_v52, %v270_v47  ;;  %v154_v45 = vld [vmem:[%s456_s12 + $0x168] sm:$0xff]  ;;  %v286_v47 = vmul.f32 %v153_v41, %v153_v41 }
  0x4f   : > { %v202_v58 = vadd.f32 %v201_v54, %v139_v49  ;;  %v334_v60 = vadd.f32 %v333_v56, %v271_v51  ;;  %v155_v49 = vld [vmem:[%s456_s12 + $0x170] sm:$0xff]  ;;  %v287_v51 = vmul.f32 %v154_v45, %v154_v45 }
  0x51   : > { %v203_v62 = vadd.f32 %v202_v58, %v140_v53  ;;  %v335_v0 = vadd.f32 %v334_v60, %v272_v55  ;;  %v156_v53 = vld [vmem:[%s456_s12 + $0x178] sm:$0xff]  ;;  %v288_v55 = vmul.f32 %v155_v49, %v155_v49 }
  0x53   : > { %v204_v2 = vadd.f32 %v203_v62, %v141_v57  ;;  %v336_v4 = vadd.f32 %v335_v0, %v273_v59  ;;  %v157_v57 = vld [vmem:[%s456_s12 + $0x180] sm:$0xff]  ;;  %v289_v59 = vmul.f32 %v156_v53, %v156_v53 }
  0x55   : > { %v205_v6 = vadd.f32 %v204_v2, %v142_v61  ;;  %v337_v8 = vadd.f32 %v336_v4, %v274_v63  ;;  %v158_v61 = vld [vmem:[%s456_s12 + $0x188] sm:$0xff]  ;;  %v290_v63 = vmul.f32 %v157_v57, %v157_v57 }
  0x57   : > { %v206_v10 = vadd.f32 %v205_v6, %v143_v1  ;;  %v338_v12 = vadd.f32 %v337_v8, %v275_v3  ;;  %v159_v1 = vld [vmem:[%s456_s12 + $0x190] sm:$0xff]  ;;  %v291_v3 = vmul.f32 %v158_v61, %v158_v61 }
  0x59   : > { %v207_v14 = vadd.f32 %v206_v10, %v144_v5  ;;  %v339_v16 = vadd.f32 %v338_v12, %v276_v7  ;;  %v160_v5 = vld [vmem:[%s456_s12 + $0x198] sm:$0xff]  ;;  %v292_v7 = vmul.f32 %v159_v1, %v159_v1 }
  0x5b   : > { %v208_v18 = vadd.f32 %v207_v14, %v145_v9  ;;  %v340_v20 = vadd.f32 %v339_v16, %v277_v11  ;;  %v161_v9 = vld [vmem:[%s456_s12 + $0x1a0] sm:$0xff]  ;;  %v293_v11 = vmul.f32 %v160_v5, %v160_v5 }
  0x5d   : > { %v209_v22 = vadd.f32 %v208_v18, %v146_v13  ;;  %v341_v24 = vadd.f32 %v340_v20, %v278_v15  ;;  %v162_v13 = vld [vmem:[%s456_s12 + $0x1a8] sm:$0xff]  ;;  %v294_v15 = vmul.f32 %v161_v9, %v161_v9 }
  0x5f   : > { %v210_v26 = vadd.f32 %v209_v22, %v147_v17  ;;  %v342_v28 = vadd.f32 %v341_v24, %v279_v19  ;;  %v163_v17 = vld [vmem:[%s456_s12 + $0x1b0] sm:$0xff]  ;;  %v295_v19 = vmul.f32 %v162_v13, %v162_v13 }
  0x61   : > { %v211_v30 = vadd.f32 %v210_v26, %v148_v21  ;;  %v343_v32 = vadd.f32 %v342_v28, %v280_v23  ;;  %v164_v21 = vld [vmem:[%s456_s12 + $0x1b8] sm:$0xff]  ;;  %v296_v23 = vmul.f32 %v163_v17, %v163_v17 }
  0x63   : > { %v212_v34 = vadd.f32 %v211_v30, %v149_v25  ;;  %v344_v36 = vadd.f32 %v343_v32, %v281_v27  ;;  %v165_v25 = vld [vmem:[%s456_s12 + $0x1c0] sm:$0xff]  ;;  %v297_v27 = vmul.f32 %v164_v21, %v164_v21 }
  0x65   : > { %v213_v38 = vadd.f32 %v212_v34, %v150_v29  ;;  %v345_v40 = vadd.f32 %v344_v36, %v282_v31  ;;  %v166_v29 = vld [vmem:[%s456_s12 + $0x1c8] sm:$0xff]  ;;  %v298_v31 = vmul.f32 %v165_v25, %v165_v25 }
  0x67   : > { %v214_v42 = vadd.f32 %v213_v38, %v151_v33  ;;  %v346_v44 = vadd.f32 %v345_v40, %v283_v35  ;;  %v167_v33 = vld [vmem:[%s456_s12 + $0x1d0] sm:$0xff]  ;;  %v299_v35 = vmul.f32 %v166_v29, %v166_v29 }
  0x69   : > { %v215_v46 = vadd.f32 %v214_v42, %v152_v37  ;;  %v347_v48 = vadd.f32 %v346_v44, %v284_v39  ;;  %v168_v37 = vld [vmem:[%s456_s12 + $0x1d8] sm:$0xff]  ;;  %v300_v39 = vmul.f32 %v167_v33, %v167_v33 }
  0x6b   : > { %v216_v50 = vadd.f32 %v215_v46, %v153_v41  ;;  %v348_v52 = vadd.f32 %v347_v48, %v285_v43  ;;  %v169_v41 = vld [vmem:[%s456_s12 + $0x1e0] sm:$0xff]  ;;  %v301_v43 = vmul.f32 %v168_v37, %v168_v37 }
  0x6d   : > { %v217_v54 = vadd.f32 %v216_v50, %v154_v45  ;;  %v349_v56 = vadd.f32 %v348_v52, %v286_v47  ;;  %v170_v45 = vld [vmem:[%s456_s12 + $0x1e8] sm:$0xff]  ;;  %v302_v47 = vmul.f32 %v169_v41, %v169_v41 }
  0x6f   : > { %v218_v58 = vadd.f32 %v217_v54, %v155_v49  ;;  %v350_v60 = vadd.f32 %v349_v56, %v287_v51  ;;  %v171_v49 = vld [vmem:[%s456_s12 + $0x1f0] sm:$0xff]  ;;  %v303_v51 = vmul.f32 %v170_v45, %v170_v45 }
  0x71   : > { %v219_v62 = vadd.f32 %v218_v58, %v156_v53  ;;  %v351_v0 = vadd.f32 %v350_v60, %v288_v55  ;;  %v172_v53 = vld [vmem:[%s456_s12 + $0x1f8] sm:$0xff]  ;;  %v304_v55 = vmul.f32 %v171_v49, %v171_v49 }
  0x72   : > { %v305_v58 = vmul.f32 %v172_v53, %v172_v53 }
  0x73   : > { %v220_v2 = vadd.f32 %v219_v62, %v157_v57  ;;  %v352_v4 = vadd.f32 %v351_v0, %v289_v59 }
  0x75   : > { %v221_v6 = vadd.f32 %v220_v2, %v158_v61  ;;  %v353_v8 = vadd.f32 %v352_v4, %v290_v63 }
  0x77   : > { %v222_v10 = vadd.f32 %v221_v6, %v159_v1  ;;  %v354_v12 = vadd.f32 %v353_v8, %v291_v3 }
  0x79   : > { %v223_v14 = vadd.f32 %v222_v10, %v160_v5  ;;  %v355_v16 = vadd.f32 %v354_v12, %v292_v7 }
  0x7b   : > { %v224_v18 = vadd.f32 %v223_v14, %v161_v9  ;;  %v356_v20 = vadd.f32 %v355_v16, %v293_v11  ;;  %v375_v11 = vld [vmem:[%s535_s1] sm:$0x3] }
  0x7d   : > { %v225_v22 = vadd.f32 %v224_v18, %v162_v13  ;;  %v357_v24 = vadd.f32 %v356_v20, %v294_v15 }
  0x7f   : > { %v226_v26 = vadd.f32 %v225_v22, %v163_v17  ;;  %v358_v28 = vadd.f32 %v357_v24, %v295_v19 }
  0x81   : > { %v227_v30 = vadd.f32 %v226_v26, %v164_v21  ;;  %v359_v32 = vadd.f32 %v358_v28, %v296_v23 }
  0x83   : > { %v228_v34 = vadd.f32 %v227_v30, %v165_v25  ;;  %v360_v36 = vadd.f32 %v359_v32, %v297_v27 }
  0x85   : > { %v229_v38 = vadd.f32 %v228_v34, %v166_v29  ;;  %v361_v40 = vadd.f32 %v360_v36, %v298_v31 }
  0x87   : > { %v230_v42 = vadd.f32 %v229_v38, %v167_v33  ;;  %v362_v44 = vadd.f32 %v361_v40, %v299_v35 }
  0x89   : > { %v231_v46 = vadd.f32 %v230_v42, %v168_v37  ;;  %v363_v48 = vadd.f32 %v362_v44, %v300_v39 }
  0x8b   : > { %v232_v50 = vadd.f32 %v231_v46, %v169_v41  ;;  %v364_v52 = vadd.f32 %v363_v48, %v301_v43 }
  0x8d   : > { %v233_v54 = vadd.f32 %v232_v50, %v170_v45  ;;  %v365_v56 = vadd.f32 %v364_v52, %v302_v47 }
  0x8f   : > { %v234_v57 = vadd.f32 %v233_v54, %v171_v49  ;;  %v366_v59 = vadd.f32 %v365_v56, %v303_v51 }
  0x91   : > { %v235_v60 = vadd.f32 %v234_v57, %v172_v53  ;;  %v367_v61 = vadd.f32 %v366_v59, %v304_v55 }
  0x93   : > { %v236_v62 = vrot.slane %v235_v60, 4  ;;  %v368_v63 = vadd.f32 %v367_v61, %v305_v58 }
  0x95   : > { %v237_v0 = vadd.f32 %v236_v62, %v235_v60  ;;  %v369_v1 = vrot.slane %v368_v63, 4 }
  0x97   : > { %v238_v2 = vrot.slane %v237_v0, 2  ;;  %v370_v3 = vadd.f32 %v369_v1, %v368_v63 }
  0x99   : > { %v239_v4 = vadd.f32 %v238_v2, %v237_v0  ;;  %v371_v5 = vrot.slane %v370_v3, 2 }
  0x9b   : > { %v240_v6 = vrot.slane %v239_v4, 1  ;;  %v372_v7 = vadd.f32 %v371_v5, %v370_v3 }
  0x9d   : > { %v241_v8 = vadd.f32 %v240_v6, %v239_v4  ;;  %v373_v9 = vrot.slane %v372_v7, 1 }
  0x9f   : > { %v374_v10 = vadd.f32 %v373_v9, %v372_v7 }
  0xa1   : > { %v377_v12 = vsel %vm376_vm0, %v241_v8, %v374_v10 }
  0xa2   : > { %v378_v13 = vadd.f32 %v377_v12, %v375_v11 }
  0xa4   : > { %379 = vst [vmem:[%s535_s1] sm:$0x3] %v378_v13 }
  0xa5 PF: > { %s11_s6 = sadd.s32 1, %s432_s6  }
  0xa6   : > { %p8_p5 = scmp.ge.s32.totalorder %s11_s6, 27  }
  0xa8   :  { %10 = sbr.rel (!%p8_p5) target bundleno = 1 (0x1), region = 54 }

// kernel: tile.18
= control target key start
LH: loop header
LB: loop body
LE: loop exit
PB: predicated region body
PF: predicated region fallthrough
CT: control target
= control target key end

     0   :  { %s22_s0 = inlined_call_operand.vmem [shape: f32[64], index: 0, kind: input, shape index: {}]   ;;  %s23_s1 = inlined_call_operand.vmem [shape: f32[2,64], index: 1, kind: output, shape index: {}]  }
   0x1   :  { %v4_v0 = vld [vmem:[%s22_s0] ss:$0 sm:$0xff] }
   0x2   :  { %5 = vst [vmem:[%s23_s1] sm:$0x3] %v4_v0 }

// kernel: tile.19
= control target key start
LH: loop header
LB: loop body
LE: loop exit
PB: predicated region body
PF: predicated region fallthrough
CT: control target
= control target key end

     0   :  { %vm7_vm0 = vcmask 523264   ;;  %vm13_vm1 = vcmask 1048064   ;;  %s39_s0 = inlined_call_operand.vmem [shape: f32[2,64], index: 0, kind: input, shape index: {}]   ;;  %s40_s1 = inlined_call_operand.vmem [shape: f32[1,128], index: 1, kind: output, shape index: {}]  }
   0x1   :  { %v4_v0 = vld [vmem:[%s39_s0] sm:$0x3]  ;;  %s22_s0 = smov 64  }
   0x2   :  { %5 = vst [vmem:[#allocation1] sm:$0x3] %v4_v0 }
   0x9   :  { %v10_v1 = vld [vmem:[#allocation1 + $0x1] sm:$0x1]   ;;  %v6_v2 = vld [vmem:[#allocation1] sm:$0x1]  }
   0xa   :  { %11 = vrot.lane.b32.xlu0 %v10_v1, %s22_s0  ;;  %8 = vst.msk [vmem:[#allocation0] sm:$0x1] %vm7_vm0, %v6_v2  }
  0x7c   :  { %v12_v3 = vpop.permute.xlu0 %11  }
  0x7d   :  { %14 = vst.msk [vmem:[#allocation0] sm:$0x1] %vm13_vm1, %v12_v3  }
  0x84   :  { %v18_v4 = vld [vmem:[#allocation0] sm:$0x1] }
  0x85   :  { %20 = vst [vmem:[%s40_s1] sm:$0x1] %v18_v4 }

// kernel: generator_forward.25
= control target key start
LH: loop header
LB: loop body
LE: loop exit
PB: predicated region body
PF: predicated region fallthrough
CT: control target
= control target key end

     0   :  { %s1188_s12 = smov 0   ;;  %s1447_s0 = inlined_call_operand.vmem [shape: f32[12800,128], index: 0, kind: input, shape index: {}]   ;;  %s1448_s1 = inlined_call_operand.vmem [shape: f32[1,128], index: 1, kind: input, shape index: {}]   ;;  %s1449_s2 = inlined_call_operand.vmem [shape: f32[1,128], index: 2, kind: input, shape index: {}]   ;;  %s1450_s3 = inlined_call_operand.vmem [shape: bf16[12800,128], index: 3, kind: output, shape index: {}]  }
   0x1 LB: > { %s820_s13 = sadd.s32 4294967295, %s1166_s12   ;;  %p824_p0 = scmp.ge.s32.totalorder %s1166_s12, 1  ;;  %s1166_s12 = sphi %s1188_s12, %s13_s12  }
   0x2   : > { %p138_p1 = scmp.lt.s32.totalorder %s1166_s12, 26 }
   0x4   : > { %p139_p2 = pnand %p824_p0, %p138_p1 }
   0x5   : > { %s825_s14 = sshll.u32 (!%p139_p2), %s820_s13, 6  ;;  %v1202_v0 = vld [vmem:[%s1448_s1] ss:$0 sm:$0xff] (!%p139_p2) }
   0x6   : > { %142 = sbr.rel (%p139_p2) target bundleno = 79 (0x4f), region = 32  ;;  %p163_p3 = scmp.lt.s32.totalorder (!%p139_p2), %s825_s14, 1599  ;;  %v1212_v1 = vld [vmem:[%s1449_s2] ss:$0 sm:$0xff] (!%p139_p2) }
   0xd   : > { %s1452_s14 = smov (!%p163_p3, %s825_s14), 1599 }
   0xe   : > { %s826_s15 = sshll.u32 %s1452_s14, 3  ;;  %s828_s23 = sshll.u32 %s1452_s14, 2 }
   0xf   : > { %s1207_s20 = scalar_lea.vmem %s1447_s0, %s826_s15  ;;  %s1244_s26 = scalar_lea.vmem %s1450_s3, %s828_s23 }
  0x10   : > { %v174_v2 = vld [vmem:[%s1207_s20] sm:$0xff]  ;;  %v175_v3 = vld [vmem:[%s1207_s20 + $0x8] sm:$0xff]  ;;  %v176_v4 = vld [vmem:[%s1207_s20 + $0x10] sm:$0xff] }
  0x11   : > { %v245_v5 = vmul.f32 %v1202_v0, %v174_v2  ;;  %v246_v6 = vmul.f32 %v1202_v0, %v175_v3  ;;  %v177_v7 = vld [vmem:[%s1207_s20 + $0x18] sm:$0xff]  ;;  %v247_v8 = vmul.f32 %v1202_v0, %v176_v4  ;;  %v178_v9 = vld [vmem:[%s1207_s20 + $0x20] sm:$0xff]  ;;  %v179_v10 = vld [vmem:[%s1207_s20 + $0x28] sm:$0xff] }
  0x12   : > { %v248_v11 = vmul.f32 %v1202_v0, %v177_v7  ;;  %v249_v12 = vmul.f32 %v1202_v0, %v178_v9  ;;  %v250_v13 = vmul.f32 %v1202_v0, %v179_v10  ;;  %v180_v14 = vld [vmem:[%s1207_s20 + $0x30] sm:$0xff]  ;;  %v181_v15 = vld [vmem:[%s1207_s20 + $0x38] sm:$0xff]  ;;  %v182_v24 = vld [vmem:[%s1207_s20 + $0x40] sm:$0xff] }
  0x13   : > { %v316_v16 = vadd.f32 %v1212_v1, %v245_v5  ;;  %v317_v17 = vadd.f32 %v1212_v1, %v246_v6  ;;  %v318_v18 = vadd.f32 %v1212_v1, %v247_v8  ;;  %v251_v19 = vmul.f32 %v1202_v0, %v180_v14  ;;  %v183_v25 = vld [vmem:[%s1207_s20 + $0x48] sm:$0xff]  ;;  %v184_v30 = vld [vmem:[%s1207_s20 + $0x50] sm:$0xff]  ;;  %v185_v35 = vld [vmem:[%s1207_s20 + $0x58] sm:$0xff] }
  0x14   : > { %v319_v20 = vadd.f32 %v1212_v1, %v248_v11  ;;  %v320_v21 = vadd.f32 %v1212_v1, %v249_v12  ;;  %v321_v22 = vadd.f32 %v1212_v1, %v250_v13  ;;  %v252_v23 = vmul.f32 %v1202_v0, %v181_v15  ;;  %v186_v36 = vld [vmem:[%s1207_s20 + $0x60] sm:$0xff]  ;;  %v187_v41 = vld [vmem:[%s1207_s20 + $0x68] sm:$0xff]  ;;  %v188_v42 = vld [vmem:[%s1207_s20 + $0x70] sm:$0xff] }
  0x15   : > { %v380_v26 = vmax.f32 %v316_v16, 0.0  ;;  %v381_v27 = vmax.f32 %v317_v17, 0.0  ;;  %v382_v28 = vmax.f32 %v318_v18, 0.0  ;;  %v322_v29 = vadd.f32 %v1212_v1, %v251_v19  ;;  %v189_v51 = vld [vmem:[%s1207_s20 + $0x78] sm:$0xff]  ;;  %v190_v56 = vld [vmem:[%s1207_s20 + $0x80] sm:$0xff]  ;;  %v191_v61 = vld [vmem:[%s1207_s20 + $0x88] sm:$0xff] }
  0x16   : > { %v383_v31 = vmax.f32 %v319_v20, 0.0  ;;  %v384_v32 = vmax.f32 %v320_v21, 0.0  ;;  %v385_v33 = vmax.f32 %v321_v22, 0.0  ;;  %v323_v34 = vadd.f32 %v1212_v1, %v252_v23  ;;  %v192_v4 = vld [vmem:[%s1207_s20 + $0x90] sm:$0xff]  ;;  %v193_v5 = vld [vmem:[%s1207_s20 + $0x98] sm:$0xff]  ;;  %v194_v10 = vld [vmem:[%s1207_s20 + $0xa0] sm:$0xff] }
  0x17   : > { %v964_v37 = vpack.c.bf16 %v381_v27, %v380_v26  ;;  %v386_v38 = vmax.f32 %v322_v29, 0.0  ;;  %v253_v39 = vmul.f32 %v1202_v0, %v182_v24  ;;  %v254_v40 = vmul.f32 %v1202_v0, %v183_v25  ;;  %v195_v15 = vld [vmem:[%s1207_s20 + $0xa8] sm:$0xff]  ;;  %v196_v20 = vld [vmem:[%s1207_s20 + $0xb0] sm:$0xff]  ;;  %v197_v25 = vld [vmem:[%s1207_s20 + $0xb8] sm:$0xff] }
  0x18   : > { %v969_v43 = vpack.c.bf16 %v383_v31, %v382_v28  ;;  %v974_v44 = vpack.c.bf16 %v385_v33, %v384_v32  ;;  %v387_v45 = vmax.f32 %v323_v34, 0.0  ;;  %v255_v46 = vmul.f32 %v1202_v0, %v184_v30  ;;  %v198_v30 = vld [vmem:[%s1207_s20 + $0xc0] sm:$0xff] }
  0x19   : > { %965 = vst [vmem:[%s1244_s26] sm:$0xff] %v964_v37   ;;  %v324_v47 = vadd.f32 %v1212_v1, %v253_v39  ;;  %v325_v48 = vadd.f32 %v1212_v1, %v254_v40  ;;  %v256_v49 = vmul.f32 %v1202_v0, %v185_v35  ;;  %v257_v50 = vmul.f32 %v1202_v0, %v186_v36  ;;  %v199_v35 = vld [vmem:[%s1207_s20 + $0xc8] sm:$0xff]  ;;  %v200_v40 = vld [vmem:[%s1207_s20 + $0xd0] sm:$0xff] }
  0x1a   : > { %1121 = vst [vmem:[%s1244_s26 + $0x8] sm:$0xff] %v969_v43   ;;  %1122 = vst [vmem:[%s1244_s26 + $0x10] sm:$0xff] %v974_v44   ;;  %v979_v52 = vpack.c.bf16 %v387_v45, %v386_v38  ;;  %v326_v53 = vadd.f32 %v1212_v1, %v255_v46  ;;  %v258_v54 = vmul.f32 %v1202_v0, %v187_v41  ;;  %v201_v41 = vld [vmem:[%s1207_s20 + $0xd8] sm:$0xff]  ;;  %v202_v46 = vld [vmem:[%s1207_s20 + $0xe0] sm:$0xff] }
  0x1b   : > { %v259_v55 = vmul.f32 %v1202_v0, %v188_v42  ;;  %v388_v57 = vmax.f32 %v324_v47, 0.0  ;;  %v389_v58 = vmax.f32 %v325_v48, 0.0  ;;  %v327_v59 = vadd.f32 %v1212_v1, %v256_v49 }
  0x1c   : > { %v328_v60 = vadd.f32 %v1212_v1, %v257_v50  ;;  %1123 = vst [vmem:[%s1244_s26 + $0x18] sm:$0xff] %v979_v52   ;;  %v390_v62 = vmax.f32 %v326_v53, 0.0  ;;  %v329_v63 = vadd.f32 %v1212_v1, %v258_v54  ;;  %v260_v2 = vmul.f32 %v1202_v0, %v189_v51  ;;  %v203_v51 = vld [vmem:[%s1207_s20 + $0xe8] sm:$0xff] }
  0x1d   : > { %v330_v3 = vadd.f32 %v1212_v1, %v259_v55  ;;  %v984_v6 = vpack.c.bf16 %v389_v58, %v388_v57  ;;  %v391_v7 = vmax.f32 %v327_v59, 0.0  ;;  %v261_v9 = vmul.f32 %v1202_v0, %v190_v56  ;;  %v204_v56 = vld [vmem:[%s1207_s20 + $0xf0] sm:$0xff] }
  0x1e   : > { %v392_v8 = vmax.f32 %v328_v60, 0.0  ;;  %v393_v11 = vmax.f32 %v329_v63, 0.0  ;;  %v331_v12 = vadd.f32 %v1212_v1, %v260_v2  ;;  %v262_v14 = vmul.f32 %v1202_v0, %v191_v61  ;;  %v205_v61 = vld [vmem:[%s1207_s20 + $0xf8] sm:$0xff] }
  0x1f   : > { %v394_v13 = vmax.f32 %v330_v3, 0.0  ;;  %1124 = vst [vmem:[%s1244_s26 + $0x20] sm:$0xff] %v984_v6   ;;  %v989_v16 = vpack.c.bf16 %v391_v7, %v390_v62  ;;  %v332_v17 = vadd.f32 %v1212_v1, %v261_v9  ;;  %v263_v18 = vmul.f32 %v1202_v0, %v192_v4  ;;  %v206_v4 = vld [vmem:[%s1207_s20 + $0x100] sm:$0xff]  ;;  %v207_v9 = vld [vmem:[%s1207_s20 + $0x108] sm:$0xff] }
  0x20   : > { %v264_v19 = vmul.f32 %v1202_v0, %v193_v5  ;;  %v994_v21 = vpack.c.bf16 %v393_v11, %v392_v8  ;;  %v395_v22 = vmax.f32 %v331_v12, 0.0  ;;  %v333_v23 = vadd.f32 %v1212_v1, %v262_v14  ;;  %v208_v14 = vld [vmem:[%s1207_s20 + $0x110] sm:$0xff] }
  0x21   : > { %v265_v24 = vmul.f32 %v1202_v0, %v194_v10  ;;  %1125 = vst [vmem:[%s1244_s26 + $0x28] sm:$0xff] %v989_v16   ;;  %v396_v26 = vmax.f32 %v332_v17, 0.0  ;;  %v334_v27 = vadd.f32 %v1212_v1, %v263_v18  ;;  %v266_v29 = vmul.f32 %v1202_v0, %v195_v15  ;;  %v209_v15 = vld [vmem:[%s1207_s20 + $0x118] sm:$0xff] }
  0x22   : > { %v335_v28 = vadd.f32 %v1212_v1, %v264_v19  ;;  %1126 = vst [vmem:[%s1244_s26 + $0x30] sm:$0xff] %v994_v21   ;;  %v999_v31 = vpack.c.bf16 %v395_v22, %v394_v13  ;;  %v397_v32 = vmax.f32 %v333_v23, 0.0  ;;  %v267_v34 = vmul.f32 %v1202_v0, %v196_v20  ;;  %v210_v20 = vld [vmem:[%s1207_s20 + $0x120] sm:$0xff] }
  0x23   : > { %v336_v33 = vadd.f32 %v1212_v1, %v265_v24  ;;  %v398_v36 = vmax.f32 %v334_v27, 0.0  ;;  %v337_v38 = vadd.f32 %v1212_v1, %v266_v29  ;;  %v268_v39 = vmul.f32 %v1202_v0, %v197_v25  ;;  %v211_v25 = vld [vmem:[%s1207_s20 + $0x128] sm:$0xff] }
  0x24   : > { %v399_v37 = vmax.f32 %v335_v28, 0.0  ;;  %1127 = vst [vmem:[%s1244_s26 + $0x38] sm:$0xff] %v999_v31   ;;  %v1004_v42 = vpack.c.bf16 %v397_v32, %v396_v26  ;;  %v338_v44 = vadd.f32 %v1212_v1, %v267_v34  ;;  %v269_v45 = vmul.f32 %v1202_v0, %v198_v30  ;;  %v212_v30 = vld [vmem:[%s1207_s20 + $0x130] sm:$0xff] }
  0x25   : > { %v400_v43 = vmax.f32 %v336_v33, 0.0  ;;  %v401_v48 = vmax.f32 %v337_v38, 0.0  ;;  %v339_v49 = vadd.f32 %v1212_v1, %v268_v39  ;;  %v270_v50 = vmul.f32 %v1202_v0, %v199_v35  ;;  %v213_v35 = vld [vmem:[%s1207_s20 + $0x138] sm:$0xff] }
  0x26   : > { %v1009_v47 = vpack.c.bf16 %v399_v37, %v398_v36  ;;  %1128 = vst [vmem:[%s1244_s26 + $0x40] sm:$0xff] %v1004_v42   ;;  %v402_v52 = vmax.f32 %v338_v44, 0.0  ;;  %v340_v53 = vadd.f32 %v1212_v1, %v269_v45  ;;  %v271_v54 = vmul.f32 %v1202_v0, %v200_v40  ;;  %v214_v40 = vld [vmem:[%s1207_s20 + $0x140] sm:$0xff]  ;;  %v215_v45 = vld [vmem:[%s1207_s20 + $0x148] sm:$0xff] }
  0x27   : > { %v272_v55 = vmul.f32 %v1202_v0, %v201_v41  ;;  %v1014_v57 = vpack.c.bf16 %v401_v48, %v400_v43  ;;  %v403_v58 = vmax.f32 %v339_v49, 0.0  ;;  %v341_v59 = vadd.f32 %v1212_v1, %v270_v50  ;;  %v216_v50 = vld [vmem:[%s1207_s20 + $0x150] sm:$0xff] }
  0x28   : > { %1129 = vst [vmem:[%s1244_s26 + $0x48] sm:$0xff] %v1009_v47   ;;  %v273_v60 = vmul.f32 %v1202_v0, %v202_v46  ;;  %v404_v62 = vmax.f32 %v340_v53, 0.0  ;;  %v342_v63 = vadd.f32 %v1212_v1, %v271_v54  ;;  %v274_v3 = vmul.f32 %v1202_v0, %v203_v51  ;;  %v217_v51 = vld [vmem:[%s1207_s20 + $0x158] sm:$0xff] }
  0x29   : > { %v343_v2 = vadd.f32 %v1212_v1, %v272_v55  ;;  %1130 = vst [vmem:[%s1244_s26 + $0x50] sm:$0xff] %v1014_v57   ;;  %v1019_v5 = vpack.c.bf16 %v403_v58, %v402_v52  ;;  %v405_v6 = vmax.f32 %v341_v59, 0.0  ;;  %v275_v8 = vmul.f32 %v1202_v0, %v204_v56  ;;  %v218_v56 = vld [vmem:[%s1207_s20 + $0x160] sm:$0xff] }
  0x2a   : > { %v344_v7 = vadd.f32 %v1212_v1, %v273_v60  ;;  %v406_v10 = vmax.f32 %v342_v63, 0.0  ;;  %v345_v12 = vadd.f32 %v1212_v1, %v274_v3  ;;  %v276_v13 = vmul.f32 %v1202_v0, %v205_v61  ;;  %v219_v61 = vld [vmem:[%s1207_s20 + $0x168] sm:$0xff] }
  0x2b   : > { %v407_v11 = vmax.f32 %v343_v2, 0.0  ;;  %1131 = vst [vmem:[%s1244_s26 + $0x58] sm:$0xff] %v1019_v5   ;;  %v1024_v16 = vpack.c.bf16 %v405_v6, %v404_v62  ;;  %v346_v18 = vadd.f32 %v1212_v1, %v275_v8  ;;  %v277_v19 = vmul.f32 %v1202_v0, %v206_v4  ;;  %v220_v4 = vld [vmem:[%s1207_s20 + $0x170] sm:$0xff] }
  0x2c   : > { %v408_v17 = vmax.f32 %v344_v7, 0.0  ;;  %v409_v22 = vmax.f32 %v345_v12, 0.0  ;;  %v347_v23 = vadd.f32 %v1212_v1, %v276_v13  ;;  %v278_v24 = vmul.f32 %v1202_v0, %v207_v9  ;;  %v221_v9 = vld [vmem:[%s1207_s20 + $0x178] sm:$0xff] }
  0x2d   : > { %v1029_v21 = vpack.c.bf16 %v407_v11, %v406_v10  ;;  %1132 = vst [vmem:[%s1244_s26 + $0x60] sm:$0xff] %v1024_v16   ;;  %v410_v26 = vmax.f32 %v346_v18, 0.0  ;;  %v348_v27 = vadd.f32 %v1212_v1, %v277_v19  ;;  %v279_v28 = vmul.f32 %v1202_v0, %v208_v14  ;;  %v222_v14 = vld [vmem:[%s1207_s20 + $0x180] sm:$0xff]  ;;  %v223_v19 = vld [vmem:[%s1207_s20 + $0x188] sm:$0xff] }
  0x2e   : > { %v280_v29 = vmul.f32 %v1202_v0, %v209_v15  ;;  %v1034_v31 = vpack.c.bf16 %v409_v22, %v408_v17  ;;  %v411_v32 = vmax.f32 %v347_v23, 0.0  ;;  %v349_v33 = vadd.f32 %v1212_v1, %v278_v24  ;;  %v224_v24 = vld [vmem:[%s1207_s20 + $0x190] sm:$0xff] }
  0x2f   : > { %1133 = vst [vmem:[%s1244_s26 + $0x68] sm:$0xff] %v1029_v21   ;;  %v281_v34 = vmul.f32 %v1202_v0, %v210_v20  ;;  %v412_v36 = vmax.f32 %v348_v27, 0.0  ;;  %v350_v37 = vadd.f32 %v1212_v1, %v279_v28  ;;  %v282_v39 = vmul.f32 %v1202_v0, %v211_v25  ;;  %v225_v25 = vld [vmem:[%s1207_s20 + $0x198] sm:$0xff] }
  0x30   : > { %v351_v38 = vadd.f32 %v1212_v1, %v280_v29  ;;  %1134 = vst [vmem:[%s1244_s26 + $0x70] sm:$0xff] %v1034_v31   ;;  %v1039_v41 = vpack.c.bf16 %v411_v32, %v410_v26  ;;  %v413_v42 = vmax.f32 %v349_v33, 0.0  ;;  %v283_v44 = vmul.f32 %v1202_v0, %v212_v30  ;;  %v226_v30 = vld [vmem:[%s1207_s20 + $0x1a0] sm:$0xff] }
  0x31   : > { %v352_v43 = vadd.f32 %v1212_v1, %v281_v34  ;;  %v414_v46 = vmax.f32 %v350_v37, 0.0  ;;  %v353_v48 = vadd.f32 %v1212_v1, %v282_v39  ;;  %v284_v49 = vmul.f32 %v1202_v0, %v213_v35  ;;  %v227_v35 = vld [vmem:[%s1207_s20 + $0x1a8] sm:$0xff] }
  0x32   : > { %v415_v47 = vmax.f32 %v351_v38, 0.0  ;;  %1135 = vst [vmem:[%s1244_s26 + $0x78] sm:$0xff] %v1039_v41   ;;  %v1044_v52 = vpack.c.bf16 %v413_v42, %v412_v36  ;;  %v354_v54 = vadd.f32 %v1212_v1, %v283_v44  ;;  %v285_v55 = vmul.f32 %v1202_v0, %v214_v40  ;;  %v228_v40 = vld [vmem:[%s1207_s20 + $0x1b0] sm:$0xff] }
  0x33   : > { %v416_v53 = vmax.f32 %v352_v43, 0.0  ;;  %v417_v58 = vmax.f32 %v353_v48, 0.0  ;;  %v355_v59 = vadd.f32 %v1212_v1, %v284_v49  ;;  %v286_v60 = vmul.f32 %v1202_v0, %v215_v45  ;;  %v229_v45 = vld [vmem:[%s1207_s20 + $0x1b8] sm:$0xff] }
  0x34   : > { %v1049_v57 = vpack.c.bf16 %v415_v47, %v414_v46  ;;  %1136 = vst [vmem:[%s1244_s26 + $0x80] sm:$0xff] %v1044_v52   ;;  %v418_v62 = vmax.f32 %v354_v54, 0.0  ;;  %v356_v63 = vadd.f32 %v1212_v1, %v285_v55  ;;  %v287_v2 = vmul.f32 %v1202_v0, %v216_v50  ;;  %v230_v50 = vld [vmem:[%s1207_s20 + $0x1c0] sm:$0xff]  ;;  %v231_v55 = vld [vmem:[%s1207_s20 + $0x1c8] sm:$0xff] }
  0x35   : > { %v288_v3 = vmul.f32 %v1202_v0, %v217_v51  ;;  %v1054_v5 = vpack.c.bf16 %v417_v58, %v416_v53  ;;  %v419_v6 = vmax.f32 %v355_v59, 0.0  ;;  %v357_v7 = vadd.f32 %v1212_v1, %v286_v60  ;;  %v232_v60 = vld [vmem:[%s1207_s20 + $0x1d0] sm:$0xff] }
  0x36   : > { %1137 = vst [vmem:[%s1244_s26 + $0x88] sm:$0xff] %v1049_v57   ;;  %v289_v8 = vmul.f32 %v1202_v0, %v218_v56  ;;  %v420_v10 = vmax.f32 %v356_v63, 0.0  ;;  %v358_v11 = vadd.f32 %v1212_v1, %v287_v2  ;;  %v290_v13 = vmul.f32 %v1202_v0, %v219_v61  ;;  %v233_v61 = vld [vmem:[%s1207_s20 + $0x1d8] sm:$0xff] }
  0x37   : > { %v359_v12 = vadd.f32 %v1212_v1, %v288_v3  ;;  %1138 = vst [vmem:[%s1244_s26 + $0x90] sm:$0xff] %v1054_v5   ;;  %v1059_v15 = vpack.c.bf16 %v419_v6, %v418_v62  ;;  %v421_v16 = vmax.f32 %v357_v7, 0.0  ;;  %v291_v18 = vmul.f32 %v1202_v0, %v220_v4  ;;  %v234_v4 = vld [vmem:[%s1207_s20 + $0x1e0] sm:$0xff] }
  0x38   : > { %v360_v17 = vadd.f32 %v1212_v1, %v289_v8  ;;  %v422_v20 = vmax.f32 %v358_v11, 0.0  ;;  %v361_v22 = vadd.f32 %v1212_v1, %v290_v13  ;;  %v292_v23 = vmul.f32 %v1202_v0, %v221_v9  ;;  %v235_v9 = vld [vmem:[%s1207_s20 + $0x1e8] sm:$0xff] }
  0x39   : > { %v423_v21 = vmax.f32 %v359_v12, 0.0  ;;  %1139 = vst [vmem:[%s1244_s26 + $0x98] sm:$0xff] %v1059_v15   ;;  %v1064_v26 = vpack.c.bf16 %v421_v16, %v420_v10  ;;  %v362_v28 = vadd.f32 %v1212_v1, %v291_v18  ;;  %v293_v29 = vmul.f32 %v1202_v0, %v222_v14  ;;  %v236_v14 = vld [vmem:[%s1207_s20 + $0x1f0] sm:$0xff] }
  0x3a   : > { %v424_v27 = vmax.f32 %v360_v17, 0.0  ;;  %v425_v32 = vmax.f32 %v361_v22, 0.0  ;;  %v363_v33 = vadd.f32 %v1212_v1, %v292_v23  ;;  %v294_v34 = vmul.f32 %v1202_v0, %v223_v19  ;;  %v237_v19 = vld [vmem:[%s1207_s20 + $0x1f8] sm:$0xff] }
  0x3b   : > { %v1069_v31 = vpack.c.bf16 %v423_v21, %v422_v20  ;;  %1140 = vst [vmem:[%s1244_s26 + $0xa0] sm:$0xff] %v1064_v26   ;;  %v426_v36 = vmax.f32 %v362_v28, 0.0  ;;  %v364_v37 = vadd.f32 %v1212_v1, %v293_v29  ;;  %v295_v38 = vmul.f32 %v1202_v0, %v224_v24 }
  0x3c   : > { %v296_v39 = vmul.f32 %v1202_v0, %v225_v25  ;;  %v1074_v41 = vpack.c.bf16 %v425_v32, %v424_v27  ;;  %v427_v42 = vmax.f32 %v363_v33, 0.0  ;;  %v365_v43 = vadd.f32 %v1212_v1, %v294_v34 }
  0x3d   : > { %1141 = vst [vmem:[%s1244_s26 + $0xa8] sm:$0xff] %v1069_v31   ;;  %v297_v44 = vmul.f32 %v1202_v0, %v226_v30  ;;  %v428_v46 = vmax.f32 %v364_v37, 0.0  ;;  %v366_v47 = vadd.f32 %v1212_v1, %v295_v38  ;;  %v298_v49 = vmul.f32 %v1202_v0, %v227_v35 }
  0x3e   : > { %v367_v48 = vadd.f32 %v1212_v1, %v296_v39  ;;  %1142 = vst [vmem:[%s1244_s26 + $0xb0] sm:$0xff] %v1074_v41   ;;  %v1079_v51 = vpack.c.bf16 %v427_v42, %v426_v36  ;;  %v429_v52 = vmax.f32 %v365_v43, 0.0  ;;  %v299_v54 = vmul.f32 %v1202_v0, %v228_v40 }
  0x3f   : > { %v368_v53 = vadd.f32 %v1212_v1, %v297_v44  ;;  %v430_v56 = vmax.f32 %v366_v47, 0.0  ;;  %v369_v58 = vadd.f32 %v1212_v1, %v298_v49  ;;  %v300_v59 = vmul.f32 %v1202_v0, %v229_v45 }
  0x40   : > { %v431_v57 = vmax.f32 %v367_v48, 0.0  ;;  %1143 = vst [vmem:[%s1244_s26 + $0xb8] sm:$0xff] %v1079_v51   ;;  %v1084_v62 = vpack.c.bf16 %v429_v52, %v428_v46  ;;  %v370_v2 = vadd.f32 %v1212_v1, %v299_v54  ;;  %v301_v3 = vmul.f32 %v1202_v0, %v230_v50 }
  0x41   : > { %v432_v63 = vmax.f32 %v368_v53, 0.0  ;;  %v433_v6 = vmax.f32 %v369_v58, 0.0  ;;  %v371_v7 = vadd.f32 %v1212_v1, %v300_v59  ;;  %v302_v8 = vmul.f32 %v1202_v0, %v231_v55 }
  0x42   : > { %v1089_v5 = vpack.c.bf16 %v431_v57, %v430_v56  ;;  %1144 = vst [vmem:[%s1244_s26 + $0xc0] sm:$0xff] %v1084_v62   ;;  %v434_v10 = vmax.f32 %v370_v2, 0.0  ;;  %v372_v11 = vadd.f32 %v1212_v1, %v301_v3  ;;  %v303_v12 = vmul.f32 %v1202_v0, %v232_v60 }
  0x43   : > { %v304_v13 = vmul.f32 %v1202_v0, %v233_v61  ;;  %v1094_v15 = vpack.c.bf16 %v433_v6, %v432_v63  ;;  %v435_v16 = vmax.f32 %v371_v7, 0.0  ;;  %v373_v17 = vadd.f32 %v1212_v1, %v302_v8 }
  0x44   : > { %1145 = vst [vmem:[%s1244_s26 + $0xc8] sm:$0xff] %v1089_v5   ;;  %v305_v18 = vmul.f32 %v1202_v0, %v234_v4  ;;  %v436_v20 = vmax.f32 %v372_v11, 0.0  ;;  %v374_v21 = vadd.f32 %v1212_v1, %v303_v12  ;;  %v306_v23 = vmul.f32 %v1202_v0, %v235_v9 }
  0x45   : > { %v375_v22 = vadd.f32 %v1212_v1, %v304_v13  ;;  %1146 = vst [vmem:[%s1244_s26 + $0xd0] sm:$0xff] %v1094_v15   ;;  %v1099_v24 = vpack.c.bf16 %v435_v16, %v434_v10  ;;  %v437_v25 = vmax.f32 %v373_v17, 0.0  ;;  %v307_v27 = vmul.f32 %v1202_v0, %v236_v14 }
  0x46   : > { %v376_v26 = vadd.f32 %v1212_v1, %v305_v18  ;;  %v438_v28 = vmax.f32 %v374_v21, 0.0  ;;  %v377_v30 = vadd.f32 %v1212_v1, %v306_v23  ;;  %v308_v31 = vmul.f32 %v1202_v0, %v237_v19 }
  0x47   : > { %v439_v29 = vmax.f32 %v375_v22, 0.0  ;;  %1147 = vst [vmem:[%s1244_s26 + $0xd8] sm:$0xff] %v1099_v24   ;;  %v1104_v32 = vpack.c.bf16 %v437_v25, %v436_v20  ;;  %v378_v34 = vadd.f32 %v1212_v1, %v307_v27 }
  0x48   : > { %v440_v33 = vmax.f32 %v376_v26, 0.0  ;;  %v441_v36 = vmax.f32 %v377_v30, 0.0  ;;  %v379_v37 = vadd.f32 %v1212_v1, %v308_v31 }
  0x49   : > { %v1109_v35 = vpack.c.bf16 %v439_v29, %v438_v28  ;;  %1148 = vst [vmem:[%s1244_s26 + $0xe0] sm:$0xff] %v1104_v32   ;;  %v442_v38 = vmax.f32 %v378_v34, 0.0 }
  0x4a   : > { %v1114_v39 = vpack.c.bf16 %v441_v36, %v440_v33  ;;  %v443_v40 = vmax.f32 %v379_v37, 0.0 }
  0x4b   : > { %1149 = vst [vmem:[%s1244_s26 + $0xe8] sm:$0xff] %v1109_v35  }
  0x4c   : > { %1150 = vst [vmem:[%s1244_s26 + $0xf0] sm:$0xff] %v1114_v39   ;;  %v1119_v41 = vpack.c.bf16 %v443_v40, %v442_v38 }
  0x4e   : > { %1151 = vst [vmem:[%s1244_s26 + $0xf8] sm:$0xff] %v1119_v41  }
  0x4f PF: > { %s13_s12 = sadd.s32 1, %s1166_s12  }
  0x50   : > { %p10_p4 = scmp.ge.s32.totalorder %s13_s12, 27  }
  0x52   :  { %12 = sbr.rel (!%p10_p4) target bundleno = 1 (0x1), region = 62 }

// kernel: generator_forward.26
= control target key start
LH: loop header
LB: loop body
LE: loop exit
PB: predicated region body
PF: predicated region fallthrough
CT: control target
= control target key end

     0   :  { %s1015_s9 = smov 0   ;;  %s1017_s10 = smov 0   ;;  %s1128_s0 = inlined_call_operand.vmem [shape: bf16[25088,128], index: 0, kind: input, shape index: {}]   ;;  %s1129_s1 = inlined_call_operand.vmem [shape: bf16[128,128], index: 1, kind: input, shape index: {}]   ;;  %s1130_s2 = inlined_call_operand.vmem [shape: f32[25088,128], index: 2, kind: output, shape index: {}]  }
   0x1   :  { %s1019_s11 = smov 0  }
   0x2 LB: > { %s31_s12 = sadd.s32 1, %s994_s10  ;;  %p808_p0 = scmp.ge.s32.totalorder %s998_s11, 1  ;;  %s998_s11 = sphi %s1019_s11, %s12_s11   ;;  %s994_s10 = sphi %s1017_s10, %s1132_s10   ;;  %s990_s9 = sphi %s1015_s9, %s1131_s9  }
   0x3   : > { %p33_p1 = scmp.ge.s32.totalorder %s31_s12, 98  ;;  %p155_p2 = scmp.lt.s32.totalorder %s998_s11, 99 }
   0x5   : > { %s1134_s12 = smov (%p33_p1, %s31_s12), 0  ;;  %p156_p3 = pnand %p808_p0, %p155_p2 }
   0x6   : > { %v952_v0 = vld [vmem:[%s1129_s1] sm:$0xff] (!%p156_p3)   ;;  %s809_s15 = sshll.u32 (!%p156_p3), %s990_s9, 5  ;;  %v953_v1 = vld [vmem:[%s1129_s1 + $0x8] sm:$0xff] (!%p156_p3)   ;;  %v954_v2 = vld [vmem:[%s1129_s1 + $0x10] sm:$0xff] (!%p156_p3)  }
   0x7   : > { %159 = sbr.rel (%p156_p3) target bundleno = 279 (0x117), region = 28  ;;  %p192_p4 = scmp.lt.s32.totalorder (!%p156_p3), %s809_s15, 3135  ;;  %863 = vmatprep.subr.bf16.mxu0 (!%p156_p3), %v952_v0  ;;  %911 = vmatprep.subr.bf16.mxu1 (!%p156_p3), %v952_v0  ;;  %v955_v3 = vld [vmem:[%s1129_s1 + $0x18] sm:$0xff] (!%p156_p3)   ;;  %v956_v6 = vld [vmem:[%s1129_s1 + $0x20] sm:$0xff] (!%p156_p3)   ;;  %v957_v7 = vld [vmem:[%s1129_s1 + $0x28] sm:$0xff] (!%p156_p3)  }
   0x8   : > { %864 = vmatpush3.bf16.msra.mxu0 (!%p156_p3), %v952_v0  ;;  %919 = vmatpush3.bf16.msra.mxu1 (!%p156_p3), %v952_v0  ;;  %v958_v8 = vld [vmem:[%s1129_s1 + $0x30] sm:$0xff] (!%p156_p3)   ;;  %v959_v9 = vld [vmem:[%s1129_s1 + $0x38] sm:$0xff] (!%p156_p3)  }
   0x9   : > { %865 = vmatprep.subr.bf16.mxu0 (!%p156_p3), %v953_v1  ;;  %912 = vmatprep.subr.bf16.mxu1 (!%p156_p3), %v953_v1 }
   0xc   : > { %866 = vmatpush3.bf16.msra.mxu0 (!%p156_p3), %v953_v1  ;;  %920 = vmatpush3.bf16.msra.mxu1 (!%p156_p3), %v953_v1 }
   0xd   : > { %867 = vmatprep.subr.bf16.mxu0 (!%p156_p3), %v954_v2  ;;  %913 = vmatprep.subr.bf16.mxu1 (!%p156_p3), %v954_v2 }
   0xe   : > { %s1136_s15 = smov (!%p192_p4, %s809_s15), 3135 }
   0xf   : > { %s810_s20 = sshll.u32 %s1136_s15, 2  ;;  %s812_s6 = sshll.u32 %s1136_s15, 3 }
  0x10   : > { %s1048_s23 = scalar_lea.vmem %s1128_s0, %s810_s20  ;;  %868 = vmatpush3.bf16.msra.mxu0 %v954_v2  ;;  %921 = vmatpush3.bf16.msra.mxu1 %v954_v2  ;;  %s1085_s9 = scalar_lea.vmem %s1130_s2, %s812_s6 }
  0x11   : > { %v960_v4 = vld [vmem:[%s1048_s23] sm:$0xff]   ;;  %869 = vmatprep.subr.bf16.mxu0 %v955_v3  ;;  %914 = vmatprep.subr.bf16.mxu1 %v955_v3  ;;  %v962_v10 = vld [vmem:[%s1048_s23 + $0x8] sm:$0xff]   ;;  %v964_v12 = vld [vmem:[%s1048_s23 + $0x10] sm:$0xff]  }
  0x12   : > { %v961_v5 = vld [vmem:[%s1048_s23 + $0x40] sm:$0xff]   ;;  %879 = vmatprep.mubr.bf16.mxu0 %v960_v4  ;;  %v963_v11 = vld [vmem:[%s1048_s23 + $0x48] sm:$0xff]   ;;  %v965_v13 = vld [vmem:[%s1048_s23 + $0x50] sm:$0xff]  }
  0x13   : > { %895 = vmatprep.mubr.bf16.mxu1 %v961_v5  ;;  %v966_v14 = vld [vmem:[%s1048_s23 + $0x18] sm:$0xff]   ;;  %v968_v16 = vld [vmem:[%s1048_s23 + $0x20] sm:$0xff]   ;;  %v970_v18 = vld [vmem:[%s1048_s23 + $0x28] sm:$0xff]  }
  0x14   : > { %870 = vmatpush3.bf16.msra.mxu0 %v955_v3  ;;  %922 = vmatpush3.bf16.msra.mxu1 %v955_v3  ;;  %v967_v15 = vld [vmem:[%s1048_s23 + $0x58] sm:$0xff]   ;;  %v969_v17 = vld [vmem:[%s1048_s23 + $0x60] sm:$0xff]   ;;  %v971_v19 = vld [vmem:[%s1048_s23 + $0x68] sm:$0xff]  }
  0x15   : > { %871 = vmatprep.subr.bf16.mxu0 %v956_v6  ;;  %915 = vmatprep.subr.bf16.mxu1 %v956_v6  ;;  %v972_v20 = vld [vmem:[%s1048_s23 + $0x30] sm:$0xff]   ;;  %v974_v22 = vld [vmem:[%s1048_s23 + $0x38] sm:$0xff]  }
  0x16   : > { %v973_v21 = vld [vmem:[%s1048_s23 + $0x70] sm:$0xff]   ;;  %v975_v23 = vld [vmem:[%s1048_s23 + $0x78] sm:$0xff]  }
  0x18   : > { %872 = vmatpush3.bf16.msra.mxu0 %v956_v6  ;;  %923 = vmatpush3.bf16.msra.mxu1 %v956_v6 }
  0x19   : > { %873 = vmatprep.subr.bf16.mxu0 %v957_v7  ;;  %916 = vmatprep.subr.bf16.mxu1 %v957_v7 }
  0x1c   : > { %874 = vmatpush3.bf16.msra.mxu0 %v957_v7  ;;  %924 = vmatpush3.bf16.msra.mxu1 %v957_v7 }
  0x1d   : > { %875 = vmatprep.subr.bf16.mxu0 %v958_v8  ;;  %917 = vmatprep.subr.bf16.mxu1 %v958_v8 }
  0x20   : > { %876 = vmatpush3.bf16.msra.mxu0 %v958_v8  ;;  %925 = vmatpush3.bf16.msra.mxu1 %v958_v8 }
  0x21   : > { %877 = vmatprep.subr.bf16.mxu0 %v959_v9  ;;  %918 = vmatprep.subr.bf16.mxu1 %v959_v9 }
  0x24   : > { %878 = vmatpush3.bf16.msra.mxu0 %v959_v9  ;;  %926 = vmatpush3.bf16.msra.mxu1 %v959_v9 }
  0x27   : > { %880 = vmatmul.mubr.bf16.vlgmr.msra.gmra.mrb[0].mxu0 %v962_v10  ;;  %896 = vmatmul.mubr.bf16.vlgmr.msra.gmra.mrb[0].mxu1 %v963_v11 }
  0x28   : > { %883 = vmatprep.mubr.bf16.mxu0 %v964_v12  ;;  %899 = vmatprep.mubr.bf16.mxu1 %v965_v13 }
  0x2f   : > { %884 = vmatmul.mubr.bf16.gmra.mrb[4].mxu0 %v966_v14  ;;  %900 = vmatmul.mubr.bf16.gmra.mrb[4].mxu1 %v967_v15 }
  0x30   : > { %887 = vmatprep.mubr.bf16.mxu0 %v968_v16  ;;  %903 = vmatprep.mubr.bf16.mxu1 %v969_v17 }
  0x37   : > { %888 = vmatmul.mubr.bf16.gmra.mrb[8].mxu0 %v970_v18  ;;  %904 = vmatmul.mubr.bf16.gmra.mrb[8].mxu1 %v971_v19 }
  0x38   : > { %891 = vmatprep.mubr.bf16.mxu0 %v972_v20  ;;  %907 = vmatprep.mubr.bf16.mxu1 %v973_v21 }
  0x3f   : > { %892 = vmatmul.mubr.bf16.gmra.mrb[12].mxu0 %v974_v22  ;;  %908 = vmatmul.mubr.bf16.gmra.mrb[12].mxu1 %v975_v23 }
  0xfa   : > { %v881_v24 = vpop.f32.mrb[0].mxu0  ;;  %v897_v25 = vpop.f32.mrb[0].mxu1 }
  0xfb   : > { %v513_v26 = vpop.f32.mrb[1].mxu0  ;;  %v577_v27 = vpop.f32.mrb[1].mxu1  ;;  %674 = vst [vmem:[%s1085_s9 + $0x10] sm:$0xff] %v881_v24  ;;  %690 = vst [vmem:[%s1085_s9 + $0x90] sm:$0xff] %v897_v25 }
  0xfc   : > { %v882_v28 = vpop.f32.mrb[2].mxu0  ;;  %v898_v29 = vpop.f32.mrb[2].mxu1  ;;  %672 = vst [vmem:[%s1085_s9] sm:$0xff] %v513_v26  ;;  %688 = vst [vmem:[%s1085_s9 + $0x80] sm:$0xff] %v577_v27 }
  0xfd   : > { %v516_v30 = vpop.f32.mrb[3].mxu0  ;;  %v580_v31 = vpop.f32.mrb[3].mxu1  ;;  %675 = vst [vmem:[%s1085_s9 + $0x18] sm:$0xff] %v882_v28  ;;  %691 = vst [vmem:[%s1085_s9 + $0x98] sm:$0xff] %v898_v29 }
  0xfe   : > { %673 = vst [vmem:[%s1085_s9 + $0x8] sm:$0xff] %v516_v30  ;;  %689 = vst [vmem:[%s1085_s9 + $0x88] sm:$0xff] %v580_v31 }
 0x102   : > { %v885_v32 = vpop.f32.mrb[4].mxu0  ;;  %v901_v33 = vpop.f32.mrb[4].mxu1 }
 0x103   : > { %v529_v34 = vpop.f32.mrb[5].mxu0  ;;  %v593_v35 = vpop.f32.mrb[5].mxu1  ;;  %678 = vst [vmem:[%s1085_s9 + $0x30] sm:$0xff] %v885_v32  ;;  %694 = vst [vmem:[%s1085_s9 + $0xb0] sm:$0xff] %v901_v33 }
 0x104   : > { %v886_v36 = vpop.f32.mrb[6].mxu0  ;;  %v902_v37 = vpop.f32.mrb[6].mxu1  ;;  %676 = vst [vmem:[%s1085_s9 + $0x20] sm:$0xff] %v529_v34  ;;  %692 = vst [vmem:[%s1085_s9 + $0xa0] sm:$0xff] %v593_v35 }
 0x105   : > { %v532_v38 = vpop.f32.mrb[7].mxu0  ;;  %v596_v39 = vpop.f32.mrb[7].mxu1  ;;  %679 = vst [vmem:[%s1085_s9 + $0x38] sm:$0xff] %v886_v36  ;;  %695 = vst [vmem:[%s1085_s9 + $0xb8] sm:$0xff] %v902_v37 }
 0x106   : > { %677 = vst [vmem:[%s1085_s9 + $0x28] sm:$0xff] %v532_v38  ;;  %693 = vst [vmem:[%s1085_s9 + $0xa8] sm:$0xff] %v596_v39 }
 0x10a   : > { %v889_v40 = vpop.f32.mrb[8].mxu0  ;;  %v905_v41 = vpop.f32.mrb[8].mxu1 }
 0x10b   : > { %v545_v42 = vpop.f32.mrb[9].mxu0  ;;  %v609_v43 = vpop.f32.mrb[9].mxu1  ;;  %682 = vst [vmem:[%s1085_s9 + $0x50] sm:$0xff] %v889_v40  ;;  %698 = vst [vmem:[%s1085_s9 + $0xd0] sm:$0xff] %v905_v41 }
 0x10c   : > { %v890_v44 = vpop.f32.mrb[10].mxu0  ;;  %v906_v45 = vpop.f32.mrb[10].mxu1  ;;  %680 = vst [vmem:[%s1085_s9 + $0x40] sm:$0xff] %v545_v42  ;;  %696 = vst [vmem:[%s1085_s9 + $0xc0] sm:$0xff] %v609_v43 }
 0x10d   : > { %v548_v46 = vpop.f32.mrb[11].mxu0  ;;  %v612_v47 = vpop.f32.mrb[11].mxu1  ;;  %683 = vst [vmem:[%s1085_s9 + $0x58] sm:$0xff] %v890_v44  ;;  %699 = vst [vmem:[%s1085_s9 + $0xd8] sm:$0xff] %v906_v45 }
 0x10e   : > { %681 = vst [vmem:[%s1085_s9 + $0x48] sm:$0xff] %v548_v46  ;;  %697 = vst [vmem:[%s1085_s9 + $0xc8] sm:$0xff] %v612_v47 }
 0x112   : > { %v893_v48 = vpop.f32.mrb[12].mxu0  ;;  %v909_v49 = vpop.f32.mrb[12].mxu1 }
 0x113   : > { %v561_v50 = vpop.f32.mrb[13].mxu0  ;;  %v625_v51 = vpop.f32.mrb[13].mxu1  ;;  %686 = vst [vmem:[%s1085_s9 + $0x70] sm:$0xff] %v893_v48  ;;  %702 = vst [vmem:[%s1085_s9 + $0xf0] sm:$0xff] %v909_v49 }
 0x114   : > { %v894_v52 = vpop.f32.mrb[14].mxu0  ;;  %v910_v53 = vpop.f32.mrb[14].mxu1  ;;  %684 = vst [vmem:[%s1085_s9 + $0x60] sm:$0xff] %v561_v50  ;;  %700 = vst [vmem:[%s1085_s9 + $0xe0] sm:$0xff] %v625_v51 }
 0x115   : > { %v564_v54 = vpop.f32.mrb[15].mxu0  ;;  %v628_v55 = vpop.f32.mrb[15].mxu1  ;;  %687 = vst [vmem:[%s1085_s9 + $0x78] sm:$0xff] %v894_v52  ;;  %703 = vst [vmem:[%s1085_s9 + $0xf8] sm:$0xff] %v910_v53 }
 0x116   : > { %685 = vst [vmem:[%s1085_s9 + $0x68] sm:$0xff] %v564_v54  ;;  %701 = vst [vmem:[%s1085_s9 + $0xe8] sm:$0xff] %v628_v55 }
 0x117 PF: > { %s12_s11 = sadd.s32 1, %s998_s11   ;;  %s1131_s9 = smov %s994_s10 }
 0x118   : > { %p9_p5 = scmp.ge.s32.totalorder %s12_s11, 100   ;;  %s1132_s10 = smov %s1134_s12 }
 0x11a   :  { %11 = sbr.rel (!%p9_p5) target bundleno = 2 (0x2), region = 65 }

// kernel: generator_forward.27
= control target key start
LH: loop header
LB: loop body
LE: loop exit
PB: predicated region body
PF: predicated region fallthrough
CT: control target
= control target key end

     0   :  { %s864_s6 = smov 0   ;;  %s1141_s0 = inlined_call_operand.vmem [shape: f32[768,512], index: 0, kind: input, shape index: {}]   ;;  %s1142_s1 = inlined_call_operand.vmem [shape: f32[768,512], index: 1, kind: output, shape index: {}]  }
   0x1 LB: > { %s567_s7 = sadd.s32 4294967295, %s852_s6   ;;  %p571_p0 = scmp.ge.s32.totalorder %s852_s6, 1  ;;  %s852_s6 = sphi %s864_s6, %s11_s6  }
   0x2   : > { %p89_p1 = scmp.lt.s32.totalorder %s852_s6, 4 }
   0x4   : > { %p90_p2 = pnand %p571_p0, %p89_p1 }
   0x5   : > { %s572_s8 = sshll.u32 (!%p90_p2), %s567_s7, 5 }
   0x6   : > { %93 = sbr.rel (%p90_p2) target bundleno = 156 (0x9c), region = 24  ;;  %p112_p3 = scmp.lt.s32.totalorder (!%p90_p2), %s572_s8, 95 }
   0xd   : > { %s1144_s8 = smov (!%p112_p3, %s572_s8), 95 }
   0xe   : > { %s580_s9 = sshll.u32 %s1144_s8, 5 }
   0xf   : > { %s875_s12 = scalar_lea.vmem %s1141_s0, %s580_s9  ;;  %s891_s15 = scalar_lea.vmem %s1142_s1, %s580_s9 }
  0x10   : > { %v125_v0 = vld [vmem:[%s875_s12] sm:$0xff]  ;;  %v126_v1 = vld [vmem:[%s875_s12 + $0x8] sm:$0xff]  ;;  %v127_v2 = vld [vmem:[%s875_s12 + $0x10] sm:$0xff] }
  0x11   : > { %590 = vtanh.f32 %v125_v0  ;;  %v128_v3 = vld [vmem:[%s875_s12 + $0x18] sm:$0xff]  ;;  %v129_v4 = vld [vmem:[%s875_s12 + $0x20] sm:$0xff]  ;;  %v130_v5 = vld [vmem:[%s875_s12 + $0x28] sm:$0xff] }
  0x12   : > { %592 = vtanh.f32 %v126_v1  ;;  %v131_v6 = vld [vmem:[%s875_s12 + $0x30] sm:$0xff]  ;;  %v132_v7 = vld [vmem:[%s875_s12 + $0x38] sm:$0xff]  ;;  %v133_v8 = vld [vmem:[%s875_s12 + $0x40] sm:$0xff] }
  0x13   : > { %594 = vtanh.f32 %v127_v2  ;;  %v134_v9 = vld [vmem:[%s875_s12 + $0x48] sm:$0xff]  ;;  %v135_v10 = vld [vmem:[%s875_s12 + $0x50] sm:$0xff]  ;;  %v136_v11 = vld [vmem:[%s875_s12 + $0x58] sm:$0xff] }
  0x14   : > { %596 = vtanh.f32 %v128_v3  ;;  %v137_v12 = vld [vmem:[%s875_s12 + $0x60] sm:$0xff]  ;;  %v138_v14 = vld [vmem:[%s875_s12 + $0x68] sm:$0xff]  ;;  %v139_v16 = vld [vmem:[%s875_s12 + $0x70] sm:$0xff] }
  0x15   : > { %598 = vtanh.f32 %v129_v4  ;;  %v140_v18 = vld [vmem:[%s875_s12 + $0x78] sm:$0xff]  ;;  %v141_v20 = vld [vmem:[%s875_s12 + $0x80] sm:$0xff]  ;;  %v142_v22 = vld [vmem:[%s875_s12 + $0x88] sm:$0xff] }
  0x16   : > { %600 = vtanh.f32 %v130_v5  ;;  %v143_v24 = vld [vmem:[%s875_s12 + $0x90] sm:$0xff]  ;;  %v144_v26 = vld [vmem:[%s875_s12 + $0x98] sm:$0xff]  ;;  %v145_v28 = vld [vmem:[%s875_s12 + $0xa0] sm:$0xff] }
  0x17   : > { %602 = vtanh.f32 %v131_v6  ;;  %v146_v30 = vld [vmem:[%s875_s12 + $0xa8] sm:$0xff]  ;;  %v147_v32 = vld [vmem:[%s875_s12 + $0xb0] sm:$0xff]  ;;  %v148_v34 = vld [vmem:[%s875_s12 + $0xb8] sm:$0xff] }
  0x18   : > { %604 = vtanh.f32 %v132_v7  ;;  %v149_v36 = vld [vmem:[%s875_s12 + $0xc0] sm:$0xff]  ;;  %v150_v38 = vld [vmem:[%s875_s12 + $0xc8] sm:$0xff]  ;;  %v151_v40 = vld [vmem:[%s875_s12 + $0xd0] sm:$0xff] }
  0x19   : > { %606 = vtanh.f32 %v133_v8  ;;  %v152_v42 = vld [vmem:[%s875_s12 + $0xd8] sm:$0xff]  ;;  %v153_v44 = vld [vmem:[%s875_s12 + $0xe0] sm:$0xff]  ;;  %v154_v46 = vld [vmem:[%s875_s12 + $0xe8] sm:$0xff] }
  0x1a   : > { %608 = vtanh.f32 %v134_v9  ;;  %v155_v48 = vld [vmem:[%s875_s12 + $0xf0] sm:$0xff]  ;;  %v156_v50 = vld [vmem:[%s875_s12 + $0xf8] sm:$0xff]  ;;  %v157_v52 = vld [vmem:[%s875_s12 + $0x100] sm:$0xff] }
  0x1b   : > { %v591_v13 = vpop.eup %590  ;;  %610 = vtanh.f32 %v135_v10  ;;  %v158_v54 = vld [vmem:[%s875_s12 + $0x108] sm:$0xff]  ;;  %v159_v56 = vld [vmem:[%s875_s12 + $0x110] sm:$0xff]  ;;  %v160_v58 = vld [vmem:[%s875_s12 + $0x118] sm:$0xff] }
  0x1c   : > { %v593_v15 = vpop.eup %592  ;;  %381 = vst [vmem:[%s891_s15] sm:$0xff] %v591_v13  ;;  %612 = vtanh.f32 %v136_v11  ;;  %v161_v60 = vld [vmem:[%s875_s12 + $0x120] sm:$0xff]  ;;  %v162_v62 = vld [vmem:[%s875_s12 + $0x128] sm:$0xff]  ;;  %v163_v0 = vld [vmem:[%s875_s12 + $0x130] sm:$0xff] }
  0x1d   : > { %v595_v17 = vpop.eup %594  ;;  %382 = vst [vmem:[%s891_s15 + $0x8] sm:$0xff] %v593_v15  ;;  %614 = vtanh.f32 %v137_v12  ;;  %v164_v2 = vld [vmem:[%s875_s12 + $0x138] sm:$0xff]  ;;  %v165_v4 = vld [vmem:[%s875_s12 + $0x140] sm:$0xff]  ;;  %v166_v6 = vld [vmem:[%s875_s12 + $0x148] sm:$0xff] }
  0x1e   : > { %v597_v19 = vpop.eup %596  ;;  %383 = vst [vmem:[%s891_s15 + $0x10] sm:$0xff] %v595_v17  ;;  %616 = vtanh.f32 %v138_v14  ;;  %v167_v8 = vld [vmem:[%s875_s12 + $0x150] sm:$0xff]  ;;  %v168_v10 = vld [vmem:[%s875_s12 + $0x158] sm:$0xff]  ;;  %v169_v12 = vld [vmem:[%s875_s12 + $0x160] sm:$0xff] }
  0x1f   : > { %v599_v21 = vpop.eup %598  ;;  %384 = vst [vmem:[%s891_s15 + $0x18] sm:$0xff] %v597_v19  ;;  %618 = vtanh.f32 %v139_v16  ;;  %v170_v14 = vld [vmem:[%s875_s12 + $0x168] sm:$0xff]  ;;  %v171_v16 = vld [vmem:[%s875_s12 + $0x170] sm:$0xff] }
  0x20   : > { %v601_v23 = vpop.eup %600  ;;  %385 = vst [vmem:[%s891_s15 + $0x20] sm:$0xff] %v599_v21  ;;  %620 = vtanh.f32 %v140_v18  ;;  %v172_v18 = vld [vmem:[%s875_s12 + $0x178] sm:$0xff] }
  0x21   : > { %v603_v25 = vpop.eup %602  ;;  %386 = vst [vmem:[%s891_s15 + $0x28] sm:$0xff] %v601_v23  ;;  %622 = vtanh.f32 %v141_v20  ;;  %v173_v20 = vld [vmem:[%s875_s12 + $0x180] sm:$0xff] }
  0x22   : > { %v605_v27 = vpop.eup %604  ;;  %387 = vst [vmem:[%s891_s15 + $0x30] sm:$0xff] %v603_v25  ;;  %624 = vtanh.f32 %v142_v22  ;;  %v174_v22 = vld [vmem:[%s875_s12 + $0x188] sm:$0xff] }
  0x23   : > { %v607_v29 = vpop.eup %606  ;;  %388 = vst [vmem:[%s891_s15 + $0x38] sm:$0xff] %v605_v27  ;;  %626 = vtanh.f32 %v143_v24  ;;  %v175_v24 = vld [vmem:[%s875_s12 + $0x190] sm:$0xff] }
  0x24   : > { %v609_v31 = vpop.eup %608  ;;  %389 = vst [vmem:[%s891_s15 + $0x40] sm:$0xff] %v607_v29  ;;  %628 = vtanh.f32 %v144_v26  ;;  %v176_v26 = vld [vmem:[%s875_s12 + $0x198] sm:$0xff] }
  0x25   : > { %v611_v33 = vpop.eup %610  ;;  %390 = vst [vmem:[%s891_s15 + $0x48] sm:$0xff] %v609_v31  ;;  %630 = vtanh.f32 %v145_v28  ;;  %v177_v28 = vld [vmem:[%s875_s12 + $0x1a0] sm:$0xff] }
  0x26   : > { %v613_v35 = vpop.eup %612  ;;  %391 = vst [vmem:[%s891_s15 + $0x50] sm:$0xff] %v611_v33  ;;  %632 = vtanh.f32 %v146_v30  ;;  %v178_v30 = vld [vmem:[%s875_s12 + $0x1a8] sm:$0xff] }
  0x27   : > { %v615_v37 = vpop.eup %614  ;;  %392 = vst [vmem:[%s891_s15 + $0x58] sm:$0xff] %v613_v35  ;;  %634 = vtanh.f32 %v147_v32  ;;  %v179_v32 = vld [vmem:[%s875_s12 + $0x1b0] sm:$0xff] }
  0x28   : > { %v617_v39 = vpop.eup %616  ;;  %393 = vst [vmem:[%s891_s15 + $0x60] sm:$0xff] %v615_v37  ;;  %636 = vtanh.f32 %v148_v34  ;;  %v180_v34 = vld [vmem:[%s875_s12 + $0x1b8] sm:$0xff] }
  0x29   : > { %v619_v41 = vpop.eup %618  ;;  %394 = vst [vmem:[%s891_s15 + $0x68] sm:$0xff] %v617_v39  ;;  %638 = vtanh.f32 %v149_v36  ;;  %v181_v36 = vld [vmem:[%s875_s12 + $0x1c0] sm:$0xff] }
  0x2a   : > { %v621_v43 = vpop.eup %620  ;;  %395 = vst [vmem:[%s891_s15 + $0x70] sm:$0xff] %v619_v41  ;;  %640 = vtanh.f32 %v150_v38  ;;  %v182_v38 = vld [vmem:[%s875_s12 + $0x1c8] sm:$0xff] }
  0x2b   : > { %v623_v45 = vpop.eup %622  ;;  %396 = vst [vmem:[%s891_s15 + $0x78] sm:$0xff] %v621_v43  ;;  %642 = vtanh.f32 %v151_v40  ;;  %v183_v40 = vld [vmem:[%s875_s12 + $0x1d0] sm:$0xff] }
  0x2c   : > { %v625_v47 = vpop.eup %624  ;;  %397 = vst [vmem:[%s891_s15 + $0x80] sm:$0xff] %v623_v45  ;;  %644 = vtanh.f32 %v152_v42  ;;  %v184_v42 = vld [vmem:[%s875_s12 + $0x1d8] sm:$0xff] }
  0x2d   : > { %v627_v49 = vpop.eup %626  ;;  %398 = vst [vmem:[%s891_s15 + $0x88] sm:$0xff] %v625_v47  ;;  %646 = vtanh.f32 %v153_v44  ;;  %v185_v44 = vld [vmem:[%s875_s12 + $0x1e0] sm:$0xff] }
  0x2e   : > { %v629_v51 = vpop.eup %628  ;;  %399 = vst [vmem:[%s891_s15 + $0x90] sm:$0xff] %v627_v49  ;;  %648 = vtanh.f32 %v154_v46  ;;  %v186_v46 = vld [vmem:[%s875_s12 + $0x1e8] sm:$0xff] }
  0x2f   : > { %v631_v53 = vpop.eup %630  ;;  %400 = vst [vmem:[%s891_s15 + $0x98] sm:$0xff] %v629_v51  ;;  %650 = vtanh.f32 %v155_v48  ;;  %v187_v48 = vld [vmem:[%s875_s12 + $0x1f0] sm:$0xff] }
  0x30   : > { %v633_v55 = vpop.eup %632  ;;  %401 = vst [vmem:[%s891_s15 + $0xa0] sm:$0xff] %v631_v53  ;;  %652 = vtanh.f32 %v156_v50  ;;  %v188_v50 = vld [vmem:[%s875_s12 + $0x1f8] sm:$0xff] }
  0x31   : > { %v635_v57 = vpop.eup %634  ;;  %402 = vst [vmem:[%s891_s15 + $0xa8] sm:$0xff] %v633_v55  ;;  %654 = vtanh.f32 %v157_v52  ;;  %v189_v52 = vld [vmem:[%s875_s12 + $0x200] sm:$0xff] }
  0x32   : > { %v637_v59 = vpop.eup %636  ;;  %403 = vst [vmem:[%s891_s15 + $0xb0] sm:$0xff] %v635_v57  ;;  %656 = vtanh.f32 %v158_v54  ;;  %v190_v54 = vld [vmem:[%s875_s12 + $0x208] sm:$0xff] }
  0x33   : > { %v639_v61 = vpop.eup %638  ;;  %404 = vst [vmem:[%s891_s15 + $0xb8] sm:$0xff] %v637_v59  ;;  %658 = vtanh.f32 %v159_v56  ;;  %v191_v56 = vld [vmem:[%s875_s12 + $0x210] sm:$0xff] }
  0x34   : > { %v641_v63 = vpop.eup %640  ;;  %405 = vst [vmem:[%s891_s15 + $0xc0] sm:$0xff] %v639_v61  ;;  %660 = vtanh.f32 %v160_v58  ;;  %v192_v58 = vld [vmem:[%s875_s12 + $0x218] sm:$0xff] }
  0x35   : > { %v643_v1 = vpop.eup %642  ;;  %406 = vst [vmem:[%s891_s15 + $0xc8] sm:$0xff] %v641_v63  ;;  %662 = vtanh.f32 %v161_v60  ;;  %v193_v60 = vld [vmem:[%s875_s12 + $0x220] sm:$0xff] }
  0x36   : > { %v645_v3 = vpop.eup %644  ;;  %407 = vst [vmem:[%s891_s15 + $0xd0] sm:$0xff] %v643_v1  ;;  %664 = vtanh.f32 %v162_v62  ;;  %v194_v62 = vld [vmem:[%s875_s12 + $0x228] sm:$0xff] }
  0x37   : > { %v647_v5 = vpop.eup %646  ;;  %408 = vst [vmem:[%s891_s15 + $0xd8] sm:$0xff] %v645_v3  ;;  %666 = vtanh.f32 %v163_v0  ;;  %v195_v0 = vld [vmem:[%s875_s12 + $0x230] sm:$0xff] }
  0x38   : > { %v649_v7 = vpop.eup %648  ;;  %409 = vst [vmem:[%s891_s15 + $0xe0] sm:$0xff] %v647_v5  ;;  %668 = vtanh.f32 %v164_v2  ;;  %v196_v2 = vld [vmem:[%s875_s12 + $0x238] sm:$0xff] }
  0x39   : > { %v651_v9 = vpop.eup %650  ;;  %410 = vst [vmem:[%s891_s15 + $0xe8] sm:$0xff] %v649_v7  ;;  %670 = vtanh.f32 %v165_v4  ;;  %v197_v4 = vld [vmem:[%s875_s12 + $0x240] sm:$0xff] }
  0x3a   : > { %v653_v11 = vpop.eup %652  ;;  %411 = vst [vmem:[%s891_s15 + $0xf0] sm:$0xff] %v651_v9  ;;  %672 = vtanh.f32 %v166_v6  ;;  %v198_v6 = vld [vmem:[%s875_s12 + $0x248] sm:$0xff] }
  0x3b   : > { %v655_v13 = vpop.eup %654  ;;  %412 = vst [vmem:[%s891_s15 + $0xf8] sm:$0xff] %v653_v11  ;;  %674 = vtanh.f32 %v167_v8  ;;  %v199_v8 = vld [vmem:[%s875_s12 + $0x250] sm:$0xff] }
  0x3c   : > { %v657_v15 = vpop.eup %656  ;;  %413 = vst [vmem:[%s891_s15 + $0x100] sm:$0xff] %v655_v13  ;;  %676 = vtanh.f32 %v168_v10  ;;  %v200_v10 = vld [vmem:[%s875_s12 + $0x258] sm:$0xff] }
  0x3d   : > { %v659_v17 = vpop.eup %658  ;;  %414 = vst [vmem:[%s891_s15 + $0x108] sm:$0xff] %v657_v15  ;;  %678 = vtanh.f32 %v169_v12  ;;  %v201_v12 = vld [vmem:[%s875_s12 + $0x260] sm:$0xff] }
  0x3e   : > { %v661_v19 = vpop.eup %660  ;;  %415 = vst [vmem:[%s891_s15 + $0x110] sm:$0xff] %v659_v17  ;;  %680 = vtanh.f32 %v170_v14  ;;  %v202_v14 = vld [vmem:[%s875_s12 + $0x268] sm:$0xff] }
  0x3f   : > { %v663_v21 = vpop.eup %662  ;;  %416 = vst [vmem:[%s891_s15 + $0x118] sm:$0xff] %v661_v19  ;;  %682 = vtanh.f32 %v171_v16  ;;  %v203_v16 = vld [vmem:[%s875_s12 + $0x270] sm:$0xff] }
  0x40   : > { %v665_v23 = vpop.eup %664  ;;  %417 = vst [vmem:[%s891_s15 + $0x120] sm:$0xff] %v663_v21  ;;  %684 = vtanh.f32 %v172_v18  ;;  %v204_v18 = vld [vmem:[%s875_s12 + $0x278] sm:$0xff] }
  0x41   : > { %v667_v25 = vpop.eup %666  ;;  %418 = vst [vmem:[%s891_s15 + $0x128] sm:$0xff] %v665_v23  ;;  %686 = vtanh.f32 %v173_v20  ;;  %v205_v20 = vld [vmem:[%s875_s12 + $0x280] sm:$0xff] }
  0x42   : > { %v669_v27 = vpop.eup %668  ;;  %419 = vst [vmem:[%s891_s15 + $0x130] sm:$0xff] %v667_v25  ;;  %688 = vtanh.f32 %v174_v22  ;;  %v206_v22 = vld [vmem:[%s875_s12 + $0x288] sm:$0xff] }
  0x43   : > { %v671_v29 = vpop.eup %670  ;;  %420 = vst [vmem:[%s891_s15 + $0x138] sm:$0xff] %v669_v27  ;;  %690 = vtanh.f32 %v175_v24  ;;  %v207_v24 = vld [vmem:[%s875_s12 + $0x290] sm:$0xff] }
  0x44   : > { %v673_v31 = vpop.eup %672  ;;  %421 = vst [vmem:[%s891_s15 + $0x140] sm:$0xff] %v671_v29  ;;  %692 = vtanh.f32 %v176_v26  ;;  %v208_v26 = vld [vmem:[%s875_s12 + $0x298] sm:$0xff] }
  0x45   : > { %v675_v33 = vpop.eup %674  ;;  %422 = vst [vmem:[%s891_s15 + $0x148] sm:$0xff] %v673_v31  ;;  %694 = vtanh.f32 %v177_v28  ;;  %v209_v28 = vld [vmem:[%s875_s12 + $0x2a0] sm:$0xff] }
  0x46   : > { %v677_v35 = vpop.eup %676  ;;  %423 = vst [vmem:[%s891_s15 + $0x150] sm:$0xff] %v675_v33  ;;  %696 = vtanh.f32 %v178_v30  ;;  %v210_v30 = vld [vmem:[%s875_s12 + $0x2a8] sm:$0xff] }
  0x47   : > { %v679_v37 = vpop.eup %678  ;;  %424 = vst [vmem:[%s891_s15 + $0x158] sm:$0xff] %v677_v35  ;;  %698 = vtanh.f32 %v179_v32  ;;  %v211_v32 = vld [vmem:[%s875_s12 + $0x2b0] sm:$0xff] }
  0x48   : > { %v681_v39 = vpop.eup %680  ;;  %425 = vst [vmem:[%s891_s15 + $0x160] sm:$0xff] %v679_v37  ;;  %700 = vtanh.f32 %v180_v34  ;;  %v212_v34 = vld [vmem:[%s875_s12 + $0x2b8] sm:$0xff] }
  0x49   : > { %v683_v41 = vpop.eup %682  ;;  %426 = vst [vmem:[%s891_s15 + $0x168] sm:$0xff] %v681_v39  ;;  %702 = vtanh.f32 %v181_v36  ;;  %v213_v36 = vld [vmem:[%s875_s12 + $0x2c0] sm:$0xff] }
  0x4a   : > { %v685_v43 = vpop.eup %684  ;;  %427 = vst [vmem:[%s891_s15 + $0x170] sm:$0xff] %v683_v41  ;;  %704 = vtanh.f32 %v182_v38  ;;  %v214_v38 = vld [vmem:[%s875_s12 + $0x2c8] sm:$0xff] }
  0x4b   : > { %v687_v45 = vpop.eup %686  ;;  %428 = vst [vmem:[%s891_s15 + $0x178] sm:$0xff] %v685_v43  ;;  %706 = vtanh.f32 %v183_v40  ;;  %v215_v40 = vld [vmem:[%s875_s12 + $0x2d0] sm:$0xff] }
  0x4c   : > { %v689_v47 = vpop.eup %688  ;;  %429 = vst [vmem:[%s891_s15 + $0x180] sm:$0xff] %v687_v45  ;;  %708 = vtanh.f32 %v184_v42  ;;  %v216_v42 = vld [vmem:[%s875_s12 + $0x2d8] sm:$0xff] }
  0x4d   : > { %v691_v49 = vpop.eup %690  ;;  %430 = vst [vmem:[%s891_s15 + $0x188] sm:$0xff] %v689_v47  ;;  %710 = vtanh.f32 %v185_v44  ;;  %v217_v44 = vld [vmem:[%s875_s12 + $0x2e0] sm:$0xff] }
  0x4e   : > { %v693_v51 = vpop.eup %692  ;;  %431 = vst [vmem:[%s891_s15 + $0x190] sm:$0xff] %v691_v49  ;;  %712 = vtanh.f32 %v186_v46  ;;  %v218_v46 = vld [vmem:[%s875_s12 + $0x2e8] sm:$0xff] }
  0x4f   : > { %v695_v53 = vpop.eup %694  ;;  %432 = vst [vmem:[%s891_s15 + $0x198] sm:$0xff] %v693_v51  ;;  %714 = vtanh.f32 %v187_v48  ;;  %v219_v48 = vld [vmem:[%s875_s12 + $0x2f0] sm:$0xff] }
  0x50   : > { %v697_v55 = vpop.eup %696  ;;  %433 = vst [vmem:[%s891_s15 + $0x1a0] sm:$0xff] %v695_v53  ;;  %716 = vtanh.f32 %v188_v50  ;;  %v220_v50 = vld [vmem:[%s875_s12 + $0x2f8] sm:$0xff] }
  0x51   : > { %v699_v57 = vpop.eup %698  ;;  %434 = vst [vmem:[%s891_s15 + $0x1a8] sm:$0xff] %v697_v55  ;;  %718 = vtanh.f32 %v189_v52  ;;  %v221_v52 = vld [vmem:[%s875_s12 + $0x300] sm:$0xff] }
  0x52   : > { %v701_v59 = vpop.eup %700  ;;  %435 = vst [vmem:[%s891_s15 + $0x1b0] sm:$0xff] %v699_v57  ;;  %720 = vtanh.f32 %v190_v54  ;;  %v222_v54 = vld [vmem:[%s875_s12 + $0x308] sm:$0xff] }
  0x53   : > { %v703_v61 = vpop.eup %702  ;;  %436 = vst [vmem:[%s891_s15 + $0x1b8] sm:$0xff] %v701_v59  ;;  %722 = vtanh.f32 %v191_v56  ;;  %v223_v56 = vld [vmem:[%s875_s12 + $0x310] sm:$0xff] }
  0x54   : > { %v705_v63 = vpop.eup %704  ;;  %437 = vst [vmem:[%s891_s15 + $0x1c0] sm:$0xff] %v703_v61  ;;  %724 = vtanh.f32 %v192_v58  ;;  %v224_v58 = vld [vmem:[%s875_s12 + $0x318] sm:$0xff] }
  0x55   : > { %v707_v1 = vpop.eup %706  ;;  %438 = vst [vmem:[%s891_s15 + $0x1c8] sm:$0xff] %v705_v63  ;;  %726 = vtanh.f32 %v193_v60  ;;  %v225_v60 = vld [vmem:[%s875_s12 + $0x320] sm:$0xff] }
  0x56   : > { %v709_v3 = vpop.eup %708  ;;  %439 = vst [vmem:[%s891_s15 + $0x1d0] sm:$0xff] %v707_v1  ;;  %728 = vtanh.f32 %v194_v62  ;;  %v226_v62 = vld [vmem:[%s875_s12 + $0x328] sm:$0xff] }
  0x57   : > { %v711_v5 = vpop.eup %710  ;;  %440 = vst [vmem:[%s891_s15 + $0x1d8] sm:$0xff] %v709_v3  ;;  %730 = vtanh.f32 %v195_v0  ;;  %v227_v0 = vld [vmem:[%s875_s12 + $0x330] sm:$0xff] }
  0x58   : > { %v713_v7 = vpop.eup %712  ;;  %441 = vst [vmem:[%s891_s15 + $0x1e0] sm:$0xff] %v711_v5  ;;  %732 = vtanh.f32 %v196_v2  ;;  %v228_v2 = vld [vmem:[%s875_s12 + $0x338] sm:$0xff] }
  0x59   : > { %v715_v9 = vpop.eup %714  ;;  %442 = vst [vmem:[%s891_s15 + $0x1e8] sm:$0xff] %v713_v7  ;;  %734 = vtanh.f32 %v197_v4  ;;  %v229_v4 = vld [vmem:[%s875_s12 + $0x340] sm:$0xff] }
  0x5a   : > { %v717_v11 = vpop.eup %716  ;;  %443 = vst [vmem:[%s891_s15 + $0x1f0] sm:$0xff] %v715_v9  ;;  %736 = vtanh.f32 %v198_v6  ;;  %v230_v6 = vld [vmem:[%s875_s12 + $0x348] sm:$0xff] }
  0x5b   : > { %v719_v13 = vpop.eup %718  ;;  %444 = vst [vmem:[%s891_s15 + $0x1f8] sm:$0xff] %v717_v11  ;;  %738 = vtanh.f32 %v199_v8  ;;  %v231_v8 = vld [vmem:[%s875_s12 + $0x350] sm:$0xff] }
  0x5c   : > { %v721_v15 = vpop.eup %720  ;;  %445 = vst [vmem:[%s891_s15 + $0x200] sm:$0xff] %v719_v13  ;;  %740 = vtanh.f32 %v200_v10  ;;  %v232_v10 = vld [vmem:[%s875_s12 + $0x358] sm:$0xff] }
  0x5d   : > { %v723_v17 = vpop.eup %722  ;;  %446 = vst [vmem:[%s891_s15 + $0x208] sm:$0xff] %v721_v15  ;;  %742 = vtanh.f32 %v201_v12  ;;  %v233_v12 = vld [vmem:[%s875_s12 + $0x360] sm:$0xff] }
  0x5e   : > { %v725_v19 = vpop.eup %724  ;;  %447 = vst [vmem:[%s891_s15 + $0x210] sm:$0xff] %v723_v17  ;;  %744 = vtanh.f32 %v202_v14  ;;  %v234_v14 = vld [vmem:[%s875_s12 + $0x368] sm:$0xff] }
  0x5f   : > { %v727_v21 = vpop.eup %726  ;;  %448 = vst [vmem:[%s891_s15 + $0x218] sm:$0xff] %v725_v19  ;;  %746 = vtanh.f32 %v203_v16  ;;  %v235_v16 = vld [vmem:[%s875_s12 + $0x370] sm:$0xff] }
  0x60   : > { %v729_v23 = vpop.eup %728  ;;  %449 = vst [vmem:[%s891_s15 + $0x220] sm:$0xff] %v727_v21  ;;  %748 = vtanh.f32 %v204_v18  ;;  %v236_v18 = vld [vmem:[%s875_s12 + $0x378] sm:$0xff] }
  0x61   : > { %v731_v25 = vpop.eup %730  ;;  %450 = vst [vmem:[%s891_s15 + $0x228] sm:$0xff] %v729_v23  ;;  %750 = vtanh.f32 %v205_v20  ;;  %v237_v20 = vld [vmem:[%s875_s12 + $0x380] sm:$0xff] }
  0x62   : > { %v733_v27 = vpop.eup %732  ;;  %451 = vst [vmem:[%s891_s15 + $0x230] sm:$0xff] %v731_v25  ;;  %752 = vtanh.f32 %v206_v22  ;;  %v238_v22 = vld [vmem:[%s875_s12 + $0x388] sm:$0xff] }
  0x63   : > { %v735_v29 = vpop.eup %734  ;;  %452 = vst [vmem:[%s891_s15 + $0x238] sm:$0xff] %v733_v27  ;;  %754 = vtanh.f32 %v207_v24  ;;  %v239_v24 = vld [vmem:[%s875_s12 + $0x390] sm:$0xff] }
  0x64   : > { %v737_v31 = vpop.eup %736  ;;  %453 = vst [vmem:[%s891_s15 + $0x240] sm:$0xff] %v735_v29  ;;  %756 = vtanh.f32 %v208_v26  ;;  %v240_v26 = vld [vmem:[%s875_s12 + $0x398] sm:$0xff] }
  0x65   : > { %v739_v33 = vpop.eup %738  ;;  %454 = vst [vmem:[%s891_s15 + $0x248] sm:$0xff] %v737_v31  ;;  %758 = vtanh.f32 %v209_v28  ;;  %v241_v28 = vld [vmem:[%s875_s12 + $0x3a0] sm:$0xff] }
  0x66   : > { %v741_v35 = vpop.eup %740  ;;  %455 = vst [vmem:[%s891_s15 + $0x250] sm:$0xff] %v739_v33  ;;  %760 = vtanh.f32 %v210_v30  ;;  %v242_v30 = vld [vmem:[%s875_s12 + $0x3a8] sm:$0xff] }
  0x67   : > { %v743_v37 = vpop.eup %742  ;;  %456 = vst [vmem:[%s891_s15 + $0x258] sm:$0xff] %v741_v35  ;;  %762 = vtanh.f32 %v211_v32  ;;  %v243_v32 = vld [vmem:[%s875_s12 + $0x3b0] sm:$0xff] }
  0x68   : > { %v745_v39 = vpop.eup %744  ;;  %457 = vst [vmem:[%s891_s15 + $0x260] sm:$0xff] %v743_v37  ;;  %764 = vtanh.f32 %v212_v34  ;;  %v244_v34 = vld [vmem:[%s875_s12 + $0x3b8] sm:$0xff] }
  0x69   : > { %v747_v41 = vpop.eup %746  ;;  %458 = vst [vmem:[%s891_s15 + $0x268] sm:$0xff] %v745_v39  ;;  %766 = vtanh.f32 %v213_v36  ;;  %v245_v36 = vld [vmem:[%s875_s12 + $0x3c0] sm:$0xff] }
  0x6a   : > { %v749_v43 = vpop.eup %748  ;;  %459 = vst [vmem:[%s891_s15 + $0x270] sm:$0xff] %v747_v41  ;;  %768 = vtanh.f32 %v214_v38  ;;  %v246_v38 = vld [vmem:[%s875_s12 + $0x3c8] sm:$0xff] }
  0x6b   : > { %v751_v45 = vpop.eup %750  ;;  %460 = vst [vmem:[%s891_s15 + $0x278] sm:$0xff] %v749_v43  ;;  %770 = vtanh.f32 %v215_v40  ;;  %v247_v40 = vld [vmem:[%s875_s12 + $0x3d0] sm:$0xff] }
  0x6c   : > { %v753_v47 = vpop.eup %752  ;;  %461 = vst [vmem:[%s891_s15 + $0x280] sm:$0xff] %v751_v45  ;;  %772 = vtanh.f32 %v216_v42  ;;  %v248_v42 = vld [vmem:[%s875_s12 + $0x3d8] sm:$0xff] }
  0x6d   : > { %v755_v49 = vpop.eup %754  ;;  %462 = vst [vmem:[%s891_s15 + $0x288] sm:$0xff] %v753_v47  ;;  %774 = vtanh.f32 %v217_v44  ;;  %v249_v44 = vld [vmem:[%s875_s12 + $0x3e0] sm:$0xff] }
  0x6e   : > { %v757_v51 = vpop.eup %756  ;;  %463 = vst [vmem:[%s891_s15 + $0x290] sm:$0xff] %v755_v49  ;;  %776 = vtanh.f32 %v218_v46  ;;  %v250_v46 = vld [vmem:[%s875_s12 + $0x3e8] sm:$0xff] }
  0x6f   : > { %v759_v53 = vpop.eup %758  ;;  %464 = vst [vmem:[%s891_s15 + $0x298] sm:$0xff] %v757_v51  ;;  %778 = vtanh.f32 %v219_v48  ;;  %v251_v48 = vld [vmem:[%s875_s12 + $0x3f0] sm:$0xff] }
  0x70   : > { %v761_v55 = vpop.eup %760  ;;  %465 = vst [vmem:[%s891_s15 + $0x2a0] sm:$0xff] %v759_v53  ;;  %780 = vtanh.f32 %v220_v50  ;;  %v252_v50 = vld [vmem:[%s875_s12 + $0x3f8] sm:$0xff] }
  0x71   : > { %v763_v57 = vpop.eup %762  ;;  %466 = vst [vmem:[%s891_s15 + $0x2a8] sm:$0xff] %v761_v55  ;;  %782 = vtanh.f32 %v221_v52 }
  0x72   : > { %v765_v59 = vpop.eup %764  ;;  %467 = vst [vmem:[%s891_s15 + $0x2b0] sm:$0xff] %v763_v57  ;;  %784 = vtanh.f32 %v222_v54 }
  0x73   : > { %v767_v61 = vpop.eup %766  ;;  %468 = vst [vmem:[%s891_s15 + $0x2b8] sm:$0xff] %v765_v59  ;;  %786 = vtanh.f32 %v223_v56 }
  0x74   : > { %v769_v63 = vpop.eup %768  ;;  %469 = vst [vmem:[%s891_s15 + $0x2c0] sm:$0xff] %v767_v61  ;;  %788 = vtanh.f32 %v224_v58 }
  0x75   : > { %v771_v1 = vpop.eup %770  ;;  %470 = vst [vmem:[%s891_s15 + $0x2c8] sm:$0xff] %v769_v63  ;;  %790 = vtanh.f32 %v225_v60 }
  0x76   : > { %v773_v3 = vpop.eup %772  ;;  %471 = vst [vmem:[%s891_s15 + $0x2d0] sm:$0xff] %v771_v1  ;;  %792 = vtanh.f32 %v226_v62 }
  0x77   : > { %v775_v5 = vpop.eup %774  ;;  %472 = vst [vmem:[%s891_s15 + $0x2d8] sm:$0xff] %v773_v3  ;;  %794 = vtanh.f32 %v227_v0 }
  0x78   : > { %v777_v7 = vpop.eup %776  ;;  %473 = vst [vmem:[%s891_s15 + $0x2e0] sm:$0xff] %v775_v5  ;;  %796 = vtanh.f32 %v228_v2 }
  0x79   : > { %v779_v9 = vpop.eup %778  ;;  %474 = vst [vmem:[%s891_s15 + $0x2e8] sm:$0xff] %v777_v7  ;;  %798 = vtanh.f32 %v229_v4 }
  0x7a   : > { %v781_v11 = vpop.eup %780  ;;  %475 = vst [vmem:[%s891_s15 + $0x2f0] sm:$0xff] %v779_v9  ;;  %800 = vtanh.f32 %v230_v6 }
  0x7b   : > { %v783_v13 = vpop.eup %782  ;;  %476 = vst [vmem:[%s891_s15 + $0x2f8] sm:$0xff] %v781_v11  ;;  %802 = vtanh.f32 %v231_v8 }
  0x7c   : > { %v785_v15 = vpop.eup %784  ;;  %477 = vst [vmem:[%s891_s15 + $0x300] sm:$0xff] %v783_v13  ;;  %804 = vtanh.f32 %v232_v10 }
  0x7d   : > { %v787_v17 = vpop.eup %786  ;;  %478 = vst [vmem:[%s891_s15 + $0x308] sm:$0xff] %v785_v15  ;;  %806 = vtanh.f32 %v233_v12 }
  0x7e   : > { %v789_v19 = vpop.eup %788  ;;  %479 = vst [vmem:[%s891_s15 + $0x310] sm:$0xff] %v787_v17  ;;  %808 = vtanh.f32 %v234_v14 }
  0x7f   : > { %v791_v21 = vpop.eup %790  ;;  %480 = vst [vmem:[%s891_s15 + $0x318] sm:$0xff] %v789_v19  ;;  %810 = vtanh.f32 %v235_v16 }
  0x80   : > { %v793_v23 = vpop.eup %792  ;;  %481 = vst [vmem:[%s891_s15 + $0x320] sm:$0xff] %v791_v21  ;;  %812 = vtanh.f32 %v236_v18 }
  0x81   : > { %v795_v25 = vpop.eup %794  ;;  %482 = vst [vmem:[%s891_s15 + $0x328] sm:$0xff] %v793_v23  ;;  %814 = vtanh.f32 %v237_v20 }
  0x82   : > { %v797_v27 = vpop.eup %796  ;;  %483 = vst [vmem:[%s891_s15 + $0x330] sm:$0xff] %v795_v25  ;;  %816 = vtanh.f32 %v238_v22 }
  0x83   : > { %v799_v29 = vpop.eup %798  ;;  %484 = vst [vmem:[%s891_s15 + $0x338] sm:$0xff] %v797_v27  ;;  %818 = vtanh.f32 %v239_v24 }
  0x84   : > { %v801_v31 = vpop.eup %800  ;;  %485 = vst [vmem:[%s891_s15 + $0x340] sm:$0xff] %v799_v29  ;;  %820 = vtanh.f32 %v240_v26 }
  0x85   : > { %v803_v33 = vpop.eup %802  ;;  %486 = vst [vmem:[%s891_s15 + $0x348] sm:$0xff] %v801_v31  ;;  %822 = vtanh.f32 %v241_v28 }
  0x86   : > { %v805_v35 = vpop.eup %804  ;;  %487 = vst [vmem:[%s891_s15 + $0x350] sm:$0xff] %v803_v33  ;;  %824 = vtanh.f32 %v242_v30 }
  0x87   : > { %v807_v37 = vpop.eup %806  ;;  %488 = vst [vmem:[%s891_s15 + $0x358] sm:$0xff] %v805_v35  ;;  %826 = vtanh.f32 %v243_v32 }
  0x88   : > { %v809_v39 = vpop.eup %808  ;;  %489 = vst [vmem:[%s891_s15 + $0x360] sm:$0xff] %v807_v37  ;;  %828 = vtanh.f32 %v244_v34 }
  0x89   : > { %v811_v41 = vpop.eup %810  ;;  %490 = vst [vmem:[%s891_s15 + $0x368] sm:$0xff] %v809_v39  ;;  %830 = vtanh.f32 %v245_v36 }
  0x8a   : > { %v813_v43 = vpop.eup %812  ;;  %491 = vst [vmem:[%s891_s15 + $0x370] sm:$0xff] %v811_v41  ;;  %832 = vtanh.f32 %v246_v38 }
  0x8b   : > { %v815_v45 = vpop.eup %814  ;;  %492 = vst [vmem:[%s891_s15 + $0x378] sm:$0xff] %v813_v43  ;;  %834 = vtanh.f32 %v247_v40 }
  0x8c   : > { %v817_v47 = vpop.eup %816  ;;  %493 = vst [vmem:[%s891_s15 + $0x380] sm:$0xff] %v815_v45  ;;  %836 = vtanh.f32 %v248_v42 }
  0x8d   : > { %v819_v49 = vpop.eup %818  ;;  %494 = vst [vmem:[%s891_s15 + $0x388] sm:$0xff] %v817_v47  ;;  %838 = vtanh.f32 %v249_v44 }
  0x8e   : > { %v821_v51 = vpop.eup %820  ;;  %495 = vst [vmem:[%s891_s15 + $0x390] sm:$0xff] %v819_v49  ;;  %840 = vtanh.f32 %v250_v46 }
  0x8f   : > { %v823_v52 = vpop.eup %822  ;;  %496 = vst [vmem:[%s891_s15 + $0x398] sm:$0xff] %v821_v51  ;;  %842 = vtanh.f32 %v251_v48 }
  0x90   : > { %v825_v53 = vpop.eup %824  ;;  %497 = vst [vmem:[%s891_s15 + $0x3a0] sm:$0xff] %v823_v52  ;;  %844 = vtanh.f32 %v252_v50 }
  0x91   : > { %v827_v54 = vpop.eup %826  ;;  %498 = vst [vmem:[%s891_s15 + $0x3a8] sm:$0xff] %v825_v53 }
  0x92   : > { %v829_v55 = vpop.eup %828  ;;  %499 = vst [vmem:[%s891_s15 + $0x3b0] sm:$0xff] %v827_v54 }
  0x93   : > { %v831_v56 = vpop.eup %830  ;;  %500 = vst [vmem:[%s891_s15 + $0x3b8] sm:$0xff] %v829_v55 }
  0x94   : > { %v833_v57 = vpop.eup %832  ;;  %501 = vst [vmem:[%s891_s15 + $0x3c0] sm:$0xff] %v831_v56 }
  0x95   : > { %v835_v58 = vpop.eup %834  ;;  %502 = vst [vmem:[%s891_s15 + $0x3c8] sm:$0xff] %v833_v57 }
  0x96   : > { %v837_v59 = vpop.eup %836  ;;  %503 = vst [vmem:[%s891_s15 + $0x3d0] sm:$0xff] %v835_v58 }
  0x97   : > { %v839_v60 = vpop.eup %838  ;;  %504 = vst [vmem:[%s891_s15 + $0x3d8] sm:$0xff] %v837_v59 }
  0x98   : > { %v841_v61 = vpop.eup %840  ;;  %505 = vst [vmem:[%s891_s15 + $0x3e0] sm:$0xff] %v839_v60 }
  0x99   : > { %v843_v62 = vpop.eup %842  ;;  %506 = vst [vmem:[%s891_s15 + $0x3e8] sm:$0xff] %v841_v61 }
  0x9a   : > { %v845_v63 = vpop.eup %844  ;;  %507 = vst [vmem:[%s891_s15 + $0x3f0] sm:$0xff] %v843_v62 }
  0x9b   : > { %508 = vst [vmem:[%s891_s15 + $0x3f8] sm:$0xff] %v845_v63 }
  0x9c PF: > { %s11_s6 = sadd.s32 1, %s852_s6  }
  0x9d   : > { %p8_p4 = scmp.ge.s32.totalorder %s11_s6, 5  }
  0x9f   :  { %10 = sbr.rel (!%p8_p4) target bundleno = 1 (0x1), region = 54 }

</bundles_post_ra>
